<compile_context>
chip_gen: v5e
topology: v5e:2x2
jax: 0.10.0
libtpu: 0.0.40
codegen_flags: <defaults>
</compile_context>

<pallas_src>
import jax
import jax.numpy as jnp
from jax.experimental import pallas as pl
from jax.experimental.pallas import tpu as pltpu


def make_double_conv(N, Cin, Cout, H, W, eps=1e-5):
    Hp, Wp = H + 2, W + 2
    M = N * H * W
    inv_M = 1.0 / float(M)

    # TODO(synk): at real UNet sizes, add a "parallel" grid over N / H
    # row-blocks (halo reads in the index_map) plus a two-phase BN reduction
    # so v7x's second TensorCore is used and tiles fit its 64 MiB VMEM.

    def kernel(x_ref, w1_ref, b1_ref, g1_ref, be1_ref,
               w2_ref, b2_ref, g2_ref, be2_ref,
               out_ref, pin_ref, pmid_ref):
        f32 = jnp.float32

        def pad_into(pad_ref, interior, C):
            # Zero only the 4 halo strips, then write the interior once.
            pad_ref[:, 0:1, :, :] = jnp.zeros((N, 1, Wp, C), f32)
            pad_ref[:, Hp - 1:Hp, :, :] = jnp.zeros((N, 1, Wp, C), f32)
            pad_ref[:, :, 0:1, :] = jnp.zeros((N, Hp, 1, C), f32)
            pad_ref[:, :, Wp - 1:Wp, :] = jnp.zeros((N, Hp, 1, C), f32)
            pad_ref[:, 1:H + 1, 1:W + 1, :] = interior

        def conv3x3(pad_ref, w_ref, Ci):
            # 9 shifted-window MXU matmuls, f32 accumulation.
            acc = jnp.zeros((M, Cout), f32)
            for ky in range(3):
                for kx in range(3):
                    tap = ky * 3 + kx
                    patch = pad_ref[:, ky:ky + H, kx:kx + W, :].reshape(M, Ci)
                    acc = acc + jnp.dot(patch, w_ref[tap],
                                        preferred_element_type=f32)
            return acc

        def bn_relu(acc, g_ref, be_ref):
            # Training-mode batch stats, fused per-channel scale/shift + ReLU.
            mean = jnp.sum(acc, axis=0, keepdims=True) * inv_M
            var = jnp.sum((acc - mean) ** 2, axis=0, keepdims=True) * inv_M
            scale = g_ref[...] * jax.lax.rsqrt(var + eps)
            shift = be_ref[...] - mean * scale
            return jnp.maximum(acc * scale + shift, 0.0)

        # ---- conv1 ----
        pad_into(pin_ref, x_ref[...], Cin)
        acc1 = conv3x3(pin_ref, w1_ref, Cin) + b1_ref[...]
        y1 = bn_relu(acc1, g1_ref, be1_ref)                 # (M, Cout)

        # ---- conv2 ----
        pad_into(pmid_ref, y1.reshape(N, H, W, Cout), Cout)
        acc2 = conv3x3(pmid_ref, w2_ref, Cout) + b2_ref[...]
        y2 = bn_relu(acc2, g2_ref, be2_ref)                 # (M, Cout)

        out_ref[...] = y2.reshape(N, H, W, Cout)

    @jax.jit
    def run(x_nchw, w1, b1, g1, be1, w2, b2, g2, be2):
        # NCHW -> NHWC (channels last = contraction dim for the MXU).
        x = jnp.transpose(x_nchw, (0, 2, 3, 1)).astype(jnp.float32)
        # PyTorch OIHW -> (ky, kx, ci, co) -> (9, ci, co): one (ci, co) weight
        # tile per conv tap, consumed directly by the per-tap matmul.
        w1k = jnp.transpose(w1, (2, 3, 1, 0)).reshape(9, Cin, Cout)
        w2k = jnp.transpose(w2, (2, 3, 1, 0)).reshape(9, Cout, Cout)
        args = (x, w1k,
                b1.reshape(1, Cout), g1.reshape(1, Cout), be1.reshape(1, Cout),
                w2k,
                b2.reshape(1, Cout), g2.reshape(1, Cout), be2.reshape(1, Cout))
        y = pl.pallas_call(
            kernel,
            out_shape=jax.ShapeDtypeStruct((N, H, W, Cout), jnp.float32),
            in_specs=[pl.BlockSpec(memory_space=pltpu.MemorySpace.VMEM)] * 9,
            out_specs=pl.BlockSpec(memory_space=pltpu.MemorySpace.VMEM),
            scratch_shapes=[
                pltpu.VMEM((N, Hp, Wp, Cin), jnp.float32),   # padded conv1 in
                pltpu.VMEM((N, Hp, Wp, Cout), jnp.float32),  # padded conv2 in
            ],
            compiler_params=pltpu.CompilerParams(
                vmem_limit_bytes=32 * 1024 * 1024),
        )(*args)
        # NHWC -> NCHW to match PyTorch output convention.
        return jnp.transpose(y, (0, 3, 1, 2))

    return run


def ref_double_conv(x, w1, b1, g1, be1, w2, b2, g2, be2, eps=1e-5):
    """Plain-JAX reference (NCHW), matching PyTorch training-mode forward."""
    def conv(x, w, b):
        y = jax.lax.conv_general_dilated(
            x, w, window_strides=(1, 1), padding=((1, 1), (1, 1)),
            dimension_numbers=('NCHW', 'OIHW', 'NCHW'))
        return y + b[None, :, None, None]

    def bn(x, g, be):
        mean = jnp.mean(x, axis=(0, 2, 3), keepdims=True)
        var = jnp.mean((x - mean) ** 2, axis=(0, 2, 3), keepdims=True)
        xn = (x - mean) * jax.lax.rsqrt(var + eps)
        return xn * g[None, :, None, None] + be[None, :, None, None]

    y = jax.nn.relu(bn(conv(x, w1, b1), g1, be1))
    y = jax.nn.relu(bn(conv(y, w2, b2), g2, be2))
    return y


if __name__ == "__main__":
    N, Cin, Cout, H, W = 2, 4, 8, 16, 16

    key = jax.random.PRNGKey(0)
    ks = jax.random.split(key, 9)
    # Deterministic synthetic parameters (shapes per nn.Conv2d / nn.BatchNorm2d)
    w1 = 0.1 * jax.random.normal(ks[0], (Cout, Cin, 3, 3), jnp.float32)
    b1 = 0.1 * jax.random.normal(ks[1], (Cout,), jnp.float32)
    g1 = 1.0 + 0.1 * jax.random.normal(ks[2], (Cout,), jnp.float32)
    be1 = 0.1 * jax.random.normal(ks[3], (Cout,), jnp.float32)
    w2 = 0.1 * jax.random.normal(ks[4], (Cout, Cout, 3, 3), jnp.float32)
    b2 = 0.1 * jax.random.normal(ks[5], (Cout,), jnp.float32)
    g2 = 1.0 + 0.1 * jax.random.normal(ks[6], (Cout,), jnp.float32)
    be2 = 0.1 * jax.random.normal(ks[7], (Cout,), jnp.float32)

    x = jax.random.normal(ks[8], (N, Cin, H, W), jnp.float32)

    run = make_double_conv(N, Cin, Cout, H, W)
    out = run(x, w1, b1, g1, be1, w2, b2, g2, be2)
    out = jax.block_until_ready(out)

    assert out.shape == (N, Cout, H, W), out.shape

    ref = ref_double_conv(x, w1, b1, g1, be1, w2, b2, g2, be2)
    err = float(jnp.max(jnp.abs(out - ref)))
    if err > 1e-3:
        raise AssertionError(f"mismatch vs reference: max abs err = {err}")

    print("KERNEL_OK")
</pallas_src>

<mosaic_0001>
module attributes {stable_mosaic.version = 11 : i64} {
  func.func @kernel(%arg0: memref<2x16x16x4xf32, #tpu.memory_space<vmem>>, %arg1: memref<9x4x8xf32, #tpu.memory_space<vmem>>, %arg2: memref<1x8xf32, #tpu.memory_space<vmem>>, %arg3: memref<1x8xf32, #tpu.memory_space<vmem>>, %arg4: memref<1x8xf32, #tpu.memory_space<vmem>>, %arg5: memref<9x8x8xf32, #tpu.memory_space<vmem>>, %arg6: memref<1x8xf32, #tpu.memory_space<vmem>>, %arg7: memref<1x8xf32, #tpu.memory_space<vmem>>, %arg8: memref<1x8xf32, #tpu.memory_space<vmem>>, %arg9: memref<2x16x16x8xf32, #tpu.memory_space<vmem>>, %arg10: memref<2x18x18x4xf32, #tpu.memory_space<vmem>>, %arg11: memref<2x18x18x8xf32, #tpu.memory_space<vmem>>) attributes {dimension_semantics = [], scalar_prefetch = 0 : i64, scratch_operands = 2 : i64, tpu.core_type = #tpu.core_type<tc>} {
    %c0 = arith.constant 0 : index
    %c0_0 = arith.constant 0 : index
    %c0_1 = arith.constant 0 : index
    %c0_2 = arith.constant 0 : index
    %0 = vector.load %arg0[%c0, %c0_0, %c0_1, %c0_2] : memref<2x16x16x4xf32, #tpu.memory_space<vmem>>, vector<2x16x16x4xf32>
    %cst = arith.constant 0.000000e+00 : f32
    %1 = vector.broadcast %cst : f32 to vector<2x1x18x4xf32>
    %c0_3 = arith.constant 0 : index
    %c0_4 = arith.constant 0 : index
    %c0_5 = arith.constant 0 : index
    %c0_6 = arith.constant 0 : index
    %2 = vector.load %arg10[%c0_3, %c0_4, %c0_5, %c0_6] : memref<2x18x18x4xf32, #tpu.memory_space<vmem>>, vector<2x1x18x4xf32>
    tpu.vector_store %arg10[%c0_3, %c0_4, %c0_5, %c0_6], %1 {strides = array<i32>} : memref<2x18x18x4xf32, #tpu.memory_space<vmem>>, vector<2x1x18x4xf32>,
    %cst_7 = arith.constant 0.000000e+00 : f32
    %3 = vector.broadcast %cst_7 : f32 to vector<2x1x18x4xf32>
    %c0_8 = arith.constant 0 : index
    %c17 = arith.constant 17 : index
    %c0_9 = arith.constant 0 : index
    %c0_10 = arith.constant 0 : index
    %4 = vector.load %arg10[%c0_8, %c17, %c0_9, %c0_10] : memref<2x18x18x4xf32, #tpu.memory_space<vmem>>, vector<2x1x18x4xf32>
    tpu.vector_store %arg10[%c0_8, %c17, %c0_9, %c0_10], %3 {strides = array<i32>} : memref<2x18x18x4xf32, #tpu.memory_space<vmem>>, vector<2x1x18x4xf32>,
    %cst_11 = arith.constant 0.000000e+00 : f32
    %5 = vector.broadcast %cst_11 : f32 to vector<2x18x1x4xf32>
    %c0_12 = arith.constant 0 : index
    %c0_13 = arith.constant 0 : index
    %c0_14 = arith.constant 0 : index
    %c0_15 = arith.constant 0 : index
    %6 = vector.load %arg10[%c0_12, %c0_13, %c0_14, %c0_15] : memref<2x18x18x4xf32, #tpu.memory_space<vmem>>, vector<2x18x1x4xf32>
    tpu.vector_store %arg10[%c0_12, %c0_13, %c0_14, %c0_15], %5 {strides = array<i32>} : memref<2x18x18x4xf32, #tpu.memory_space<vmem>>, vector<2x18x1x4xf32>,
    %cst_16 = arith.constant 0.000000e+00 : f32
    %7 = vector.broadcast %cst_16 : f32 to vector<2x18x1x4xf32>
    %c0_17 = arith.constant 0 : index
    %c0_18 = arith.constant 0 : index
    %c17_19 = arith.constant 17 : index
    %c0_20 = arith.constant 0 : index
    %8 = vector.load %arg10[%c0_17, %c0_18, %c17_19, %c0_20] : memref<2x18x18x4xf32, #tpu.memory_space<vmem>>, vector<2x18x1x4xf32>
    tpu.vector_store %arg10[%c0_17, %c0_18, %c17_19, %c0_20], %7 {strides = array<i32>} : memref<2x18x18x4xf32, #tpu.memory_space<vmem>>, vector<2x18x1x4xf32>,
    %c0_21 = arith.constant 0 : index
    %c1 = arith.constant 1 : index
    %c1_22 = arith.constant 1 : index
    %c0_23 = arith.constant 0 : index
    %9 = vector.load %arg10[%c0_21, %c1, %c1_22, %c0_23] : memref<2x18x18x4xf32, #tpu.memory_space<vmem>>, vector<2x16x16x4xf32>
    tpu.vector_store %arg10[%c0_21, %c1, %c1_22, %c0_23], %0 {strides = array<i32>} : memref<2x18x18x4xf32, #tpu.memory_space<vmem>>, vector<2x16x16x4xf32>,
    %cst_24 = arith.constant 0.000000e+00 : f32
    %10 = vector.broadcast %cst_24 : f32 to vector<512x8xf32>
    %c0_25 = arith.constant 0 : index
    %c0_26 = arith.constant 0 : index
    %c0_27 = arith.constant 0 : index
    %c0_28 = arith.constant 0 : index
    %11 = vector.load %arg10[%c0_25, %c0_26, %c0_27, %c0_28] : memref<2x18x18x4xf32, #tpu.memory_space<vmem>>, vector<2x16x16x4xf32>
    %12 = vector.shape_cast %11 : vector<2x16x16x4xf32> to vector<512x4xf32>
    %c0_29 = arith.constant 0 : index
    %c0_30 = arith.constant 0 : index
    %c0_31 = arith.constant 0 : index
    %13 = vector.load %arg1[%c0_29, %c0_30, %c0_31] : memref<9x4x8xf32, #tpu.memory_space<vmem>>, vector<1x4x8xf32>
    %14 = vector.shape_cast %13 : vector<1x4x8xf32> to vector<4x8xf32>
    %cst_32 = arith.constant dense<0.000000e+00> : vector<512x8xf32>
    %15 = tpu.matmul %12, %14, %cst_32 {dimension_numbers = #tpu.dot_dimension_numbers<[1], [0], [0], [1], [0, 0, 1, 1], [], []>} : vector<512x4xf32>, vector<4x8xf32>, vector<512x8xf32> -> vector<512x8xf32>
    %16 = arith.addf %10, %15 : vector<512x8xf32>
    %c0_33 = arith.constant 0 : index
    %c0_34 = arith.constant 0 : index
    %c1_35 = arith.constant 1 : index
    %c0_36 = arith.constant 0 : index
    %17 = vector.load %arg10[%c0_33, %c0_34, %c1_35, %c0_36] : memref<2x18x18x4xf32, #tpu.memory_space<vmem>>, vector<2x16x16x4xf32>
    %18 = vector.shape_cast %17 : vector<2x16x16x4xf32> to vector<512x4xf32>
    %c1_37 = arith.constant 1 : index
    %c0_38 = arith.constant 0 : index
    %c0_39 = arith.constant 0 : index
    %19 = vector.load %arg1[%c1_37, %c0_38, %c0_39] : memref<9x4x8xf32, #tpu.memory_space<vmem>>, vector<1x4x8xf32>
    %20 = vector.shape_cast %19 : vector<1x4x8xf32> to vector<4x8xf32>
    %cst_40 = arith.constant dense<0.000000e+00> : vector<512x8xf32>
    %21 = tpu.matmul %18, %20, %cst_40 {dimension_numbers = #tpu.dot_dimension_numbers<[1], [0], [0], [1], [0, 0, 1, 1], [], []>} : vector<512x4xf32>, vector<4x8xf32>, vector<512x8xf32> -> vector<512x8xf32>
    %22 = arith.addf %16, %21 : vector<512x8xf32>
    %c0_41 = arith.constant 0 : index
    %c0_42 = arith.constant 0 : index
    %c2 = arith.constant 2 : index
    %c0_43 = arith.constant 0 : index
    %23 = vector.load %arg10[%c0_41, %c0_42, %c2, %c0_43] : memref<2x18x18x4xf32, #tpu.memory_space<vmem>>, vector<2x16x16x4xf32>
    %24 = vector.shape_cast %23 : vector<2x16x16x4xf32> to vector<512x4xf32>
    %c2_44 = arith.constant 2 : index
    %c0_45 = arith.constant 0 : index
    %c0_46 = arith.constant 0 : index
    %25 = vector.load %arg1[%c2_44, %c0_45, %c0_46] : memref<9x4x8xf32, #tpu.memory_space<vmem>>, vector<1x4x8xf32>
    %26 = vector.shape_cast %25 : vector<1x4x8xf32> to vector<4x8xf32>
    %cst_47 = arith.constant dense<0.000000e+00> : vector<512x8xf32>
    %27 = tpu.matmul %24, %26, %cst_47 {dimension_numbers = #tpu.dot_dimension_numbers<[1], [0], [0], [1], [0, 0, 1, 1], [], []>} : vector<512x4xf32>, vector<4x8xf32>, vector<512x8xf32> -> vector<512x8xf32>
    %28 = arith.addf %22, %27 : vector<512x8xf32>
    %c0_48 = arith.constant 0 : index
    %c1_49 = arith.constant 1 : index
    %c0_50 = arith.constant 0 : index
    %c0_51 = arith.constant 0 : index
    %29 = vector.load %arg10[%c0_48, %c1_49, %c0_50, %c0_51] : memref<2x18x18x4xf32, #tpu.memory_space<vmem>>, vector<2x16x16x4xf32>
    %30 = vector.shape_cast %29 : vector<2x16x16x4xf32> to vector<512x4xf32>
    %c3 = arith.constant 3 : index
    %c0_52 = arith.constant 0 : index
    %c0_53 = arith.constant 0 : index
    %31 = vector.load %arg1[%c3, %c0_52, %c0_53] : memref<9x4x8xf32, #tpu.memory_space<vmem>>, vector<1x4x8xf32>
    %32 = vector.shape_cast %31 : vector<1x4x8xf32> to vector<4x8xf32>
    %cst_54 = arith.constant dense<0.000000e+00> : vector<512x8xf32>
    %33 = tpu.matmul %30, %32, %cst_54 {dimension_numbers = #tpu.dot_dimension_numbers<[1], [0], [0], [1], [0, 0, 1, 1], [], []>} : vector<512x4xf32>, vector<4x8xf32>, vector<512x8xf32> -> vector<512x8xf32>
    %34 = arith.addf %28, %33 : vector<512x8xf32>
    %c0_55 = arith.constant 0 : index
    %c1_56 = arith.constant 1 : index
    %c1_57 = arith.constant 1 : index
    %c0_58 = arith.constant 0 : index
    %35 = vector.load %arg10[%c0_55, %c1_56, %c1_57, %c0_58] : memref<2x18x18x4xf32, #tpu.memory_space<vmem>>, vector<2x16x16x4xf32>
    %36 = vector.shape_cast %35 : vector<2x16x16x4xf32> to vector<512x4xf32>
    %c4 = arith.constant 4 : index
    %c0_59 = arith.constant 0 : index
    %c0_60 = arith.constant 0 : index
    %37 = vector.load %arg1[%c4, %c0_59, %c0_60] : memref<9x4x8xf32, #tpu.memory_space<vmem>>, vector<1x4x8xf32>
    %38 = vector.shape_cast %37 : vector<1x4x8xf32> to vector<4x8xf32>
    %cst_61 = arith.constant dense<0.000000e+00> : vector<512x8xf32>
    %39 = tpu.matmul %36, %38, %cst_61 {dimension_numbers = #tpu.dot_dimension_numbers<[1], [0], [0], [1], [0, 0, 1, 1], [], []>} : vector<512x4xf32>, vector<4x8xf32>, vector<512x8xf32> -> vector<512x8xf32>
    %40 = arith.addf %34, %39 : vector<512x8xf32>
    %c0_62 = arith.constant 0 : index
    %c1_63 = arith.constant 1 : index
    %c2_64 = arith.constant 2 : index
    %c0_65 = arith.constant 0 : index
    %41 = vector.load %arg10[%c0_62, %c1_63, %c2_64, %c0_65] : memref<2x18x18x4xf32, #tpu.memory_space<vmem>>, vector<2x16x16x4xf32>
    %42 = vector.shape_cast %41 : vector<2x16x16x4xf32> to vector<512x4xf32>
    %c5 = arith.constant 5 : index
    %c0_66 = arith.constant 0 : index
    %c0_67 = arith.constant 0 : index
    %43 = vector.load %arg1[%c5, %c0_66, %c0_67] : memref<9x4x8xf32, #tpu.memory_space<vmem>>, vector<1x4x8xf32>
    %44 = vector.shape_cast %43 : vector<1x4x8xf32> to vector<4x8xf32>
    %cst_68 = arith.constant dense<0.000000e+00> : vector<512x8xf32>
    %45 = tpu.matmul %42, %44, %cst_68 {dimension_numbers = #tpu.dot_dimension_numbers<[1], [0], [0], [1], [0, 0, 1, 1], [], []>} : vector<512x4xf32>, vector<4x8xf32>, vector<512x8xf32> -> vector<512x8xf32>
    %46 = arith.addf %40, %45 : vector<512x8xf32>
    %c0_69 = arith.constant 0 : index
    %c2_70 = arith.constant 2 : index
    %c0_71 = arith.constant 0 : index
    %c0_72 = arith.constant 0 : index
    %47 = vector.load %arg10[%c0_69, %c2_70, %c0_71, %c0_72] : memref<2x18x18x4xf32, #tpu.memory_space<vmem>>, vector<2x16x16x4xf32>
    %48 = vector.shape_cast %47 : vector<2x16x16x4xf32> to vector<512x4xf32>
    %c6 = arith.constant 6 : index
    %c0_73 = arith.constant 0 : index
    %c0_74 = arith.constant 0 : index
    %49 = vector.load %arg1[%c6, %c0_73, %c0_74] : memref<9x4x8xf32, #tpu.memory_space<vmem>>, vector<1x4x8xf32>
    %50 = vector.shape_cast %49 : vector<1x4x8xf32> to vector<4x8xf32>
    %cst_75 = arith.constant dense<0.000000e+00> : vector<512x8xf32>
    %51 = tpu.matmul %48, %50, %cst_75 {dimension_numbers = #tpu.dot_dimension_numbers<[1], [0], [0], [1], [0, 0, 1, 1], [], []>} : vector<512x4xf32>, vector<4x8xf32>, vector<512x8xf32> -> vector<512x8xf32>
    %52 = arith.addf %46, %51 : vector<512x8xf32>
    %c0_76 = arith.constant 0 : index
    %c2_77 = arith.constant 2 : index
    %c1_78 = arith.constant 1 : index
    %c0_79 = arith.constant 0 : index
    %53 = vector.load %arg10[%c0_76, %c2_77, %c1_78, %c0_79] : memref<2x18x18x4xf32, #tpu.memory_space<vmem>>, vector<2x16x16x4xf32>
    %54 = vector.shape_cast %53 : vector<2x16x16x4xf32> to vector<512x4xf32>
    %c7 = arith.constant 7 : index
    %c0_80 = arith.constant 0 : index
    %c0_81 = arith.constant 0 : index
    %55 = vector.load %arg1[%c7, %c0_80, %c0_81] : memref<9x4x8xf32, #tpu.memory_space<vmem>>, vector<1x4x8xf32>
    %56 = vector.shape_cast %55 : vector<1x4x8xf32> to vector<4x8xf32>
    %cst_82 = arith.constant dense<0.000000e+00> : vector<512x8xf32>
    %57 = tpu.matmul %54, %56, %cst_82 {dimension_numbers = #tpu.dot_dimension_numbers<[1], [0], [0], [1], [0, 0, 1, 1], [], []>} : vector<512x4xf32>, vector<4x8xf32>, vector<512x8xf32> -> vector<512x8xf32>
    %58 = arith.addf %52, %57 : vector<512x8xf32>
    %c0_83 = arith.constant 0 : index
    %c2_84 = arith.constant 2 : index
    %c2_85 = arith.constant 2 : index
    %c0_86 = arith.constant 0 : index
    %59 = vector.load %arg10[%c0_83, %c2_84, %c2_85, %c0_86] : memref<2x18x18x4xf32, #tpu.memory_space<vmem>>, vector<2x16x16x4xf32>
    %60 = vector.shape_cast %59 : vector<2x16x16x4xf32> to vector<512x4xf32>
    %c8 = arith.constant 8 : index
    %c0_87 = arith.constant 0 : index
    %c0_88 = arith.constant 0 : index
    %61 = vector.load %arg1[%c8, %c0_87, %c0_88] : memref<9x4x8xf32, #tpu.memory_space<vmem>>, vector<1x4x8xf32>
    %62 = vector.shape_cast %61 : vector<1x4x8xf32> to vector<4x8xf32>
    %cst_89 = arith.constant dense<0.000000e+00> : vector<512x8xf32>
    %63 = tpu.matmul %60, %62, %cst_89 {dimension_numbers = #tpu.dot_dimension_numbers<[1], [0], [0], [1], [0, 0, 1, 1], [], []>} : vector<512x4xf32>, vector<4x8xf32>, vector<512x8xf32> -> vector<512x8xf32>
    %64 = arith.addf %58, %63 : vector<512x8xf32>
    %c0_90 = arith.constant 0 : index
    %c0_91 = arith.constant 0 : index
    %65 = vector.load %arg2[%c0_90, %c0_91] : memref<1x8xf32, #tpu.memory_space<vmem>>, vector<1x8xf32>
    %66 = vector.broadcast %65 : vector<1x8xf32> to vector<512x8xf32>
    %67 = arith.addf %64, %66 : vector<512x8xf32>
    %cst_92 = arith.constant dense<0.000000e+00> : vector<8xf32>
    %68 = vector.multi_reduction <add>, %67, %cst_92 [0] : vector<512x8xf32> to vector<8xf32>
    %69 = vector.shape_cast %68 : vector<8xf32> to vector<1x8xf32>
    %cst_93 = arith.constant 0.001953125 : f32
    %70 = vector.broadcast %cst_93 : f32 to vector<1x8xf32>
    %71 = arith.mulf %69, %70 : vector<1x8xf32>
    %72 = vector.broadcast %71 : vector<1x8xf32> to vector<512x8xf32>
    %73 = arith.subf %67, %72 : vector<512x8xf32>
    %74 = arith.mulf %73, %73 : vector<512x8xf32>
    %cst_94 = arith.constant dense<0.000000e+00> : vector<8xf32>
    %75 = vector.multi_reduction <add>, %74, %cst_94 [0] : vector<512x8xf32> to vector<8xf32>
    %76 = vector.shape_cast %75 : vector<8xf32> to vector<1x8xf32>
    %cst_95 = arith.constant 0.001953125 : f32
    %77 = vector.broadcast %cst_95 : f32 to vector<1x8xf32>
    %78 = arith.mulf %76, %77 : vector<1x8xf32>
    %c0_96 = arith.constant 0 : index
    %c0_97 = arith.constant 0 : index
    %79 = vector.load %arg3[%c0_96, %c0_97] : memref<1x8xf32, #tpu.memory_space<vmem>>, vector<1x8xf32>
    %cst_98 = arith.constant 9.99999974E-6 : f32
    %80 = vector.broadcast %cst_98 : f32 to vector<1x8xf32>
    %81 = arith.addf %78, %80 : vector<1x8xf32>
    %82 = math.rsqrt %81 : vector<1x8xf32>
    %83 = arith.mulf %79, %82 : vector<1x8xf32>
    %c0_99 = arith.constant 0 : index
    %c0_100 = arith.constant 0 : index
    %84 = vector.load %arg4[%c0_99, %c0_100] : memref<1x8xf32, #tpu.memory_space<vmem>>, vector<1x8xf32>
    %85 = arith.mulf %71, %83 : vector<1x8xf32>
    %86 = arith.subf %84, %85 : vector<1x8xf32>
    %87 = vector.broadcast %83 : vector<1x8xf32> to vector<512x8xf32>
    %88 = arith.mulf %67, %87 : vector<512x8xf32>
    %89 = vector.broadcast %86 : vector<1x8xf32> to vector<512x8xf32>
    %90 = arith.addf %88, %89 : vector<512x8xf32>
    %cst_101 = arith.constant 0.000000e+00 : f32
    %91 = vector.broadcast %cst_101 : f32 to vector<512x8xf32>
    %92 = arith.maximumf %90, %91 : vector<512x8xf32>
    %93 = vector.shape_cast %92 : vector<512x8xf32> to vector<2x16x16x8xf32>
    %cst_102 = arith.constant 0.000000e+00 : f32
    %94 = vector.broadcast %cst_102 : f32 to vector<2x1x18x8xf32>
    %c0_103 = arith.constant 0 : index
    %c0_104 = arith.constant 0 : index
    %c0_105 = arith.constant 0 : index
    %c0_106 = arith.constant 0 : index
    %95 = vector.load %arg11[%c0_103, %c0_104, %c0_105, %c0_106] : memref<2x18x18x8xf32, #tpu.memory_space<vmem>>, vector<2x1x18x8xf32>
    tpu.vector_store %arg11[%c0_103, %c0_104, %c0_105, %c0_106], %94 {strides = array<i32>} : memref<2x18x18x8xf32, #tpu.memory_space<vmem>>, vector<2x1x18x8xf32>,
    %cst_107 = arith.constant 0.000000e+00 : f32
    %96 = vector.broadcast %cst_107 : f32 to vector<2x1x18x8xf32>
    %c0_108 = arith.constant 0 : index
    %c17_109 = arith.constant 17 : index
    %c0_110 = arith.constant 0 : index
    %c0_111 = arith.constant 0 : index
    %97 = vector.load %arg11[%c0_108, %c17_109, %c0_110, %c0_111] : memref<2x18x18x8xf32, #tpu.memory_space<vmem>>, vector<2x1x18x8xf32>
    tpu.vector_store %arg11[%c0_108, %c17_109, %c0_110, %c0_111], %96 {strides = array<i32>} : memref<2x18x18x8xf32, #tpu.memory_space<vmem>>, vector<2x1x18x8xf32>,
    %cst_112 = arith.constant 0.000000e+00 : f32
    %98 = vector.broadcast %cst_112 : f32 to vector<2x18x1x8xf32>
    %c0_113 = arith.constant 0 : index
    %c0_114 = arith.constant 0 : index
    %c0_115 = arith.constant 0 : index
    %c0_116 = arith.constant 0 : index
    %99 = vector.load %arg11[%c0_113, %c0_114, %c0_115, %c0_116] : memref<2x18x18x8xf32, #tpu.memory_space<vmem>>, vector<2x18x1x8xf32>
    tpu.vector_store %arg11[%c0_113, %c0_114, %c0_115, %c0_116], %98 {strides = array<i32>} : memref<2x18x18x8xf32, #tpu.memory_space<vmem>>, vector<2x18x1x8xf32>,
    %cst_117 = arith.constant 0.000000e+00 : f32
    %100 = vector.broadcast %cst_117 : f32 to vector<2x18x1x8xf32>
    %c0_118 = arith.constant 0 : index
    %c0_119 = arith.constant 0 : index
    %c17_120 = arith.constant 17 : index
    %c0_121 = arith.constant 0 : index
    %101 = vector.load %arg11[%c0_118, %c0_119, %c17_120, %c0_121] : memref<2x18x18x8xf32, #tpu.memory_space<vmem>>, vector<2x18x1x8xf32>
    tpu.vector_store %arg11[%c0_118, %c0_119, %c17_120, %c0_121], %100 {strides = array<i32>} : memref<2x18x18x8xf32, #tpu.memory_space<vmem>>, vector<2x18x1x8xf32>,
    %c0_122 = arith.constant 0 : index
    %c1_123 = arith.constant 1 : index
    %c1_124 = arith.constant 1 : index
    %c0_125 = arith.constant 0 : index
    %102 = vector.load %arg11[%c0_122, %c1_123, %c1_124, %c0_125] : memref<2x18x18x8xf32, #tpu.memory_space<vmem>>, vector<2x16x16x8xf32>
    tpu.vector_store %arg11[%c0_122, %c1_123, %c1_124, %c0_125], %93 {strides = array<i32>} : memref<2x18x18x8xf32, #tpu.memory_space<vmem>>, vector<2x16x16x8xf32>,
    %cst_126 = arith.constant 0.000000e+00 : f32
    %103 = vector.broadcast %cst_126 : f32 to vector<512x8xf32>
    %c0_127 = arith.constant 0 : index
    %c0_128 = arith.constant 0 : index
    %c0_129 = arith.constant 0 : index
    %c0_130 = arith.constant 0 : index
    %104 = vector.load %arg11[%c0_127, %c0_128, %c0_129, %c0_130] : memref<2x18x18x8xf32, #tpu.memory_space<vmem>>, vector<2x16x16x8xf32>
    %105 = vector.shape_cast %104 : vector<2x16x16x8xf32> to vector<512x8xf32>
    %c0_131 = arith.constant 0 : index
    %c0_132 = arith.constant 0 : index
    %c0_133 = arith.constant 0 : index
    %106 = vector.load %arg5[%c0_131, %c0_132, %c0_133] : memref<9x8x8xf32, #tpu.memory_space<vmem>>, vector<1x8x8xf32>
    %107 = vector.shape_cast %106 : vector<1x8x8xf32> to vector<8x8xf32>
    %cst_134 = arith.constant dense<0.000000e+00> : vector<512x8xf32>
    %108 = tpu.matmul %105, %107, %cst_134 {dimension_numbers = #tpu.dot_dimension_numbers<[1], [0], [0], [1], [0, 0, 1, 1], [], []>} : vector<512x8xf32>, vector<8x8xf32>, vector<512x8xf32> -> vector<512x8xf32>
    %109 = arith.addf %103, %108 : vector<512x8xf32>
    %c0_135 = arith.constant 0 : index
    %c0_136 = arith.constant 0 : index
    %c1_137 = arith.constant 1 : index
    %c0_138 = arith.constant 0 : index
    %110 = vector.load %arg11[%c0_135, %c0_136, %c1_137, %c0_138] : memref<2x18x18x8xf32, #tpu.memory_space<vmem>>, vector<2x16x16x8xf32>
    %111 = vector.shape_cast %110 : vector<2x16x16x8xf32> to vector<512x8xf32>
    %c1_139 = arith.constant 1 : index
    %c0_140 = arith.constant 0 : index
    %c0_141 = arith.constant 0 : index
    %112 = vector.load %arg5[%c1_139, %c0_140, %c0_141] : memref<9x8x8xf32, #tpu.memory_space<vmem>>, vector<1x8x8xf32>
    %113 = vector.shape_cast %112 : vector<1x8x8xf32> to vector<8x8xf32>
    %cst_142 = arith.constant dense<0.000000e+00> : vector<512x8xf32>
    %114 = tpu.matmul %111, %113, %cst_142 {dimension_numbers = #tpu.dot_dimension_numbers<[1], [0], [0], [1], [0, 0, 1, 1], [], []>} : vector<512x8xf32>, vector<8x8xf32>, vector<512x8xf32> -> vector<512x8xf32>
    %115 = arith.addf %109, %114 : vector<512x8xf32>
    %c0_143 = arith.constant 0 : index
    %c0_144 = arith.constant 0 : index
    %c2_145 = arith.constant 2 : index
    %c0_146 = arith.constant 0 : index
    %116 = vector.load %arg11[%c0_143, %c0_144, %c2_145, %c0_146] : memref<2x18x18x8xf32, #tpu.memory_space<vmem>>, vector<2x16x16x8xf32>
    %117 = vector.shape_cast %116 : vector<2x16x16x8xf32> to vector<512x8xf32>
    %c2_147 = arith.constant 2 : index
    %c0_148 = arith.constant 0 : index
    %c0_149 = arith.constant 0 : index
    %118 = vector.load %arg5[%c2_147, %c0_148, %c0_149] : memref<9x8x8xf32, #tpu.memory_space<vmem>>, vector<1x8x8xf32>
    %119 = vector.shape_cast %118 : vector<1x8x8xf32> to vector<8x8xf32>
    %cst_150 = arith.constant dense<0.000000e+00> : vector<512x8xf32>
    %120 = tpu.matmul %117, %119, %cst_150 {dimension_numbers = #tpu.dot_dimension_numbers<[1], [0], [0], [1], [0, 0, 1, 1], [], []>} : vector<512x8xf32>, vector<8x8xf32>, vector<512x8xf32> -> vector<512x8xf32>
    %121 = arith.addf %115, %120 : vector<512x8xf32>
    %c0_151 = arith.constant 0 : index
    %c1_152 = arith.constant 1 : index
    %c0_153 = arith.constant 0 : index
    %c0_154 = arith.constant 0 : index
    %122 = vector.load %arg11[%c0_151, %c1_152, %c0_153, %c0_154] : memref<2x18x18x8xf32, #tpu.memory_space<vmem>>, vector<2x16x16x8xf32>
    %123 = vector.shape_cast %122 : vector<2x16x16x8xf32> to vector<512x8xf32>
    %c3_155 = arith.constant 3 : index
    %c0_156 = arith.constant 0 : index
    %c0_157 = arith.constant 0 : index
    %124 = vector.load %arg5[%c3_155, %c0_156, %c0_157] : memref<9x8x8xf32, #tpu.memory_space<vmem>>, vector<1x8x8xf32>
    %125 = vector.shape_cast %124 : vector<1x8x8xf32> to vector<8x8xf32>
    %cst_158 = arith.constant dense<0.000000e+00> : vector<512x8xf32>
    %126 = tpu.matmul %123, %125, %cst_158 {dimension_numbers = #tpu.dot_dimension_numbers<[1], [0], [0], [1], [0, 0, 1, 1], [], []>} : vector<512x8xf32>, vector<8x8xf32>, vector<512x8xf32> -> vector<512x8xf32>
    %127 = arith.addf %121, %126 : vector<512x8xf32>
    %c0_159 = arith.constant 0 : index
    %c1_160 = arith.constant 1 : index
    %c1_161 = arith.constant 1 : index
    %c0_162 = arith.constant 0 : index
    %128 = vector.load %arg11[%c0_159, %c1_160, %c1_161, %c0_162] : memref<2x18x18x8xf32, #tpu.memory_space<vmem>>, vector<2x16x16x8xf32>
    %129 = vector.shape_cast %128 : vector<2x16x16x8xf32> to vector<512x8xf32>
    %c4_163 = arith.constant 4 : index
    %c0_164 = arith.constant 0 : index
    %c0_165 = arith.constant 0 : index
    %130 = vector.load %arg5[%c4_163, %c0_164, %c0_165] : memref<9x8x8xf32, #tpu.memory_space<vmem>>, vector<1x8x8xf32>
    %131 = vector.shape_cast %130 : vector<1x8x8xf32> to vector<8x8xf32>
    %cst_166 = arith.constant dense<0.000000e+00> : vector<512x8xf32>
    %132 = tpu.matmul %129, %131, %cst_166 {dimension_numbers = #tpu.dot_dimension_numbers<[1], [0], [0], [1], [0, 0, 1, 1], [], []>} : vector<512x8xf32>, vector<8x8xf32>, vector<512x8xf32> -> vector<512x8xf32>
    %133 = arith.addf %127, %132 : vector<512x8xf32>
    %c0_167 = arith.constant 0 : index
    %c1_168 = arith.constant 1 : index
    %c2_169 = arith.constant 2 : index
    %c0_170 = arith.constant 0 : index
    %134 = vector.load %arg11[%c0_167, %c1_168, %c2_169, %c0_170] : memref<2x18x18x8xf32, #tpu.memory_space<vmem>>, vector<2x16x16x8xf32>
    %135 = vector.shape_cast %134 : vector<2x16x16x8xf32> to vector<512x8xf32>
    %c5_171 = arith.constant 5 : index
    %c0_172 = arith.constant 0 : index
    %c0_173 = arith.constant 0 : index
    %136 = vector.load %arg5[%c5_171, %c0_172, %c0_173] : memref<9x8x8xf32, #tpu.memory_space<vmem>>, vector<1x8x8xf32>
    %137 = vector.shape_cast %136 : vector<1x8x8xf32> to vector<8x8xf32>
    %cst_174 = arith.constant dense<0.000000e+00> : vector<512x8xf32>
    %138 = tpu.matmul %135, %137, %cst_174 {dimension_numbers = #tpu.dot_dimension_numbers<[1], [0], [0], [1], [0, 0, 1, 1], [], []>} : vector<512x8xf32>, vector<8x8xf32>, vector<512x8xf32> -> vector<512x8xf32>
    %139 = arith.addf %133, %138 : vector<512x8xf32>
    %c0_175 = arith.constant 0 : index
    %c2_176 = arith.constant 2 : index
    %c0_177 = arith.constant 0 : index
    %c0_178 = arith.constant 0 : index
    %140 = vector.load %arg11[%c0_175, %c2_176, %c0_177, %c0_178] : memref<2x18x18x8xf32, #tpu.memory_space<vmem>>, vector<2x16x16x8xf32>
    %141 = vector.shape_cast %140 : vector<2x16x16x8xf32> to vector<512x8xf32>
    %c6_179 = arith.constant 6 : index
    %c0_180 = arith.constant 0 : index
    %c0_181 = arith.constant 0 : index
    %142 = vector.load %arg5[%c6_179, %c0_180, %c0_181] : memref<9x8x8xf32, #tpu.memory_space<vmem>>, vector<1x8x8xf32>
    %143 = vector.shape_cast %142 : vector<1x8x8xf32> to vector<8x8xf32>
    %cst_182 = arith.constant dense<0.000000e+00> : vector<512x8xf32>
    %144 = tpu.matmul %141, %143, %cst_182 {dimension_numbers = #tpu.dot_dimension_numbers<[1], [0], [0], [1], [0, 0, 1, 1], [], []>} : vector<512x8xf32>, vector<8x8xf32>, vector<512x8xf32> -> vector<512x8xf32>
    %145 = arith.addf %139, %144 : vector<512x8xf32>
    %c0_183 = arith.constant 0 : index
    %c2_184 = arith.constant 2 : index
    %c1_185 = arith.constant 1 : index
    %c0_186 = arith.constant 0 : index
    %146 = vector.load %arg11[%c0_183, %c2_184, %c1_185, %c0_186] : memref<2x18x18x8xf32, #tpu.memory_space<vmem>>, vector<2x16x16x8xf32>
    %147 = vector.shape_cast %146 : vector<2x16x16x8xf32> to vector<512x8xf32>
    %c7_187 = arith.constant 7 : index
    %c0_188 = arith.constant 0 : index
    %c0_189 = arith.constant 0 : index
    %148 = vector.load %arg5[%c7_187, %c0_188, %c0_189] : memref<9x8x8xf32, #tpu.memory_space<vmem>>, vector<1x8x8xf32>
    %149 = vector.shape_cast %148 : vector<1x8x8xf32> to vector<8x8xf32>
    %cst_190 = arith.constant dense<0.000000e+00> : vector<512x8xf32>
    %150 = tpu.matmul %147, %149, %cst_190 {dimension_numbers = #tpu.dot_dimension_numbers<[1], [0], [0], [1], [0, 0, 1, 1], [], []>} : vector<512x8xf32>, vector<8x8xf32>, vector<512x8xf32> -> vector<512x8xf32>
    %151 = arith.addf %145, %150 : vector<512x8xf32>
    %c0_191 = arith.constant 0 : index
    %c2_192 = arith.constant 2 : index
    %c2_193 = arith.constant 2 : index
    %c0_194 = arith.constant 0 : index
    %152 = vector.load %arg11[%c0_191, %c2_192, %c2_193, %c0_194] : memref<2x18x18x8xf32, #tpu.memory_space<vmem>>, vector<2x16x16x8xf32>
    %153 = vector.shape_cast %152 : vector<2x16x16x8xf32> to vector<512x8xf32>
    %c8_195 = arith.constant 8 : index
    %c0_196 = arith.constant 0 : index
    %c0_197 = arith.constant 0 : index
    %154 = vector.load %arg5[%c8_195, %c0_196, %c0_197] : memref<9x8x8xf32, #tpu.memory_space<vmem>>, vector<1x8x8xf32>
    %155 = vector.shape_cast %154 : vector<1x8x8xf32> to vector<8x8xf32>
    %cst_198 = arith.constant dense<0.000000e+00> : vector<512x8xf32>
    %156 = tpu.matmul %153, %155, %cst_198 {dimension_numbers = #tpu.dot_dimension_numbers<[1], [0], [0], [1], [0, 0, 1, 1], [], []>} : vector<512x8xf32>, vector<8x8xf32>, vector<512x8xf32> -> vector<512x8xf32>
    %157 = arith.addf %151, %156 : vector<512x8xf32>
    %c0_199 = arith.constant 0 : index
    %c0_200 = arith.constant 0 : index
    %158 = vector.load %arg6[%c0_199, %c0_200] : memref<1x8xf32, #tpu.memory_space<vmem>>, vector<1x8xf32>
    %159 = vector.broadcast %158 : vector<1x8xf32> to vector<512x8xf32>
    %160 = arith.addf %157, %159 : vector<512x8xf32>
    %cst_201 = arith.constant dense<0.000000e+00> : vector<8xf32>
    %161 = vector.multi_reduction <add>, %160, %cst_201 [0] : vector<512x8xf32> to vector<8xf32>
    %162 = vector.shape_cast %161 : vector<8xf32> to vector<1x8xf32>
    %cst_202 = arith.constant 0.001953125 : f32
    %163 = vector.broadcast %cst_202 : f32 to vector<1x8xf32>
    %164 = arith.mulf %162, %163 : vector<1x8xf32>
    %165 = vector.broadcast %164 : vector<1x8xf32> to vector<512x8xf32>
    %166 = arith.subf %160, %165 : vector<512x8xf32>
    %167 = arith.mulf %166, %166 : vector<512x8xf32>
    %cst_203 = arith.constant dense<0.000000e+00> : vector<8xf32>
    %168 = vector.multi_reduction <add>, %167, %cst_203 [0] : vector<512x8xf32> to vector<8xf32>
    %169 = vector.shape_cast %168 : vector<8xf32> to vector<1x8xf32>
    %cst_204 = arith.constant 0.001953125 : f32
    %170 = vector.broadcast %cst_204 : f32 to vector<1x8xf32>
    %171 = arith.mulf %169, %170 : vector<1x8xf32>
    %c0_205 = arith.constant 0 : index
    %c0_206 = arith.constant 0 : index
    %172 = vector.load %arg7[%c0_205, %c0_206] : memref<1x8xf32, #tpu.memory_space<vmem>>, vector<1x8xf32>
    %cst_207 = arith.constant 9.99999974E-6 : f32
    %173 = vector.broadcast %cst_207 : f32 to vector<1x8xf32>
    %174 = arith.addf %171, %173 : vector<1x8xf32>
    %175 = math.rsqrt %174 : vector<1x8xf32>
    %176 = arith.mulf %172, %175 : vector<1x8xf32>
    %c0_208 = arith.constant 0 : index
    %c0_209 = arith.constant 0 : index
    %177 = vector.load %arg8[%c0_208, %c0_209] : memref<1x8xf32, #tpu.memory_space<vmem>>, vector<1x8xf32>
    %178 = arith.mulf %164, %176 : vector<1x8xf32>
    %179 = arith.subf %177, %178 : vector<1x8xf32>
    %180 = vector.broadcast %176 : vector<1x8xf32> to vector<512x8xf32>
    %181 = arith.mulf %160, %180 : vector<512x8xf32>
    %182 = vector.broadcast %179 : vector<1x8xf32> to vector<512x8xf32>
    %183 = arith.addf %181, %182 : vector<512x8xf32>
    %cst_210 = arith.constant 0.000000e+00 : f32
    %184 = vector.broadcast %cst_210 : f32 to vector<512x8xf32>
    %185 = arith.maximumf %183, %184 : vector<512x8xf32>
    %186 = vector.shape_cast %185 : vector<512x8xf32> to vector<2x16x16x8xf32>
    %c0_211 = arith.constant 0 : index
    %c0_212 = arith.constant 0 : index
    %c0_213 = arith.constant 0 : index
    %c0_214 = arith.constant 0 : index
    %187 = vector.load %arg9[%c0_211, %c0_212, %c0_213, %c0_214] : memref<2x16x16x8xf32, #tpu.memory_space<vmem>>, vector<2x16x16x8xf32>
    tpu.vector_store %arg9[%c0_211, %c0_212, %c0_213, %c0_214], %186 {strides = array<i32>} : memref<2x16x16x8xf32, #tpu.memory_space<vmem>>, vector<2x16x16x8xf32>,
    return
  }
}

</mosaic_0001>

<bundles_post_ra>
// kernel: run.1
= control target key start
LH: loop header
LB: loop body
LE: loop exit
PB: predicated region body
PF: predicated region fallthrough
CT: control target
= control target key end

     0   :  { %vm572_vm0 = vcmask 1043456   ;;  %vm96_vm1 = vcmask 31744   ;;  %v18085_v1 = vmov 0.0   ;;  %vm111_vm2 = vcmask 24576   ;;  %s18075_s1 = inlined_call_operand.vmem [shape: f32[9,4,8], index: 1, kind: input, shape index: {}]   ;;  %s18076_s0 = inlined_call_operand.vmem [shape: f32[2,16,16,4], index: 0, kind: input, shape index: {}]   ;;  %s18077_s2 = inlined_call_operand.vmem [shape: f32[1,8], index: 2, kind: input, shape index: {}]   ;;  %s18078_s5 = inlined_call_operand.vmem [shape: f32[9,8,8], index: 5, kind: input, shape index: {}]   ;;  %s18079_s3 = inlined_call_operand.vmem [shape: f32[1,8], index: 3, kind: input, shape index: {}]   ;;  %s18080_s4 = inlined_call_operand.vmem [shape: f32[1,8], index: 4, kind: input, shape index: {}]   ;;  %s18081_s6 = inlined_call_operand.vmem [shape: f32[1,8], index: 6, kind: input, shape index: {}]   ;;  %s18082_s7 = inlined_call_operand.vmem [shape: f32[1,8], index: 7, kind: input, shape index: {}]   ;;  %s18083_s8 = inlined_call_operand.vmem [shape: f32[1,8], index: 8, kind: input, shape index: {}]   ;;  %s18084_s9 = inlined_call_operand.vmem [shape: f32[2,16,16,8], index: 9, kind: output, shape index: {}]  }
   0x1   :  { %v11156_v0 = vld [vmem:[%s18075_s1 + $0x4] sm:$0xf]  ;;  %101 = vst.msk [vmem:[#allocation2 + $0x1b0] sm:$0xff] %vm96_vm1, %v18085_v1  ;;  %v313_v2 = vld [vmem:[%s18075_s1] sm:$0xf]  ;;  %vm99_vm3 = vcmask 25600  }
   0x2   :  { %12333 = vmatpush.msk.msra.mxu2 %vm572_vm0, %v11156_v0  ;;  %102 = vst.msk [vmem:[#allocation2 + $0x1b8] sm:$0xff] %vm96_vm1, %v18085_v1  ;;  %12334 = vmatpush.msk.msra.mxu3 %vm572_vm0, %v313_v2  ;;  %v11287_v3 = vld [vmem:[%s18075_s1 + $0x8] sm:$0xf]  ;;  %v11353_v6 = vld [vmem:[%s18075_s1 + $0xc] sm:$0xf]  ;;  %v64_v12 = vld [vmem:[%s18076_s0 + $0x100] sm:$0xff] }
   0x3   :  { %97 = vst.msk [vmem:[#allocation2] sm:$0xff] %vm96_vm1, %v18085_v1  ;;  %11157 = vmatpush.msk.msra.mxu0 %vm572_vm0, %v11156_v0  ;;  %11222 = vmatpush.msk.msra.mxu1 %vm572_vm0, %v313_v2  ;;  %v11419_v10 = vld [vmem:[%s18075_s1 + $0x10] sm:$0xf]  ;;  %v65_v13 = vld [vmem:[%s18076_s0 + $0x108] sm:$0xff]  ;;  %v32_v15 = vld [vmem:[%s18076_s0] sm:$0xff]  ;;  %vm4996_vm4 = vcmask 64512  }
   0x4   :  { %11288 = vmatpush.msk.msrb.mxu2 %vm572_vm0, %v11287_v3  ;;  %98 = vst.msk [vmem:[#allocation2 + $0x8] sm:$0xff] %vm96_vm1, %v18085_v1  ;;  %11354 = vmatpush.msk.msrb.mxu3 %vm572_vm0, %v11353_v6  ;;  %v66_v17 = vld [vmem:[%s18076_s0 + $0x110] sm:$0xff]  ;;  %v33_v18 = vld [vmem:[%s18076_s0 + $0x8] sm:$0xff]  ;;  %v67_v19 = vld [vmem:[%s18076_s0 + $0x118] sm:$0xff]  ;;  %vm5621_vm8 = vcmask 57344   ;;  %vm5609_vm9 = vcmask 58368  }
   0x5   :  { %105 = vst.msk [vmem:[#allocation2 + $0x198] sm:$0xff] %vm96_vm1, %v18085_v1  ;;  %11420 = vmatpush.msk.msrb.mxu0 %vm572_vm0, %v11419_v10  ;;  %v34_v20 = vld [vmem:[%s18076_s0 + $0x10] sm:$0xff]  ;;  %v68_v21 = vld [vmem:[%s18076_s0 + $0x120] sm:$0xff]  ;;  %v35_v22 = vld [vmem:[%s18076_s0 + $0x18] sm:$0xff] }
   0x6   :  { %106 = vst.msk [vmem:[#allocation2 + $0x1a0] sm:$0xff] %vm96_vm1, %v18085_v1  ;;  %v69_v25 = vld [vmem:[%s18076_s0 + $0x128] sm:$0xff]  ;;  %v36_v28 = vld [vmem:[%s18076_s0 + $0x20] sm:$0xff]  ;;  %v70_v33 = vld [vmem:[%s18076_s0 + $0x130] sm:$0xff] }
   0x7   :  { %108 = vst.msk [vmem:[#allocation2 + $0x348] sm:$0xff] %vm96_vm1, %v18085_v1  ;;  %v37_v34 = vld [vmem:[%s18076_s0 + $0x28] sm:$0xff]  ;;  %v71_v39 = vld [vmem:[%s18076_s0 + $0x138] sm:$0xff]  ;;  %v38_v40 = vld [vmem:[%s18076_s0 + $0x30] sm:$0xff] }
   0x8   :  { %109 = vst.msk [vmem:[#allocation2 + $0x350] sm:$0xff] %vm96_vm1, %v18085_v1  ;;  %v72_v45 = vld [vmem:[%s18076_s0 + $0x140] sm:$0xff]  ;;  %v39_v46 = vld [vmem:[%s18076_s0 + $0x38] sm:$0xff]  ;;  %v73_v51 = vld [vmem:[%s18076_s0 + $0x148] sm:$0xff] }
   0x9   :  { %v346_v4 = vld [vmem:[#allocation2 + $0x1b1] sm:$0xff]  ;;  %130 = vst.msk [vmem:[#allocation2 + $0x1b0] sm:$0x1] %vm111_vm2, %v18085_v1  ;;  %v40_v52 = vld [vmem:[%s18076_s0 + $0x40] sm:$0xff]  ;;  %v41_v58 = vld [vmem:[%s18076_s0 + $0x48] sm:$0xff] }
   0xa   :  { %11190 = vmatmul.msk.f32.vlgmr.msra.gmra.mxu2 %vm96_vm1, %v346_v4  ;;  %112 = vst.msk [vmem:[#allocation2] sm:$0x1] %vm111_vm2, %v18085_v1  ;;  %v282_v7 = vld [vmem:[#allocation2 + $0x1b8] sm:$0xff]  ;;  %v74_v57 = vld [vmem:[%s18076_s0 + $0x150] sm:$0xff]  ;;  %v76_v6 = vld [vmem:[%s18076_s0 + $0x160] sm:$0xff] }
   0xb   :  { %113 = vst.msk [vmem:[#allocation2 + $0x18] sm:$0x1] %vm111_vm2, %v18085_v1  ;;  %v314_v8 = vld [vmem:[#allocation2 + $0x1] sm:$0xff]  ;;  %v75_v63 = vld [vmem:[%s18076_s0 + $0x158] sm:$0xff]  ;;  %v42_v0 = vld [vmem:[%s18076_s0 + $0x50] sm:$0xff] }
   0xc   :  { %114 = vst.msk [vmem:[#allocation2 + $0x30] sm:$0x1] %vm111_vm2, %v18085_v1  ;;  %11158 = vmatmul.msk.f32.vlgmr.msra.gmra.mxu0 %vm96_vm1, %v314_v8  ;;  %v250_v11 = vld [vmem:[#allocation2 + $0x8] sm:$0xff] }
   0xd   :  { %115 = vst.msk [vmem:[#allocation2 + $0x48] sm:$0x1] %vm111_vm2, %v18085_v1 }
   0xe   :  { %116 = vst.msk [vmem:[#allocation2 + $0x60] sm:$0x1] %vm111_vm2, %v18085_v1 }
   0xf   :  { %117 = vst.msk [vmem:[#allocation2 + $0x78] sm:$0x1] %vm111_vm2, %v18085_v1 }
  0x10   :  { %v281_v5 = vld [vmem:[#allocation2 + $0x1b0] sm:$0xff]  ;;  %118 = vst.msk [vmem:[#allocation2 + $0x90] sm:$0x1] %vm111_vm2, %v18085_v1 }
  0x11   :  { %11255 = vmatmul.msk.f32.vlgmr.msra.gmra.mxu3 %vm96_vm1, %v281_v5  ;;  %119 = vst.msk [vmem:[#allocation2 + $0xa8] sm:$0x1] %vm111_vm2, %v18085_v1  ;;  %v249_v9 = vld [vmem:[#allocation2] sm:$0xff] }
  0x12   :  { %120 = vst.msk [vmem:[#allocation2 + $0xc0] sm:$0x1] %vm111_vm2, %v18085_v1  ;;  %11223 = vmatmul.msk.f32.vlgmr.msra.gmra.mxu1 %vm96_vm1, %v249_v9 }
  0x13   :  { %121 = vst.msk [vmem:[#allocation2 + $0xd8] sm:$0x1] %vm111_vm2, %v18085_v1 }
  0x14   :  { %122 = vst.msk [vmem:[#allocation2 + $0xf0] sm:$0x1] %vm111_vm2, %v18085_v1 }
  0x15   :  { %123 = vst.msk [vmem:[#allocation2 + $0x108] sm:$0x1] %vm111_vm2, %v18085_v1 }
  0x16   :  { %124 = vst.msk [vmem:[#allocation2 + $0x120] sm:$0x1] %vm111_vm2, %v18085_v1 }
  0x17   :  { %125 = vst.msk [vmem:[#allocation2 + $0x138] sm:$0x1] %vm111_vm2, %v18085_v1 }
  0x18   :  { %126 = vst.msk [vmem:[#allocation2 + $0x150] sm:$0x1] %vm111_vm2, %v18085_v1 }
  0x19   :  { %127 = vst.msk [vmem:[#allocation2 + $0x168] sm:$0x1] %vm111_vm2, %v18085_v1  ;;  %11256 = vmatmul.msk.f32.gmra.mxu3 %vm96_vm1, %v282_v7  ;;  %v43_v7 = vld [vmem:[%s18076_s0 + $0x58] sm:$0xff] }
  0x1a   :  { %128 = vst.msk [vmem:[#allocation2 + $0x180] sm:$0x1] %vm111_vm2, %v18085_v1  ;;  %11224 = vmatmul.msk.f32.gmra.mxu1 %vm96_vm1, %v250_v11 }
  0x1b   :  { %129 = vst.msk [vmem:[#allocation2 + $0x198] sm:$0x1] %vm111_vm2, %v18085_v1 }
  0x1c   :  { %131 = vst.msk [vmem:[#allocation2 + $0x1c8] sm:$0x1] %vm111_vm2, %v18085_v1 }
  0x1d   :  { %132 = vst.msk [vmem:[#allocation2 + $0x1e0] sm:$0x1] %vm111_vm2, %v18085_v1 }
  0x1e   :  { %133 = vst.msk [vmem:[#allocation2 + $0x1f8] sm:$0x1] %vm111_vm2, %v18085_v1 }
  0x1f   :  { %134 = vst.msk [vmem:[#allocation2 + $0x210] sm:$0x1] %vm111_vm2, %v18085_v1 }
  0x20   :  { %135 = vst.msk [vmem:[#allocation2 + $0x228] sm:$0x1] %vm111_vm2, %v18085_v1 }
  0x21   :  { %136 = vst.msk [vmem:[#allocation2 + $0x240] sm:$0x1] %vm111_vm2, %v18085_v1 }
  0x22   :  { %137 = vst.msk [vmem:[#allocation2 + $0x258] sm:$0x1] %vm111_vm2, %v18085_v1 }
  0x23   :  { %138 = vst.msk [vmem:[#allocation2 + $0x270] sm:$0x1] %vm111_vm2, %v18085_v1 }
  0x24   :  { %139 = vst.msk [vmem:[#allocation2 + $0x288] sm:$0x1] %vm111_vm2, %v18085_v1 }
  0x25   :  { %140 = vst.msk [vmem:[#allocation2 + $0x2a0] sm:$0x1] %vm111_vm2, %v18085_v1 }
  0x26   :  { %141 = vst.msk [vmem:[#allocation2 + $0x2b8] sm:$0x1] %vm111_vm2, %v18085_v1 }
  0x27   :  { %142 = vst.msk [vmem:[#allocation2 + $0x2d0] sm:$0x1] %vm111_vm2, %v18085_v1 }
  0x28   :  { %143 = vst.msk [vmem:[#allocation2 + $0x2e8] sm:$0x1] %vm111_vm2, %v18085_v1 }
  0x29   :  { %144 = vst.msk [vmem:[#allocation2 + $0x300] sm:$0x1] %vm111_vm2, %v18085_v1 }
  0x2a   :  { %145 = vst.msk [vmem:[#allocation2 + $0x318] sm:$0x1] %vm111_vm2, %v18085_v1 }
  0x2b   :  { %146 = vst.msk [vmem:[#allocation2 + $0x330] sm:$0x1] %vm111_vm2, %v18085_v1 }
  0x2c   :  { %147 = vst.msk [vmem:[#allocation2 + $0x348] sm:$0x1] %vm111_vm2, %v18085_v1 }
  0x2d   :  { %149 = vst.msk [vmem:[#allocation2 + $0x29] sm:$0x1] %vm111_vm2, %v18085_v1 }
  0x2e   :  { %150 = vst.msk [vmem:[#allocation2 + $0x41] sm:$0x1] %vm111_vm2, %v18085_v1 }
  0x2f   :  { %151 = vst.msk [vmem:[#allocation2 + $0x59] sm:$0x1] %vm111_vm2, %v18085_v1 }
  0x30   :  { %152 = vst.msk [vmem:[#allocation2 + $0x71] sm:$0x1] %vm111_vm2, %v18085_v1 }
  0x31   :  { %153 = vst.msk [vmem:[#allocation2 + $0x89] sm:$0x1] %vm111_vm2, %v18085_v1 }
  0x32   :  { %154 = vst.msk [vmem:[#allocation2 + $0xa1] sm:$0x1] %vm111_vm2, %v18085_v1 }
  0x33   :  { %155 = vst.msk [vmem:[#allocation2 + $0xb9] sm:$0x1] %vm111_vm2, %v18085_v1 }
  0x34   :  { %156 = vst.msk [vmem:[#allocation2 + $0xd1] sm:$0x1] %vm111_vm2, %v18085_v1 }
  0x35   :  { %157 = vst.msk [vmem:[#allocation2 + $0xe9] sm:$0x1] %vm111_vm2, %v18085_v1 }
  0x36   :  { %158 = vst.msk [vmem:[#allocation2 + $0x101] sm:$0x1] %vm111_vm2, %v18085_v1 }
  0x37   :  { %159 = vst.msk [vmem:[#allocation2 + $0x119] sm:$0x1] %vm111_vm2, %v18085_v1 }
  0x38   :  { %160 = vst.msk [vmem:[#allocation2 + $0x131] sm:$0x1] %vm111_vm2, %v18085_v1 }
  0x39   :  { %161 = vst.msk [vmem:[#allocation2 + $0x149] sm:$0x1] %vm111_vm2, %v18085_v1 }
  0x3a   :  { %162 = vst.msk [vmem:[#allocation2 + $0x161] sm:$0x1] %vm111_vm2, %v18085_v1 }
  0x3b   :  { %163 = vst.msk [vmem:[#allocation2 + $0x179] sm:$0x1] %vm111_vm2, %v18085_v1 }
  0x3c   :  { %164 = vst.msk [vmem:[#allocation2 + $0x191] sm:$0x1] %vm111_vm2, %v18085_v1 }
  0x3d   :  { %167 = vst.msk [vmem:[#allocation2 + $0x1d9] sm:$0x1] %vm111_vm2, %v18085_v1 }
  0x3e   :  { %168 = vst.msk [vmem:[#allocation2 + $0x1f1] sm:$0x1] %vm111_vm2, %v18085_v1 }
  0x3f   :  { %169 = vst.msk [vmem:[#allocation2 + $0x209] sm:$0x1] %vm111_vm2, %v18085_v1 }
  0x40   :  { %170 = vst.msk [vmem:[#allocation2 + $0x221] sm:$0x1] %vm111_vm2, %v18085_v1 }
  0x41   :  { %171 = vst.msk [vmem:[#allocation2 + $0x239] sm:$0x1] %vm111_vm2, %v18085_v1 }
  0x42   :  { %172 = vst.msk [vmem:[#allocation2 + $0x251] sm:$0x1] %vm111_vm2, %v18085_v1 }
  0x43   :  { %173 = vst.msk [vmem:[#allocation2 + $0x269] sm:$0x1] %vm111_vm2, %v18085_v1 }
  0x44   :  { %174 = vst.msk [vmem:[#allocation2 + $0x281] sm:$0x1] %vm111_vm2, %v18085_v1 }
  0x45   :  { %175 = vst.msk [vmem:[#allocation2 + $0x299] sm:$0x1] %vm111_vm2, %v18085_v1 }
  0x46   :  { %176 = vst.msk [vmem:[#allocation2 + $0x2b1] sm:$0x1] %vm111_vm2, %v18085_v1 }
  0x47   :  { %177 = vst.msk [vmem:[#allocation2 + $0x2c9] sm:$0x1] %vm111_vm2, %v18085_v1 }
  0x48   :  { %178 = vst.msk [vmem:[#allocation2 + $0x2e1] sm:$0x1] %vm111_vm2, %v18085_v1 }
  0x49   :  { %179 = vst.msk [vmem:[#allocation2 + $0x2f9] sm:$0x1] %vm111_vm2, %v18085_v1 }
  0x4a   :  { %180 = vst.msk [vmem:[#allocation2 + $0x311] sm:$0x1] %vm111_vm2, %v18085_v1 }
  0x4b   :  { %181 = vst.msk [vmem:[#allocation2 + $0x329] sm:$0x1] %vm111_vm2, %v18085_v1 }
  0x4c   :  { %182 = vst.msk [vmem:[#allocation2 + $0x341] sm:$0x1] %vm111_vm2, %v18085_v1 }
  0x4d   :  { %103 = vst.msk [vmem:[#allocation2 + $0x1c0] sm:$0x3] %vm99_vm3, %v18085_v1 }
  0x4e   :  { %100 = vst.msk [vmem:[#allocation2 + $0x10] sm:$0x3] %vm99_vm3, %v18085_v1 }
  0x4f   :  { %107 = vst.msk [vmem:[#allocation2 + $0x1a8] sm:$0x3] %vm99_vm3, %v18085_v1 }
  0x50   :  { %110 = vst.msk [vmem:[#allocation2 + $0x358] sm:$0x3] %vm99_vm3, %v18085_v1 }
  0x51   :  { %166 = vst.msk [vmem:[#allocation2 + $0x1c1] sm:$0x1] %vm111_vm2, %v18085_v1 }
  0x52   :  { %148 = vst.msk [vmem:[#allocation2 + $0x11] sm:$0x1] %vm111_vm2, %v18085_v1 }
  0x53   :  { %165 = vst.msk [vmem:[#allocation2 + $0x1a9] sm:$0x1] %vm111_vm2, %v18085_v1 }
  0x54   :  { %v347_v14 = vld [vmem:[#allocation2 + $0x1b9] sm:$0xff]  ;;  %183 = vst.msk [vmem:[#allocation2 + $0x359] sm:$0x1] %vm111_vm2, %v18085_v1 }
  0x55   :  { %11191 = vmatmul.msk.f32.gmra.mxu2 %vm96_vm1, %v347_v14  ;;  %217 = vst.msk [vmem:[#allocation2 + $0x1c9] sm:$0xff] %vm96_vm1, %v64_v12  ;;  %v315_v16 = vld [vmem:[#allocation2 + $0x9] sm:$0xff]  ;;  %v88_v1 = vld [vmem:[%s18076_s0 + $0x1c0] sm:$0xff] }
  0x56   :  { %11159 = vmatmul.msk.f32.gmra.mxu0 %vm96_vm1, %v315_v16  ;;  %218 = vst.msk [vmem:[#allocation2 + $0x1d1] sm:$0xff] %vm96_vm1, %v65_v13  ;;  %v77_v12 = vld [vmem:[%s18076_s0 + $0x168] sm:$0xff]  ;;  %v44_v13 = vld [vmem:[%s18076_s0 + $0x60] sm:$0xff] }
  0x57   :  { %185 = vst.msk [vmem:[#allocation2 + $0x19] sm:$0xff] %vm96_vm1, %v32_v15 }
  0x58   :  { %219 = vst.msk [vmem:[#allocation2 + $0x1e1] sm:$0xff] %vm96_vm1, %v66_v17 }
  0x59   :  { %186 = vst.msk [vmem:[#allocation2 + $0x21] sm:$0xff] %vm96_vm1, %v33_v18  ;;  %v78_v18 = vld [vmem:[%s18076_s0 + $0x170] sm:$0xff] }
  0x5a   :  { %220 = vst.msk [vmem:[#allocation2 + $0x1e9] sm:$0xff] %vm96_vm1, %v67_v19  ;;  %v45_v19 = vld [vmem:[%s18076_s0 + $0x68] sm:$0xff] }
  0x5b   :  { %187 = vst.msk [vmem:[#allocation2 + $0x31] sm:$0xff] %vm96_vm1, %v34_v20 }
  0x5c   :  { %v348_v23 = vld [vmem:[#allocation2 + $0x1c9] sm:$0xff]  ;;  %221 = vst.msk [vmem:[#allocation2 + $0x1f9] sm:$0xff] %vm96_vm1, %v68_v21 }
  0x5d   :  { %v283_v24 = vld [vmem:[#allocation2 + $0x1c8] sm:$0xff]  ;;  %11192 = vmatmul.msk.f32.gmra.mxu2 %vm96_vm1, %v348_v23  ;;  %188 = vst.msk [vmem:[#allocation2 + $0x39] sm:$0xff] %vm96_vm1, %v35_v22  ;;  %v349_v29 = vld [vmem:[#allocation2 + $0x1d1] sm:$0xff] }
  0x5e   :  { %11257 = vmatmul.msk.f32.gmra.mxu3 %vm96_vm1, %v283_v24  ;;  %v12628_v26 = vld [vmem:[#allocation2 + $0x19] sm:$0xff]  ;;  %222 = vst.msk [vmem:[#allocation2 + $0x201] sm:$0xff] %vm96_vm1, %v69_v25  ;;  %v284_v30 = vld [vmem:[#allocation2 + $0x1d0] sm:$0xff] }
  0x5f   :  { %v12630_v27 = vld [vmem:[#allocation2 + $0x18] sm:$0xff]  ;;  %11160 = vmatmul.msk.f32.gmra.mxu0 %vm96_vm1, %v12628_v26  ;;  %189 = vst.msk [vmem:[#allocation2 + $0x49] sm:$0xff] %vm96_vm1, %v36_v28  ;;  %v350_v35 = vld [vmem:[#allocation2 + $0x1e1] sm:$0xff]  ;;  %v46_v25 = vld [vmem:[%s18076_s0 + $0x70] sm:$0xff] }
  0x60   :  { %11225 = vmatmul.msk.f32.gmra.mxu1 %vm96_vm1, %v12630_v27  ;;  %v12641_v31 = vld [vmem:[#allocation2 + $0x21] sm:$0xff]  ;;  %223 = vst.msk [vmem:[#allocation2 + $0x211] sm:$0xff] %vm96_vm1, %v70_v33  ;;  %v79_v24 = vld [vmem:[%s18076_s0 + $0x178] sm:$0xff] }
  0x61   :  { %v12643_v32 = vld [vmem:[#allocation2 + $0x20] sm:$0xff]  ;;  %190 = vst.msk [vmem:[#allocation2 + $0x51] sm:$0xff] %vm96_vm1, %v37_v34  ;;  %v351_v41 = vld [vmem:[#allocation2 + $0x1e9] sm:$0xff] }
  0x62   :  { %v285_v36 = vld [vmem:[#allocation2 + $0x1e0] sm:$0xff]  ;;  %v12659_v37 = vld [vmem:[#allocation2 + $0x31] sm:$0xff]  ;;  %224 = vst.msk [vmem:[#allocation2 + $0x219] sm:$0xff] %vm96_vm1, %v71_v39  ;;  %v286_v42 = vld [vmem:[#allocation2 + $0x1e8] sm:$0xff] }
  0x63   :  { %v12661_v38 = vld [vmem:[#allocation2 + $0x30] sm:$0xff]  ;;  %191 = vst.msk [vmem:[#allocation2 + $0x61] sm:$0xff] %vm96_vm1, %v38_v40  ;;  %v352_v47 = vld [vmem:[#allocation2 + $0x1f9] sm:$0xff] }
  0x64   :  { %v12677_v43 = vld [vmem:[#allocation2 + $0x39] sm:$0xff]  ;;  %225 = vst.msk [vmem:[#allocation2 + $0x229] sm:$0xff] %vm96_vm1, %v72_v45 }
  0x65   :  { %11193 = vmatmul.msk.f32.gmra.mxu2 %vm96_vm1, %v349_v29  ;;  %v12679_v44 = vld [vmem:[#allocation2 + $0x38] sm:$0xff]  ;;  %192 = vst.msk [vmem:[#allocation2 + $0x69] sm:$0xff] %vm96_vm1, %v39_v46  ;;  %v353_v53 = vld [vmem:[#allocation2 + $0x201] sm:$0xff] }
  0x66   :  { %11258 = vmatmul.msk.f32.gmra.mxu3 %vm96_vm1, %v284_v30  ;;  %v287_v48 = vld [vmem:[#allocation2 + $0x1f8] sm:$0xff]  ;;  %v12695_v49 = vld [vmem:[#allocation2 + $0x49] sm:$0xff]  ;;  %226 = vst.msk [vmem:[#allocation2 + $0x231] sm:$0xff] %vm96_vm1, %v73_v51  ;;  %v288_v54 = vld [vmem:[#allocation2 + $0x200] sm:$0xff] }
  0x67   :  { %11161 = vmatmul.msk.f32.gmra.mxu0 %vm96_vm1, %v12641_v31  ;;  %v12697_v50 = vld [vmem:[#allocation2 + $0x48] sm:$0xff]  ;;  %193 = vst.msk [vmem:[#allocation2 + $0x79] sm:$0xff] %vm96_vm1, %v40_v52  ;;  %v354_v59 = vld [vmem:[#allocation2 + $0x211] sm:$0xff]  ;;  %v80_v34 = vld [vmem:[%s18076_s0 + $0x180] sm:$0xff] }
  0x68   :  { %11226 = vmatmul.msk.f32.gmra.mxu1 %vm96_vm1, %v12643_v32  ;;  %v12713_v55 = vld [vmem:[#allocation2 + $0x51] sm:$0xff]  ;;  %227 = vst.msk [vmem:[#allocation2 + $0x241] sm:$0xff] %vm96_vm1, %v74_v57  ;;  %v48_v45 = vld [vmem:[%s18076_s0 + $0x80] sm:$0xff] }
  0x69   :  { %v12715_v56 = vld [vmem:[#allocation2 + $0x50] sm:$0xff]  ;;  %194 = vst.msk [vmem:[#allocation2 + $0x81] sm:$0xff] %vm96_vm1, %v41_v58  ;;  %v355_v2 = vld [vmem:[#allocation2 + $0x219] sm:$0xff] }
  0x6a   :  { %v289_v60 = vld [vmem:[#allocation2 + $0x210] sm:$0xff]  ;;  %v12731_v61 = vld [vmem:[#allocation2 + $0x61] sm:$0xff]  ;;  %228 = vst.msk [vmem:[#allocation2 + $0x249] sm:$0xff] %vm96_vm1, %v75_v63  ;;  %v290_v3 = vld [vmem:[#allocation2 + $0x218] sm:$0xff] }
  0x6b   :  { %v12733_v62 = vld [vmem:[#allocation2 + $0x60] sm:$0xff]  ;;  %195 = vst.msk [vmem:[#allocation2 + $0x91] sm:$0xff] %vm96_vm1, %v42_v0  ;;  %v356_v8 = vld [vmem:[#allocation2 + $0x229] sm:$0xff] }
  0x6c   :  { %v12749_v4 = vld [vmem:[#allocation2 + $0x69] sm:$0xff]  ;;  %229 = vst.msk [vmem:[#allocation2 + $0x259] sm:$0xff] %vm96_vm1, %v76_v6 }
  0x6d   :  { %11194 = vmatmul.msk.f32.gmra.mxu2 %vm96_vm1, %v350_v35  ;;  %v12751_v5 = vld [vmem:[#allocation2 + $0x68] sm:$0xff]  ;;  %196 = vst.msk [vmem:[#allocation2 + $0x99] sm:$0xff] %vm96_vm1, %v43_v7  ;;  %v357_v14 = vld [vmem:[#allocation2 + $0x231] sm:$0xff] }
  0x6e   :  { %11259 = vmatmul.msk.f32.gmra.mxu3 %vm96_vm1, %v285_v36  ;;  %v291_v9 = vld [vmem:[#allocation2 + $0x228] sm:$0xff]  ;;  %v12767_v10 = vld [vmem:[#allocation2 + $0x79] sm:$0xff]  ;;  %230 = vst.msk [vmem:[#allocation2 + $0x261] sm:$0xff] %vm96_vm1, %v77_v12  ;;  %v292_v15 = vld [vmem:[#allocation2 + $0x230] sm:$0xff] }
  0x6f   :  { %11162 = vmatmul.msk.f32.gmra.mxu0 %vm96_vm1, %v12659_v37  ;;  %v12769_v11 = vld [vmem:[#allocation2 + $0x78] sm:$0xff]  ;;  %197 = vst.msk [vmem:[#allocation2 + $0xa9] sm:$0xff] %vm96_vm1, %v44_v13  ;;  %v358_v20 = vld [vmem:[#allocation2 + $0x241] sm:$0xff]  ;;  %v82_v52 = vld [vmem:[%s18076_s0 + $0x190] sm:$0xff] }
  0x70   :  { %11227 = vmatmul.msk.f32.gmra.mxu1 %vm96_vm1, %v12661_v38  ;;  %v12785_v16 = vld [vmem:[#allocation2 + $0x81] sm:$0xff]  ;;  %231 = vst.msk [vmem:[#allocation2 + $0x271] sm:$0xff] %vm96_vm1, %v78_v18  ;;  %v47_v35 = vld [vmem:[%s18076_s0 + $0x78] sm:$0xff]  ;;  %v50_v6 = vld [vmem:[%s18076_s0 + $0x90] sm:$0xff] }
  0x71   :  { %v12787_v17 = vld [vmem:[#allocation2 + $0x80] sm:$0xff]  ;;  %198 = vst.msk [vmem:[#allocation2 + $0xb1] sm:$0xff] %vm96_vm1, %v45_v19  ;;  %v359_v28 = vld [vmem:[#allocation2 + $0x249] sm:$0xff]  ;;  %v51_v19 = vld [vmem:[%s18076_s0 + $0x98] sm:$0xff] }
  0x72   :  { %v293_v21 = vld [vmem:[#allocation2 + $0x240] sm:$0xff]  ;;  %v12803_v22 = vld [vmem:[#allocation2 + $0x91] sm:$0xff]  ;;  %232 = vst.msk [vmem:[#allocation2 + $0x279] sm:$0xff] %vm96_vm1, %v79_v24  ;;  %v294_v29 = vld [vmem:[#allocation2 + $0x248] sm:$0xff] }
  0x73   :  { %v12805_v23 = vld [vmem:[#allocation2 + $0x90] sm:$0xff]  ;;  %199 = vst.msk [vmem:[#allocation2 + $0xc1] sm:$0xff] %vm96_vm1, %v46_v25  ;;  %v360_v36 = vld [vmem:[#allocation2 + $0x259] sm:$0xff] }
  0x74   :  { %v12821_v30 = vld [vmem:[#allocation2 + $0x99] sm:$0xff]  ;;  %233 = vst.msk [vmem:[#allocation2 + $0x289] sm:$0xff] %vm96_vm1, %v80_v34 }
  0x75   :  { %11195 = vmatmul.msk.f32.gmra.mxu2 %vm96_vm1, %v351_v41  ;;  %v12823_v33 = vld [vmem:[#allocation2 + $0x98] sm:$0xff]  ;;  %200 = vst.msk [vmem:[#allocation2 + $0xc9] sm:$0xff] %vm96_vm1, %v47_v35  ;;  %v361_v46 = vld [vmem:[#allocation2 + $0x261] sm:$0xff] }
  0x76   :  { %11260 = vmatmul.msk.f32.gmra.mxu3 %vm96_vm1, %v286_v42  ;;  %v295_v39 = vld [vmem:[#allocation2 + $0x258] sm:$0xff]  ;;  %v12839_v40 = vld [vmem:[#allocation2 + $0xa9] sm:$0xff]  ;;  %201 = vst.msk [vmem:[#allocation2 + $0xd9] sm:$0xff] %vm96_vm1, %v48_v45 }
  0x77   :  { %11163 = vmatmul.msk.f32.gmra.mxu0 %vm96_vm1, %v12677_v43  ;;  %v12841_v41 = vld [vmem:[#allocation2 + $0xa8] sm:$0xff]  ;;  %235 = vst.msk [vmem:[#allocation2 + $0x2a1] sm:$0xff] %vm96_vm1, %v82_v52  ;;  %v362_v58 = vld [vmem:[#allocation2 + $0x271] sm:$0xff] }
  0x78   :  { %11228 = vmatmul.msk.f32.gmra.mxu1 %vm96_vm1, %v12679_v44  ;;  %v81_v42 = vld [vmem:[%s18076_s0 + $0x188] sm:$0xff]  ;;  %v12859_v51 = vld [vmem:[#allocation2 + $0xb0] sm:$0xff]  ;;  %203 = vst.msk [vmem:[#allocation2 + $0xf1] sm:$0xff] %vm96_vm1, %v50_v6 }
  0x79   :  { %234 = vst.msk [vmem:[#allocation2 + $0x291] sm:$0xff] %vm96_vm1, %v81_v42  ;;  %v363_v7 = vld [vmem:[#allocation2 + $0x279] sm:$0xff]  ;;  %v86_v6 = vld [vmem:[%s18076_s0 + $0x1b0] sm:$0xff] }
  0x7a   :  { %v12881_v63 = vld [vmem:[#allocation2 + $0xc1] sm:$0xff]  ;;  %204 = vst.msk [vmem:[#allocation2 + $0xf9] sm:$0xff] %vm96_vm1, %v51_v19 }
  0x7b   :  { %v12883_v0 = vld [vmem:[#allocation2 + $0xc0] sm:$0xff]  ;;  %v364_v24 = vld [vmem:[#allocation2 + $0x289] sm:$0xff]  ;;  %239 = vst.msk [vmem:[#allocation2 + $0x2d1] sm:$0xff] %vm96_vm1, %v86_v6 }
  0x7c   :  { %v12905_v13 = vld [vmem:[#allocation2 + $0xc9] sm:$0xff]  ;;  %241 = vst.msk [vmem:[#allocation2 + $0x2e9] sm:$0xff] %vm96_vm1, %v88_v1 }
  0x7d   :  { %11196 = vmatmul.msk.f32.gmra.mxu2 %vm96_vm1, %v352_v47  ;;  %v296_v47 = vld [vmem:[#allocation2 + $0x260] sm:$0xff]  ;;  %v299_v25 = vld [vmem:[#allocation2 + $0x288] sm:$0xff]  ;;  %v12931_v35 = vld [vmem:[#allocation2 + $0xd8] sm:$0xff] }
  0x7e   :  { %11261 = vmatmul.msk.f32.gmra.mxu3 %vm96_vm1, %v287_v48  ;;  %v12857_v48 = vld [vmem:[#allocation2 + $0xb1] sm:$0xff]  ;;  %v12929_v34 = vld [vmem:[#allocation2 + $0xd9] sm:$0xff]  ;;  %v366_v19 = vld [vmem:[#allocation2 + $0x2a1] sm:$0xff] }
  0x7f   :  { %11164 = vmatmul.msk.f32.gmra.mxu0 %vm96_vm1, %v12695_v49 }
  0x80   :  { %11229 = vmatmul.msk.f32.gmra.mxu1 %vm96_vm1, %v12697_v50  ;;  %v300_v52 = vld [vmem:[#allocation2 + $0x290] sm:$0xff] }
  0x85   :  { %11197 = vmatmul.msk.f32.gmra.mxu2 %vm96_vm1, %v353_v53  ;;  %v49_v53 = vld [vmem:[%s18076_s0 + $0x88] sm:$0xff] }
  0x86   :  { %11262 = vmatmul.msk.f32.gmra.mxu3 %vm96_vm1, %v288_v54  ;;  %202 = vst.msk [vmem:[#allocation2 + $0xe1] sm:$0xff] %vm96_vm1, %v49_v53 }
  0x87   :  { %11165 = vmatmul.msk.f32.gmra.mxu0 %vm96_vm1, %v12713_v55 }
  0x88   :  { %11230 = vmatmul.msk.f32.gmra.mxu1 %vm96_vm1, %v12715_v56 }
  0x89   :  { %v12877_v57 = vpop.f32.mrf.mxu0 }
  0x8d   :  { %11198 = vmatmul.msk.f32.gmra.mxu2 %vm96_vm1, %v354_v59  ;;  %v297_v59 = vld [vmem:[#allocation2 + $0x270] sm:$0xff] }
  0x8e   :  { %11263 = vmatmul.msk.f32.gmra.mxu3 %vm96_vm1, %v289_v60 }
  0x8f   :  { %11166 = vmatmul.msk.f32.gmra.mxu0 %vm96_vm1, %v12731_v61  ;;  %v12875_v54 = vpop.f32.mrf.mxu1 }
  0x90   :  { %11231 = vmatmul.msk.f32.gmra.mxu1 %vm96_vm1, %v12733_v62 }
  0x94   :  { %v12879_v60 = vpop.f32.mrf.mxu3 }
  0x95   :  { %11199 = vmatmul.msk.f32.gmra.mxu2 %vm96_vm1, %v355_v2  ;;  %18273 = vst [vmem:[#allocation4_spill] sm:$0xff] %v12879_v60  ;;  %v83_v2 = vld [vmem:[%s18076_s0 + $0x198] sm:$0xff]  ;;  %v89_v60 = vld [vmem:[%s18076_s0 + $0x1c8] sm:$0xff] }
  0x96   :  { %11264 = vmatmul.msk.f32.gmra.mxu3 %vm96_vm1, %v290_v3  ;;  %236 = vst.msk [vmem:[#allocation2 + $0x2a9] sm:$0xff] %vm96_vm1, %v83_v2  ;;  %v12891_v3 = vpop.f32.mrf.mxu2  ;;  %v12955_v2 = vld [vmem:[#allocation2 + $0xe0] sm:$0xff] }
  0x97   :  { %11167 = vmatmul.msk.f32.gmra.mxu0 %vm96_vm1, %v12749_v4  ;;  %18274 = vst [vmem:[#allocation5_spill] sm:$0xff] %v12891_v3 }
  0x98   :  { %11232 = vmatmul.msk.f32.gmra.mxu1 %vm96_vm1, %v12751_v5  ;;  %242 = vst.msk [vmem:[#allocation2 + $0x2f1] sm:$0xff] %vm96_vm1, %v89_v60 }
  0x9c   :  { %v1096_v18 = vpop.f32.mrf.mxu3 }
  0x9d   :  { %11200 = vmatmul.msk.f32.gmra.mxu2 %vm96_vm1, %v356_v8  ;;  %v298_v8 = vld [vmem:[#allocation2 + $0x278] sm:$0xff] }
  0x9e   :  { %11265 = vmatmul.msk.f32.gmra.mxu3 %vm96_vm1, %v291_v9  ;;  %v12901_v9 = vpop.f32.mrf.mxu1 }
  0x9f   :  { %11168 = vmatmul.msk.f32.gmra.mxu0 %vm96_vm1, %v12767_v10 }
  0xa0   :  { %11233 = vmatmul.msk.f32.gmra.mxu1 %vm96_vm1, %v12769_v11 }
  0xa5   :  { %11201 = vmatmul.msk.f32.gmra.mxu2 %vm96_vm1, %v357_v14  ;;  %v12907_v14 = vld [vmem:[#allocation2 + $0xc8] sm:$0xff] }
  0xa6   :  { %11266 = vmatmul.msk.f32.gmra.mxu3 %vm96_vm1, %v292_v15  ;;  %v84_v15 = vld [vmem:[%s18076_s0 + $0x1a0] sm:$0xff] }
  0xa7   :  { %11169 = vmatmul.msk.f32.gmra.mxu0 %vm96_vm1, %v12785_v16  ;;  %237 = vst.msk [vmem:[#allocation2 + $0x2b9] sm:$0xff] %vm96_vm1, %v84_v15 }
  0xa8   :  { %11234 = vmatmul.msk.f32.gmra.mxu1 %vm96_vm1, %v12787_v17 }
  0xad   :  { %11202 = vmatmul.msk.f32.gmra.mxu2 %vm96_vm1, %v358_v20 }
  0xae   :  { %11267 = vmatmul.msk.f32.gmra.mxu3 %vm96_vm1, %v293_v21 }
  0xaf   :  { %11170 = vmatmul.msk.f32.gmra.mxu0 %vm96_vm1, %v12803_v22 }
  0xb0   :  { %11235 = vmatmul.msk.f32.gmra.mxu1 %vm96_vm1, %v12805_v23 }
  0xb5   :  { %11203 = vmatmul.msk.f32.gmra.mxu2 %vm96_vm1, %v359_v28 }
  0xb6   :  { %11268 = vmatmul.msk.f32.gmra.mxu3 %vm96_vm1, %v294_v29 }
  0xb7   :  { %11171 = vmatmul.msk.f32.gmra.mxu0 %vm96_vm1, %v12821_v30 }
  0xb8   :  { %11236 = vmatmul.msk.f32.gmra.mxu1 %vm96_vm1, %v12823_v33 }
  0xbd   :  { %11204 = vmatmul.msk.f32.gmra.mxu2 %vm96_vm1, %v360_v36  ;;  %v85_v36 = vld [vmem:[%s18076_s0 + $0x1a8] sm:$0xff] }
  0xbe   :  { %11269 = vmatmul.msk.f32.gmra.mxu3 %vm96_vm1, %v295_v39  ;;  %238 = vst.msk [vmem:[#allocation2 + $0x2c1] sm:$0xff] %vm96_vm1, %v85_v36  ;;  %v52_v39 = vld [vmem:[%s18076_s0 + $0xa0] sm:$0xff]  ;;  %v12977_v36 = vld [vmem:[#allocation2 + $0xf1] sm:$0xff] }
  0xbf   :  { %11172 = vmatmul.msk.f32.gmra.mxu0 %vm96_vm1, %v12839_v40  ;;  %205 = vst.msk [vmem:[#allocation2 + $0x109] sm:$0xff] %vm96_vm1, %v52_v39  ;;  %v12979_v39 = vld [vmem:[#allocation2 + $0xf0] sm:$0xff] }
  0xc0   :  { %11237 = vmatmul.msk.f32.gmra.mxu1 %vm96_vm1, %v12841_v41 }
  0xc5   :  { %11205 = vmatmul.msk.f32.gmra.mxu2 %vm96_vm1, %v361_v46 }
  0xc6   :  { %11270 = vmatmul.msk.f32.gmra.mxu3 %vm96_vm1, %v296_v47  ;;  %v365_v47 = vld [vmem:[#allocation2 + $0x291] sm:$0xff] }
  0xc7   :  { %11173 = vmatmul.msk.f32.gmra.mxu0 %vm96_vm1, %v12857_v48 }
  0xc8   :  { %11238 = vmatmul.msk.f32.gmra.mxu1 %vm96_vm1, %v12859_v51 }
  0xcd   :  { %11206 = vmatmul.msk.f32.gmra.mxu2 %vm96_vm1, %v362_v58 }
  0xce   :  { %11271 = vmatmul.msk.f32.gmra.mxu3 %vm96_vm1, %v297_v59  ;;  %v12953_v59 = vld [vmem:[#allocation2 + $0xe1] sm:$0xff] }
  0xcf   :  { %11174 = vmatmul.msk.f32.gmra.mxu0 %vm96_vm1, %v12881_v63 }
  0xd0   :  { %11239 = vmatmul.msk.f32.gmra.mxu1 %vm96_vm1, %v12883_v0 }
  0xd3   :  { %v12903_v12 = vpop.f32.mrf.mxu0 }
  0xd5   :  { %11207 = vmatmul.msk.f32.gmra.mxu2 %vm96_vm1, %v363_v7  ;;  %v53_v7 = vld [vmem:[%s18076_s0 + $0xa8] sm:$0xff] }
  0xd6   :  { %11272 = vmatmul.msk.f32.gmra.mxu3 %vm96_vm1, %v298_v8  ;;  %206 = vst.msk [vmem:[#allocation2 + $0x111] sm:$0xff] %vm96_vm1, %v53_v7  ;;  %v367_v7 = vld [vmem:[#allocation2 + $0x2a9] sm:$0xff] }
  0xd7   :  { %11175 = vmatmul.msk.f32.gmra.mxu0 %vm96_vm1, %v12905_v13 }
  0xd8   :  { %11240 = vmatmul.msk.f32.gmra.mxu1 %vm96_vm1, %v12907_v14  ;;  %v692_v20 = vpop.f32.mrf.mxu2 }
  0xd9   :  { %v12923_v21 = vadd.f32 %v1096_v18, %v692_v20  ;;  %v301_v20 = vld [vmem:[#allocation2 + $0x2a0] sm:$0xff] }
  0xdb   :  { %18275 = vst [vmem:[#allocation6_spill] sm:$0xff] %v12923_v21  ;;  %v13027_v21 = vld [vmem:[#allocation2 + $0x108] sm:$0xff] }
  0xdc   :  { %v12925_v28 = vpop.f32.mrf.mxu0 }
  0xdd   :  { %v12927_v29 = vpop.f32.mrf.mxu1  ;;  %11208 = vmatmul.msk.f32.gmra.mxu2 %vm96_vm1, %v364_v24 }
  0xde   :  { %11273 = vmatmul.msk.f32.gmra.mxu3 %vm96_vm1, %v299_v25 }
  0xdf   :  { %11176 = vmatmul.msk.f32.gmra.mxu0 %vm96_vm1, %v12929_v34 }
  0xe0   :  { %11241 = vmatmul.msk.f32.gmra.mxu1 %vm96_vm1, %v12931_v35  ;;  %v695_v42 = vpop.f32.mrf.mxu2 }
  0xe1   :  { %v1099_v45 = vpop.f32.mrf.mxu3 }
  0xe2   :  { %v12947_v46 = vadd.f32 %v1099_v45, %v695_v42  ;;  %v87_v42 = vld [vmem:[%s18076_s0 + $0x1b8] sm:$0xff]  ;;  %v54_v45 = vld [vmem:[%s18076_s0 + $0xb0] sm:$0xff] }
  0xe3   :  { %240 = vst.msk [vmem:[#allocation2 + $0x2d9] sm:$0xff] %vm96_vm1, %v87_v42  ;;  %v13003_v42 = vld [vmem:[#allocation2 + $0xf8] sm:$0xff] }
  0xe4   :  { %18276 = vst [vmem:[#allocation7_spill] sm:$0xff] %v12947_v46  ;;  %v12949_v53 = vpop.f32.mrf.mxu0  ;;  %v13025_v46 = vld [vmem:[#allocation2 + $0x109] sm:$0xff] }
  0xe5   :  { %v12951_v58 = vpop.f32.mrf.mxu1  ;;  %11209 = vmatmul.msk.f32.gmra.mxu2 %vm96_vm1, %v365_v47  ;;  %207 = vst.msk [vmem:[#allocation2 + $0x121] sm:$0xff] %vm96_vm1, %v54_v45  ;;  %v55_v45 = vld [vmem:[%s18076_s0 + $0xb8] sm:$0xff] }
  0xe6   :  { %11274 = vmatmul.msk.f32.gmra.mxu3 %vm96_vm1, %v300_v52  ;;  %208 = vst.msk [vmem:[#allocation2 + $0x129] sm:$0xff] %vm96_vm1, %v55_v45  ;;  %v56_v45 = vld [vmem:[%s18076_s0 + $0xc0] sm:$0xff] }
  0xe7   :  { %11177 = vmatmul.msk.f32.gmra.mxu0 %vm96_vm1, %v12953_v59  ;;  %209 = vst.msk [vmem:[#allocation2 + $0x139] sm:$0xff] %vm96_vm1, %v56_v45  ;;  %v57_v45 = vld [vmem:[%s18076_s0 + $0xc8] sm:$0xff] }
  0xe8   :  { %11242 = vmatmul.msk.f32.gmra.mxu1 %vm96_vm1, %v12955_v2  ;;  %v698_v8 = vpop.f32.mrf.mxu2  ;;  %210 = vst.msk [vmem:[#allocation2 + $0x141] sm:$0xff] %vm96_vm1, %v57_v45  ;;  %v58_v45 = vld [vmem:[%s18076_s0 + $0xd0] sm:$0xff] }
  0xe9   :  { %v1102_v15 = vpop.f32.mrf.mxu3  ;;  %211 = vst.msk [vmem:[#allocation2 + $0x151] sm:$0xff] %vm96_vm1, %v58_v45  ;;  %v59_v45 = vld [vmem:[%s18076_s0 + $0xd8] sm:$0xff] }
  0xea   :  { %v12971_v18 = vadd.f32 %v1102_v15, %v698_v8  ;;  %v302_v8 = vld [vmem:[#allocation2 + $0x2a8] sm:$0xff]  ;;  %212 = vst.msk [vmem:[#allocation2 + $0x159] sm:$0xff] %vm96_vm1, %v59_v45  ;;  %v60_v45 = vld [vmem:[%s18076_s0 + $0xe0] sm:$0xff] }
  0xeb   :  { %213 = vst.msk [vmem:[#allocation2 + $0x169] sm:$0xff] %vm96_vm1, %v60_v45  ;;  %v61_v45 = vld [vmem:[%s18076_s0 + $0xe8] sm:$0xff] }
  0xec   :  { %18277 = vst [vmem:[#allocation8_spill] sm:$0xff] %v12971_v18  ;;  %v12973_v24 = vpop.f32.mrf.mxu0 }
  0xed   :  { %v12975_v25 = vpop.f32.mrf.mxu1  ;;  %11210 = vmatmul.msk.f32.gmra.mxu2 %vm96_vm1, %v366_v19  ;;  %214 = vst.msk [vmem:[#allocation2 + $0x171] sm:$0xff] %vm96_vm1, %v61_v45  ;;  %v11551_v45 = vld [vmem:[%s18075_s1 + $0x18] sm:$0xf] }
  0xee   :  { %11275 = vmatmul.msk.f32.gmra.mxu3 %vm96_vm1, %v301_v20  ;;  %v13001_v20 = vld [vmem:[#allocation2 + $0xf9] sm:$0xff]  ;;  %11552 = vmatpush.msk.msra.mxu2 %vm572_vm0, %v11551_v45 }
  0xef   :  { %11178 = vmatmul.msk.f32.gmra.mxu0 %vm96_vm1, %v12977_v36 }
  0xf0   :  { %11243 = vmatmul.msk.f32.gmra.mxu1 %vm96_vm1, %v12979_v39  ;;  %v701_v47 = vpop.f32.mrf.mxu2 }
  0xf1   :  { %v1105_v52 = vpop.f32.mrf.mxu3  ;;  %v13191_v45 = vld [vmem:[#allocation2 + $0x158] sm:$0xff] }
  0xf2   :  { %v12995_v6 = vadd.f32 %v1105_v52, %v701_v47  ;;  %18318 = vst [vmem:[#allocation49_spill] sm:$0xff] %v13191_v45 }
  0xf4   :  { %18278 = vst [vmem:[#allocation9_spill] sm:$0xff] %v12995_v6  ;;  %v12997_v15 = vpop.f32.mrf.mxu0 }
  0xf5   :  { %18279 = vst [vmem:[#allocation10_spill] sm:$0xff] %v12997_v15  ;;  %v12999_v19 = vpop.f32.mrf.mxu1  ;;  %11211 = vmatmul.msk.f32.gmra.mxu2 %vm96_vm1, %v367_v7  ;;  %v368_v7 = vld [vmem:[#allocation2 + $0x2b9] sm:$0xff] }
  0xf6   :  { %18280 = vst [vmem:[#allocation11_spill] sm:$0xff] %v12999_v19  ;;  %11276 = vmatmul.msk.f32.gmra.mxu3 %vm96_vm1, %v302_v8  ;;  %v303_v8 = vld [vmem:[#allocation2 + $0x2b8] sm:$0xff]  ;;  %v90_v19 = vld [vmem:[%s18076_s0 + $0x1d0] sm:$0xff]  ;;  %v13075_v15 = vld [vmem:[#allocation2 + $0x120] sm:$0xff] }
  0xf7   :  { %11179 = vmatmul.msk.f32.gmra.mxu0 %vm96_vm1, %v13001_v20  ;;  %243 = vst.msk [vmem:[#allocation2 + $0x301] sm:$0xff] %vm96_vm1, %v90_v19 }
  0xf8   :  { %11244 = vmatmul.msk.f32.gmra.mxu1 %vm96_vm1, %v13003_v42  ;;  %v704_v47 = vpop.f32.mrf.mxu2  ;;  %18293 = vst [vmem:[#allocation24_spill] sm:$0xff] %v13075_v15 }
  0xf9   :  { %v1108_v52 = vpop.f32.mrf.mxu3 }
  0xfa   :  { %v13019_v6 = vadd.f32 %v1108_v52, %v704_v47 }
  0xfc   :  { %18281 = vst [vmem:[#allocation12_spill] sm:$0xff] %v13019_v6  ;;  %v13021_v18 = vpop.f32.mrf.mxu0 }
  0xfd   :  { %18282 = vst [vmem:[#allocation13_spill] sm:$0xff] %v13021_v18  ;;  %v13023_v1 = vpop.f32.mrf.mxu1  ;;  %11212 = vmatmul.msk.f32.gmra.mxu2 %vm96_vm1, %v368_v7  ;;  %v369_v7 = vld [vmem:[#allocation2 + $0x2c1] sm:$0xff]  ;;  %v13051_v18 = vld [vmem:[#allocation2 + $0x110] sm:$0xff] }
  0xfe   :  { %18283 = vst [vmem:[#allocation14_spill] sm:$0xff] %v13023_v1  ;;  %11277 = vmatmul.msk.f32.gmra.mxu3 %vm96_vm1, %v303_v8  ;;  %v304_v8 = vld [vmem:[#allocation2 + $0x2c0] sm:$0xff]  ;;  %v13049_v1 = vld [vmem:[#allocation2 + $0x111] sm:$0xff] }
  0xff   :  { %11180 = vmatmul.msk.f32.gmra.mxu0 %vm96_vm1, %v13025_v46  ;;  %18287 = vst [vmem:[#allocation18_spill] sm:$0xff] %v13049_v1 }
 0x100   :  { %11245 = vmatmul.msk.f32.gmra.mxu1 %vm96_vm1, %v13027_v21  ;;  %v707_v47 = vpop.f32.mrf.mxu2  ;;  %18288 = vst [vmem:[#allocation19_spill] sm:$0xff] %v13051_v18 }
 0x101   :  { %v1111_v52 = vpop.f32.mrf.mxu3 }
 0x102   :  { %v13043_v6 = vadd.f32 %v1111_v52, %v707_v47 }
 0x104   :  { %18284 = vst [vmem:[#allocation15_spill] sm:$0xff] %v13043_v6  ;;  %v13045_v3 = vpop.f32.mrf.mxu0 }
 0x105   :  { %18285 = vst [vmem:[#allocation16_spill] sm:$0xff] %v13045_v3  ;;  %v13047_v60 = vpop.f32.mrf.mxu1  ;;  %11213 = vmatmul.msk.f32.gmra.mxu2 %vm96_vm1, %v369_v7  ;;  %v370_v7 = vld [vmem:[#allocation2 + $0x2d1] sm:$0xff]  ;;  %v13073_v3 = vld [vmem:[#allocation2 + $0x121] sm:$0xff] }
 0x106   :  { %18286 = vst [vmem:[#allocation17_spill] sm:$0xff] %v13047_v60  ;;  %11278 = vmatmul.msk.f32.gmra.mxu3 %vm96_vm1, %v304_v8  ;;  %v305_v8 = vld [vmem:[#allocation2 + $0x2d0] sm:$0xff] }
 0x107   :  { %11181 = vmatmul.msk.f32.gmra.mxu0 %vm96_vm1, %v13049_v1  ;;  %18292 = vst [vmem:[#allocation23_spill] sm:$0xff] %v13073_v3  ;;  %v91_v1 = vld [vmem:[%s18076_s0 + $0x1d8] sm:$0xff] }
 0x108   :  { %11246 = vmatmul.msk.f32.gmra.mxu1 %vm96_vm1, %v13051_v18  ;;  %v710_v47 = vpop.f32.mrf.mxu2  ;;  %244 = vst.msk [vmem:[#allocation2 + $0x309] sm:$0xff] %vm96_vm1, %v91_v1  ;;  %v13099_v18 = vld [vmem:[#allocation2 + $0x128] sm:$0xff] }
 0x109   :  { %v1114_v52 = vpop.f32.mrf.mxu3  ;;  %18298 = vst [vmem:[#allocation29_spill] sm:$0xff] %v13099_v18 }
 0x10a   :  { %v13067_v6 = vadd.f32 %v1114_v52, %v710_v47 }
 0x10c   :  { %18289 = vst [vmem:[#allocation20_spill] sm:$0xff] %v13067_v6  ;;  %v13069_v60 = vpop.f32.mrf.mxu0 }
 0x10d   :  { %18290 = vst [vmem:[#allocation21_spill] sm:$0xff] %v13069_v60  ;;  %v13071_v19 = vpop.f32.mrf.mxu1  ;;  %11214 = vmatmul.msk.f32.gmra.mxu2 %vm96_vm1, %v370_v7  ;;  %v371_v7 = vld [vmem:[#allocation2 + $0x2d9] sm:$0xff]  ;;  %v13097_v60 = vld [vmem:[#allocation2 + $0x129] sm:$0xff] }
 0x10e   :  { %18291 = vst [vmem:[#allocation22_spill] sm:$0xff] %v13071_v19  ;;  %11279 = vmatmul.msk.f32.gmra.mxu3 %vm96_vm1, %v305_v8  ;;  %v306_v8 = vld [vmem:[#allocation2 + $0x2d8] sm:$0xff] }
 0x10f   :  { %11182 = vmatmul.msk.f32.gmra.mxu0 %vm96_vm1, %v13073_v3  ;;  %18297 = vst [vmem:[#allocation28_spill] sm:$0xff] %v13097_v60  ;;  %v92_v3 = vld [vmem:[%s18076_s0 + $0x1e0] sm:$0xff] }
 0x110   :  { %11247 = vmatmul.msk.f32.gmra.mxu1 %vm96_vm1, %v13075_v15  ;;  %v713_v47 = vpop.f32.mrf.mxu2  ;;  %245 = vst.msk [vmem:[#allocation2 + $0x319] sm:$0xff] %vm96_vm1, %v92_v3  ;;  %v13123_v15 = vld [vmem:[#allocation2 + $0x138] sm:$0xff] }
 0x111   :  { %v1117_v52 = vpop.f32.mrf.mxu3  ;;  %18303 = vst [vmem:[#allocation34_spill] sm:$0xff] %v13123_v15 }
 0x112   :  { %v13091_v6 = vadd.f32 %v1117_v52, %v713_v47 }
 0x114   :  { %18294 = vst [vmem:[#allocation25_spill] sm:$0xff] %v13091_v6  ;;  %v13093_v19 = vpop.f32.mrf.mxu0 }
 0x115   :  { %18295 = vst [vmem:[#allocation26_spill] sm:$0xff] %v13093_v19  ;;  %v13095_v1 = vpop.f32.mrf.mxu1  ;;  %11215 = vmatmul.msk.f32.gmra.mxu2 %vm96_vm1, %v371_v7  ;;  %v372_v7 = vld [vmem:[#allocation2 + $0x2e9] sm:$0xff]  ;;  %v13121_v19 = vld [vmem:[#allocation2 + $0x139] sm:$0xff] }
 0x116   :  { %18296 = vst [vmem:[#allocation27_spill] sm:$0xff] %v13095_v1  ;;  %11280 = vmatmul.msk.f32.gmra.mxu3 %vm96_vm1, %v306_v8  ;;  %v307_v8 = vld [vmem:[#allocation2 + $0x2e8] sm:$0xff] }
 0x117   :  { %11183 = vmatmul.msk.f32.gmra.mxu0 %vm96_vm1, %v13097_v60  ;;  %18302 = vst [vmem:[#allocation33_spill] sm:$0xff] %v13121_v19  ;;  %v93_v60 = vld [vmem:[%s18076_s0 + $0x1e8] sm:$0xff] }
 0x118   :  { %11248 = vmatmul.msk.f32.gmra.mxu1 %vm96_vm1, %v13099_v18  ;;  %v716_v47 = vpop.f32.mrf.mxu2  ;;  %246 = vst.msk [vmem:[#allocation2 + $0x321] sm:$0xff] %vm96_vm1, %v93_v60  ;;  %v13147_v18 = vld [vmem:[#allocation2 + $0x140] sm:$0xff] }
 0x119   :  { %v1120_v52 = vpop.f32.mrf.mxu3  ;;  %18308 = vst [vmem:[#allocation39_spill] sm:$0xff] %v13147_v18 }
 0x11a   :  { %v13115_v6 = vadd.f32 %v1120_v52, %v716_v47 }
 0x11c   :  { %18299 = vst [vmem:[#allocation30_spill] sm:$0xff] %v13115_v6  ;;  %v13117_v1 = vpop.f32.mrf.mxu0 }
 0x11d   :  { %18300 = vst [vmem:[#allocation31_spill] sm:$0xff] %v13117_v1  ;;  %v13119_v3 = vpop.f32.mrf.mxu1  ;;  %11216 = vmatmul.msk.f32.gmra.mxu2 %vm96_vm1, %v372_v7  ;;  %v373_v7 = vld [vmem:[#allocation2 + $0x2f1] sm:$0xff]  ;;  %v13145_v1 = vld [vmem:[#allocation2 + $0x141] sm:$0xff] }
 0x11e   :  { %18301 = vst [vmem:[#allocation32_spill] sm:$0xff] %v13119_v3  ;;  %11281 = vmatmul.msk.f32.gmra.mxu3 %vm96_vm1, %v307_v8  ;;  %v308_v8 = vld [vmem:[#allocation2 + $0x2f0] sm:$0xff] }
 0x11f   :  { %11184 = vmatmul.msk.f32.gmra.mxu0 %vm96_vm1, %v13121_v19  ;;  %18307 = vst [vmem:[#allocation38_spill] sm:$0xff] %v13145_v1  ;;  %v13165_v19 = vld [vmem:[#allocation2 + $0x151] sm:$0xff] }
 0x120   :  { %11249 = vmatmul.msk.f32.gmra.mxu1 %vm96_vm1, %v13123_v15  ;;  %v719_v47 = vpop.f32.mrf.mxu2  ;;  %18312 = vst [vmem:[#allocation43_spill] sm:$0xff] %v13165_v19  ;;  %v13167_v15 = vld [vmem:[#allocation2 + $0x150] sm:$0xff] }
 0x121   :  { %v1123_v52 = vpop.f32.mrf.mxu3  ;;  %18313 = vst [vmem:[#allocation44_spill] sm:$0xff] %v13167_v15 }
 0x122   :  { %v13139_v6 = vadd.f32 %v1123_v52, %v719_v47 }
 0x124   :  { %18304 = vst [vmem:[#allocation35_spill] sm:$0xff] %v13139_v6  ;;  %v13141_v3 = vpop.f32.mrf.mxu0 }
 0x125   :  { %18305 = vst [vmem:[#allocation36_spill] sm:$0xff] %v13141_v3  ;;  %v13143_v60 = vpop.f32.mrf.mxu1  ;;  %11217 = vmatmul.msk.f32.gmra.mxu2 %vm96_vm1, %v373_v7  ;;  %v309_v7 = vld [vmem:[#allocation2 + $0x300] sm:$0xff] }
 0x126   :  { %18306 = vst [vmem:[#allocation37_spill] sm:$0xff] %v13143_v60  ;;  %11282 = vmatmul.msk.f32.gmra.mxu3 %vm96_vm1, %v308_v8  ;;  %v374_v60 = vld [vmem:[#allocation2 + $0x301] sm:$0xff] }
 0x127   :  { %11185 = vmatmul.msk.f32.gmra.mxu0 %vm96_vm1, %v13145_v1 }
 0x128   :  { %11250 = vmatmul.msk.f32.gmra.mxu1 %vm96_vm1, %v13147_v18  ;;  %v722_v47 = vpop.f32.mrf.mxu2  ;;  %v13189_v18 = vld [vmem:[#allocation2 + $0x159] sm:$0xff] }
 0x129   :  { %v1126_v52 = vpop.f32.mrf.mxu3  ;;  %18317 = vst [vmem:[#allocation48_spill] sm:$0xff] %v13189_v18 }
 0x12a   :  { %v13159_v6 = vadd.f32 %v1126_v52, %v722_v47  ;;  %v11617_v47 = vld [vmem:[%s18075_s1 + $0x1c] sm:$0xf] }
 0x12b   :  { %11618 = vmatpush.msk.msra.mxu3 %vm572_vm0, %v11617_v47  ;;  %v11683_v47 = vld [vmem:[%s18075_s1 + $0x20] sm:$0xf] }
 0x12c   :  { %18309 = vst [vmem:[#allocation40_spill] sm:$0xff] %v13159_v6  ;;  %v13161_v3 = vpop.f32.mrf.mxu0  ;;  %v375_v6 = vld [vmem:[#allocation2 + $0x309] sm:$0xff]  ;;  %11684 = vmatpush.msk.msra.mxu0 %vm572_vm0, %v11683_v47 }
 0x12d   :  { %18310 = vst [vmem:[#allocation41_spill] sm:$0xff] %v13161_v3  ;;  %v13163_v8 = vpop.f32.mrf.mxu1  ;;  %11218 = vmatmul.msk.f32.gmra.mxu2 %vm96_vm1, %v374_v60 }
 0x12e   :  { %18311 = vst [vmem:[#allocation42_spill] sm:$0xff] %v13163_v8  ;;  %11283 = vmatmul.msk.f32.gmra.mxu3 %vm96_vm1, %v309_v7  ;;  %v310_v8 = vld [vmem:[#allocation2 + $0x308] sm:$0xff] }
 0x12f   :  { %11186 = vmatmul.msk.f32.gmra.mxu0 %vm96_vm1, %v13165_v19  ;;  %v13215_v19 = vld [vmem:[#allocation2 + $0x168] sm:$0xff] }
 0x130   :  { %11251 = vmatmul.msk.f32.gmra.mxu1 %vm96_vm1, %v13167_v15  ;;  %v725_v60 = vpop.f32.mrf.mxu2  ;;  %v13229_v15 = vld [vmem:[#allocation2 + $0x171] sm:$0xff] }
 0x131   :  { %v1129_v52 = vpop.f32.mrf.mxu3 }
 0x132   :  { %v13183_v7 = vadd.f32 %v1129_v52, %v725_v60  ;;  %v11485_v60 = vld [vmem:[%s18075_s1 + $0x14] sm:$0xf] }
 0x133   :  { %11486 = vmatpush.msk.msrb.mxu1 %vm572_vm0, %v11485_v60 }
 0x134   :  { %18314 = vst [vmem:[#allocation45_spill] sm:$0xff] %v13183_v7  ;;  %v13185_v3 = vpop.f32.mrf.mxu0  ;;  %v376_v7 = vld [vmem:[#allocation2 + $0x319] sm:$0xff] }
 0x135   :  { %18315 = vst [vmem:[#allocation46_spill] sm:$0xff] %v13185_v3  ;;  %v13187_v1 = vpop.f32.mrf.mxu1  ;;  %11219 = vmatmul.msk.f32.gmra.mxu2 %vm96_vm1, %v375_v6 }
 0x136   :  { %18316 = vst [vmem:[#allocation47_spill] sm:$0xff] %v13187_v1  ;;  %11284 = vmatmul.msk.f32.gmra.mxu3 %vm96_vm1, %v310_v8  ;;  %v311_v1 = vld [vmem:[#allocation2 + $0x318] sm:$0xff] }
 0x137   :  { %11187 = vmatmul.msk.f32.gmra.mxu0 %vm96_vm1, %v13189_v18  ;;  %v13213_v18 = vld [vmem:[#allocation2 + $0x169] sm:$0xff] }
 0x138   :  { %11252 = vmatmul.msk.f32.gmra.mxu1 %vm96_vm1, %v13191_v45  ;;  %v728_v52 = vpop.f32.mrf.mxu2  ;;  %18322 = vst [vmem:[#allocation53_spill] sm:$0xff] %v13213_v18 }
 0x139   :  { %v1132_v6 = vpop.f32.mrf.mxu3 }
 0x13a   :  { %v13207_v8 = vadd.f32 %v1132_v6, %v728_v52 }
 0x13c   :  { %18319 = vst [vmem:[#allocation50_spill] sm:$0xff] %v13207_v8  ;;  %v13209_v3 = vpop.f32.mrf.mxu0  ;;  %v377_v8 = vld [vmem:[#allocation2 + $0x321] sm:$0xff] }
 0x13d   :  { %18320 = vst [vmem:[#allocation51_spill] sm:$0xff] %v13209_v3  ;;  %v13211_v47 = vpop.f32.mrf.mxu1  ;;  %11220 = vmatmul.msk.f32.gmra.mxu2 %vm96_vm1, %v376_v7  ;;  %v13231_v7 = vld [vmem:[#allocation2 + $0x170] sm:$0xff] }
 0x13e   :  { %18321 = vst [vmem:[#allocation52_spill] sm:$0xff] %v13211_v47  ;;  %11285 = vmatmul.msk.f32.gmra.mxu3 %vm96_vm1, %v311_v1  ;;  %v312_v47 = vld [vmem:[#allocation2 + $0x320] sm:$0xff] }
 0x13f   :  { %11188 = vmatmul.msk.f32.gmra.mxu0 %vm96_vm1, %v13213_v18  ;;  %v2791_v18 = vld [vmem:[#allocation2 + $0x1a] sm:$0xff] }
 0x140   :  { %11253 = vmatmul.msk.f32.gmra.mxu1 %vm96_vm1, %v13215_v19  ;;  %v731_v60 = vpop.f32.mrf.mxu2 }
 0x141   :  { %v1135_v52 = vpop.f32.mrf.mxu3 }
 0x142   :  { %v13223_v6 = vadd.f32 %v1135_v52, %v731_v60 }
 0x144   :  { %18323 = vst [vmem:[#allocation54_spill] sm:$0xff] %v13223_v6  ;;  %v13225_v3 = vpop.f32.mrf.mxu0  ;;  %v1189_v6 = vld [vmem:[#allocation2 + $0x2] sm:$0xff] }
 0x145   :  { %18324 = vst [vmem:[#allocation55_spill] sm:$0xff] %v13225_v3  ;;  %v13227_v45 = vpop.f32.mrf.mxu1  ;;  %11221 = vmatmul.msk.f32.gmra.mxu2 %vm96_vm1, %v377_v8 }
 0x146   :  { %18325 = vst [vmem:[#allocation56_spill] sm:$0xff] %v13227_v45  ;;  %11286 = vmatmul.msk.f32.gmra.mxu3 %vm96_vm1, %v312_v47 }
 0x147   :  { %11189 = vmatmul.msk.f32.gmra.mxu0 %vm96_vm1, %v13229_v15 }
 0x148   :  { %11254 = vmatmul.msk.f32.gmra.mxu1 %vm96_vm1, %v13231_v7  ;;  %v734_v1 = vpop.f32.mrf.mxu2 }
 0x149   :  { %v1138_v60 = vpop.f32.mrf.mxu3 }
 0x14a   :  { %v13239_v52 = vadd.f32 %v1138_v60, %v734_v1  ;;  %v1190_v60 = vld [vmem:[#allocation2 + $0xa] sm:$0xff] }
 0x14c   :  { %18326 = vst [vmem:[#allocation57_spill] sm:$0xff] %v13239_v52  ;;  %v13241_v45 = vpop.f32.mrf.mxu0 }
 0x14d   :  { %18327 = vst [vmem:[#allocation58_spill] sm:$0xff] %v13241_v45  ;;  %v13243_v3 = vpop.f32.mrf.mxu1  ;;  %11289 = vmatmul.msk.f32.vlgmr.msrb.gmra.mxu2 %vm96_vm1, %v1189_v6 }
 0x14e   :  { %18328 = vst [vmem:[#allocation59_spill] sm:$0xff] %v13243_v3  ;;  %11355 = vmatmul.msk.f32.vlgmr.msrb.gmra.mxu3 %vm96_vm1, %v12630_v27  ;;  %v2792_v3 = vld [vmem:[#allocation2 + $0x22] sm:$0xff] }
 0x14f   :  { %11421 = vmatmul.msk.f32.vlgmr.msrb.gmra.mxu0 %vm96_vm1, %v12628_v26 }
 0x150   :  { %11487 = vmatmul.msk.f32.vlgmr.msrb.gmra.mxu1 %vm96_vm1, %v2791_v18  ;;  %v737_v8 = vpop.f32.mrf.mxu2 }
 0x151   :  { %v1141_v47 = vpop.f32.mrf.mxu3 }
 0x152   :  { %v13251_v1 = vadd.f32 %v1141_v47, %v737_v8 }
 0x154   :  { %18329 = vst [vmem:[#allocation60_spill] sm:$0xff] %v13251_v1  ;;  %v13253_v52 = vpop.f32.mrf.mxu0  ;;  %v2793_v1 = vld [vmem:[#allocation2 + $0x32] sm:$0xff] }
 0x155   :  { %v13255_v45 = vpop.f32.mrf.mxu1  ;;  %11290 = vmatmul.msk.f32.gmra.mxu2 %vm96_vm1, %v1190_v60 }
 0x156   :  { %11356 = vmatmul.msk.f32.gmra.mxu3 %vm96_vm1, %v12643_v32 }
 0x157   :  { %11422 = vmatmul.msk.f32.gmra.mxu0 %vm96_vm1, %v12641_v31 }
 0x158   :  { %11488 = vmatmul.msk.f32.gmra.mxu1 %vm96_vm1, %v2792_v3  ;;  %v740_v26 = vpop.f32.mrf.mxu2 }
 0x159   :  { %v1144_v27 = vpop.f32.mrf.mxu3 }
 0x15a   :  { %v13263_v6 = vadd.f32 %v1144_v27, %v740_v26 }
 0x15c   :  { %18330 = vst [vmem:[#allocation61_spill] sm:$0xff] %v13263_v6  ;;  %v13265_v8 = vpop.f32.mrf.mxu0  ;;  %v2794_v6 = vld [vmem:[#allocation2 + $0x3a] sm:$0xff] }
 0x15d   :  { %v13267_v47 = vpop.f32.mrf.mxu1  ;;  %11291 = vmatmul.msk.f32.gmra.mxu2 %vm96_vm1, %v2791_v18 }
 0x15e   :  { %11357 = vmatmul.msk.f32.gmra.mxu3 %vm96_vm1, %v12661_v38 }
 0x15f   :  { %11423 = vmatmul.msk.f32.gmra.mxu0 %vm96_vm1, %v12659_v37 }
 0x160   :  { %11489 = vmatmul.msk.f32.gmra.mxu1 %vm96_vm1, %v2793_v1  ;;  %v743_v31 = vpop.f32.mrf.mxu2 }
 0x161   :  { %v1147_v32 = vpop.f32.mrf.mxu3 }
 0x162   :  { %v13275_v60 = vadd.f32 %v1147_v32, %v743_v31 }
 0x164   :  { %18331 = vst [vmem:[#allocation62_spill] sm:$0xff] %v13275_v60  ;;  %v13277_v26 = vpop.f32.mrf.mxu0  ;;  %v2795_v60 = vld [vmem:[#allocation2 + $0x4a] sm:$0xff] }
 0x165   :  { %v13279_v27 = vpop.f32.mrf.mxu1  ;;  %11292 = vmatmul.msk.f32.gmra.mxu2 %vm96_vm1, %v2792_v3 }
 0x166   :  { %11358 = vmatmul.msk.f32.gmra.mxu3 %vm96_vm1, %v12679_v44 }
 0x167   :  { %11424 = vmatmul.msk.f32.gmra.mxu0 %vm96_vm1, %v12677_v43 }
 0x168   :  { %11490 = vmatmul.msk.f32.gmra.mxu1 %vm96_vm1, %v2794_v6  ;;  %v746_v37 = vpop.f32.mrf.mxu2 }
 0x169   :  { %v1150_v38 = vpop.f32.mrf.mxu3 }
 0x16a   :  { %v13287_v18 = vadd.f32 %v1150_v38, %v746_v37 }
 0x16c   :  { %18332 = vst [vmem:[#allocation63_spill] sm:$0xff] %v13287_v18  ;;  %v13289_v31 = vpop.f32.mrf.mxu0  ;;  %v2796_v18 = vld [vmem:[#allocation2 + $0x52] sm:$0xff] }
 0x16d   :  { %v13291_v32 = vpop.f32.mrf.mxu1  ;;  %11293 = vmatmul.msk.f32.gmra.mxu2 %vm96_vm1, %v2793_v1 }
 0x16e   :  { %11359 = vmatmul.msk.f32.gmra.mxu3 %vm96_vm1, %v12697_v50 }
 0x16f   :  { %11425 = vmatmul.msk.f32.gmra.mxu0 %vm96_vm1, %v12695_v49 }
 0x170   :  { %11491 = vmatmul.msk.f32.gmra.mxu1 %vm96_vm1, %v2795_v60  ;;  %v749_v43 = vpop.f32.mrf.mxu2 }
 0x171   :  { %v1153_v44 = vpop.f32.mrf.mxu3 }
 0x172   :  { %v13299_v3 = vadd.f32 %v1153_v44, %v749_v43 }
 0x174   :  { %18333 = vst [vmem:[#allocation64_spill] sm:$0xff] %v13299_v3  ;;  %v13301_v37 = vpop.f32.mrf.mxu0  ;;  %v2797_v3 = vld [vmem:[#allocation2 + $0x62] sm:$0xff] }
 0x175   :  { %v13303_v38 = vpop.f32.mrf.mxu1  ;;  %11294 = vmatmul.msk.f32.gmra.mxu2 %vm96_vm1, %v2794_v6 }
 0x176   :  { %11360 = vmatmul.msk.f32.gmra.mxu3 %vm96_vm1, %v12715_v56 }
 0x177   :  { %11426 = vmatmul.msk.f32.gmra.mxu0 %vm96_vm1, %v12713_v55 }
 0x178   :  { %11492 = vmatmul.msk.f32.gmra.mxu1 %vm96_vm1, %v2796_v18  ;;  %v752_v49 = vpop.f32.mrf.mxu2 }
 0x179   :  { %v1156_v50 = vpop.f32.mrf.mxu3 }
 0x17a   :  { %v13311_v1 = vadd.f32 %v1156_v50, %v752_v49 }
 0x17c   :  { %18334 = vst [vmem:[#allocation65_spill] sm:$0xff] %v13311_v1  ;;  %v13313_v43 = vpop.f32.mrf.mxu0  ;;  %v2798_v1 = vld [vmem:[#allocation2 + $0x6a] sm:$0xff] }
 0x17d   :  { %v13315_v44 = vpop.f32.mrf.mxu1  ;;  %11295 = vmatmul.msk.f32.gmra.mxu2 %vm96_vm1, %v2795_v60 }
 0x17e   :  { %11361 = vmatmul.msk.f32.gmra.mxu3 %vm96_vm1, %v12733_v62 }
 0x17f   :  { %11427 = vmatmul.msk.f32.gmra.mxu0 %vm96_vm1, %v12731_v61 }
 0x180   :  { %11493 = vmatmul.msk.f32.gmra.mxu1 %vm96_vm1, %v2797_v3  ;;  %v755_v55 = vpop.f32.mrf.mxu2 }
 0x181   :  { %v1159_v56 = vpop.f32.mrf.mxu3 }
 0x182   :  { %v13323_v6 = vadd.f32 %v1159_v56, %v755_v55 }
 0x184   :  { %18335 = vst [vmem:[#allocation66_spill] sm:$0xff] %v13323_v6  ;;  %v13325_v49 = vpop.f32.mrf.mxu0  ;;  %v2799_v6 = vld [vmem:[#allocation2 + $0x7a] sm:$0xff] }
 0x185   :  { %v13327_v50 = vpop.f32.mrf.mxu1  ;;  %11296 = vmatmul.msk.f32.gmra.mxu2 %vm96_vm1, %v2796_v18 }
 0x186   :  { %11362 = vmatmul.msk.f32.gmra.mxu3 %vm96_vm1, %v12751_v5 }
 0x187   :  { %11428 = vmatmul.msk.f32.gmra.mxu0 %vm96_vm1, %v12749_v4 }
 0x188   :  { %11494 = vmatmul.msk.f32.gmra.mxu1 %vm96_vm1, %v2798_v1  ;;  %v758_v61 = vpop.f32.mrf.mxu2 }
 0x189   :  { %v1162_v62 = vpop.f32.mrf.mxu3 }
 0x18a   :  { %v13335_v60 = vadd.f32 %v1162_v62, %v758_v61 }
 0x18c   :  { %18336 = vst [vmem:[#allocation67_spill] sm:$0xff] %v13335_v60  ;;  %v13337_v55 = vpop.f32.mrf.mxu0  ;;  %v2800_v60 = vld [vmem:[#allocation2 + $0x82] sm:$0xff] }
 0x18d   :  { %v13339_v56 = vpop.f32.mrf.mxu1  ;;  %11297 = vmatmul.msk.f32.gmra.mxu2 %vm96_vm1, %v2797_v3 }
 0x18e   :  { %11363 = vmatmul.msk.f32.gmra.mxu3 %vm96_vm1, %v12769_v11 }
 0x18f   :  { %11429 = vmatmul.msk.f32.gmra.mxu0 %vm96_vm1, %v12767_v10 }
 0x190   :  { %11495 = vmatmul.msk.f32.gmra.mxu1 %vm96_vm1, %v2799_v6  ;;  %v761_v4 = vpop.f32.mrf.mxu2 }
 0x191   :  { %v1165_v5 = vpop.f32.mrf.mxu3 }
 0x192   :  { %v13347_v18 = vadd.f32 %v1165_v5, %v761_v4 }
 0x194   :  { %18337 = vst [vmem:[#allocation68_spill] sm:$0xff] %v13347_v18  ;;  %v13349_v61 = vpop.f32.mrf.mxu0  ;;  %v2801_v18 = vld [vmem:[#allocation2 + $0x92] sm:$0xff] }
 0x195   :  { %v13351_v62 = vpop.f32.mrf.mxu1  ;;  %11298 = vmatmul.msk.f32.gmra.mxu2 %vm96_vm1, %v2798_v1 }
 0x196   :  { %11364 = vmatmul.msk.f32.gmra.mxu3 %vm96_vm1, %v12787_v17 }
 0x197   :  { %11430 = vmatmul.msk.f32.gmra.mxu0 %vm96_vm1, %v12785_v16 }
 0x198   :  { %11496 = vmatmul.msk.f32.gmra.mxu1 %vm96_vm1, %v2800_v60  ;;  %v764_v10 = vpop.f32.mrf.mxu2 }
 0x199   :  { %v1168_v11 = vpop.f32.mrf.mxu3 }
 0x19a   :  { %v13359_v3 = vadd.f32 %v1168_v11, %v764_v10 }
 0x19c   :  { %18338 = vst [vmem:[#allocation69_spill] sm:$0xff] %v13359_v3  ;;  %v13361_v4 = vpop.f32.mrf.mxu0  ;;  %v2802_v3 = vld [vmem:[#allocation2 + $0x9a] sm:$0xff] }
 0x19d   :  { %v13363_v5 = vpop.f32.mrf.mxu1  ;;  %11299 = vmatmul.msk.f32.gmra.mxu2 %vm96_vm1, %v2799_v6 }
 0x19e   :  { %11365 = vmatmul.msk.f32.gmra.mxu3 %vm96_vm1, %v12805_v23 }
 0x19f   :  { %11431 = vmatmul.msk.f32.gmra.mxu0 %vm96_vm1, %v12803_v22 }
 0x1a0   :  { %11497 = vmatmul.msk.f32.gmra.mxu1 %vm96_vm1, %v2801_v18  ;;  %v767_v16 = vpop.f32.mrf.mxu2 }
 0x1a1   :  { %v1171_v17 = vpop.f32.mrf.mxu3 }
 0x1a2   :  { %v13371_v1 = vadd.f32 %v1171_v17, %v767_v16 }
 0x1a4   :  { %18339 = vst [vmem:[#allocation70_spill] sm:$0xff] %v13371_v1  ;;  %v13373_v10 = vpop.f32.mrf.mxu0  ;;  %v2803_v1 = vld [vmem:[#allocation2 + $0xaa] sm:$0xff] }
 0x1a5   :  { %v13375_v11 = vpop.f32.mrf.mxu1  ;;  %11300 = vmatmul.msk.f32.gmra.mxu2 %vm96_vm1, %v2800_v60 }
 0x1a6   :  { %11366 = vmatmul.msk.f32.gmra.mxu3 %vm96_vm1, %v12823_v33 }
 0x1a7   :  { %11432 = vmatmul.msk.f32.gmra.mxu0 %vm96_vm1, %v12821_v30 }
 0x1a8   :  { %11498 = vmatmul.msk.f32.gmra.mxu1 %vm96_vm1, %v2802_v3  ;;  %v770_v22 = vpop.f32.mrf.mxu2 }
 0x1a9   :  { %v1174_v23 = vpop.f32.mrf.mxu3 }
 0x1aa   :  { %v13383_v6 = vadd.f32 %v1174_v23, %v770_v22 }
 0x1ac   :  { %18340 = vst [vmem:[#allocation71_spill] sm:$0xff] %v13383_v6  ;;  %v13385_v16 = vpop.f32.mrf.mxu0  ;;  %v2804_v6 = vld [vmem:[#allocation2 + $0xb2] sm:$0xff] }
 0x1ad   :  { %v13387_v17 = vpop.f32.mrf.mxu1  ;;  %11301 = vmatmul.msk.f32.gmra.mxu2 %vm96_vm1, %v2801_v18 }
 0x1ae   :  { %11367 = vmatmul.msk.f32.gmra.mxu3 %vm96_vm1, %v12841_v41 }
 0x1af   :  { %11433 = vmatmul.msk.f32.gmra.mxu0 %vm96_vm1, %v12839_v40 }
 0x1b0   :  { %11499 = vmatmul.msk.f32.gmra.mxu1 %vm96_vm1, %v2803_v1  ;;  %v773_v30 = vpop.f32.mrf.mxu2 }
 0x1b1   :  { %v1177_v33 = vpop.f32.mrf.mxu3 }
 0x1b2   :  { %v13395_v60 = vadd.f32 %v1177_v33, %v773_v30 }
 0x1b4   :  { %18341 = vst [vmem:[#allocation72_spill] sm:$0xff] %v13395_v60  ;;  %v13397_v22 = vpop.f32.mrf.mxu0  ;;  %v2805_v60 = vld [vmem:[#allocation2 + $0xc2] sm:$0xff] }
 0x1b5   :  { %v13399_v23 = vpop.f32.mrf.mxu1  ;;  %11302 = vmatmul.msk.f32.gmra.mxu2 %vm96_vm1, %v2802_v3 }
 0x1b6   :  { %11368 = vmatmul.msk.f32.gmra.mxu3 %vm96_vm1, %v12859_v51 }
 0x1b7   :  { %11434 = vmatmul.msk.f32.gmra.mxu0 %vm96_vm1, %v12857_v48 }
 0x1b8   :  { %11500 = vmatmul.msk.f32.gmra.mxu1 %vm96_vm1, %v2804_v6  ;;  %v776_v40 = vpop.f32.mrf.mxu2 }
 0x1b9   :  { %v1180_v41 = vpop.f32.mrf.mxu3 }
 0x1ba   :  { %v13407_v18 = vadd.f32 %v1180_v41, %v776_v40 }
 0x1bc   :  { %18342 = vst [vmem:[#allocation73_spill] sm:$0xff] %v13407_v18  ;;  %v13409_v30 = vpop.f32.mrf.mxu0  ;;  %v2806_v18 = vld [vmem:[#allocation2 + $0xca] sm:$0xff] }
 0x1bd   :  { %v13411_v33 = vpop.f32.mrf.mxu1  ;;  %11303 = vmatmul.msk.f32.gmra.mxu2 %vm96_vm1, %v2803_v1 }
 0x1be   :  { %18343 = vst [vmem:[#allocation74_spill] sm:$0xff] %v13411_v33  ;;  %11369 = vmatmul.msk.f32.gmra.mxu3 %vm96_vm1, %v12883_v0 }
 0x1bf   :  { %11435 = vmatmul.msk.f32.gmra.mxu0 %vm96_vm1, %v12881_v63 }
 0x1c0   :  { %11501 = vmatmul.msk.f32.gmra.mxu1 %vm96_vm1, %v2805_v60  ;;  %v779_v48 = vpop.f32.mrf.mxu2 }
 0x1c1   :  { %v1183_v51 = vpop.f32.mrf.mxu3 }
 0x1c2   :  { %v13419_v3 = vadd.f32 %v1183_v51, %v779_v48 }
 0x1c4   :  { %18344 = vst [vmem:[#allocation75_spill] sm:$0xff] %v13419_v3  ;;  %v13421_v40 = vpop.f32.mrf.mxu0  ;;  %v2807_v3 = vld [vmem:[#allocation2 + $0xda] sm:$0xff] }
 0x1c5   :  { %18345 = vst [vmem:[#allocation76_spill] sm:$0xff] %v13421_v40  ;;  %v13423_v41 = vpop.f32.mrf.mxu1  ;;  %11304 = vmatmul.msk.f32.gmra.mxu2 %vm96_vm1, %v2804_v6  ;;  %v2808_v40 = vld [vmem:[#allocation2 + $0xe2] sm:$0xff] }
 0x1c6   :  { %18346 = vst [vmem:[#allocation77_spill] sm:$0xff] %v13423_v41  ;;  %11370 = vmatmul.msk.f32.gmra.mxu3 %vm96_vm1, %v12907_v14  ;;  %v998_v14 = vadd.f32 %v12875_v54, %v12877_v57  ;;  %v1001_v54 = vadd.f32 %v12901_v9, %v12903_v12  ;;  %v1004_v9 = vadd.f32 %v12927_v29, %v12925_v28 }
 0x1c7   :  { %11436 = vmatmul.msk.f32.gmra.mxu0 %vm96_vm1, %v12905_v13  ;;  %v1007_v28 = vadd.f32 %v12951_v58, %v12949_v53  ;;  %v1010_v53 = vadd.f32 %v12975_v25, %v12973_v24  ;;  %v18349_v24 = vld [vmem:[#allocation10_spill] sm:$0xff]  ;;  %v18350_v25 = vld [vmem:[#allocation11_spill] sm:$0xff] }
 0x1c8   :  { %11502 = vmatmul.msk.f32.gmra.mxu1 %vm96_vm1, %v2806_v18  ;;  %v782_v63 = vpop.f32.mrf.mxu2 }
 0x1c9   :  { %v1186_v0 = vpop.f32.mrf.mxu3 }
 0x1ca   :  { %v13431_v1 = vadd.f32 %v1186_v0, %v782_v63 }
 0x1cc   :  { %18347 = vst [vmem:[#allocation78_spill] sm:$0xff] %v13431_v1  ;;  %v2535_v48 = vpop.f32.mrf.mxu0 }
 0x1cd   :  { %v3069_v51 = vpop.f32.mrf.mxu1  ;;  %11305 = vmatmul.msk.f32.gmra.mxu2 %vm96_vm1, %v2805_v60 }
 0x1ce   :  { %11371 = vmatmul.msk.f32.gmra.mxu3 %vm96_vm1, %v12931_v35 }
 0x1cf   :  { %11437 = vmatmul.msk.f32.gmra.mxu0 %vm96_vm1, %v12929_v34 }
 0x1d0   :  { %11503 = vmatmul.msk.f32.gmra.mxu1 %vm96_vm1, %v2807_v3  ;;  %v1467_v13 = vpop.f32.mrf.mxu2 }
 0x1d1   :  { %v2001_v6 = vpop.f32.mrf.mxu3  ;;  %v1659_v63 = vadd.f32 %v1467_v13, %v998_v14 }
 0x1d3   :  { %v2193_v0 = vadd.f32 %v2001_v6, %v1659_v63 }
 0x1d4   :  { %v2538_v1 = vpop.f32.mrf.mxu0 }
 0x1d5   :  { %v3072_v41 = vpop.f32.mrf.mxu1  ;;  %v2727_v33 = vadd.f32 %v2535_v48, %v2193_v0  ;;  %11306 = vmatmul.msk.f32.gmra.mxu2 %vm96_vm1, %v2806_v18  ;;  %v2809_v18 = vld [vmem:[#allocation2 + $0xf2] sm:$0xff] }
 0x1d6   :  { %11372 = vmatmul.msk.f32.gmra.mxu3 %vm96_vm1, %v12955_v2 }
 0x1d7   :  { %v13446_v57 = vadd.f32 %v3069_v51, %v2727_v33  ;;  %11438 = vmatmul.msk.f32.gmra.mxu0 %vm96_vm1, %v12953_v59 }
 0x1d8   :  { %11504 = vmatmul.msk.f32.gmra.mxu1 %vm96_vm1, %v2808_v40  ;;  %v1470_v34 = vpop.f32.mrf.mxu2 }
 0x1d9   :  { %v2004_v35 = vpop.f32.mrf.mxu3  ;;  %v1660_v60 = vadd.f32 %v1470_v34, %v1001_v54 }
 0x1db   :  { %v2194_v14 = vadd.f32 %v2004_v35, %v1660_v60 }
 0x1dc   :  { %v2541_v48 = vpop.f32.mrf.mxu0 }
 0x1dd   :  { %v3075_v13 = vpop.f32.mrf.mxu1  ;;  %v2728_v6 = vadd.f32 %v2538_v1, %v2194_v14  ;;  %11307 = vmatmul.msk.f32.gmra.mxu2 %vm96_vm1, %v2807_v3  ;;  %v2810_v3 = vld [vmem:[#allocation2 + $0xfa] sm:$0xff] }
 0x1de   :  { %11373 = vmatmul.msk.f32.gmra.mxu3 %vm96_vm1, %v12979_v39 }
 0x1df   :  { %v13456_v12 = vadd.f32 %v3072_v41, %v2728_v6  ;;  %11439 = vmatmul.msk.f32.gmra.mxu0 %vm96_vm1, %v12977_v36 }
 0x1e0   :  { %11505 = vmatmul.msk.f32.gmra.mxu1 %vm96_vm1, %v2809_v18  ;;  %v1473_v59 = vpop.f32.mrf.mxu2 }
 0x1e1   :  { %v2007_v2 = vpop.f32.mrf.mxu3  ;;  %v1661_v33 = vadd.f32 %v1473_v59, %v1004_v9  ;;  %v1013_v59 = vadd.f32 %v18350_v25, %v18349_v24  ;;  %v18358_v24 = vld [vmem:[#allocation17_spill] sm:$0xff] }
 0x1e3   :  { %v2195_v51 = vadd.f32 %v2007_v2, %v1661_v33 }
 0x1e4   :  { %v2544_v1 = vpop.f32.mrf.mxu0 }
 0x1e5   :  { %v3078_v63 = vpop.f32.mrf.mxu1  ;;  %v2729_v0 = vadd.f32 %v2541_v48, %v2195_v51  ;;  %11308 = vmatmul.msk.f32.gmra.mxu2 %vm96_vm1, %v2808_v40  ;;  %v2811_v40 = vld [vmem:[#allocation2 + $0x10a] sm:$0xff] }
 0x1e6   :  { %11374 = vmatmul.msk.f32.gmra.mxu3 %vm96_vm1, %v13003_v42 }
 0x1e7   :  { %v13466_v29 = vadd.f32 %v3075_v13, %v2729_v0  ;;  %11440 = vmatmul.msk.f32.gmra.mxu0 %vm96_vm1, %v13001_v20 }
 0x1e8   :  { %11506 = vmatmul.msk.f32.gmra.mxu1 %vm96_vm1, %v2810_v3  ;;  %v1476_v36 = vpop.f32.mrf.mxu2 }
 0x1e9   :  { %v2010_v39 = vpop.f32.mrf.mxu3  ;;  %v1662_v41 = vadd.f32 %v1476_v36, %v1007_v28 }
 0x1eb   :  { %v2196_v54 = vadd.f32 %v2010_v39, %v1662_v41  ;;  %v18352_v39 = vld [vmem:[#allocation24_spill] sm:$0xff]  ;;  %v18353_v41 = vld [vmem:[#allocation13_spill] sm:$0xff] }
 0x1ec   :  { %v2547_v34 = vpop.f32.mrf.mxu0 }
 0x1ed   :  { %v3081_v35 = vpop.f32.mrf.mxu1  ;;  %v2730_v60 = vadd.f32 %v2544_v1, %v2196_v54  ;;  %11309 = vmatmul.msk.f32.gmra.mxu2 %vm96_vm1, %v2809_v18  ;;  %v2812_v18 = vld [vmem:[#allocation2 + $0x112] sm:$0xff] }
 0x1ee   :  { %11375 = vmatmul.msk.f32.gmra.mxu3 %vm96_vm1, %v13027_v21  ;;  %v18348_v21 = vld [vmem:[#allocation19_spill] sm:$0xff]  ;;  %v18354_v54 = vld [vmem:[#allocation14_spill] sm:$0xff] }
 0x1ef   :  { %v13476_v58 = vadd.f32 %v3078_v63, %v2730_v60  ;;  %11441 = vmatmul.msk.f32.gmra.mxu0 %vm96_vm1, %v13025_v46  ;;  %v18351_v46 = vld [vmem:[#allocation18_spill] sm:$0xff]  ;;  %v18355_v60 = vld [vmem:[#allocation23_spill] sm:$0xff] }
 0x1f0   :  { %11507 = vmatmul.msk.f32.gmra.mxu1 %vm96_vm1, %v2811_v40  ;;  %v1479_v20 = vpop.f32.mrf.mxu2 }
 0x1f1   :  { %v2013_v42 = vpop.f32.mrf.mxu3  ;;  %v1663_v14 = vadd.f32 %v1479_v20, %v1010_v53 }
 0x1f3   :  { %v2197_v48 = vadd.f32 %v2013_v42, %v1663_v14 }
 0x1f4   :  { %v2550_v13 = vpop.f32.mrf.mxu0 }
 0x1f5   :  { %v3084_v6 = vpop.f32.mrf.mxu1  ;;  %v2731_v9 = vadd.f32 %v2547_v34, %v2197_v48  ;;  %11310 = vmatmul.msk.f32.gmra.mxu2 %vm96_vm1, %v2810_v3  ;;  %v2813_v3 = vld [vmem:[#allocation2 + $0x122] sm:$0xff]  ;;  %v1016_v34 = vadd.f32 %v18354_v54, %v18353_v41  ;;  %v18360_v41 = vld [vmem:[#allocation34_spill] sm:$0xff] }
 0x1f6   :  { %11376 = vmatmul.msk.f32.gmra.mxu3 %vm96_vm1, %v18348_v21  ;;  %v18356_v21 = vld [vmem:[#allocation29_spill] sm:$0xff]  ;;  %v18362_v54 = vld [vmem:[#allocation22_spill] sm:$0xff] }
 0x1f7   :  { %v13486_v2 = vadd.f32 %v3081_v35, %v2731_v9  ;;  %11442 = vmatmul.msk.f32.gmra.mxu0 %vm96_vm1, %v18351_v46  ;;  %v18359_v46 = vld [vmem:[#allocation28_spill] sm:$0xff] }
 0x1f8   :  { %11508 = vmatmul.msk.f32.gmra.mxu1 %vm96_vm1, %v2812_v18  ;;  %v1482_v33 = vpop.f32.mrf.mxu2 }
 0x1f9   :  { %v2016_v51 = vpop.f32.mrf.mxu3  ;;  %v1664_v1 = vadd.f32 %v1482_v33, %v1013_v59 }
 0x1fb   :  { %v2198_v63 = vadd.f32 %v2016_v51, %v1664_v1 }
 0x1fc   :  { %v2553_v0 = vpop.f32.mrf.mxu0 }
 0x1fd   :  { %v3087_v28 = vpop.f32.mrf.mxu1  ;;  %v2732_v36 = vadd.f32 %v2550_v13, %v2198_v63  ;;  %11311 = vmatmul.msk.f32.gmra.mxu2 %vm96_vm1, %v2811_v40  ;;  %v2814_v40 = vld [vmem:[#allocation2 + $0x12a] sm:$0xff] }
 0x1fe   :  { %11377 = vmatmul.msk.f32.gmra.mxu3 %vm96_vm1, %v18352_v39 }
 0x1ff   :  { %v13496_v35 = vadd.f32 %v3084_v6, %v2732_v36  ;;  %11443 = vmatmul.msk.f32.gmra.mxu0 %vm96_vm1, %v18355_v60  ;;  %v18357_v6 = vld [vmem:[#allocation16_spill] sm:$0xff] }
 0x200   :  { %11509 = vmatmul.msk.f32.gmra.mxu1 %vm96_vm1, %v2813_v3  ;;  %v1485_v53 = vpop.f32.mrf.mxu2  ;;  %v1019_v25 = vadd.f32 %v18358_v24, %v18357_v6  ;;  %v18364_v24 = vld [vmem:[#allocation39_spill] sm:$0xff] }
 0x201   :  { %v2019_v20 = vpop.f32.mrf.mxu3  ;;  %v1665_v42 = vadd.f32 %v1485_v53, %v1016_v34  ;;  %v18363_v53 = vld [vmem:[#allocation33_spill] sm:$0xff] }
 0x203   :  { %v2199_v14 = vadd.f32 %v2019_v20, %v1665_v42 }
 0x204   :  { %v2556_v48 = vpop.f32.mrf.mxu0 }
 0x205   :  { %v3090_v13 = vpop.f32.mrf.mxu1  ;;  %v2733_v9 = vadd.f32 %v2553_v0, %v2199_v14  ;;  %11312 = vmatmul.msk.f32.gmra.mxu2 %vm96_vm1, %v2812_v18  ;;  %v2815_v18 = vld [vmem:[#allocation2 + $0x13a] sm:$0xff] }
 0x206   :  { %11378 = vmatmul.msk.f32.gmra.mxu3 %vm96_vm1, %v18356_v21 }
 0x207   :  { %v13506_v59 = vadd.f32 %v3087_v28, %v2733_v9  ;;  %11444 = vmatmul.msk.f32.gmra.mxu0 %vm96_vm1, %v18359_v46  ;;  %v18361_v28 = vld [vmem:[#allocation21_spill] sm:$0xff]  ;;  %v18366_v46 = vld [vmem:[#allocation27_spill] sm:$0xff] }
 0x208   :  { %11510 = vmatmul.msk.f32.gmra.mxu1 %vm96_vm1, %v2814_v40  ;;  %v1488_v33 = vpop.f32.mrf.mxu2  ;;  %v1022_v34 = vadd.f32 %v18362_v54, %v18361_v28  ;;  %v2817_v54 = vld [vmem:[#allocation2 + $0x152] sm:$0xff] }
 0x209   :  { %v2022_v51 = vpop.f32.mrf.mxu3  ;;  %v1666_v1 = vadd.f32 %v1488_v33, %v1019_v25  ;;  %v18365_v25 = vld [vmem:[#allocation26_spill] sm:$0xff] }
 0x20a   :  { %v1025_v33 = vadd.f32 %v18366_v46, %v18365_v25 }
 0x20b   :  { %v2200_v63 = vadd.f32 %v2022_v51, %v1666_v1  ;;  %v18367_v1 = vld [vmem:[#allocation38_spill] sm:$0xff] }
 0x20c   :  { %v2559_v0 = vpop.f32.mrf.mxu0 }
 0x20d   :  { %v3093_v36 = vpop.f32.mrf.mxu1  ;;  %v2734_v39 = vadd.f32 %v2556_v48, %v2200_v63  ;;  %11313 = vmatmul.msk.f32.gmra.mxu2 %vm96_vm1, %v2813_v3  ;;  %v2816_v3 = vld [vmem:[#allocation2 + $0x142] sm:$0xff] }
 0x20e   :  { %11379 = vmatmul.msk.f32.gmra.mxu3 %vm96_vm1, %v18360_v41 }
 0x20f   :  { %v13516_v60 = vadd.f32 %v3090_v13, %v2734_v39  ;;  %11445 = vmatmul.msk.f32.gmra.mxu0 %vm96_vm1, %v18363_v53  ;;  %v62_v13 = vld [vmem:[%s18076_s0 + $0xf0] sm:$0xff]  ;;  %v18368_v53 = vld [vmem:[#allocation44_spill] sm:$0xff] }
 0x210   :  { %11511 = vmatmul.msk.f32.gmra.mxu1 %vm96_vm1, %v2815_v18  ;;  %v1491_v20 = vpop.f32.mrf.mxu2  ;;  %215 = vst.msk [vmem:[#allocation2 + $0x181] sm:$0xff] %vm96_vm1, %v62_v13 }
 0x211   :  { %v2025_v42 = vpop.f32.mrf.mxu3  ;;  %v1667_v14 = vadd.f32 %v1491_v20, %v1022_v34  ;;  %v18369_v20 = vld [vmem:[#allocation31_spill] sm:$0xff] }
 0x213   :  { %v2201_v9 = vadd.f32 %v2025_v42, %v1667_v14  ;;  %v18370_v42 = vld [vmem:[#allocation32_spill] sm:$0xff] }
 0x214   :  { %v2562_v48 = vpop.f32.mrf.mxu0  ;;  %v1028_v14 = vadd.f32 %v18370_v42, %v18369_v20 }
 0x215   :  { %v3096_v21 = vpop.f32.mrf.mxu1  ;;  %v2735_v6 = vadd.f32 %v2559_v0, %v2201_v9  ;;  %11314 = vmatmul.msk.f32.gmra.mxu2 %vm96_vm1, %v2814_v40 }
 0x216   :  { %11380 = vmatmul.msk.f32.gmra.mxu3 %vm96_vm1, %v18364_v24 }
 0x217   :  { %v13529_v51 = vadd.f32 %v3093_v36, %v2735_v6  ;;  %11446 = vmatmul.msk.f32.gmra.mxu0 %vm96_vm1, %v18367_v1  ;;  %v63_v36 = vld [vmem:[%s18076_s0 + $0xf8] sm:$0xff] }
 0x218   :  { %11512 = vmatmul.msk.f32.gmra.mxu1 %vm96_vm1, %v2816_v3  ;;  %v1494_v40 = vpop.f32.mrf.mxu2  ;;  %v18371_v6 = vld [vmem:[#allocation43_spill] sm:$0xff]  ;;  %216 = vst.msk [vmem:[#allocation2 + $0x189] sm:$0xff] %vm96_vm1, %v63_v36 }
 0x219   :  { %v2028_v63 = vpop.f32.mrf.mxu3  ;;  %v1668_v0 = vadd.f32 %v1494_v40, %v1025_v33  ;;  %v2818_v33 = vld [vmem:[#allocation2 + $0x15a] sm:$0xff]  ;;  %v18372_v40 = vld [vmem:[#allocation49_spill] sm:$0xff] }
 0x21b   :  { %v2202_v39 = vadd.f32 %v2028_v63, %v1668_v0  ;;  %v18374_v63 = vld [vmem:[#allocation37_spill] sm:$0xff] }
 0x21c   :  { %v2565_v41 = vpop.f32.mrf.mxu0 }
 0x21d   :  { %v3099_v28 = vpop.f32.mrf.mxu1  ;;  %v2736_v34 = vadd.f32 %v2562_v48, %v2202_v39  ;;  %11315 = vmatmul.msk.f32.gmra.mxu2 %vm96_vm1, %v2815_v18 }
 0x21e   :  { %11381 = vmatmul.msk.f32.gmra.mxu3 %vm96_vm1, %v18368_v53 }
 0x21f   :  { %v13543_v9 = vadd.f32 %v3096_v21, %v2736_v34  ;;  %11447 = vmatmul.msk.f32.gmra.mxu0 %vm96_vm1, %v18371_v6  ;;  %v18373_v21 = vld [vmem:[#allocation36_spill] sm:$0xff] }
 0x220   :  { %11513 = vmatmul.msk.f32.gmra.mxu1 %vm96_vm1, %v2817_v54  ;;  %v1497_v18 = vpop.f32.mrf.mxu2  ;;  %v1031_v0 = vadd.f32 %v18374_v63, %v18373_v21  ;;  %v18375_v34 = vld [vmem:[#allocation48_spill] sm:$0xff] }
 0x221   :  { %v2031_v48 = vpop.f32.mrf.mxu3  ;;  %v1669_v24 = vadd.f32 %v1497_v18, %v1028_v14  ;;  %v18377_v18 = vld [vmem:[#allocation42_spill] sm:$0xff] }
 0x223   :  { %v2203_v13 = vadd.f32 %v2031_v48, %v1669_v24 }
 0x224   :  { %v2568_v25 = vpop.f32.mrf.mxu0 }
 0x225   :  { %v3102_v46 = vpop.f32.mrf.mxu1  ;;  %v2737_v1 = vadd.f32 %v2565_v41, %v2203_v13  ;;  %11316 = vmatmul.msk.f32.gmra.mxu2 %vm96_vm1, %v2816_v3  ;;  %v2819_v3 = vld [vmem:[#allocation2 + $0x16a] sm:$0xff] }
 0x226   :  { %11382 = vmatmul.msk.f32.gmra.mxu3 %vm96_vm1, %v18372_v40  ;;  %v18378_v13 = vld [vmem:[#allocation53_spill] sm:$0xff] }
 0x227   :  { %v13554_v39 = vadd.f32 %v3099_v28, %v2737_v1  ;;  %11448 = vmatmul.msk.f32.gmra.mxu0 %vm96_vm1, %v18375_v34  ;;  %v18376_v28 = vld [vmem:[#allocation41_spill] sm:$0xff] }
 0x228   :  { %11514 = vmatmul.msk.f32.gmra.mxu1 %vm96_vm1, %v2818_v33  ;;  %v1500_v53 = vpop.f32.mrf.mxu2  ;;  %v1034_v48 = vadd.f32 %v18377_v18, %v18376_v28  ;;  %v1753_v28 = vld [vmem:[#allocation2 + $0x180] sm:$0xff] }
 0x229   :  { %v2034_v36 = vpop.f32.mrf.mxu3  ;;  %v1670_v20 = vadd.f32 %v1500_v53, %v1031_v0 }
 0x22b   :  { %v2204_v42 = vadd.f32 %v2034_v36, %v1670_v20 }
 0x22c   :  { %v2571_v41 = vpop.f32.mrf.mxu0 }
 0x22d   :  { %v3105_v14 = vpop.f32.mrf.mxu1  ;;  %v2738_v6 = vadd.f32 %v2568_v25, %v2204_v42  ;;  %11317 = vmatmul.msk.f32.gmra.mxu2 %vm96_vm1, %v2817_v54  ;;  %v2820_v54 = vld [vmem:[#allocation2 + $0x172] sm:$0xff] }
 0x22e   :  { %11383 = vmatmul.msk.f32.gmra.mxu3 %vm96_vm1, %v13215_v19  ;;  %v18379_v19 = vld [vmem:[#allocation46_spill] sm:$0xff] }
 0x22f   :  { %v13564_v24 = vadd.f32 %v3102_v46, %v2738_v6  ;;  %11449 = vmatmul.msk.f32.gmra.mxu0 %vm96_vm1, %v18378_v13  ;;  %v18380_v46 = vld [vmem:[#allocation47_spill] sm:$0xff]  ;;  %v2821_v13 = vld [vmem:[#allocation2 + $0x182] sm:$0xff] }
 0x230   :  { %11515 = vmatmul.msk.f32.gmra.mxu1 %vm96_vm1, %v2819_v3  ;;  %v1503_v1 = vpop.f32.mrf.mxu2  ;;  %v1037_v53 = vadd.f32 %v18380_v46, %v18379_v19  ;;  %v1754_v19 = vld [vmem:[#allocation2 + $0x188] sm:$0xff] }
 0x231   :  { %v2037_v40 = vpop.f32.mrf.mxu3  ;;  %v1671_v21 = vadd.f32 %v1503_v1, %v1034_v48  ;;  %v2287_v48 = vld [vmem:[#allocation2 + $0x181] sm:$0xff] }
 0x232   :  { %v18382_v1 = vld [vmem:[#allocation52_spill] sm:$0xff] }
 0x233   :  { %v2205_v63 = vadd.f32 %v2037_v40, %v1671_v21 }
 0x234   :  { %v2574_v25 = vpop.f32.mrf.mxu0 }
 0x235   :  { %v3108_v0 = vpop.f32.mrf.mxu1  ;;  %v2739_v34 = vadd.f32 %v2571_v41, %v2205_v63  ;;  %11318 = vmatmul.msk.f32.gmra.mxu2 %vm96_vm1, %v2818_v33 }
 0x236   :  { %11384 = vmatmul.msk.f32.gmra.mxu3 %vm96_vm1, %v13231_v7 }
 0x237   :  { %v13574_v36 = vadd.f32 %v3105_v14, %v2739_v34  ;;  %11450 = vmatmul.msk.f32.gmra.mxu0 %vm96_vm1, %v13229_v15  ;;  %v18381_v14 = vld [vmem:[#allocation51_spill] sm:$0xff] }
 0x238   :  { %11516 = vmatmul.msk.f32.gmra.mxu1 %vm96_vm1, %v2820_v54  ;;  %v1506_v20 = vpop.f32.mrf.mxu2  ;;  %v1040_v40 = vadd.f32 %v18382_v1, %v18381_v14  ;;  %v1221_v14 = vld [vmem:[#allocation2 + $0x1b2] sm:$0xff]  ;;  %v1755_v1 = vld [vmem:[#allocation2 + $0x1c8] sm:$0xff] }
 0x239   :  { %v2040_v42 = vpop.f32.mrf.mxu3  ;;  %v1672_v6 = vadd.f32 %v1506_v20, %v1037_v53  ;;  %v2288_v20 = vld [vmem:[#allocation2 + $0x189] sm:$0xff] }
 0x23b   :  { %v2206_v41 = vadd.f32 %v2040_v42, %v1672_v6  ;;  %v18384_v6 = vld [vmem:[#allocation56_spill] sm:$0xff] }
 0x23c   :  { %v2577_v18 = vpop.f32.mrf.mxu0 }
 0x23d   :  { %v3111_v33 = vpop.f32.mrf.mxu1  ;;  %v2740_v7 = vadd.f32 %v2574_v25, %v2206_v41  ;;  %11319 = vmatmul.msk.f32.gmra.mxu2 %vm96_vm1, %v2819_v3  ;;  %v2822_v3 = vld [vmem:[#allocation2 + $0x18a] sm:$0xff] }
 0x23e   :  { %11385 = vmatmul.msk.f32.gmra.mxu3 %vm96_vm1, %v1753_v28 }
 0x23f   :  { %v13583_v15 = vadd.f32 %v3108_v0, %v2740_v7  ;;  %11451 = vmatmul.msk.f32.gmra.mxu0 %vm96_vm1, %v2287_v48  ;;  %v18383_v0 = vld [vmem:[#allocation55_spill] sm:$0xff] }
 0x240   :  { %11517 = vmatmul.msk.f32.gmra.mxu1 %vm96_vm1, %v2821_v13  ;;  %v1509_v21 = vpop.f32.mrf.mxu2  ;;  %v1043_v28 = vadd.f32 %v18384_v6, %v18383_v0  ;;  %v1222_v6 = vld [vmem:[#allocation2 + $0x1ba] sm:$0xff] }
 0x241   :  { %v2043_v63 = vpop.f32.mrf.mxu3  ;;  %v1673_v34 = vadd.f32 %v1509_v21, %v1040_v40 }
 0x243   :  { %v2207_v46 = vadd.f32 %v2043_v63, %v1673_v34  ;;  %v2823_v63 = vld [vmem:[#allocation2 + $0x1ca] sm:$0xff] }
 0x244   :  { %v2580_v53 = vpop.f32.mrf.mxu0 }
 0x245   :  { %v3114_v25 = vpop.f32.mrf.mxu1  ;;  %v2741_v42 = vadd.f32 %v2577_v18, %v2207_v46  ;;  %11320 = vmatmul.msk.f32.gmra.mxu2 %vm96_vm1, %v2820_v54  ;;  %v2289_v54 = vld [vmem:[#allocation2 + $0x1c9] sm:$0xff] }
 0x246   :  { %11386 = vmatmul.msk.f32.gmra.mxu3 %vm96_vm1, %v1754_v19  ;;  %v18386_v19 = vld [vmem:[#allocation59_spill] sm:$0xff] }
 0x247   :  { %v13591_v41 = vadd.f32 %v3111_v33, %v2741_v42  ;;  %11452 = vmatmul.msk.f32.gmra.mxu0 %vm96_vm1, %v2288_v20  ;;  %v18385_v33 = vld [vmem:[#allocation58_spill] sm:$0xff] }
 0x248   :  { %11518 = vmatmul.msk.f32.gmra.mxu1 %vm96_vm1, %v2822_v3  ;;  %v1512_v48 = vpop.f32.mrf.mxu2  ;;  %v1046_v46 = vadd.f32 %v18386_v19, %v18385_v33  ;;  %v1757_v19 = vld [vmem:[#allocation2 + $0x1e0] sm:$0xff] }
 0x249   :  { %v2046_v13 = vpop.f32.mrf.mxu3  ;;  %v1674_v7 = vadd.f32 %v1512_v48, %v1043_v28  ;;  %v1756_v28 = vld [vmem:[#allocation2 + $0x1d0] sm:$0xff] }
 0x24b   :  { %v2208_v40 = vadd.f32 %v2046_v13, %v1674_v7  ;;  %v2290_v7 = vld [vmem:[#allocation2 + $0x1d1] sm:$0xff] }
 0x24c   :  { %v2583_v18 = vpop.f32.mrf.mxu0 }
 0x24d   :  { %v3117_v21 = vpop.f32.mrf.mxu1  ;;  %v2742_v34 = vadd.f32 %v2580_v53, %v2208_v40  ;;  %11321 = vmatmul.msk.f32.gmra.mxu2 %vm96_vm1, %v1221_v14  ;;  %v2824_v14 = vld [vmem:[#allocation2 + $0x1d2] sm:$0xff] }
 0x24e   :  { %11387 = vmatmul.msk.f32.gmra.mxu3 %vm96_vm1, %v1755_v1 }
 0x24f   :  { %v13599_v20 = vadd.f32 %v3114_v25, %v2742_v34  ;;  %11453 = vmatmul.msk.f32.gmra.mxu0 %vm96_vm1, %v2289_v54  ;;  %v1049_v25 = vadd.f32 %v13255_v45, %v13253_v52  ;;  %v1052_v45 = vadd.f32 %v13267_v47, %v13265_v8  ;;  %v1055_v8 = vadd.f32 %v13279_v27, %v13277_v26 }
 0x250   :  { %11519 = vmatmul.msk.f32.gmra.mxu1 %vm96_vm1, %v2823_v63  ;;  %v1515_v3 = vpop.f32.mrf.mxu2  ;;  %v1058_v26 = vadd.f32 %v13291_v32, %v13289_v31  ;;  %v1061_v31 = vadd.f32 %v13303_v38, %v13301_v37  ;;  %v1064_v37 = vadd.f32 %v13315_v44, %v13313_v43  ;;  %v1067_v43 = vadd.f32 %v13327_v50, %v13325_v49 }
 0x251   :  { %v2049_v42 = vpop.f32.mrf.mxu3  ;;  %v1675_v0 = vadd.f32 %v1515_v3, %v1046_v46  ;;  %v1070_v49 = vadd.f32 %v13339_v56, %v13337_v55  ;;  %v1073_v55 = vadd.f32 %v13351_v62, %v13349_v61  ;;  %v1076_v61 = vadd.f32 %v13363_v5, %v13361_v4 }
 0x252   :  { %v1079_v4 = vadd.f32 %v13375_v11, %v13373_v10  ;;  %v1082_v10 = vadd.f32 %v13387_v17, %v13385_v16  ;;  %v1085_v16 = vadd.f32 %v13399_v23, %v13397_v22  ;;  %v18387_v22 = vld [vmem:[#allocation74_spill] sm:$0xff] }
 0x253   :  { %v2209_v48 = vadd.f32 %v2049_v42, %v1675_v0  ;;  %v2291_v42 = vld [vmem:[#allocation2 + $0x1e1] sm:$0xff]  ;;  %v1088_v23 = vadd.f32 %v18387_v22, %v13409_v30  ;;  %v1772_v22 = vld [vmem:[#allocation2 + $0x290] sm:$0xff] }
 0x254   :  { %v2586_v53 = vpop.f32.mrf.mxu0  ;;  %v2825_v0 = vld [vmem:[#allocation2 + $0x1e2] sm:$0xff] }
 0x255   :  { %v3120_v13 = vpop.f32.mrf.mxu1  ;;  %v2743_v1 = vadd.f32 %v2583_v18, %v2209_v48  ;;  %11322 = vmatmul.msk.f32.gmra.mxu2 %vm96_vm1, %v1222_v6  ;;  %v18388_v30 = vld [vmem:[#allocation76_spill] sm:$0xff] }
 0x256   :  { %11388 = vmatmul.msk.f32.gmra.mxu3 %vm96_vm1, %v1756_v28 }
 0x257   :  { %v13607_v40 = vadd.f32 %v3117_v21, %v2743_v1  ;;  %11454 = vmatmul.msk.f32.gmra.mxu0 %vm96_vm1, %v2290_v7  ;;  %v1758_v7 = vld [vmem:[#allocation2 + $0x1e8] sm:$0xff] }
 0x258   :  { %11520 = vmatmul.msk.f32.gmra.mxu1 %vm96_vm1, %v2824_v14  ;;  %v1518_v54 = vpop.f32.mrf.mxu2 }
 0x259   :  { %v2052_v34 = vpop.f32.mrf.mxu3  ;;  %v1676_v33 = vadd.f32 %v1518_v54, %v1049_v25  ;;  %v2292_v54 = vld [vmem:[#allocation2 + $0x1e9] sm:$0xff] }
 0x25b   :  { %v2210_v46 = vadd.f32 %v2052_v34, %v1676_v33 }
 0x25c   :  { %v2589_v3 = vpop.f32.mrf.mxu0 }
 0x25d   :  { %v3123_v18 = vpop.f32.mrf.mxu1  ;;  %v2744_v6 = vadd.f32 %v2586_v53, %v2210_v46  ;;  %11323 = vmatmul.msk.f32.gmra.mxu2 %vm96_vm1, %v2823_v63  ;;  %v2826_v63 = vld [vmem:[#allocation2 + $0x1ea] sm:$0xff]  ;;  %v1759_v46 = vld [vmem:[#allocation2 + $0x1f8] sm:$0xff] }
 0x25e   :  { %11389 = vmatmul.msk.f32.gmra.mxu3 %vm96_vm1, %v1757_v19 }
 0x25f   :  { %v13615_v52 = vadd.f32 %v3120_v13, %v2744_v6  ;;  %11455 = vmatmul.msk.f32.gmra.mxu0 %vm96_vm1, %v2291_v42 }
 0x260   :  { %11521 = vmatmul.msk.f32.gmra.mxu1 %vm96_vm1, %v2825_v0  ;;  %v1521_v21 = vpop.f32.mrf.mxu2 }
 0x261   :  { %v2055_v28 = vpop.f32.mrf.mxu3  ;;  %v1677_v48 = vadd.f32 %v1521_v21, %v1052_v45  ;;  %v2293_v45 = vld [vmem:[#allocation2 + $0x1f9] sm:$0xff] }
 0x263   :  { %v2211_v1 = vadd.f32 %v2055_v28, %v1677_v48 }
 0x264   :  { %v2592_v25 = vpop.f32.mrf.mxu0 }
 0x265   :  { %v3126_v53 = vpop.f32.mrf.mxu1  ;;  %v2745_v34 = vadd.f32 %v2589_v3, %v2211_v1  ;;  %11324 = vmatmul.msk.f32.gmra.mxu2 %vm96_vm1, %v2824_v14  ;;  %v2827_v14 = vld [vmem:[#allocation2 + $0x1fa] sm:$0xff] }
 0x266   :  { %11390 = vmatmul.msk.f32.gmra.mxu3 %vm96_vm1, %v1758_v7  ;;  %v1760_v7 = vld [vmem:[#allocation2 + $0x200] sm:$0xff] }
 0x267   :  { %v13623_v47 = vadd.f32 %v3123_v18, %v2745_v34  ;;  %11456 = vmatmul.msk.f32.gmra.mxu0 %vm96_vm1, %v2292_v54  ;;  %v2294_v34 = vld [vmem:[#allocation2 + $0x201] sm:$0xff] }
 0x268   :  { %11522 = vmatmul.msk.f32.gmra.mxu1 %vm96_vm1, %v2826_v63  ;;  %v1524_v13 = vpop.f32.mrf.mxu2 }
 0x269   :  { %v2058_v33 = vpop.f32.mrf.mxu3  ;;  %v1678_v19 = vadd.f32 %v1524_v13, %v1055_v8 }
 0x26b   :  { %v2212_v42 = vadd.f32 %v2058_v33, %v1678_v19  ;;  %v1761_v19 = vld [vmem:[#allocation2 + $0x210] sm:$0xff] }
 0x26c   :  { %v2595_v6 = vpop.f32.mrf.mxu0 }
 0x26d   :  { %v3129_v3 = vpop.f32.mrf.mxu1  ;;  %v2746_v21 = vadd.f32 %v2592_v25, %v2212_v42  ;;  %11325 = vmatmul.msk.f32.gmra.mxu2 %vm96_vm1, %v2825_v0  ;;  %v2828_v0 = vld [vmem:[#allocation2 + $0x202] sm:$0xff] }
 0x26e   :  { %11391 = vmatmul.msk.f32.gmra.mxu3 %vm96_vm1, %v1759_v46 }
 0x26f   :  { %v13631_v27 = vadd.f32 %v3126_v53, %v2746_v21  ;;  %11457 = vmatmul.msk.f32.gmra.mxu0 %vm96_vm1, %v2293_v45  ;;  %v2295_v45 = vld [vmem:[#allocation2 + $0x211] sm:$0xff] }
 0x270   :  { %11523 = vmatmul.msk.f32.gmra.mxu1 %vm96_vm1, %v2827_v14  ;;  %v1527_v18 = vpop.f32.mrf.mxu2 }
 0x271   :  { %v2061_v28 = vpop.f32.mrf.mxu3  ;;  %v1679_v48 = vadd.f32 %v1527_v18, %v1058_v26 }
 0x273   :  { %v2213_v1 = vadd.f32 %v2061_v28, %v1679_v48  ;;  %v1762_v28 = vld [vmem:[#allocation2 + $0x218] sm:$0xff] }
 0x274   :  { %v2598_v54 = vpop.f32.mrf.mxu0 }
 0x275   :  { %v3132_v25 = vpop.f32.mrf.mxu1  ;;  %v2747_v8 = vadd.f32 %v2595_v6, %v2213_v1  ;;  %11326 = vmatmul.msk.f32.gmra.mxu2 %vm96_vm1, %v2826_v63  ;;  %v2829_v63 = vld [vmem:[#allocation2 + $0x212] sm:$0xff] }
 0x276   :  { %11392 = vmatmul.msk.f32.gmra.mxu3 %vm96_vm1, %v1760_v7 }
 0x277   :  { %v13639_v32 = vadd.f32 %v3129_v3, %v2747_v8  ;;  %11458 = vmatmul.msk.f32.gmra.mxu0 %vm96_vm1, %v2294_v34 }
 0x278   :  { %11524 = vmatmul.msk.f32.gmra.mxu1 %vm96_vm1, %v2828_v0  ;;  %v1530_v53 = vpop.f32.mrf.mxu2 }
 0x279   :  { %v2064_v13 = vpop.f32.mrf.mxu3  ;;  %v1680_v33 = vadd.f32 %v1530_v53, %v1061_v31  ;;  %v1763_v53 = vld [vmem:[#allocation2 + $0x228] sm:$0xff] }
 0x27b   :  { %v2214_v46 = vadd.f32 %v2064_v13, %v1680_v33 }
 0x27c   :  { %v2601_v42 = vpop.f32.mrf.mxu0 }
 0x27d   :  { %v3135_v6 = vpop.f32.mrf.mxu1  ;;  %v2748_v21 = vadd.f32 %v2598_v54, %v2214_v46  ;;  %11327 = vmatmul.msk.f32.gmra.mxu2 %vm96_vm1, %v2827_v14  ;;  %v2296_v54 = vld [vmem:[#allocation2 + $0x219] sm:$0xff]  ;;  %v2297_v46 = vld [vmem:[#allocation2 + $0x229] sm:$0xff] }
 0x27e   :  { %11393 = vmatmul.msk.f32.gmra.mxu3 %vm96_vm1, %v1761_v19  ;;  %v2830_v14 = vld [vmem:[#allocation2 + $0x21a] sm:$0xff] }
 0x27f   :  { %v13647_v38 = vadd.f32 %v3132_v25, %v2748_v21  ;;  %11459 = vmatmul.msk.f32.gmra.mxu0 %vm96_vm1, %v2295_v45 }
 0x280   :  { %11525 = vmatmul.msk.f32.gmra.mxu1 %vm96_vm1, %v2829_v63  ;;  %v1533_v3 = vpop.f32.mrf.mxu2 }
 0x281   :  { %v2067_v26 = vpop.f32.mrf.mxu3  ;;  %v1681_v18 = vadd.f32 %v1533_v3, %v1064_v37  ;;  %v1764_v37 = vld [vmem:[#allocation2 + $0x230] sm:$0xff] }
 0x283   :  { %v2215_v48 = vadd.f32 %v2067_v26, %v1681_v18 }
 0x284   :  { %v2604_v7 = vpop.f32.mrf.mxu0 }
 0x285   :  { %v3138_v1 = vpop.f32.mrf.mxu1  ;;  %v2749_v34 = vadd.f32 %v2601_v42, %v2215_v48  ;;  %11328 = vmatmul.msk.f32.gmra.mxu2 %vm96_vm1, %v2828_v0  ;;  %v2831_v0 = vld [vmem:[#allocation2 + $0x22a] sm:$0xff] }
 0x286   :  { %11394 = vmatmul.msk.f32.gmra.mxu3 %vm96_vm1, %v1762_v28  ;;  %v2298_v28 = vld [vmem:[#allocation2 + $0x231] sm:$0xff] }
 0x287   :  { %v13655_v44 = vadd.f32 %v3135_v6, %v2749_v34  ;;  %11460 = vmatmul.msk.f32.gmra.mxu0 %vm96_vm1, %v2296_v54  ;;  %v1765_v34 = vld [vmem:[#allocation2 + $0x240] sm:$0xff] }
 0x288   :  { %11526 = vmatmul.msk.f32.gmra.mxu1 %vm96_vm1, %v2830_v14  ;;  %v1536_v25 = vpop.f32.mrf.mxu2 }
 0x289   :  { %v2070_v8 = vpop.f32.mrf.mxu3  ;;  %v1682_v31 = vadd.f32 %v1536_v25, %v1067_v43 }
 0x28b   :  { %v2216_v13 = vadd.f32 %v2070_v8, %v1682_v31  ;;  %v2299_v31 = vld [vmem:[#allocation2 + $0x241] sm:$0xff] }
 0x28c   :  { %v2607_v33 = vpop.f32.mrf.mxu0 }
 0x28d   :  { %v3141_v19 = vpop.f32.mrf.mxu1  ;;  %v2750_v42 = vadd.f32 %v2604_v7, %v2216_v13  ;;  %11329 = vmatmul.msk.f32.gmra.mxu2 %vm96_vm1, %v2829_v63  ;;  %v2832_v63 = vld [vmem:[#allocation2 + $0x232] sm:$0xff] }
 0x28e   :  { %11395 = vmatmul.msk.f32.gmra.mxu3 %vm96_vm1, %v1763_v53 }
 0x28f   :  { %v13663_v50 = vadd.f32 %v3138_v1, %v2750_v42  ;;  %11461 = vmatmul.msk.f32.gmra.mxu0 %vm96_vm1, %v2297_v46  ;;  %v1766_v46 = vld [vmem:[#allocation2 + $0x248] sm:$0xff] }
 0x290   :  { %11527 = vmatmul.msk.f32.gmra.mxu1 %vm96_vm1, %v2831_v0  ;;  %v1539_v6 = vpop.f32.mrf.mxu2 }
 0x291   :  { %v2073_v45 = vpop.f32.mrf.mxu3  ;;  %v1683_v21 = vadd.f32 %v1539_v6, %v1070_v49 }
 0x293   :  { %v2217_v3 = vadd.f32 %v2073_v45, %v1683_v21  ;;  %v2300_v45 = vld [vmem:[#allocation2 + $0x249] sm:$0xff] }
 0x294   :  { %v2610_v26 = vpop.f32.mrf.mxu0 }
 0x295   :  { %v3144_v18 = vpop.f32.mrf.mxu1  ;;  %v2751_v48 = vadd.f32 %v2607_v33, %v2217_v3  ;;  %11330 = vmatmul.msk.f32.gmra.mxu2 %vm96_vm1, %v2830_v14  ;;  %v2833_v14 = vld [vmem:[#allocation2 + $0x242] sm:$0xff] }
 0x296   :  { %11396 = vmatmul.msk.f32.gmra.mxu3 %vm96_vm1, %v1764_v37 }
 0x297   :  { %v13671_v56 = vadd.f32 %v3141_v19, %v2751_v48  ;;  %11462 = vmatmul.msk.f32.gmra.mxu0 %vm96_vm1, %v2298_v28 }
 0x298   :  { %11528 = vmatmul.msk.f32.gmra.mxu1 %vm96_vm1, %v2832_v63  ;;  %v1542_v7 = vpop.f32.mrf.mxu2 }
 0x299   :  { %v2076_v1 = vpop.f32.mrf.mxu3  ;;  %v1684_v54 = vadd.f32 %v1542_v7, %v1073_v55  ;;  %v2301_v7 = vld [vmem:[#allocation2 + $0x259] sm:$0xff] }
 0x29b   :  { %v2218_v43 = vadd.f32 %v2076_v1, %v1684_v54 }
 0x29c   :  { %v2613_v25 = vpop.f32.mrf.mxu0 }
 0x29d   :  { %v3147_v8 = vpop.f32.mrf.mxu1  ;;  %v2752_v53 = vadd.f32 %v2610_v26, %v2218_v43  ;;  %11331 = vmatmul.msk.f32.gmra.mxu2 %vm96_vm1, %v2831_v0  ;;  %v2834_v0 = vld [vmem:[#allocation2 + $0x24a] sm:$0xff] }
 0x29e   :  { %11397 = vmatmul.msk.f32.gmra.mxu3 %vm96_vm1, %v1765_v34 }
 0x29f   :  { %v13679_v62 = vadd.f32 %v3144_v18, %v2752_v53  ;;  %11463 = vmatmul.msk.f32.gmra.mxu0 %vm96_vm1, %v2299_v31  ;;  %v1767_v18 = vld [vmem:[#allocation2 + $0x258] sm:$0xff] }
 0x2a0   :  { %11529 = vmatmul.msk.f32.gmra.mxu1 %vm96_vm1, %v2833_v14  ;;  %v1545_v13 = vpop.f32.mrf.mxu2 }
 0x2a1   :  { %v2079_v33 = vpop.f32.mrf.mxu3  ;;  %v1685_v19 = vadd.f32 %v1545_v13, %v1076_v61  ;;  %v2302_v61 = vld [vmem:[#allocation2 + $0x261] sm:$0xff] }
 0x2a3   :  { %v2219_v42 = vadd.f32 %v2079_v33, %v1685_v19 }
 0x2a4   :  { %v2616_v49 = vpop.f32.mrf.mxu0 }
 0x2a5   :  { %v3150_v6 = vpop.f32.mrf.mxu1  ;;  %v2753_v21 = vadd.f32 %v2613_v25, %v2219_v42  ;;  %11332 = vmatmul.msk.f32.gmra.mxu2 %vm96_vm1, %v2832_v63  ;;  %v2835_v63 = vld [vmem:[#allocation2 + $0x25a] sm:$0xff]  ;;  %v1769_v42 = vld [vmem:[#allocation2 + $0x270] sm:$0xff] }
 0x2a6   :  { %11398 = vmatmul.msk.f32.gmra.mxu3 %vm96_vm1, %v1766_v46  ;;  %v1768_v25 = vld [vmem:[#allocation2 + $0x260] sm:$0xff] }
 0x2a7   :  { %v13687_v5 = vadd.f32 %v3147_v8, %v2753_v21  ;;  %11464 = vmatmul.msk.f32.gmra.mxu0 %vm96_vm1, %v2300_v45  ;;  %v2303_v21 = vld [vmem:[#allocation2 + $0x271] sm:$0xff] }
 0x2a8   :  { %11530 = vmatmul.msk.f32.gmra.mxu1 %vm96_vm1, %v2834_v0  ;;  %v1548_v37 = vpop.f32.mrf.mxu2 }
 0x2a9   :  { %v2082_v3 = vpop.f32.mrf.mxu3  ;;  %v1686_v26 = vadd.f32 %v1548_v37, %v1079_v4 }
 0x2ab   :  { %v2220_v28 = vadd.f32 %v2082_v3, %v1686_v26 }
 0x2ac   :  { %v2619_v48 = vpop.f32.mrf.mxu0 }
 0x2ad   :  { %v3153_v55 = vpop.f32.mrf.mxu1  ;;  %v2754_v1 = vadd.f32 %v2616_v49, %v2220_v28  ;;  %11333 = vmatmul.msk.f32.gmra.mxu2 %vm96_vm1, %v2833_v14  ;;  %v2836_v14 = vld [vmem:[#allocation2 + $0x262] sm:$0xff]  ;;  %v1770_v28 = vld [vmem:[#allocation2 + $0x278] sm:$0xff] }
 0x2ae   :  { %11399 = vmatmul.msk.f32.gmra.mxu3 %vm96_vm1, %v1767_v18 }
 0x2af   :  { %v13695_v11 = vadd.f32 %v3150_v6, %v2754_v1  ;;  %11465 = vmatmul.msk.f32.gmra.mxu0 %vm96_vm1, %v2301_v7  ;;  %v2304_v1 = vld [vmem:[#allocation2 + $0x279] sm:$0xff] }
 0x2b0   :  { %11531 = vmatmul.msk.f32.gmra.mxu1 %vm96_vm1, %v2835_v63  ;;  %v1551_v54 = vpop.f32.mrf.mxu2 }
 0x2b1   :  { %v2085_v34 = vpop.f32.mrf.mxu3  ;;  %v1687_v43 = vadd.f32 %v1551_v54, %v1082_v10  ;;  %v18389_v54 = vld [vmem:[#allocation77_spill] sm:$0xff] }
 0x2b3   :  { %v2221_v8 = vadd.f32 %v2085_v34, %v1687_v43  ;;  %v1091_v34 = vadd.f32 %v18389_v54, %v18388_v30  ;;  %v1773_v30 = vld [vmem:[#allocation2 + $0x2a0] sm:$0xff] }
 0x2b4   :  { %v2622_v31 = vpop.f32.mrf.mxu0 }
 0x2b5   :  { %v3156_v53 = vpop.f32.mrf.mxu1  ;;  %v2755_v13 = vadd.f32 %v2619_v48, %v2221_v8  ;;  %11334 = vmatmul.msk.f32.gmra.mxu2 %vm96_vm1, %v2834_v0  ;;  %v2837_v0 = vld [vmem:[#allocation2 + $0x272] sm:$0xff] }
 0x2b6   :  { %11400 = vmatmul.msk.f32.gmra.mxu3 %vm96_vm1, %v1768_v25 }
 0x2b7   :  { %v13703_v17 = vadd.f32 %v3153_v55, %v2755_v13  ;;  %11466 = vmatmul.msk.f32.gmra.mxu0 %vm96_vm1, %v2302_v61 }
 0x2b8   :  { %11532 = vmatmul.msk.f32.gmra.mxu1 %vm96_vm1, %v2836_v14  ;;  %v1554_v33 = vpop.f32.mrf.mxu2 }
 0x2b9   :  { %v2088_v19 = vpop.f32.mrf.mxu3  ;;  %v1688_v46 = vadd.f32 %v1554_v33, %v1085_v16  ;;  %v2305_v33 = vld [vmem:[#allocation2 + $0x289] sm:$0xff] }
 0x2bb   :  { %v2222_v49 = vadd.f32 %v2088_v19, %v1688_v46  ;;  %v18390_v46 = vld [vmem:[#allocation5_spill] sm:$0xff] }
 0x2bc   :  { %v2625_v6 = vpop.f32.mrf.mxu0 }
 0x2bd   :  { %v3159_v45 = vpop.f32.mrf.mxu1  ;;  %v2756_v4 = vadd.f32 %v2622_v31, %v2222_v49  ;;  %11335 = vmatmul.msk.f32.gmra.mxu2 %vm96_vm1, %v2835_v63  ;;  %v2838_v63 = vld [vmem:[#allocation2 + $0x27a] sm:$0xff] }
 0x2be   :  { %11401 = vmatmul.msk.f32.gmra.mxu3 %vm96_vm1, %v1769_v42  ;;  %v18391_v42 = vld [vmem:[#allocation4_spill] sm:$0xff] }
 0x2bf   :  { %v13711_v37 = vadd.f32 %v3156_v53, %v2756_v4  ;;  %11467 = vmatmul.msk.f32.gmra.mxu0 %vm96_vm1, %v2303_v21  ;;  %v1771_v53 = vld [vmem:[#allocation2 + $0x288] sm:$0xff]  ;;  %v1094_v49 = vadd.f32 %v18391_v42, %v18390_v46 }
 0x2c0   :  { %11533 = vmatmul.msk.f32.gmra.mxu1 %vm96_vm1, %v2837_v0  ;;  %v1557_v3 = vpop.f32.mrf.mxu2 }
 0x2c1   :  { %v2091_v26 = vpop.f32.mrf.mxu3  ;;  %v1689_v18 = vadd.f32 %v1557_v3, %v1088_v23 }
 0x2c3   :  { %v2223_v48 = vadd.f32 %v2091_v26, %v1689_v18  ;;  %v2306_v18 = vld [vmem:[#allocation2 + $0x291] sm:$0xff] }
 0x2c4   :  { %v2628_v55 = vpop.f32.mrf.mxu0 }
 0x2c5   :  { %v3162_v7 = vpop.f32.mrf.mxu1  ;;  %v2757_v10 = vadd.f32 %v2625_v6, %v2223_v48  ;;  %11336 = vmatmul.msk.f32.gmra.mxu2 %vm96_vm1, %v2836_v14  ;;  %v2839_v14 = vld [vmem:[#allocation2 + $0x28a] sm:$0xff] }
 0x2c6   :  { %11402 = vmatmul.msk.f32.gmra.mxu3 %vm96_vm1, %v1770_v28 }
 0x2c7   :  { %v13719_v43 = vadd.f32 %v3159_v45, %v2757_v10  ;;  %11468 = vmatmul.msk.f32.gmra.mxu0 %vm96_vm1, %v2304_v1  ;;  %v18392_v1 = vld [vmem:[#allocation6_spill] sm:$0xff] }
 0x2c8   :  { %11534 = vmatmul.msk.f32.gmra.mxu1 %vm96_vm1, %v2838_v63  ;;  %v1560_v25 = vpop.f32.mrf.mxu2 }
 0x2c9   :  { %v2094_v8 = vpop.f32.mrf.mxu3  ;;  %v1690_v31 = vadd.f32 %v1560_v25, %v1091_v34 }
 0x2cb   :  { %v2224_v61 = vadd.f32 %v2094_v8, %v1690_v31  ;;  %v2307_v8 = vld [vmem:[#allocation2 + $0x2a1] sm:$0xff] }
 0x2cc   :  { %v2631_v13 = vpop.f32.mrf.mxu0  ;;  %v2841_v31 = vld [vmem:[#allocation2 + $0x2a2] sm:$0xff] }
 0x2cd   :  { %v3165_v16 = vpop.f32.mrf.mxu1  ;;  %v2758_v19 = vadd.f32 %v2628_v55, %v2224_v61  ;;  %11337 = vmatmul.msk.f32.gmra.mxu2 %vm96_vm1, %v2837_v0  ;;  %v2840_v0 = vld [vmem:[#allocation2 + $0x292] sm:$0xff] }
 0x2ce   :  { %11403 = vmatmul.msk.f32.gmra.mxu3 %vm96_vm1, %v1771_v53 }
 0x2cf   :  { %v13727_v6 = vadd.f32 %v3162_v7, %v2758_v19  ;;  %11469 = vmatmul.msk.f32.gmra.mxu0 %vm96_vm1, %v2305_v33  ;;  %v1774_v19 = vld [vmem:[#allocation2 + $0x2a8] sm:$0xff] }
 0x2d0   :  { %11535 = vmatmul.msk.f32.gmra.mxu1 %vm96_vm1, %v2839_v14  ;;  %v1563_v45 = vpop.f32.mrf.mxu2 }
 0x2d1   :  { %v2097_v21 = vpop.f32.mrf.mxu3  ;;  %v1691_v4 = vadd.f32 %v1563_v45, %v1094_v49  ;;  %v2308_v45 = vld [vmem:[#allocation2 + $0x2a9] sm:$0xff] }
 0x2d3   :  { %v2225_v23 = vadd.f32 %v2097_v21, %v1691_v4  ;;  %v2842_v21 = vld [vmem:[#allocation2 + $0x2aa] sm:$0xff] }
 0x2d4   :  { %v2634_v3 = vpop.f32.mrf.mxu0 }
 0x2d5   :  { %v3168_v26 = vpop.f32.mrf.mxu1  ;;  %v2759_v28 = vadd.f32 %v2631_v13, %v2225_v23  ;;  %11338 = vmatmul.msk.f32.gmra.mxu2 %vm96_vm1, %v2838_v63 }
 0x2d6   :  { %11404 = vmatmul.msk.f32.gmra.mxu3 %vm96_vm1, %v1772_v22 }
 0x2d7   :  { %v13733_v48 = vadd.f32 %v3165_v16, %v2759_v28  ;;  %11470 = vmatmul.msk.f32.gmra.mxu0 %vm96_vm1, %v2306_v18  ;;  %v18393_v16 = vld [vmem:[#allocation7_spill] sm:$0xff] }
 0x2d8   :  { %11536 = vmatmul.msk.f32.gmra.mxu1 %vm96_vm1, %v2840_v0  ;;  %v1566_v55 = vpop.f32.mrf.mxu2  ;;  %v1775_v18 = vld [vmem:[#allocation2 + $0x2b8] sm:$0xff] }
 0x2d9   :  { %v2100_v7 = vpop.f32.mrf.mxu3  ;;  %v1692_v10 = vadd.f32 %v1566_v55, %v18392_v1  ;;  %v2843_v1 = vld [vmem:[#allocation2 + $0x2ba] sm:$0xff] }
 0x2db   :  { %v2226_v54 = vadd.f32 %v2100_v7, %v1692_v10  ;;  %v2309_v7 = vld [vmem:[#allocation2 + $0x2b9] sm:$0xff] }
 0x2dc   :  { %v2637_v34 = vpop.f32.mrf.mxu0 }
 0x2dd   :  { %v3171_v25 = vpop.f32.mrf.mxu1  ;;  %v2760_v53 = vadd.f32 %v2634_v3, %v2226_v54  ;;  %11339 = vmatmul.msk.f32.gmra.mxu2 %vm96_vm1, %v2839_v14  ;;  %v18394_v3 = vld [vmem:[#allocation8_spill] sm:$0xff] }
 0x2de   :  { %11405 = vmatmul.msk.f32.gmra.mxu3 %vm96_vm1, %v1773_v30 }
 0x2df   :  { %v13740_v63 = vadd.f32 %v3168_v26, %v2760_v53  ;;  %11471 = vmatmul.msk.f32.gmra.mxu0 %vm96_vm1, %v2307_v8  ;;  %v1776_v53 = vld [vmem:[#allocation2 + $0x2c0] sm:$0xff] }
 0x2e0   :  { %11537 = vmatmul.msk.f32.gmra.mxu1 %vm96_vm1, %v2841_v31  ;;  %v1569_v61 = vpop.f32.mrf.mxu2 }
 0x2e1   :  { %v2103_v13 = vpop.f32.mrf.mxu3  ;;  %v1693_v33 = vadd.f32 %v1569_v61, %v18393_v16  ;;  %v2310_v16 = vld [vmem:[#allocation2 + $0x2c1] sm:$0xff] }
 0x2e3   :  { %v2227_v46 = vadd.f32 %v2103_v13, %v1693_v33  ;;  %v2844_v33 = vld [vmem:[#allocation2 + $0x2c2] sm:$0xff] }
 0x2e4   :  { %v2640_v42 = vpop.f32.mrf.mxu0 }
 0x2e5   :  { %v3174_v49 = vpop.f32.mrf.mxu1  ;;  %v2761_v4 = vadd.f32 %v2637_v34, %v2227_v46  ;;  %11340 = vmatmul.msk.f32.gmra.mxu2 %vm96_vm1, %v2840_v0 }
 0x2e6   :  { %11406 = vmatmul.msk.f32.gmra.mxu3 %vm96_vm1, %v1774_v19 }
 0x2e7   :  { %v13747_v14 = vadd.f32 %v3171_v25, %v2761_v4  ;;  %11472 = vmatmul.msk.f32.gmra.mxu0 %vm96_vm1, %v2308_v45  ;;  %v18395_v25 = vld [vmem:[#allocation9_spill] sm:$0xff]  ;;  %v18396_v45 = vld [vmem:[#allocation12_spill] sm:$0xff] }
 0x2e8   :  { %11538 = vmatmul.msk.f32.gmra.mxu1 %vm96_vm1, %v2842_v21  ;;  %v1572_v22 = vpop.f32.mrf.mxu2 }
 0x2e9   :  { %v2106_v23 = vpop.f32.mrf.mxu3  ;;  %v1694_v26 = vadd.f32 %v1572_v22, %v18394_v3  ;;  %v1777_v22 = vld [vmem:[#allocation2 + $0x2d0] sm:$0xff] }
 0x2eb   :  { %v2228_v28 = vadd.f32 %v2106_v23, %v1694_v26  ;;  %v2311_v26 = vld [vmem:[#allocation2 + $0x2d1] sm:$0xff] }
 0x2ec   :  { %v2643_v55 = vpop.f32.mrf.mxu0 }
 0x2ed   :  { %v2762_v10 = vadd.f32 %v2640_v42, %v2228_v28  ;;  %11341 = vmatmul.msk.f32.gmra.mxu2 %vm96_vm1, %v2841_v31  ;;  %v3177_v0 = vpop.f32.mrf.mxu1 }
 0x2ee   :  { %11407 = vmatmul.msk.f32.gmra.mxu3 %vm96_vm1, %v1775_v18  ;;  %v2845_v18 = vld [vmem:[#allocation2 + $0x2d2] sm:$0xff] }
 0x2ef   :  { %v13754_v30 = vadd.f32 %v3174_v49, %v2762_v10  ;;  %11473 = vmatmul.msk.f32.gmra.mxu0 %vm96_vm1, %v2309_v7  ;;  %v18397_v10 = vld [vmem:[#allocation15_spill] sm:$0xff] }
 0x2f0   :  { %11539 = vmatmul.msk.f32.gmra.mxu1 %vm96_vm1, %v2843_v1  ;;  %v1575_v54 = vpop.f32.mrf.mxu2 }
 0x2f1   :  { %v2109_v34 = vpop.f32.mrf.mxu3  ;;  %v1695_v8 = vadd.f32 %v1575_v54, %v18395_v25 }
 0x2f3   :  { %v2229_v61 = vadd.f32 %v2109_v34, %v1695_v8  ;;  %v1778_v34 = vld [vmem:[#allocation2 + $0x2d8] sm:$0xff] }
 0x2f4   :  { %v2646_v13 = vpop.f32.mrf.mxu0 }
 0x2f5   :  { %v2763_v19 = vadd.f32 %v2643_v55, %v2229_v61  ;;  %11342 = vmatmul.msk.f32.gmra.mxu2 %vm96_vm1, %v2842_v21  ;;  %v3180_v46 = vpop.f32.mrf.mxu1  ;;  %v2846_v61 = vld [vmem:[#allocation2 + $0x2da] sm:$0xff] }
 0x2f6   :  { %11408 = vmatmul.msk.f32.gmra.mxu3 %vm96_vm1, %v1776_v53  ;;  %v2312_v53 = vld [vmem:[#allocation2 + $0x2d9] sm:$0xff] }
 0x2f7   :  { %v13761_v31 = vadd.f32 %v3177_v0, %v2763_v19  ;;  %11474 = vmatmul.msk.f32.gmra.mxu0 %vm96_vm1, %v2310_v16 }
 0x2f8   :  { %11540 = vmatmul.msk.f32.gmra.mxu1 %vm96_vm1, %v2844_v33  ;;  %v1578_v42 = vpop.f32.mrf.mxu2 }
 0x2f9   :  { %v2112_v49 = vpop.f32.mrf.mxu3  ;;  %v1696_v4 = vadd.f32 %v1578_v42, %v18396_v45 }
 0x2fb   :  { %v2230_v23 = vadd.f32 %v2112_v49, %v1696_v4  ;;  %v1779_v49 = vld [vmem:[#allocation2 + $0x2e8] sm:$0xff] }
 0x2fc   :  { %v2649_v3 = vpop.f32.mrf.mxu0 }
 0x2fd   :  { %v2764_v28 = vadd.f32 %v2646_v13, %v2230_v23  ;;  %11343 = vmatmul.msk.f32.gmra.mxu2 %vm96_vm1, %v2843_v1  ;;  %v3183_v54 = vpop.f32.mrf.mxu1  ;;  %v2313_v23 = vld [vmem:[#allocation2 + $0x2e9] sm:$0xff] }
 0x2fe   :  { %11409 = vmatmul.msk.f32.gmra.mxu3 %vm96_vm1, %v1777_v22 }
 0x2ff   :  { %v13768_v21 = vadd.f32 %v3180_v46, %v2764_v28  ;;  %11475 = vmatmul.msk.f32.gmra.mxu0 %vm96_vm1, %v2311_v26  ;;  %v18398_v46 = vld [vmem:[#allocation20_spill] sm:$0xff] }
 0x300   :  { %11541 = vmatmul.msk.f32.gmra.mxu1 %vm96_vm1, %v2845_v18  ;;  %v1581_v55 = vpop.f32.mrf.mxu2 }
 0x301   :  { %v2115_v7 = vpop.f32.mrf.mxu3  ;;  %v1697_v0 = vadd.f32 %v1581_v55, %v18397_v10 }
 0x303   :  { %v2231_v25 = vadd.f32 %v2115_v7, %v1697_v0  ;;  %v18399_v7 = vld [vmem:[#allocation25_spill] sm:$0xff]  ;;  %v1780_v0 = vld [vmem:[#allocation2 + $0x2f0] sm:$0xff] }
 0x304   :  { %v2652_v8 = vpop.f32.mrf.mxu0 }
 0x305   :  { %v2765_v13 = vadd.f32 %v2649_v3, %v2231_v25  ;;  %11344 = vmatmul.msk.f32.gmra.mxu2 %vm96_vm1, %v2844_v33  ;;  %v3186_v4 = vpop.f32.mrf.mxu1  ;;  %v2847_v3 = vld [vmem:[#allocation2 + $0x2ea] sm:$0xff] }
 0x306   :  { %11410 = vmatmul.msk.f32.gmra.mxu3 %vm96_vm1, %v1778_v34  ;;  %v2314_v25 = vld [vmem:[#allocation2 + $0x2f1] sm:$0xff] }
 0x307   :  { %v13775_v1 = vadd.f32 %v3183_v54, %v2765_v13  ;;  %11476 = vmatmul.msk.f32.gmra.mxu0 %vm96_vm1, %v2312_v53  ;;  %v2848_v53 = vld [vmem:[#allocation2 + $0x2f2] sm:$0xff] }
 0x308   :  { %11542 = vmatmul.msk.f32.gmra.mxu1 %vm96_vm1, %v2846_v61  ;;  %v1584_v16 = vpop.f32.mrf.mxu2 }
 0x309   :  { %v2118_v19 = vpop.f32.mrf.mxu3  ;;  %v1698_v42 = vadd.f32 %v1584_v16, %v18398_v46 }
 0x30b   :  { %v2232_v45 = vadd.f32 %v2118_v19, %v1698_v42  ;;  %v18400_v19 = vld [vmem:[#allocation30_spill] sm:$0xff]  ;;  %v1781_v42 = vld [vmem:[#allocation2 + $0x300] sm:$0xff] }
 0x30c   :  { %v2655_v22 = vpop.f32.mrf.mxu0 }
 0x30d   :  { %v2766_v26 = vadd.f32 %v2652_v8, %v2232_v45  ;;  %11345 = vmatmul.msk.f32.gmra.mxu2 %vm96_vm1, %v2845_v18  ;;  %v94_v18 = vld [vmem:[%s18076_s0 + $0x1f0] sm:$0xff] }
 0x30e   :  { %11411 = vmatmul.msk.f32.gmra.mxu3 %vm96_vm1, %v1779_v49  ;;  %247 = vst.msk [vmem:[#allocation2 + $0x331] sm:$0xff] %vm96_vm1, %v94_v18 }
 0x30f   :  { %v13782_v33 = vadd.f32 %v3186_v4, %v2766_v26  ;;  %11477 = vmatmul.msk.f32.gmra.mxu0 %vm96_vm1, %v2313_v23  ;;  %v2849_v4 = vld [vmem:[#allocation2 + $0x302] sm:$0xff]  ;;  %v95_v23 = vld [vmem:[%s18076_s0 + $0x1f8] sm:$0xff] }
 0x310   :  { %11543 = vmatmul.msk.f32.gmra.mxu1 %vm96_vm1, %v2847_v3  ;;  %v1587_v28 = vpop.f32.mrf.mxu2  ;;  %248 = vst.msk [vmem:[#allocation2 + $0x339] sm:$0xff] %vm96_vm1, %v95_v23  ;;  %v2851_v23 = vld [vmem:[#allocation2 + $0x31a] sm:$0xff] }
 0x311   :  { %v2121_v55 = vpop.f32.mrf.mxu3  ;;  %v1699_v10 = vadd.f32 %v1587_v28, %v18399_v7 }
 0x313   :  { %v2233_v54 = vadd.f32 %v2121_v55, %v1699_v10  ;;  %v18401_v55 = vld [vmem:[#allocation35_spill] sm:$0xff]  ;;  %v1782_v10 = vld [vmem:[#allocation2 + $0x308] sm:$0xff] }
 0x314   :  { %v2658_v34 = vpop.f32.mrf.mxu0 }
 0x315   :  { %v13787_v8 = vadd.f32 %v2655_v22, %v2233_v54  ;;  %11346 = vmatmul.msk.f32.gmra.mxu2 %vm96_vm1, %v2846_v61  ;;  %v2315_v61 = vld [vmem:[#allocation2 + $0x301] sm:$0xff] }
 0x316   :  { %11412 = vmatmul.msk.f32.gmra.mxu3 %vm96_vm1, %v1780_v0 }
 0x317   :  { %11478 = vmatmul.msk.f32.gmra.mxu0 %vm96_vm1, %v2314_v25 }
 0x318   :  { %11544 = vmatmul.msk.f32.gmra.mxu1 %vm96_vm1, %v2848_v53  ;;  %v1590_v13 = vpop.f32.mrf.mxu2 }
 0x319   :  { %v2124_v16 = vpop.f32.mrf.mxu3  ;;  %v1700_v46 = vadd.f32 %v1590_v13, %v18400_v19 }
 0x31b   :  { %v2234_v49 = vadd.f32 %v2124_v16, %v1700_v46  ;;  %v18402_v16 = vld [vmem:[#allocation40_spill] sm:$0xff]  ;;  %v1783_v46 = vld [vmem:[#allocation2 + $0x318] sm:$0xff] }
 0x31c   :  { %v2661_v45 = vpop.f32.mrf.mxu0 }
 0x31d   :  { %v13798_v22 = vadd.f32 %v2658_v34, %v2234_v49  ;;  %11347 = vmatmul.msk.f32.gmra.mxu2 %vm96_vm1, %v2847_v3  ;;  %v2316_v3 = vld [vmem:[#allocation2 + $0x309] sm:$0xff] }
 0x31e   :  { %11413 = vmatmul.msk.f32.gmra.mxu3 %vm96_vm1, %v1781_v42  ;;  %v2850_v34 = vld [vmem:[#allocation2 + $0x30a] sm:$0xff] }
 0x31f   :  { %11479 = vmatmul.msk.f32.gmra.mxu0 %vm96_vm1, %v2315_v61  ;;  %v2317_v61 = vld [vmem:[#allocation2 + $0x319] sm:$0xff] }
 0x320   :  { %11545 = vmatmul.msk.f32.gmra.mxu1 %vm96_vm1, %v2849_v4  ;;  %v1593_v26 = vpop.f32.mrf.mxu2 }
 0x321   :  { %v2127_v28 = vpop.f32.mrf.mxu3  ;;  %v1701_v7 = vadd.f32 %v1593_v26, %v18401_v55 }
 0x323   :  { %v2235_v0 = vadd.f32 %v2127_v28, %v1701_v7  ;;  %v18403_v28 = vld [vmem:[#allocation45_spill] sm:$0xff]  ;;  %v1784_v7 = vld [vmem:[#allocation2 + $0x320] sm:$0xff] }
 0x324   :  { %v2664_v54 = vpop.f32.mrf.mxu0 }
 0x325   :  { %v13809_v25 = vadd.f32 %v2661_v45, %v2235_v0  ;;  %11348 = vmatmul.msk.f32.gmra.mxu2 %vm96_vm1, %v2848_v53 }
 0x326   :  { %11414 = vmatmul.msk.f32.gmra.mxu3 %vm96_vm1, %v1782_v10 }
 0x327   :  { %11480 = vmatmul.msk.f32.gmra.mxu0 %vm96_vm1, %v2316_v3  ;;  %v2318_v3 = vld [vmem:[#allocation2 + $0x321] sm:$0xff] }
 0x328   :  { %11546 = vmatmul.msk.f32.gmra.mxu1 %vm96_vm1, %v2850_v34  ;;  %v1596_v18 = vpop.f32.mrf.mxu2 }
 0x329   :  { %v2130_v13 = vpop.f32.mrf.mxu3  ;;  %v1702_v19 = vadd.f32 %v1596_v18, %v18402_v16  ;;  %v2852_v18 = vld [vmem:[#allocation2 + $0x322] sm:$0xff]  ;;  %v18405_v16 = vld [vmem:[#allocation50_spill] sm:$0xff] }
 0x32b   :  { %v2236_v42 = vadd.f32 %v2130_v13, %v1702_v19 }
 0x32c   :  { %v2667_v49 = vpop.f32.mrf.mxu0 }
 0x32d   :  { %v13816_v26 = vadd.f32 %v2664_v54, %v2236_v42  ;;  %11349 = vmatmul.msk.f32.gmra.mxu2 %vm96_vm1, %v2849_v4 }
 0x32e   :  { %11415 = vmatmul.msk.f32.gmra.mxu3 %vm96_vm1, %v1783_v46  ;;  %v1785_v46 = vld [vmem:[#allocation2 + $0x330] sm:$0xff] }
 0x32f   :  { %11481 = vmatmul.msk.f32.gmra.mxu0 %vm96_vm1, %v2317_v61 }
 0x330   :  { %11547 = vmatmul.msk.f32.gmra.mxu1 %vm96_vm1, %v2851_v23  ;;  %v1599_v53 = vpop.f32.mrf.mxu2 }
 0x331   :  { %v2133_v45 = vpop.f32.mrf.mxu3  ;;  %v1703_v55 = vadd.f32 %v1599_v53, %v18403_v28  ;;  %v2319_v53 = vld [vmem:[#allocation2 + $0x331] sm:$0xff] }
 0x333   :  { %v2237_v10 = vadd.f32 %v2133_v45, %v1703_v55  ;;  %v2853_v45 = vld [vmem:[#allocation2 + $0x332] sm:$0xff] }
 0x334   :  { %v2670_v0 = vpop.f32.mrf.mxu0  ;;  %v18407_v55 = vld [vmem:[#allocation54_spill] sm:$0xff] }
 0x335   :  { %v13823_v13 = vadd.f32 %v2667_v49, %v2237_v10  ;;  %11350 = vmatmul.msk.f32.gmra.mxu2 %vm96_vm1, %v2850_v34  ;;  %v1786_v10 = vld [vmem:[#allocation2 + $0x338] sm:$0xff] }
 0x336   :  { %11416 = vmatmul.msk.f32.gmra.mxu3 %vm96_vm1, %v1784_v7 }
 0x337   :  { %18404 = vst [vmem:[#allocation19_spill] sm:$0xff] %v13823_v13  ;;  %11482 = vmatmul.msk.f32.gmra.mxu0 %vm96_vm1, %v2318_v3  ;;  %v4449_v13 = vld [vmem:[#allocation2 + $0x2f2] sm:$0xff] }
 0x338   :  { %11548 = vmatmul.msk.f32.gmra.mxu1 %vm96_vm1, %v2852_v18  ;;  %v1602_v4 = vpop.f32.mrf.mxu2 }
 0x339   :  { %v2136_v54 = vpop.f32.mrf.mxu3  ;;  %v1704_v19 = vadd.f32 %v1602_v4, %v18405_v16  ;;  %v2854_v16 = vld [vmem:[#allocation2 + $0x33a] sm:$0xff] }
 0x33b   :  { %v2238_v42 = vadd.f32 %v2136_v54, %v1704_v19  ;;  %v2320_v54 = vld [vmem:[#allocation2 + $0x339] sm:$0xff] }
 0x33c   :  { %v2673_v61 = vpop.f32.mrf.mxu0 }
 0x33d   :  { %v13830_v28 = vadd.f32 %v2670_v0, %v2238_v42  ;;  %11351 = vmatmul.msk.f32.gmra.mxu2 %vm96_vm1, %v2851_v23 }
 0x33e   :  { %11417 = vmatmul.msk.f32.gmra.mxu3 %vm96_vm1, %v1785_v46  ;;  %v18409_v46 = vld [vmem:[#allocation57_spill] sm:$0xff] }
 0x33f   :  { %18406 = vst [vmem:[#allocation10_spill] sm:$0xff] %v13830_v28  ;;  %11483 = vmatmul.msk.f32.gmra.mxu0 %vm96_vm1, %v2319_v53  ;;  %v3326_v53 = vld [vmem:[#allocation2 + $0x30] sm:$0xff] }
 0x340   :  { %11549 = vmatmul.msk.f32.gmra.mxu1 %vm96_vm1, %v2853_v45  ;;  %v1605_v34 = vpop.f32.mrf.mxu2  ;;  %v3860_v45 = vld [vmem:[#allocation2 + $0x31] sm:$0xff] }
 0x341   :  { %v2139_v49 = vpop.f32.mrf.mxu3  ;;  %v1705_v7 = vadd.f32 %v1605_v34, %v18407_v55  ;;  %v4394_v55 = vld [vmem:[#allocation2 + $0x32] sm:$0xff] }
 0x343   :  { %v2239_v3 = vadd.f32 %v2139_v49, %v1705_v7 }
 0x344   :  { %v2676_v4 = vpop.f32.mrf.mxu0 }
 0x345   :  { %v13837_v19 = vadd.f32 %v2673_v61, %v2239_v3  ;;  %11352 = vmatmul.msk.f32.gmra.mxu2 %vm96_vm1, %v2852_v18 }
 0x346   :  { %11418 = vmatmul.msk.f32.gmra.mxu3 %vm96_vm1, %v1786_v10  ;;  %v18411_v10 = vld [vmem:[#allocation60_spill] sm:$0xff] }
 0x347   :  { %18408 = vst [vmem:[#allocation11_spill] sm:$0xff] %v13837_v19  ;;  %11484 = vmatmul.msk.f32.gmra.mxu0 %vm96_vm1, %v2320_v54  ;;  %v3327_v54 = vld [vmem:[#allocation2 + $0x38] sm:$0xff] }
 0x348   :  { %11550 = vmatmul.msk.f32.gmra.mxu1 %vm96_vm1, %v2854_v16  ;;  %v1608_v23 = vpop.f32.mrf.mxu2  ;;  %v3861_v16 = vld [vmem:[#allocation2 + $0x39] sm:$0xff] }
 0x349   :  { %v2142_v0 = vpop.f32.mrf.mxu3  ;;  %v1706_v42 = vadd.f32 %v1608_v23, %v18409_v46  ;;  %v4395_v19 = vld [vmem:[#allocation2 + $0x3a] sm:$0xff] }
 0x34b   :  { %v2240_v34 = vadd.f32 %v2142_v0, %v1706_v42 }
 0x34c   :  { %v2679_v49 = vpop.f32.mrf.mxu0 }
 0x34d   :  { %v13844_v7 = vadd.f32 %v2676_v4, %v2240_v34  ;;  %11553 = vmatmul.msk.f32.vlgmr.msra.gmra.mxu2 %vm96_vm1, %v3326_v53  ;;  %v18413_v53 = vld [vmem:[#allocation61_spill] sm:$0xff] }
 0x34e   :  { %11619 = vmatmul.msk.f32.vlgmr.msra.gmra.mxu3 %vm96_vm1, %v3860_v45  ;;  %v3328_v34 = vld [vmem:[#allocation2 + $0x48] sm:$0xff] }
 0x34f   :  { %18410 = vst [vmem:[#allocation18_spill] sm:$0xff] %v13844_v7  ;;  %11685 = vmatmul.msk.f32.vlgmr.msra.gmra.mxu0 %vm96_vm1, %v4394_v55  ;;  %v3862_v55 = vld [vmem:[#allocation2 + $0x49] sm:$0xff] }
 0x350   :  { %v1611_v18 = vpop.f32.mrf.mxu2  ;;  %v4396_v7 = vld [vmem:[#allocation2 + $0x4a] sm:$0xff] }
 0x351   :  { %v2145_v61 = vpop.f32.mrf.mxu3  ;;  %v1707_v3 = vadd.f32 %v1611_v18, %v18411_v10 }
 0x353   :  { %v2241_v23 = vadd.f32 %v2145_v61, %v1707_v3 }
 0x354   :  { %v2682_v46 = vpop.f32.mrf.mxu0 }
 0x355   :  { %v13850_v0 = vadd.f32 %v2679_v49, %v2241_v23  ;;  %11554 = vmatmul.msk.f32.gmra.mxu2 %vm96_vm1, %v3327_v54  ;;  %v3863_v23 = vld [vmem:[#allocation2 + $0x51] sm:$0xff] }
 0x356   :  { %11620 = vmatmul.msk.f32.gmra.mxu3 %vm96_vm1, %v3861_v16  ;;  %v3329_v16 = vld [vmem:[#allocation2 + $0x50] sm:$0xff] }
 0x357   :  { %18412 = vst [vmem:[#allocation24_spill] sm:$0xff] %v13850_v0  ;;  %11686 = vmatmul.msk.f32.gmra.mxu0 %vm96_vm1, %v4395_v19  ;;  %v18415_v19 = vld [vmem:[#allocation62_spill] sm:$0xff] }
 0x358   :  { %v1614_v4 = vpop.f32.mrf.mxu2  ;;  %v4397_v0 = vld [vmem:[#allocation2 + $0x52] sm:$0xff] }
 0x359   :  { %v2148_v42 = vpop.f32.mrf.mxu3  ;;  %v1708_v45 = vadd.f32 %v1614_v4, %v18413_v53 }
 0x35b   :  { %v2242_v18 = vadd.f32 %v2148_v42, %v1708_v45 }
 0x35c   :  { %v2685_v10 = vpop.f32.mrf.mxu0 }
 0x35d   :  { %v13856_v61 = vadd.f32 %v2682_v46, %v2242_v18  ;;  %11555 = vmatmul.msk.f32.gmra.mxu2 %vm96_vm1, %v3328_v34  ;;  %v3864_v18 = vld [vmem:[#allocation2 + $0x61] sm:$0xff] }
 0x35e   :  { %11621 = vmatmul.msk.f32.gmra.mxu3 %vm96_vm1, %v3862_v55  ;;  %v3330_v55 = vld [vmem:[#allocation2 + $0x60] sm:$0xff] }
 0x35f   :  { %18414 = vst [vmem:[#allocation13_spill] sm:$0xff] %v13856_v61  ;;  %11687 = vmatmul.msk.f32.gmra.mxu0 %vm96_vm1, %v4396_v7  ;;  %v18417_v7 = vld [vmem:[#allocation63_spill] sm:$0xff]  ;;  %v4398_v61 = vld [vmem:[#allocation2 + $0x62] sm:$0xff] }
 0x360   :  { %v1617_v49 = vpop.f32.mrf.mxu2 }
 0x361   :  { %v2151_v3 = vpop.f32.mrf.mxu3  ;;  %v1709_v54 = vadd.f32 %v1617_v49, %v18415_v19 }
 0x363   :  { %v2243_v4 = vadd.f32 %v2151_v3, %v1709_v54 }
 0x364   :  { %v2688_v53 = vpop.f32.mrf.mxu0 }
 0x365   :  { %v13862_v42 = vadd.f32 %v2685_v10, %v2243_v4  ;;  %11556 = vmatmul.msk.f32.gmra.mxu2 %vm96_vm1, %v3329_v16  ;;  %v3865_v4 = vld [vmem:[#allocation2 + $0x69] sm:$0xff] }
 0x366   :  { %11622 = vmatmul.msk.f32.gmra.mxu3 %vm96_vm1, %v3863_v23  ;;  %v3331_v23 = vld [vmem:[#allocation2 + $0x68] sm:$0xff] }
 0x367   :  { %18416 = vst [vmem:[#allocation14_spill] sm:$0xff] %v13862_v42  ;;  %11688 = vmatmul.msk.f32.gmra.mxu0 %vm96_vm1, %v4397_v0  ;;  %v18419_v0 = vld [vmem:[#allocation64_spill] sm:$0xff]  ;;  %v4399_v42 = vld [vmem:[#allocation2 + $0x6a] sm:$0xff] }
 0x368   :  { %v1620_v46 = vpop.f32.mrf.mxu2 }
 0x369   :  { %v2154_v45 = vpop.f32.mrf.mxu3  ;;  %v1710_v34 = vadd.f32 %v1620_v46, %v18417_v7 }
 0x36b   :  { %v2244_v49 = vadd.f32 %v2154_v45, %v1710_v34 }
 0x36c   :  { %v2691_v19 = vpop.f32.mrf.mxu0 }
 0x36d   :  { %v13868_v3 = vadd.f32 %v2688_v53, %v2244_v49  ;;  %11557 = vmatmul.msk.f32.gmra.mxu2 %vm96_vm1, %v3330_v55  ;;  %v3866_v49 = vld [vmem:[#allocation2 + $0x79] sm:$0xff] }
 0x36e   :  { %11623 = vmatmul.msk.f32.gmra.mxu3 %vm96_vm1, %v3864_v18  ;;  %v3332_v18 = vld [vmem:[#allocation2 + $0x78] sm:$0xff] }
 0x36f   :  { %18418 = vst [vmem:[#allocation23_spill] sm:$0xff] %v13868_v3  ;;  %11689 = vmatmul.msk.f32.gmra.mxu0 %vm96_vm1, %v4398_v61  ;;  %v18421_v61 = vld [vmem:[#allocation65_spill] sm:$0xff]  ;;  %v4400_v3 = vld [vmem:[#allocation2 + $0x7a] sm:$0xff] }
 0x370   :  { %v1623_v10 = vpop.f32.mrf.mxu2 }
 0x371   :  { %v2157_v54 = vpop.f32.mrf.mxu3  ;;  %v1711_v16 = vadd.f32 %v1623_v10, %v18419_v0 }
 0x373   :  { %v2245_v46 = vadd.f32 %v2157_v54, %v1711_v16 }
 0x374   :  { %v2694_v7 = vpop.f32.mrf.mxu0 }
 0x375   :  { %v13874_v45 = vadd.f32 %v2691_v19, %v2245_v46  ;;  %11558 = vmatmul.msk.f32.gmra.mxu2 %vm96_vm1, %v3331_v23  ;;  %v3867_v46 = vld [vmem:[#allocation2 + $0x81] sm:$0xff] }
 0x376   :  { %11624 = vmatmul.msk.f32.gmra.mxu3 %vm96_vm1, %v3865_v4  ;;  %v3333_v4 = vld [vmem:[#allocation2 + $0x80] sm:$0xff] }
 0x377   :  { %18420 = vst [vmem:[#allocation29_spill] sm:$0xff] %v13874_v45  ;;  %11690 = vmatmul.msk.f32.gmra.mxu0 %vm96_vm1, %v4399_v42  ;;  %v18423_v42 = vld [vmem:[#allocation66_spill] sm:$0xff]  ;;  %v4401_v45 = vld [vmem:[#allocation2 + $0x82] sm:$0xff] }
 0x378   :  { %v1626_v53 = vpop.f32.mrf.mxu2 }
 0x379   :  { %v2160_v34 = vpop.f32.mrf.mxu3  ;;  %v1712_v55 = vadd.f32 %v1626_v53, %v18421_v61 }
 0x37b   :  { %v2246_v10 = vadd.f32 %v2160_v34, %v1712_v55 }
 0x37c   :  { %v2697_v0 = vpop.f32.mrf.mxu0 }
 0x37d   :  { %v13880_v54 = vadd.f32 %v2694_v7, %v2246_v10  ;;  %11559 = vmatmul.msk.f32.gmra.mxu2 %vm96_vm1, %v3332_v18  ;;  %v3868_v10 = vld [vmem:[#allocation2 + $0x91] sm:$0xff] }
 0x37e   :  { %11625 = vmatmul.msk.f32.gmra.mxu3 %vm96_vm1, %v3866_v49  ;;  %v3334_v49 = vld [vmem:[#allocation2 + $0x90] sm:$0xff] }
 0x37f   :  { %18422 = vst [vmem:[#allocation16_spill] sm:$0xff] %v13880_v54  ;;  %11691 = vmatmul.msk.f32.gmra.mxu0 %vm96_vm1, %v4400_v3  ;;  %v18425_v3 = vld [vmem:[#allocation67_spill] sm:$0xff] }
 0x380   :  { %v1629_v19 = vpop.f32.mrf.mxu2  ;;  %v4402_v54 = vld [vmem:[#allocation2 + $0x92] sm:$0xff] }
 0x381   :  { %v2163_v16 = vpop.f32.mrf.mxu3  ;;  %v1713_v23 = vadd.f32 %v1629_v19, %v18423_v42 }
 0x383   :  { %v2247_v53 = vadd.f32 %v2163_v16, %v1713_v23 }
 0x384   :  { %v2700_v61 = vpop.f32.mrf.mxu0 }
 0x385   :  { %v13886_v34 = vadd.f32 %v2697_v0, %v2247_v53  ;;  %11560 = vmatmul.msk.f32.gmra.mxu2 %vm96_vm1, %v3333_v4  ;;  %v3869_v53 = vld [vmem:[#allocation2 + $0x99] sm:$0xff] }
 0x386   :  { %11626 = vmatmul.msk.f32.gmra.mxu3 %vm96_vm1, %v3867_v46  ;;  %v3335_v46 = vld [vmem:[#allocation2 + $0x98] sm:$0xff] }
 0x387   :  { %18424 = vst [vmem:[#allocation17_spill] sm:$0xff] %v13886_v34  ;;  %11692 = vmatmul.msk.f32.gmra.mxu0 %vm96_vm1, %v4401_v45  ;;  %v18427_v45 = vld [vmem:[#allocation68_spill] sm:$0xff] }
 0x388   :  { %v1632_v7 = vpop.f32.mrf.mxu2  ;;  %v4403_v34 = vld [vmem:[#allocation2 + $0x9a] sm:$0xff] }
 0x389   :  { %v2166_v55 = vpop.f32.mrf.mxu3  ;;  %v1714_v18 = vadd.f32 %v1632_v7, %v18425_v3 }
 0x38b   :  { %v2248_v19 = vadd.f32 %v2166_v55, %v1714_v18 }
 0x38c   :  { %v2703_v42 = vpop.f32.mrf.mxu0 }
 0x38d   :  { %v13892_v16 = vadd.f32 %v2700_v61, %v2248_v19  ;;  %11561 = vmatmul.msk.f32.gmra.mxu2 %vm96_vm1, %v3334_v49  ;;  %v3870_v19 = vld [vmem:[#allocation2 + $0xa9] sm:$0xff] }
 0x38e   :  { %11627 = vmatmul.msk.f32.gmra.mxu3 %vm96_vm1, %v3868_v10  ;;  %v3336_v10 = vld [vmem:[#allocation2 + $0xa8] sm:$0xff] }
 0x38f   :  { %18426 = vst [vmem:[#allocation28_spill] sm:$0xff] %v13892_v16  ;;  %11693 = vmatmul.msk.f32.gmra.mxu0 %vm96_vm1, %v4402_v54  ;;  %v18429_v54 = vld [vmem:[#allocation69_spill] sm:$0xff] }
 0x390   :  { %v1635_v0 = vpop.f32.mrf.mxu2  ;;  %v4404_v16 = vld [vmem:[#allocation2 + $0xaa] sm:$0xff] }
 0x391   :  { %v2169_v23 = vpop.f32.mrf.mxu3  ;;  %v1715_v4 = vadd.f32 %v1635_v0, %v18427_v45 }
 0x393   :  { %v2249_v7 = vadd.f32 %v2169_v23, %v1715_v4 }
 0x394   :  { %v2706_v3 = vpop.f32.mrf.mxu0 }
 0x395   :  { %v13898_v55 = vadd.f32 %v2703_v42, %v2249_v7  ;;  %11562 = vmatmul.msk.f32.gmra.mxu2 %vm96_vm1, %v3335_v46  ;;  %v3871_v7 = vld [vmem:[#allocation2 + $0xb1] sm:$0xff] }
 0x396   :  { %11628 = vmatmul.msk.f32.gmra.mxu3 %vm96_vm1, %v3869_v53  ;;  %v3337_v53 = vld [vmem:[#allocation2 + $0xb0] sm:$0xff] }
 0x397   :  { %18428 = vst [vmem:[#allocation34_spill] sm:$0xff] %v13898_v55  ;;  %11694 = vmatmul.msk.f32.gmra.mxu0 %vm96_vm1, %v4403_v34  ;;  %v18431_v34 = vld [vmem:[#allocation70_spill] sm:$0xff] }
 0x398   :  { %v1638_v61 = vpop.f32.mrf.mxu2  ;;  %v4405_v55 = vld [vmem:[#allocation2 + $0xb2] sm:$0xff] }
 0x399   :  { %v2172_v18 = vpop.f32.mrf.mxu3  ;;  %v1716_v49 = vadd.f32 %v1638_v61, %v18429_v54 }
 0x39b   :  { %v2250_v0 = vadd.f32 %v2172_v18, %v1716_v49 }
 0x39c   :  { %v2709_v45 = vpop.f32.mrf.mxu0 }
 0x39d   :  { %v13904_v23 = vadd.f32 %v2706_v3, %v2250_v0  ;;  %11563 = vmatmul.msk.f32.gmra.mxu2 %vm96_vm1, %v3336_v10  ;;  %v3872_v0 = vld [vmem:[#allocation2 + $0xc1] sm:$0xff] }
 0x39e   :  { %11629 = vmatmul.msk.f32.gmra.mxu3 %vm96_vm1, %v3870_v19  ;;  %v3338_v19 = vld [vmem:[#allocation2 + $0xc0] sm:$0xff] }
 0x39f   :  { %18430 = vst [vmem:[#allocation21_spill] sm:$0xff] %v13904_v23  ;;  %11695 = vmatmul.msk.f32.gmra.mxu0 %vm96_vm1, %v4404_v16  ;;  %v18433_v16 = vld [vmem:[#allocation71_spill] sm:$0xff]  ;;  %v4406_v23 = vld [vmem:[#allocation2 + $0xc2] sm:$0xff] }
 0x3a0   :  { %v1641_v42 = vpop.f32.mrf.mxu2 }
 0x3a1   :  { %v2175_v4 = vpop.f32.mrf.mxu3  ;;  %v1717_v46 = vadd.f32 %v1641_v42, %v18431_v34 }
 0x3a3   :  { %v2251_v61 = vadd.f32 %v2175_v4, %v1717_v46 }
 0x3a4   :  { %v2712_v54 = vpop.f32.mrf.mxu0 }
 0x3a5   :  { %v13910_v18 = vadd.f32 %v2709_v45, %v2251_v61  ;;  %11564 = vmatmul.msk.f32.gmra.mxu2 %vm96_vm1, %v3337_v53  ;;  %v3873_v61 = vld [vmem:[#allocation2 + $0xc9] sm:$0xff] }
 0x3a6   :  { %11630 = vmatmul.msk.f32.gmra.mxu3 %vm96_vm1, %v3871_v7  ;;  %v3339_v7 = vld [vmem:[#allocation2 + $0xc8] sm:$0xff] }
 0x3a7   :  { %18432 = vst [vmem:[#allocation22_spill] sm:$0xff] %v13910_v18  ;;  %11696 = vmatmul.msk.f32.gmra.mxu0 %vm96_vm1, %v4405_v55  ;;  %v18435_v55 = vld [vmem:[#allocation72_spill] sm:$0xff]  ;;  %v4407_v18 = vld [vmem:[#allocation2 + $0xca] sm:$0xff] }
 0x3a8   :  { %v1644_v3 = vpop.f32.mrf.mxu2 }
 0x3a9   :  { %v2178_v49 = vpop.f32.mrf.mxu3  ;;  %v1718_v10 = vadd.f32 %v1644_v3, %v18433_v16 }
 0x3ab   :  { %v2252_v42 = vadd.f32 %v2178_v49, %v1718_v10  ;;  %v18437_v10 = vmov 0.0  }
 0x3ac   :  { %v2715_v34 = vpop.f32.mrf.mxu0  ;;  %5607 = vst.msk [vmem:[#allocation3] sm:$0xff] %vm4996_vm4, %v18437_v10 }
 0x3ad   :  { %v13916_v4 = vadd.f32 %v2712_v54, %v2252_v42  ;;  %11565 = vmatmul.msk.f32.gmra.mxu2 %vm96_vm1, %v3338_v19  ;;  %v18438_v19 = vld [vmem:[#allocation73_spill] sm:$0xff]  ;;  %5608 = vst.msk [vmem:[#allocation3 + $0x8] sm:$0xff] %vm4996_vm4, %v18437_v10  ;;  %v3340_v42 = vld [vmem:[#allocation2 + $0xd8] sm:$0xff] }
 0x3ae   :  { %11631 = vmatmul.msk.f32.gmra.mxu3 %vm96_vm1, %v3872_v0  ;;  %5611 = vst.msk [vmem:[#allocation3 + $0x1b0] sm:$0xff] %vm4996_vm4, %v18437_v10 }
 0x3af   :  { %18434 = vst [vmem:[#allocation33_spill] sm:$0xff] %v13916_v4  ;;  %11697 = vmatmul.msk.f32.gmra.mxu0 %vm96_vm1, %v4406_v23  ;;  %v4410_v4 = vld [vmem:[#allocation2 + $0xf2] sm:$0xff] }
 0x3b0   :  { %v1647_v45 = vpop.f32.mrf.mxu2  ;;  %5612 = vst.msk [vmem:[#allocation3 + $0x1b8] sm:$0xff] %vm4996_vm4, %v18437_v10 }
 0x3b1   :  { %v2181_v46 = vpop.f32.mrf.mxu3  ;;  %v1719_v53 = vadd.f32 %v1647_v45, %v18435_v55  ;;  %5615 = vst.msk [vmem:[#allocation3 + $0x198] sm:$0xff] %vm4996_vm4, %v18437_v10 }
 0x3b2   :  { %5616 = vst.msk [vmem:[#allocation3 + $0x1a0] sm:$0xff] %vm4996_vm4, %v18437_v10 }
 0x3b3   :  { %v2253_v3 = vadd.f32 %v2181_v46, %v1719_v53  ;;  %v4408_v46 = vld [vmem:[#allocation2 + $0xda] sm:$0xff]  ;;  %5618 = vst.msk [vmem:[#allocation3 + $0x348] sm:$0xff] %vm4996_vm4, %v18437_v10 }
 0x3b4   :  { %v2718_v16 = vpop.f32.mrf.mxu0  ;;  %5619 = vst.msk [vmem:[#allocation3 + $0x350] sm:$0xff] %vm4996_vm4, %v18437_v10 }
 0x3b5   :  { %v13922_v49 = vadd.f32 %v2715_v34, %v2253_v3  ;;  %11566 = vmatmul.msk.f32.gmra.mxu2 %vm96_vm1, %v3339_v7  ;;  %v3874_v34 = vld [vmem:[#allocation2 + $0xd9] sm:$0xff] }
 0x3b6   :  { %11632 = vmatmul.msk.f32.gmra.mxu3 %vm96_vm1, %v3873_v61  ;;  %v18440_v61 = vld [vmem:[#allocation75_spill] sm:$0xff] }
 0x3b7   :  { %18436 = vst [vmem:[#allocation39_spill] sm:$0xff] %v13922_v49  ;;  %11698 = vmatmul.msk.f32.gmra.mxu0 %vm96_vm1, %v4407_v18  ;;  %v3876_v49 = vld [vmem:[#allocation2 + $0xf1] sm:$0xff] }
 0x3b8   :  { %v1650_v54 = vpop.f32.mrf.mxu2 }
 0x3b9   :  { %v2184_v23 = vpop.f32.mrf.mxu3  ;;  %v1720_v0 = vadd.f32 %v1650_v54, %v18438_v19  ;;  %v3875_v54 = vld [vmem:[#allocation2 + $0xe1] sm:$0xff] }
 0x3bb   :  { %v2254_v45 = vadd.f32 %v2184_v23, %v1720_v0  ;;  %v4409_v0 = vld [vmem:[#allocation2 + $0xe2] sm:$0xff] }
 0x3bc   :  { %v2721_v18 = vpop.f32.mrf.mxu0 }
 0x3bd   :  { %v13938_v55 = vadd.f32 %v2718_v16, %v2254_v45  ;;  %11567 = vmatmul.msk.f32.gmra.mxu2 %vm96_vm1, %v3340_v42  ;;  %v3341_v16 = vld [vmem:[#allocation2 + $0xe0] sm:$0xff] }
 0x3be   :  { %11633 = vmatmul.msk.f32.gmra.mxu3 %vm96_vm1, %v3874_v34 }
 0x3bf   :  { %18439 = vst [vmem:[#allocation26_spill] sm:$0xff] %v13938_v55  ;;  %11699 = vmatmul.msk.f32.gmra.mxu0 %vm96_vm1, %v4408_v46  ;;  %v18442_v46 = vld [vmem:[#allocation78_spill] sm:$0xff] }
 0x3c0   :  { %v1653_v53 = vpop.f32.mrf.mxu2  ;;  %v3342_v55 = vld [vmem:[#allocation2 + $0xf0] sm:$0xff] }
 0x3c1   :  { %v2187_v7 = vpop.f32.mrf.mxu3  ;;  %v1721_v3 = vadd.f32 %v1653_v53, %v18440_v61 }
 0x3c3   :  { %v2255_v23 = vadd.f32 %v2187_v7, %v1721_v3 }
 0x3c4   :  { %v2724_v19 = vpop.f32.mrf.mxu0 }
 0x3c5   :  { %v13950_v42 = vadd.f32 %v2721_v18, %v2255_v23  ;;  %11568 = vmatmul.msk.f32.gmra.mxu2 %vm96_vm1, %v3341_v16  ;;  %v3877_v23 = vld [vmem:[#allocation2 + $0xf9] sm:$0xff] }
 0x3c6   :  { %11634 = vmatmul.msk.f32.gmra.mxu3 %vm96_vm1, %v3875_v54  ;;  %v3343_v54 = vld [vmem:[#allocation2 + $0xf8] sm:$0xff] }
 0x3c7   :  { %18441 = vst [vmem:[#allocation27_spill] sm:$0xff] %v13950_v42  ;;  %11700 = vmatmul.msk.f32.gmra.mxu0 %vm96_vm1, %v4409_v0 }
 0x3c8   :  { %v1656_v34 = vpop.f32.mrf.mxu2 }
 0x3c9   :  { %v2190_v45 = vpop.f32.mrf.mxu3  ;;  %v1722_v10 = vadd.f32 %v1656_v34, %v18442_v46  ;;  %v4411_v46 = vld [vmem:[#allocation2 + $0xfa] sm:$0xff] }
 0x3cb   :  { %v2256_v53 = vadd.f32 %v2190_v45, %v1722_v10  ;;  %v3878_v45 = vld [vmem:[#allocation2 + $0x109] sm:$0xff] }
 0x3cc   :  { %v4672_v61 = vpop.f32.mrf.mxu0 }
 0x3cd   :  { %v13956_v7 = vadd.f32 %v2724_v19, %v2256_v53  ;;  %11569 = vmatmul.msk.f32.gmra.mxu2 %vm96_vm1, %v3342_v55  ;;  %v3344_v19 = vld [vmem:[#allocation2 + $0x108] sm:$0xff] }
 0x3ce   :  { %11635 = vmatmul.msk.f32.gmra.mxu3 %vm96_vm1, %v3876_v49 }
 0x3cf   :  { %18443 = vst [vmem:[#allocation38_spill] sm:$0xff] %v13956_v7  ;;  %11701 = vmatmul.msk.f32.gmra.mxu0 %vm96_vm1, %v4410_v4 }
 0x3d0   :  { %v3604_v18 = vpop.f32.mrf.mxu2 }
 0x3d1   :  { %v4138_v3 = vpop.f32.mrf.mxu3  ;;  %v3796_v16 = vadd.f32 %v3604_v18, %v13446_v57  ;;  %v4412_v18 = vld [vmem:[#allocation2 + $0x10a] sm:$0xff] }
 0x3d3   :  { %v4330_v0 = vadd.f32 %v4138_v3, %v3796_v16 }
 0x3d4   :  { %v4675_v34 = vpop.f32.mrf.mxu0 }
 0x3d5   :  { %v13962_v10 = vadd.f32 %v4672_v61, %v4330_v0  ;;  %11570 = vmatmul.msk.f32.gmra.mxu2 %vm96_vm1, %v3343_v54  ;;  %v3879_v0 = vld [vmem:[#allocation2 + $0x111] sm:$0xff] }
 0x3d6   :  { %11636 = vmatmul.msk.f32.gmra.mxu3 %vm96_vm1, %v3877_v23  ;;  %v3345_v23 = vld [vmem:[#allocation2 + $0x110] sm:$0xff] }
 0x3d7   :  { %11702 = vmatmul.msk.f32.gmra.mxu0 %vm96_vm1, %v4411_v46 }
 0x3d8   :  { %v3607_v49 = vpop.f32.mrf.mxu2 }
 0x3d9   :  { %v4141_v55 = vpop.f32.mrf.mxu3  ;;  %v3797_v4 = vadd.f32 %v3607_v49, %v13456_v12  ;;  %v4413_v49 = vld [vmem:[#allocation2 + $0x112] sm:$0xff] }
 0x3db   :  { %v4331_v57 = vadd.f32 %v4141_v55, %v3797_v4 }
 0x3dc   :  { %v4678_v53 = vpop.f32.mrf.mxu0 }
 0x3dd   :  { %v13968_v3 = vadd.f32 %v4675_v34, %v4331_v57  ;;  %11571 = vmatmul.msk.f32.gmra.mxu2 %vm96_vm1, %v3344_v19  ;;  %v3880_v57 = vld [vmem:[#allocation2 + $0x121] sm:$0xff] }
 0x3de   :  { %11637 = vmatmul.msk.f32.gmra.mxu3 %vm96_vm1, %v3878_v45  ;;  %v3346_v45 = vld [vmem:[#allocation2 + $0x120] sm:$0xff] }
 0x3df   :  { %11703 = vmatmul.msk.f32.gmra.mxu0 %vm96_vm1, %v4412_v18 }
 0x3e0   :  { %v3610_v61 = vpop.f32.mrf.mxu2 }
 0x3e1   :  { %v4144_v16 = vpop.f32.mrf.mxu3  ;;  %v3798_v54 = vadd.f32 %v3610_v61, %v13466_v29  ;;  %v4414_v61 = vld [vmem:[#allocation2 + $0x122] sm:$0xff] }
 0x3e3   :  { %v4332_v12 = vadd.f32 %v4144_v16, %v3798_v54 }
 0x3e4   :  { %v4681_v46 = vpop.f32.mrf.mxu0 }
 0x3e5   :  { %v13974_v55 = vadd.f32 %v4678_v53, %v4332_v12  ;;  %11572 = vmatmul.msk.f32.gmra.mxu2 %vm96_vm1, %v3345_v23  ;;  %v3881_v12 = vld [vmem:[#allocation2 + $0x129] sm:$0xff] }
 0x3e6   :  { %11638 = vmatmul.msk.f32.gmra.mxu3 %vm96_vm1, %v3879_v0  ;;  %v3347_v0 = vld [vmem:[#allocation2 + $0x128] sm:$0xff] }
 0x3e7   :  { %11704 = vmatmul.msk.f32.gmra.mxu0 %vm96_vm1, %v4413_v49 }
 0x3e8   :  { %v3613_v34 = vpop.f32.mrf.mxu2 }
 0x3e9   :  { %v4147_v4 = vpop.f32.mrf.mxu3  ;;  %v3799_v19 = vadd.f32 %v3613_v34, %v13476_v58  ;;  %v4415_v34 = vld [vmem:[#allocation2 + $0x12a] sm:$0xff] }
 0x3eb   :  { %v4333_v29 = vadd.f32 %v4147_v4, %v3799_v19 }
 0x3ec   :  { %v4684_v18 = vpop.f32.mrf.mxu0 }
 0x3ed   :  { %v13980_v16 = vadd.f32 %v4681_v46, %v4333_v29  ;;  %11573 = vmatmul.msk.f32.gmra.mxu2 %vm96_vm1, %v3346_v45  ;;  %v3882_v29 = vld [vmem:[#allocation2 + $0x139] sm:$0xff] }
 0x3ee   :  { %11639 = vmatmul.msk.f32.gmra.mxu3 %vm96_vm1, %v3880_v57  ;;  %v3348_v57 = vld [vmem:[#allocation2 + $0x138] sm:$0xff] }
 0x3ef   :  { %11705 = vmatmul.msk.f32.gmra.mxu0 %vm96_vm1, %v4414_v61 }
 0x3f0   :  { %v3616_v53 = vpop.f32.mrf.mxu2 }
 0x3f1   :  { %v4150_v54 = vpop.f32.mrf.mxu3  ;;  %v3800_v23 = vadd.f32 %v3616_v53, %v13486_v2  ;;  %v4416_v53 = vld [vmem:[#allocation2 + $0x13a] sm:$0xff] }
 0x3f3   :  { %v4334_v58 = vadd.f32 %v4150_v54, %v3800_v23 }
 0x3f4   :  { %v4687_v49 = vpop.f32.mrf.mxu0 }
 0x3f5   :  { %v13986_v4 = vadd.f32 %v4684_v18, %v4334_v58  ;;  %11574 = vmatmul.msk.f32.gmra.mxu2 %vm96_vm1, %v3347_v0  ;;  %v3883_v58 = vld [vmem:[#allocation2 + $0x141] sm:$0xff] }
 0x3f6   :  { %11640 = vmatmul.msk.f32.gmra.mxu3 %vm96_vm1, %v3881_v12  ;;  %v3349_v12 = vld [vmem:[#allocation2 + $0x140] sm:$0xff] }
 0x3f7   :  { %11706 = vmatmul.msk.f32.gmra.mxu0 %vm96_vm1, %v4415_v34 }
 0x3f8   :  { %v3619_v46 = vpop.f32.mrf.mxu2 }
 0x3f9   :  { %v4153_v19 = vpop.f32.mrf.mxu3  ;;  %v3801_v45 = vadd.f32 %v3619_v46, %v13496_v35  ;;  %v4417_v46 = vld [vmem:[#allocation2 + $0x142] sm:$0xff] }
 0x3fb   :  { %v4335_v2 = vadd.f32 %v4153_v19, %v3801_v45 }
 0x3fc   :  { %v4690_v61 = vpop.f32.mrf.mxu0 }
 0x3fd   :  { %v13992_v54 = vadd.f32 %v4687_v49, %v4335_v2  ;;  %11575 = vmatmul.msk.f32.gmra.mxu2 %vm96_vm1, %v3348_v57  ;;  %v3884_v2 = vld [vmem:[#allocation2 + $0x151] sm:$0xff] }
 0x3fe   :  { %11641 = vmatmul.msk.f32.gmra.mxu3 %vm96_vm1, %v3882_v29  ;;  %v3350_v29 = vld [vmem:[#allocation2 + $0x150] sm:$0xff] }
 0x3ff   :  { %11707 = vmatmul.msk.f32.gmra.mxu0 %vm96_vm1, %v4416_v53 }
 0x400   :  { %v3622_v18 = vpop.f32.mrf.mxu2 }
 0x401   :  { %v4156_v23 = vpop.f32.mrf.mxu3  ;;  %v3802_v0 = vadd.f32 %v3622_v18, %v13506_v59  ;;  %v4418_v18 = vld [vmem:[#allocation2 + $0x152] sm:$0xff] }
 0x403   :  { %v4336_v35 = vadd.f32 %v4156_v23, %v3802_v0 }
 0x404   :  { %v4693_v34 = vpop.f32.mrf.mxu0 }
 0x405   :  { %v13998_v19 = vadd.f32 %v4690_v61, %v4336_v35  ;;  %11576 = vmatmul.msk.f32.gmra.mxu2 %vm96_vm1, %v3349_v12  ;;  %v3885_v35 = vld [vmem:[#allocation2 + $0x159] sm:$0xff] }
 0x406   :  { %11642 = vmatmul.msk.f32.gmra.mxu3 %vm96_vm1, %v3883_v58  ;;  %v3351_v58 = vld [vmem:[#allocation2 + $0x158] sm:$0xff] }
 0x407   :  { %11708 = vmatmul.msk.f32.gmra.mxu0 %vm96_vm1, %v4417_v46 }
 0x408   :  { %v3625_v49 = vpop.f32.mrf.mxu2 }
 0x409   :  { %v4159_v45 = vpop.f32.mrf.mxu3  ;;  %v3803_v57 = vadd.f32 %v3625_v49, %v13516_v60  ;;  %v4419_v49 = vld [vmem:[#allocation2 + $0x15a] sm:$0xff] }
 0x40b   :  { %v4337_v59 = vadd.f32 %v4159_v45, %v3803_v57 }
 0x40c   :  { %v4696_v53 = vpop.f32.mrf.mxu0 }
 0x40d   :  { %v14004_v23 = vadd.f32 %v4693_v34, %v4337_v59  ;;  %11577 = vmatmul.msk.f32.gmra.mxu2 %vm96_vm1, %v3350_v29  ;;  %v3886_v59 = vld [vmem:[#allocation2 + $0x169] sm:$0xff] }
 0x40e   :  { %11643 = vmatmul.msk.f32.gmra.mxu3 %vm96_vm1, %v3884_v2  ;;  %v3352_v2 = vld [vmem:[#allocation2 + $0x168] sm:$0xff] }
 0x40f   :  { %11709 = vmatmul.msk.f32.gmra.mxu0 %vm96_vm1, %v4418_v18 }
 0x410   :  { %v3628_v61 = vpop.f32.mrf.mxu2 }
 0x411   :  { %v4162_v0 = vpop.f32.mrf.mxu3  ;;  %v3804_v12 = vadd.f32 %v3628_v61, %v13529_v51  ;;  %v4420_v61 = vld [vmem:[#allocation2 + $0x16a] sm:$0xff] }
 0x413   :  { %v4338_v60 = vadd.f32 %v4162_v0, %v3804_v12 }
 0x414   :  { %v4699_v46 = vpop.f32.mrf.mxu0 }
 0x415   :  { %v14010_v45 = vadd.f32 %v4696_v53, %v4338_v60  ;;  %11578 = vmatmul.msk.f32.gmra.mxu2 %vm96_vm1, %v3351_v58  ;;  %v3887_v60 = vld [vmem:[#allocation2 + $0x171] sm:$0xff] }
 0x416   :  { %11644 = vmatmul.msk.f32.gmra.mxu3 %vm96_vm1, %v3885_v35  ;;  %v3353_v35 = vld [vmem:[#allocation2 + $0x170] sm:$0xff] }
 0x417   :  { %11710 = vmatmul.msk.f32.gmra.mxu0 %vm96_vm1, %v4419_v49 }
 0x418   :  { %v3631_v34 = vpop.f32.mrf.mxu2 }
 0x419   :  { %v4165_v57 = vpop.f32.mrf.mxu3  ;;  %v3805_v29 = vadd.f32 %v3631_v34, %v13543_v9  ;;  %v4421_v34 = vld [vmem:[#allocation2 + $0x172] sm:$0xff] }
 0x41b   :  { %v4339_v51 = vadd.f32 %v4165_v57, %v3805_v29 }
 0x41c   :  { %v4702_v18 = vpop.f32.mrf.mxu0 }
 0x41d   :  { %v14016_v0 = vadd.f32 %v4699_v46, %v4339_v51  ;;  %11579 = vmatmul.msk.f32.gmra.mxu2 %vm96_vm1, %v3352_v2  ;;  %v3888_v51 = vld [vmem:[#allocation2 + $0x181] sm:$0xff] }
 0x41e   :  { %11645 = vmatmul.msk.f32.gmra.mxu3 %vm96_vm1, %v3886_v59  ;;  %v3354_v59 = vld [vmem:[#allocation2 + $0x180] sm:$0xff] }
 0x41f   :  { %11711 = vmatmul.msk.f32.gmra.mxu0 %vm96_vm1, %v4420_v61 }
 0x420   :  { %v3634_v53 = vpop.f32.mrf.mxu2 }
 0x421   :  { %v4168_v12 = vpop.f32.mrf.mxu3  ;;  %v3806_v58 = vadd.f32 %v3634_v53, %v13554_v39  ;;  %v4422_v53 = vld [vmem:[#allocation2 + $0x182] sm:$0xff] }
 0x423   :  { %v4340_v9 = vadd.f32 %v4168_v12, %v3806_v58 }
 0x424   :  { %v4705_v49 = vpop.f32.mrf.mxu0 }
 0x425   :  { %v14022_v57 = vadd.f32 %v4702_v18, %v4340_v9  ;;  %11580 = vmatmul.msk.f32.gmra.mxu2 %vm96_vm1, %v3353_v35  ;;  %v3889_v9 = vld [vmem:[#allocation2 + $0x189] sm:$0xff] }
 0x426   :  { %11646 = vmatmul.msk.f32.gmra.mxu3 %vm96_vm1, %v3887_v60  ;;  %v3355_v60 = vld [vmem:[#allocation2 + $0x188] sm:$0xff] }
 0x427   :  { %11712 = vmatmul.msk.f32.gmra.mxu0 %vm96_vm1, %v4421_v34 }
 0x428   :  { %v3637_v46 = vpop.f32.mrf.mxu2 }
 0x429   :  { %v4171_v29 = vpop.f32.mrf.mxu3  ;;  %v3807_v2 = vadd.f32 %v3637_v46, %v13564_v24  ;;  %v4423_v46 = vld [vmem:[#allocation2 + $0x18a] sm:$0xff] }
 0x42b   :  { %v4341_v39 = vadd.f32 %v4171_v29, %v3807_v2 }
 0x42c   :  { %v4708_v61 = vpop.f32.mrf.mxu0 }
 0x42d   :  { %v14028_v12 = vadd.f32 %v4705_v49, %v4341_v39  ;;  %11581 = vmatmul.msk.f32.gmra.mxu2 %vm96_vm1, %v3354_v59  ;;  %v3890_v39 = vld [vmem:[#allocation2 + $0x199] sm:$0xff] }
 0x42e   :  { %11647 = vmatmul.msk.f32.gmra.mxu3 %vm96_vm1, %v3888_v51  ;;  %v3356_v51 = vld [vmem:[#allocation2 + $0x198] sm:$0xff] }
 0x42f   :  { %11713 = vmatmul.msk.f32.gmra.mxu0 %vm96_vm1, %v4422_v53 }
 0x430   :  { %v3640_v18 = vpop.f32.mrf.mxu2 }
 0x431   :  { %v4174_v58 = vpop.f32.mrf.mxu3  ;;  %v3808_v35 = vadd.f32 %v3640_v18, %v13574_v36  ;;  %v4424_v18 = vld [vmem:[#allocation2 + $0x19a] sm:$0xff] }
 0x433   :  { %v4342_v24 = vadd.f32 %v4174_v58, %v3808_v35 }
 0x434   :  { %v4711_v34 = vpop.f32.mrf.mxu0 }
 0x435   :  { %v14034_v29 = vadd.f32 %v4708_v61, %v4342_v24  ;;  %11582 = vmatmul.msk.f32.gmra.mxu2 %vm96_vm1, %v3355_v60  ;;  %v3891_v24 = vld [vmem:[#allocation2 + $0x1a1] sm:$0xff] }
 0x436   :  { %11648 = vmatmul.msk.f32.gmra.mxu3 %vm96_vm1, %v3889_v9  ;;  %v3357_v9 = vld [vmem:[#allocation2 + $0x1a0] sm:$0xff] }
 0x437   :  { %11714 = vmatmul.msk.f32.gmra.mxu0 %vm96_vm1, %v4423_v46 }
 0x438   :  { %v3643_v49 = vpop.f32.mrf.mxu2 }
 0x439   :  { %v4177_v2 = vpop.f32.mrf.mxu3  ;;  %v3809_v59 = vadd.f32 %v3643_v49, %v13583_v15  ;;  %v4425_v49 = vld [vmem:[#allocation2 + $0x1a2] sm:$0xff] }
 0x43b   :  { %v4343_v36 = vadd.f32 %v4177_v2, %v3809_v59 }
 0x43c   :  { %v4714_v53 = vpop.f32.mrf.mxu0 }
 0x43d   :  { %v14040_v58 = vadd.f32 %v4711_v34, %v4343_v36  ;;  %11583 = vmatmul.msk.f32.gmra.mxu2 %vm96_vm1, %v3356_v51  ;;  %v3892_v36 = vld [vmem:[#allocation2 + $0x1e1] sm:$0xff] }
 0x43e   :  { %11649 = vmatmul.msk.f32.gmra.mxu3 %vm96_vm1, %v3890_v39  ;;  %v3358_v39 = vld [vmem:[#allocation2 + $0x1e0] sm:$0xff] }
 0x43f   :  { %11715 = vmatmul.msk.f32.gmra.mxu0 %vm96_vm1, %v4424_v18 }
 0x440   :  { %v3646_v61 = vpop.f32.mrf.mxu2 }
 0x441   :  { %v4180_v35 = vpop.f32.mrf.mxu3  ;;  %v3810_v60 = vadd.f32 %v3646_v61, %v13591_v41  ;;  %v4426_v61 = vld [vmem:[#allocation2 + $0x1e2] sm:$0xff] }
 0x443   :  { %v4344_v15 = vadd.f32 %v4180_v35, %v3810_v60 }
 0x444   :  { %v4717_v46 = vpop.f32.mrf.mxu0 }
 0x445   :  { %v14046_v2 = vadd.f32 %v4714_v53, %v4344_v15  ;;  %11584 = vmatmul.msk.f32.gmra.mxu2 %vm96_vm1, %v3357_v9  ;;  %v3893_v15 = vld [vmem:[#allocation2 + $0x1e9] sm:$0xff] }
 0x446   :  { %11650 = vmatmul.msk.f32.gmra.mxu3 %vm96_vm1, %v3891_v24  ;;  %v3359_v24 = vld [vmem:[#allocation2 + $0x1e8] sm:$0xff] }
 0x447   :  { %11716 = vmatmul.msk.f32.gmra.mxu0 %vm96_vm1, %v4425_v49 }
 0x448   :  { %v3649_v34 = vpop.f32.mrf.mxu2 }
 0x449   :  { %v4183_v59 = vpop.f32.mrf.mxu3  ;;  %v3811_v51 = vadd.f32 %v3649_v34, %v13599_v20  ;;  %v4427_v34 = vld [vmem:[#allocation2 + $0x1ea] sm:$0xff] }
 0x44b   :  { %v4345_v41 = vadd.f32 %v4183_v59, %v3811_v51 }
 0x44c   :  { %v4720_v18 = vpop.f32.mrf.mxu0 }
 0x44d   :  { %v14052_v35 = vadd.f32 %v4717_v46, %v4345_v41  ;;  %11585 = vmatmul.msk.f32.gmra.mxu2 %vm96_vm1, %v3358_v39  ;;  %v3894_v41 = vld [vmem:[#allocation2 + $0x1f9] sm:$0xff] }
 0x44e   :  { %11651 = vmatmul.msk.f32.gmra.mxu3 %vm96_vm1, %v3892_v36  ;;  %v3360_v36 = vld [vmem:[#allocation2 + $0x1f8] sm:$0xff] }
 0x44f   :  { %11717 = vmatmul.msk.f32.gmra.mxu0 %vm96_vm1, %v4426_v61 }
 0x450   :  { %v3652_v53 = vpop.f32.mrf.mxu2 }
 0x451   :  { %v4186_v60 = vpop.f32.mrf.mxu3  ;;  %v3812_v9 = vadd.f32 %v3652_v53, %v13607_v40  ;;  %v4428_v53 = vld [vmem:[#allocation2 + $0x1fa] sm:$0xff] }
 0x453   :  { %v4346_v20 = vadd.f32 %v4186_v60, %v3812_v9 }
 0x454   :  { %v4723_v49 = vpop.f32.mrf.mxu0 }
 0x455   :  { %v14058_v59 = vadd.f32 %v4720_v18, %v4346_v20  ;;  %11586 = vmatmul.msk.f32.gmra.mxu2 %vm96_vm1, %v3359_v24  ;;  %v3895_v20 = vld [vmem:[#allocation2 + $0x201] sm:$0xff] }
 0x456   :  { %11652 = vmatmul.msk.f32.gmra.mxu3 %vm96_vm1, %v3893_v15  ;;  %v3361_v15 = vld [vmem:[#allocation2 + $0x200] sm:$0xff] }
 0x457   :  { %11718 = vmatmul.msk.f32.gmra.mxu0 %vm96_vm1, %v4427_v34 }
 0x458   :  { %v3655_v46 = vpop.f32.mrf.mxu2 }
 0x459   :  { %v4189_v51 = vpop.f32.mrf.mxu3  ;;  %v3813_v39 = vadd.f32 %v3655_v46, %v13615_v52  ;;  %v4429_v46 = vld [vmem:[#allocation2 + $0x202] sm:$0xff] }
 0x45b   :  { %v4347_v40 = vadd.f32 %v4189_v51, %v3813_v39 }
 0x45c   :  { %v4726_v61 = vpop.f32.mrf.mxu0 }
 0x45d   :  { %v14064_v60 = vadd.f32 %v4723_v49, %v4347_v40  ;;  %11587 = vmatmul.msk.f32.gmra.mxu2 %vm96_vm1, %v3360_v36  ;;  %v3896_v40 = vld [vmem:[#allocation2 + $0x211] sm:$0xff] }
 0x45e   :  { %11653 = vmatmul.msk.f32.gmra.mxu3 %vm96_vm1, %v3894_v41  ;;  %v3362_v41 = vld [vmem:[#allocation2 + $0x210] sm:$0xff] }
 0x45f   :  { %11719 = vmatmul.msk.f32.gmra.mxu0 %vm96_vm1, %v4428_v53  ;;  %v11749_v53 = vld [vmem:[%s18078_s5 + $0x8] sm:$0xff] }
 0x460   :  { %v3658_v18 = vpop.f32.mrf.mxu2  ;;  %6097 = vmatpush.msra.mxu1 %v11749_v53  ;;  %v3898_v53 = vld [vmem:[#allocation2 + $0x229] sm:$0xff] }
 0x461   :  { %v4192_v9 = vpop.f32.mrf.mxu3  ;;  %v3814_v24 = vadd.f32 %v3658_v18, %v13623_v47 }
 0x463   :  { %v4348_v52 = vadd.f32 %v4192_v9, %v3814_v24 }
 0x464   :  { %v4729_v34 = vpop.f32.mrf.mxu0 }
 0x465   :  { %v14070_v51 = vadd.f32 %v4726_v61, %v4348_v52  ;;  %11588 = vmatmul.msk.f32.gmra.mxu2 %vm96_vm1, %v3361_v15  ;;  %v4430_v61 = vld [vmem:[#allocation2 + $0x212] sm:$0xff] }
 0x466   :  { %11654 = vmatmul.msk.f32.gmra.mxu3 %vm96_vm1, %v3895_v20  ;;  %v3363_v20 = vld [vmem:[#allocation2 + $0x218] sm:$0xff] }
 0x467   :  { %11720 = vmatmul.msk.f32.gmra.mxu0 %vm96_vm1, %v4429_v46  ;;  %v3897_v52 = vld [vmem:[#allocation2 + $0x219] sm:$0xff] }
 0x468   :  { %v3661_v49 = vpop.f32.mrf.mxu2 }
 0x469   :  { %v4195_v39 = vpop.f32.mrf.mxu3  ;;  %v3815_v36 = vadd.f32 %v3661_v49, %v13631_v27 }
 0x46b   :  { %v4349_v47 = vadd.f32 %v4195_v39, %v3815_v36  ;;  %v4431_v39 = vld [vmem:[#allocation2 + $0x21a] sm:$0xff] }
 0x46c   :  { %v4732_v18 = vpop.f32.mrf.mxu0 }
 0x46d   :  { %v14079_v9 = vadd.f32 %v4729_v34, %v4349_v47  ;;  %11589 = vmatmul.msk.f32.gmra.mxu2 %vm96_vm1, %v3362_v41  ;;  %v3364_v47 = vld [vmem:[#allocation2 + $0x228] sm:$0xff] }
 0x46e   :  { %11655 = vmatmul.msk.f32.gmra.mxu3 %vm96_vm1, %v3896_v40 }
 0x46f   :  { %11721 = vmatmul.msk.f32.gmra.mxu0 %vm96_vm1, %v4430_v61 }
 0x470   :  { %v3664_v24 = vpop.f32.mrf.mxu2 }
 0x471   :  { %v4198_v27 = vpop.f32.mrf.mxu3  ;;  %v3816_v15 = vadd.f32 %v3664_v24, %v13639_v32  ;;  %v4432_v24 = vld [vmem:[#allocation2 + $0x22a] sm:$0xff] }
 0x473   :  { %v4350_v46 = vadd.f32 %v4198_v27, %v3816_v15 }
 0x474   :  { %v4735_v49 = vpop.f32.mrf.mxu0 }
 0x475   :  { %v14085_v36 = vadd.f32 %v4732_v18, %v4350_v46  ;;  %11590 = vmatmul.msk.f32.gmra.mxu2 %vm96_vm1, %v3363_v20  ;;  %v3899_v46 = vld [vmem:[#allocation2 + $0x231] sm:$0xff] }
 0x476   :  { %11656 = vmatmul.msk.f32.gmra.mxu3 %vm96_vm1, %v3897_v52  ;;  %v3365_v52 = vld [vmem:[#allocation2 + $0x230] sm:$0xff] }
 0x477   :  { %11722 = vmatmul.msk.f32.gmra.mxu0 %vm96_vm1, %v4431_v39 }
 0x478   :  { %v3667_v34 = vpop.f32.mrf.mxu2 }
 0x479   :  { %v4201_v41 = vpop.f32.mrf.mxu3  ;;  %v3817_v40 = vadd.f32 %v3667_v34, %v13647_v38  ;;  %v4433_v34 = vld [vmem:[#allocation2 + $0x232] sm:$0xff] }
 0x47b   :  { %v4351_v32 = vadd.f32 %v4201_v41, %v3817_v40 }
 0x47c   :  { %v4738_v61 = vpop.f32.mrf.mxu0 }
 0x47d   :  { %v14091_v27 = vadd.f32 %v4735_v49, %v4351_v32  ;;  %11591 = vmatmul.msk.f32.gmra.mxu2 %vm96_vm1, %v3364_v47  ;;  %v3900_v32 = vld [vmem:[#allocation2 + $0x241] sm:$0xff] }
 0x47e   :  { %11657 = vmatmul.msk.f32.gmra.mxu3 %vm96_vm1, %v3898_v53  ;;  %v3366_v53 = vld [vmem:[#allocation2 + $0x240] sm:$0xff] }
 0x47f   :  { %11723 = vmatmul.msk.f32.gmra.mxu0 %vm96_vm1, %v4432_v24 }
 0x480   :  { %v3670_v18 = vpop.f32.mrf.mxu2 }
 0x481   :  { %v4204_v15 = vpop.f32.mrf.mxu3  ;;  %v3818_v20 = vadd.f32 %v3670_v18, %v13655_v44  ;;  %v4434_v18 = vld [vmem:[#allocation2 + $0x242] sm:$0xff] }
 0x483   :  { %v4352_v38 = vadd.f32 %v4204_v15, %v3818_v20 }
 0x484   :  { %v4741_v39 = vpop.f32.mrf.mxu0 }
 0x485   :  { %v14097_v41 = vadd.f32 %v4738_v61, %v4352_v38  ;;  %11592 = vmatmul.msk.f32.gmra.mxu2 %vm96_vm1, %v3365_v52  ;;  %v3901_v38 = vld [vmem:[#allocation2 + $0x249] sm:$0xff] }
 0x486   :  { %11658 = vmatmul.msk.f32.gmra.mxu3 %vm96_vm1, %v3899_v46  ;;  %v3367_v46 = vld [vmem:[#allocation2 + $0x248] sm:$0xff] }
 0x487   :  { %11724 = vmatmul.msk.f32.gmra.mxu0 %vm96_vm1, %v4433_v34 }
 0x488   :  { %v3673_v49 = vpop.f32.mrf.mxu2 }
 0x489   :  { %v4207_v40 = vpop.f32.mrf.mxu3  ;;  %v3819_v47 = vadd.f32 %v3673_v49, %v13663_v50  ;;  %v4435_v49 = vld [vmem:[#allocation2 + $0x24a] sm:$0xff] }
 0x48b   :  { %v4353_v44 = vadd.f32 %v4207_v40, %v3819_v47 }
 0x48c   :  { %v4744_v24 = vpop.f32.mrf.mxu0 }
 0x48d   :  { %v14103_v15 = vadd.f32 %v4741_v39, %v4353_v44  ;;  %11593 = vmatmul.msk.f32.gmra.mxu2 %vm96_vm1, %v3366_v53  ;;  %v3902_v44 = vld [vmem:[#allocation2 + $0x259] sm:$0xff] }
 0x48e   :  { %11659 = vmatmul.msk.f32.gmra.mxu3 %vm96_vm1, %v3900_v32  ;;  %v3368_v32 = vld [vmem:[#allocation2 + $0x258] sm:$0xff] }
 0x48f   :  { %11725 = vmatmul.msk.f32.gmra.mxu0 %vm96_vm1, %v4434_v18 }
 0x490   :  { %v3676_v61 = vpop.f32.mrf.mxu2 }
 0x491   :  { %v4210_v20 = vpop.f32.mrf.mxu3  ;;  %v3820_v52 = vadd.f32 %v3676_v61, %v13671_v56  ;;  %v4436_v61 = vld [vmem:[#allocation2 + $0x25a] sm:$0xff] }
 0x493   :  { %v4354_v50 = vadd.f32 %v4210_v20, %v3820_v52 }
 0x494   :  { %v4747_v34 = vpop.f32.mrf.mxu0 }
 0x495   :  { %v14109_v40 = vadd.f32 %v4744_v24, %v4354_v50  ;;  %11594 = vmatmul.msk.f32.gmra.mxu2 %vm96_vm1, %v3367_v46  ;;  %v3903_v50 = vld [vmem:[#allocation2 + $0x261] sm:$0xff] }
 0x496   :  { %11660 = vmatmul.msk.f32.gmra.mxu3 %vm96_vm1, %v3901_v38  ;;  %v3369_v38 = vld [vmem:[#allocation2 + $0x260] sm:$0xff] }
 0x497   :  { %11726 = vmatmul.msk.f32.gmra.mxu0 %vm96_vm1, %v4435_v49 }
 0x498   :  { %v3679_v39 = vpop.f32.mrf.mxu2 }
 0x499   :  { %v4213_v47 = vpop.f32.mrf.mxu3  ;;  %v3821_v53 = vadd.f32 %v3679_v39, %v13679_v62  ;;  %v4437_v39 = vld [vmem:[#allocation2 + $0x262] sm:$0xff] }
 0x49b   :  { %v4355_v56 = vadd.f32 %v4213_v47, %v3821_v53 }
 0x49c   :  { %v4750_v18 = vpop.f32.mrf.mxu0 }
 0x49d   :  { %v14115_v20 = vadd.f32 %v4747_v34, %v4355_v56  ;;  %11595 = vmatmul.msk.f32.gmra.mxu2 %vm96_vm1, %v3368_v32  ;;  %v3904_v56 = vld [vmem:[#allocation2 + $0x271] sm:$0xff] }
 0x49e   :  { %11661 = vmatmul.msk.f32.gmra.mxu3 %vm96_vm1, %v3902_v44  ;;  %v3370_v44 = vld [vmem:[#allocation2 + $0x270] sm:$0xff] }
 0x49f   :  { %11727 = vmatmul.msk.f32.gmra.mxu0 %vm96_vm1, %v4436_v61 }
 0x4a0   :  { %v3682_v24 = vpop.f32.mrf.mxu2 }
 0x4a1   :  { %v4216_v52 = vpop.f32.mrf.mxu3  ;;  %v3822_v46 = vadd.f32 %v3682_v24, %v13687_v5  ;;  %v4438_v24 = vld [vmem:[#allocation2 + $0x272] sm:$0xff] }
 0x4a3   :  { %v4356_v62 = vadd.f32 %v4216_v52, %v3822_v46 }
 0x4a4   :  { %v4753_v49 = vpop.f32.mrf.mxu0 }
 0x4a5   :  { %v14121_v47 = vadd.f32 %v4750_v18, %v4356_v62  ;;  %11596 = vmatmul.msk.f32.gmra.mxu2 %vm96_vm1, %v3369_v38  ;;  %v3905_v62 = vld [vmem:[#allocation2 + $0x279] sm:$0xff] }
 0x4a6   :  { %11662 = vmatmul.msk.f32.gmra.mxu3 %vm96_vm1, %v3903_v50  ;;  %v3371_v50 = vld [vmem:[#allocation2 + $0x278] sm:$0xff] }
 0x4a7   :  { %11728 = vmatmul.msk.f32.gmra.mxu0 %vm96_vm1, %v4437_v39 }
 0x4a8   :  { %v3685_v34 = vpop.f32.mrf.mxu2 }
 0x4a9   :  { %v4219_v53 = vpop.f32.mrf.mxu3  ;;  %v3823_v32 = vadd.f32 %v3685_v34, %v13695_v11  ;;  %v4439_v34 = vld [vmem:[#allocation2 + $0x27a] sm:$0xff] }
 0x4ab   :  { %v4357_v5 = vadd.f32 %v4219_v53, %v3823_v32 }
 0x4ac   :  { %v4756_v61 = vpop.f32.mrf.mxu0 }
 0x4ad   :  { %v14127_v52 = vadd.f32 %v4753_v49, %v4357_v5  ;;  %11597 = vmatmul.msk.f32.gmra.mxu2 %vm96_vm1, %v3370_v44  ;;  %v3906_v5 = vld [vmem:[#allocation2 + $0x289] sm:$0xff] }
 0x4ae   :  { %11663 = vmatmul.msk.f32.gmra.mxu3 %vm96_vm1, %v3904_v56  ;;  %v3372_v56 = vld [vmem:[#allocation2 + $0x288] sm:$0xff] }
 0x4af   :  { %11729 = vmatmul.msk.f32.gmra.mxu0 %vm96_vm1, %v4438_v24 }
 0x4b0   :  { %v3688_v18 = vpop.f32.mrf.mxu2 }
 0x4b1   :  { %v4222_v46 = vpop.f32.mrf.mxu3  ;;  %v3824_v38 = vadd.f32 %v3688_v18, %v13703_v17  ;;  %v4440_v18 = vld [vmem:[#allocation2 + $0x28a] sm:$0xff] }
 0x4b3   :  { %v4358_v11 = vadd.f32 %v4222_v46, %v3824_v38 }
 0x4b4   :  { %v4759_v39 = vpop.f32.mrf.mxu0 }
 0x4b5   :  { %v14133_v53 = vadd.f32 %v4756_v61, %v4358_v11  ;;  %11598 = vmatmul.msk.f32.gmra.mxu2 %vm96_vm1, %v3371_v50  ;;  %v3907_v11 = vld [vmem:[#allocation2 + $0x291] sm:$0xff] }
 0x4b6   :  { %11664 = vmatmul.msk.f32.gmra.mxu3 %vm96_vm1, %v3905_v62  ;;  %v3373_v62 = vld [vmem:[#allocation2 + $0x290] sm:$0xff] }
 0x4b7   :  { %11730 = vmatmul.msk.f32.gmra.mxu0 %vm96_vm1, %v4439_v34 }
 0x4b8   :  { %v3691_v49 = vpop.f32.mrf.mxu2 }
 0x4b9   :  { %v4225_v32 = vpop.f32.mrf.mxu3  ;;  %v3825_v44 = vadd.f32 %v3691_v49, %v13711_v37  ;;  %v4441_v49 = vld [vmem:[#allocation2 + $0x292] sm:$0xff] }
 0x4bb   :  { %v4359_v17 = vadd.f32 %v4225_v32, %v3825_v44 }
 0x4bc   :  { %v4762_v24 = vpop.f32.mrf.mxu0 }
 0x4bd   :  { %v14139_v46 = vadd.f32 %v4759_v39, %v4359_v17  ;;  %11599 = vmatmul.msk.f32.gmra.mxu2 %vm96_vm1, %v3372_v56  ;;  %v3908_v17 = vld [vmem:[#allocation2 + $0x2a1] sm:$0xff] }
 0x4be   :  { %11665 = vmatmul.msk.f32.gmra.mxu3 %vm96_vm1, %v3906_v5  ;;  %v3374_v5 = vld [vmem:[#allocation2 + $0x2a0] sm:$0xff] }
 0x4bf   :  { %11731 = vmatmul.msk.f32.gmra.mxu0 %vm96_vm1, %v4440_v18 }
 0x4c0   :  { %v3694_v61 = vpop.f32.mrf.mxu2 }
 0x4c1   :  { %v4228_v38 = vpop.f32.mrf.mxu3  ;;  %v3826_v50 = vadd.f32 %v3694_v61, %v13719_v43  ;;  %v4442_v61 = vld [vmem:[#allocation2 + $0x2a2] sm:$0xff] }
 0x4c3   :  { %v4360_v37 = vadd.f32 %v4228_v38, %v3826_v50 }
 0x4c4   :  { %v4765_v34 = vpop.f32.mrf.mxu0 }
 0x4c5   :  { %v14145_v32 = vadd.f32 %v4762_v24, %v4360_v37  ;;  %11600 = vmatmul.msk.f32.gmra.mxu2 %vm96_vm1, %v3373_v62  ;;  %v3909_v37 = vld [vmem:[#allocation2 + $0x2a9] sm:$0xff] }
 0x4c6   :  { %11666 = vmatmul.msk.f32.gmra.mxu3 %vm96_vm1, %v3907_v11  ;;  %v3375_v11 = vld [vmem:[#allocation2 + $0x2a8] sm:$0xff] }
 0x4c7   :  { %11732 = vmatmul.msk.f32.gmra.mxu0 %vm96_vm1, %v4441_v49 }
 0x4c8   :  { %v3697_v39 = vpop.f32.mrf.mxu2 }
 0x4c9   :  { %v4231_v44 = vpop.f32.mrf.mxu3  ;;  %v3827_v56 = vadd.f32 %v3697_v39, %v13727_v6  ;;  %v4443_v39 = vld [vmem:[#allocation2 + $0x2aa] sm:$0xff] }
 0x4cb   :  { %v4361_v43 = vadd.f32 %v4231_v44, %v3827_v56 }
 0x4cc   :  { %v4768_v18 = vpop.f32.mrf.mxu0 }
 0x4cd   :  { %v14151_v38 = vadd.f32 %v4765_v34, %v4361_v43  ;;  %11601 = vmatmul.msk.f32.gmra.mxu2 %vm96_vm1, %v3374_v5  ;;  %v3910_v43 = vld [vmem:[#allocation2 + $0x2b9] sm:$0xff] }
 0x4ce   :  { %11667 = vmatmul.msk.f32.gmra.mxu3 %vm96_vm1, %v3908_v17  ;;  %v3376_v17 = vld [vmem:[#allocation2 + $0x2b8] sm:$0xff] }
 0x4cf   :  { %11733 = vmatmul.msk.f32.gmra.mxu0 %vm96_vm1, %v4442_v61 }
 0x4d0   :  { %v3700_v24 = vpop.f32.mrf.mxu2 }
 0x4d1   :  { %v4234_v50 = vpop.f32.mrf.mxu3  ;;  %v3828_v62 = vadd.f32 %v3700_v24, %v13733_v48  ;;  %v4444_v24 = vld [vmem:[#allocation2 + $0x2ba] sm:$0xff] }
 0x4d3   :  { %v4362_v6 = vadd.f32 %v4234_v50, %v3828_v62  ;;  %v14163_v50 = vpop.f32.mrf.mxu1 }
 0x4d4   :  { %v4771_v49 = vpop.f32.mrf.mxu0 }
 0x4d5   :  { %v14157_v44 = vadd.f32 %v4768_v18, %v4362_v6  ;;  %11602 = vmatmul.msk.f32.gmra.mxu2 %vm96_vm1, %v3375_v11  ;;  %v3911_v6 = vld [vmem:[#allocation2 + $0x2c1] sm:$0xff] }
 0x4d6   :  { %11668 = vmatmul.msk.f32.gmra.mxu3 %vm96_vm1, %v3909_v37 }
 0x4d7   :  { %11734 = vmatmul.msk.f32.gmra.mxu0 %vm96_vm1, %v4443_v39 }
 0x4d8   :  { %v3703_v34 = vpop.f32.mrf.mxu2 }
 0x4d9   :  { %v4237_v56 = vpop.f32.mrf.mxu3  ;;  %v3829_v5 = vadd.f32 %v3703_v34, %v13740_v63  ;;  %v3377_v63 = vld [vmem:[#allocation2 + $0x2c0] sm:$0xff] }
 0x4db   :  { %v4363_v48 = vadd.f32 %v4237_v56, %v3829_v5  ;;  %v4445_v56 = vld [vmem:[#allocation2 + $0x2c2] sm:$0xff] }
 0x4dc   :  { %v4774_v61 = vpop.f32.mrf.mxu0 }
 0x4dd   :  { %v14165_v62 = vadd.f32 %v4771_v49, %v4363_v48  ;;  %11603 = vmatmul.msk.f32.gmra.mxu2 %vm96_vm1, %v3376_v17  ;;  %v14175_v49 = vpop.f32.mrf.mxu1 }
 0x4de   :  { %11669 = vmatmul.msk.f32.gmra.mxu3 %vm96_vm1, %v3910_v43 }
 0x4df   :  { %11735 = vmatmul.msk.f32.gmra.mxu0 %vm96_vm1, %v4444_v24  ;;  %v3912_v24 = vld [vmem:[#allocation2 + $0x2d1] sm:$0xff] }
 0x4e0   :  { %v3706_v18 = vpop.f32.mrf.mxu2 }
 0x4e1   :  { %v4240_v11 = vpop.f32.mrf.mxu3  ;;  %v3830_v37 = vadd.f32 %v3706_v18, %v13747_v14  ;;  %v3378_v14 = vld [vmem:[#allocation2 + $0x2d0] sm:$0xff] }
 0x4e3   :  { %v4364_v39 = vadd.f32 %v4240_v11, %v3830_v37  ;;  %v4446_v37 = vld [vmem:[#allocation2 + $0x2d2] sm:$0xff] }
 0x4e4   :  { %v4777_v34 = vpop.f32.mrf.mxu0 }
 0x4e5   :  { %v14171_v5 = vadd.f32 %v4774_v61, %v4364_v39  ;;  %11604 = vmatmul.msk.f32.gmra.mxu2 %vm96_vm1, %v3377_v63 }
 0x4e6   :  { %11670 = vmatmul.msk.f32.gmra.mxu3 %vm96_vm1, %v3911_v6  ;;  %v14184_v6 = vpop.f32.mrf.mxu1 }
 0x4e7   :  { %11736 = vmatmul.msk.f32.gmra.mxu0 %vm96_vm1, %v4445_v56  ;;  %v3913_v56 = vld [vmem:[#allocation2 + $0x2d9] sm:$0xff] }
 0x4e8   :  { %v3709_v17 = vpop.f32.mrf.mxu2 }
 0x4e9   :  { %v4243_v43 = vpop.f32.mrf.mxu3  ;;  %v3831_v48 = vadd.f32 %v3709_v17, %v13754_v30  ;;  %v3379_v30 = vld [vmem:[#allocation2 + $0x2d8] sm:$0xff] }
 0x4eb   :  { %v4365_v18 = vadd.f32 %v4243_v43, %v3831_v48  ;;  %v4447_v48 = vld [vmem:[#allocation2 + $0x2da] sm:$0xff] }
 0x4ec   :  { %v4780_v11 = vpop.f32.mrf.mxu0 }
 0x4ed   :  { %v14179_v7 = vadd.f32 %v4777_v34, %v4365_v18  ;;  %11605 = vmatmul.msk.f32.gmra.mxu2 %vm96_vm1, %v3378_v14  ;;  %v3380_v18 = vld [vmem:[#allocation2 + $0x2e8] sm:$0xff] }
 0x4ee   :  { %11671 = vmatmul.msk.f32.gmra.mxu3 %vm96_vm1, %v3912_v24 }
 0x4ef   :  { %11737 = vmatmul.msk.f32.gmra.mxu0 %vm96_vm1, %v4446_v37  ;;  %v3914_v37 = vld [vmem:[#allocation2 + $0x2e9] sm:$0xff] }
 0x4f0   :  { %v3712_v61 = vpop.f32.mrf.mxu2 }
 0x4f1   :  { %v4246_v63 = vpop.f32.mrf.mxu3  ;;  %v3832_v39 = vadd.f32 %v3712_v61, %v13761_v31  ;;  %v14193_v31 = vpop.f32.mrf.mxu1 }
 0x4f3   :  { %v4366_v17 = vadd.f32 %v4246_v63, %v3832_v39  ;;  %v4448_v39 = vld [vmem:[#allocation2 + $0x2ea] sm:$0xff] }
 0x4f4   :  { %v4783_v43 = vpop.f32.mrf.mxu0 }
 0x4f5   :  { %v14187_v42 = vadd.f32 %v4780_v11, %v4366_v17  ;;  %11606 = vmatmul.msk.f32.gmra.mxu2 %vm96_vm1, %v3379_v30  ;;  %v3915_v17 = vld [vmem:[#allocation2 + $0x2f1] sm:$0xff] }
 0x4f6   :  { %11672 = vmatmul.msk.f32.gmra.mxu3 %vm96_vm1, %v3913_v56 }
 0x4f7   :  { %11738 = vmatmul.msk.f32.gmra.mxu0 %vm96_vm1, %v4447_v48 }
 0x4f8   :  { %v3715_v34 = vpop.f32.mrf.mxu2 }
 0x4f9   :  { %v4249_v14 = vpop.f32.mrf.mxu3  ;;  %v3833_v24 = vadd.f32 %v3715_v34, %v13768_v21  ;;  %v3381_v21 = vld [vmem:[#allocation2 + $0x2f0] sm:$0xff] }
 0x4fb   :  { %v4367_v61 = vadd.f32 %v4249_v14, %v3833_v24  ;;  %v14201_v14 = vpop.f32.mrf.mxu1 }
 0x4fc   :  { %v4786_v63 = vpop.f32.mrf.mxu0 }
 0x4fd   :  { %v14195_v28 = vadd.f32 %v4783_v43, %v4367_v61  ;;  %11607 = vmatmul.msk.f32.gmra.mxu2 %vm96_vm1, %v3380_v18  ;;  %v3916_v61 = vld [vmem:[#allocation2 + $0x301] sm:$0xff] }
 0x4fe   :  { %11673 = vmatmul.msk.f32.gmra.mxu3 %vm96_vm1, %v3914_v37 }
 0x4ff   :  { %11739 = vmatmul.msk.f32.gmra.mxu0 %vm96_vm1, %v4448_v39 }
 0x500   :  { %v3718_v11 = vpop.f32.mrf.mxu2 }
 0x501   :  { %v4252_v30 = vpop.f32.mrf.mxu3  ;;  %v3834_v56 = vadd.f32 %v3718_v11, %v13775_v1  ;;  %v3382_v1 = vld [vmem:[#allocation2 + $0x300] sm:$0xff] }
 0x503   :  { %v4368_v48 = vadd.f32 %v4252_v30, %v3834_v56  ;;  %v4450_v30 = vld [vmem:[#allocation2 + $0x302] sm:$0xff] }
 0x504   :  { %v4789_v34 = vpop.f32.mrf.mxu0 }
 0x505   :  { %v14203_v24 = vadd.f32 %v4786_v63, %v4368_v48  ;;  %11608 = vmatmul.msk.f32.gmra.mxu2 %vm96_vm1, %v3381_v21  ;;  %v14215_v63 = vpop.f32.mrf.mxu1 }
 0x506   :  { %11674 = vmatmul.msk.f32.gmra.mxu3 %vm96_vm1, %v3915_v17  ;;  %18447 = vst [vmem:[#allocation43_spill] sm:$0xff] %v14215_v63  ;;  %v3917_v17 = vld [vmem:[#allocation2 + $0x309] sm:$0xff] }
 0x507   :  { %18444 = vst [vmem:[#allocation44_spill] sm:$0xff] %v14203_v24  ;;  %11740 = vmatmul.msk.f32.gmra.mxu0 %vm96_vm1, %v4449_v13  ;;  %v4454_v24 = vld [vmem:[#allocation2 + $0x332] sm:$0xff] }
 0x508   :  { %v3721_v43 = vpop.f32.mrf.mxu2 }
 0x509   :  { %v4255_v18 = vpop.f32.mrf.mxu3  ;;  %v3835_v37 = vadd.f32 %v3721_v43, %v13782_v33  ;;  %v3383_v33 = vld [vmem:[#allocation2 + $0x308] sm:$0xff] }
 0x50a   :  { %v4451_v43 = vld [vmem:[#allocation2 + $0x30a] sm:$0xff] }
 0x50b   :  { %v4369_v39 = vadd.f32 %v4255_v18, %v3835_v37 }
 0x50c   :  { %v14209_v11 = vpop.f32.mrf.mxu0 }
 0x50d   :  { %18445 = vst [vmem:[#allocation31_spill] sm:$0xff] %v14209_v11  ;;  %v14211_v56 = vadd.f32 %v4789_v34, %v4369_v39  ;;  %11609 = vmatmul.msk.f32.gmra.mxu2 %vm96_vm1, %v3382_v1  ;;  %v14231_v37 = vpop.f32.mrf.mxu1  ;;  %v3384_v1 = vld [vmem:[#allocation2 + $0x318] sm:$0xff]  ;;  %v4453_v11 = vld [vmem:[#allocation2 + $0x322] sm:$0xff] }
 0x50e   :  { %11675 = vmatmul.msk.f32.gmra.mxu3 %vm96_vm1, %v3916_v61  ;;  %18449 = vst [vmem:[#allocation36_spill] sm:$0xff] %v14231_v37  ;;  %v3918_v61 = vld [vmem:[#allocation2 + $0x319] sm:$0xff] }
 0x50f   :  { %18446 = vst [vmem:[#allocation32_spill] sm:$0xff] %v14211_v56  ;;  %11741 = vmatmul.msk.f32.gmra.mxu0 %vm96_vm1, %v4450_v30  ;;  %v4452_v30 = vld [vmem:[#allocation2 + $0x31a] sm:$0xff] }
 0x510   :  { %v14218_v13 = vpop.f32.mrf.mxu2 }
 0x511   :  { %v14220_v21 = vpop.f32.mrf.mxu3 }
 0x514   :  { %v14222_v48 = vpop.f32.mrf.mxu0 }
 0x515   :  { %18448 = vst [vmem:[#allocation49_spill] sm:$0xff] %v14222_v48  ;;  %11610 = vmatmul.msk.f32.gmra.mxu2 %vm96_vm1, %v3383_v33  ;;  %v3919_v48 = vld [vmem:[#allocation2 + $0x321] sm:$0xff]  ;;  %v14242_v56 = vpop.f32.mrf.mxu1 }
 0x516   :  { %11676 = vmatmul.msk.f32.gmra.mxu3 %vm96_vm1, %v3917_v17  ;;  %18452 = vst [vmem:[#allocation41_spill] sm:$0xff] %v14242_v56 }
 0x517   :  { %11742 = vmatmul.msk.f32.gmra.mxu0 %vm96_vm1, %v4451_v43  ;;  %v3385_v43 = vld [vmem:[#allocation2 + $0x320] sm:$0xff] }
 0x518   :  { %v14227_v34 = vpop.f32.mrf.mxu2 }
 0x519   :  { %v14229_v18 = vpop.f32.mrf.mxu3 }
 0x51c   :  { %v14233_v39 = vpop.f32.mrf.mxu0 }
 0x51d   :  { %18450 = vst [vmem:[#allocation37_spill] sm:$0xff] %v14233_v39  ;;  %11611 = vmatmul.msk.f32.gmra.mxu2 %vm96_vm1, %v3384_v1  ;;  %v3920_v39 = vld [vmem:[#allocation2 + $0x331] sm:$0xff]  ;;  %v14255_v63 = vpop.f32.mrf.mxu1 }
 0x51e   :  { %11677 = vmatmul.msk.f32.gmra.mxu3 %vm96_vm1, %v3918_v61  ;;  %18456 = vst [vmem:[#allocation47_spill] sm:$0xff] %v14255_v63  ;;  %v3922_v63 = vld [vmem:[#allocation2 + $0x349] sm:$0xff] }
 0x51f   :  { %11743 = vmatmul.msk.f32.gmra.mxu0 %vm96_vm1, %v4452_v30  ;;  %v3386_v30 = vld [vmem:[#allocation2 + $0x330] sm:$0xff] }
 0x520   :  { %v14238_v33 = vpop.f32.mrf.mxu2 }
 0x521   :  { %v14240_v17 = vpop.f32.mrf.mxu3 }
 0x522   :  { %18451 = vst [vmem:[#allocation48_spill] sm:$0xff] %v14240_v17 }
 0x524   :  { %v14244_v37 = vpop.f32.mrf.mxu0 }
 0x525   :  { %18453 = vst [vmem:[#allocation42_spill] sm:$0xff] %v14244_v37  ;;  %11612 = vmatmul.msk.f32.gmra.mxu2 %vm96_vm1, %v3385_v43  ;;  %v3387_v43 = vld [vmem:[#allocation2 + $0x338] sm:$0xff] }
 0x526   :  { %11678 = vmatmul.msk.f32.gmra.mxu3 %vm96_vm1, %v3919_v48  ;;  %v3921_v37 = vld [vmem:[#allocation2 + $0x339] sm:$0xff] }
 0x527   :  { %11744 = vmatmul.msk.f32.gmra.mxu0 %vm96_vm1, %v4453_v11 }
 0x528   :  { %v14249_v1 = vpop.f32.mrf.mxu2 }
 0x529   :  { %v14251_v61 = vpop.f32.mrf.mxu3 }
 0x52a   :  { %18454 = vst [vmem:[#allocation53_spill] sm:$0xff] %v14251_v61  ;;  %v4455_v61 = vld [vmem:[#allocation2 + $0x33a] sm:$0xff] }
 0x52c   :  { %v14253_v17 = vpop.f32.mrf.mxu0 }
 0x52d   :  { %18455 = vst [vmem:[#allocation46_spill] sm:$0xff] %v14253_v17  ;;  %11613 = vmatmul.msk.f32.gmra.mxu2 %vm96_vm1, %v3386_v30  ;;  %v14268_v17 = vpop.f32.mrf.mxu1  ;;  %v3388_v30 = vld [vmem:[#allocation2 + $0x348] sm:$0xff] }
 0x52e   :  { %11679 = vmatmul.msk.f32.gmra.mxu3 %vm96_vm1, %v3920_v39  ;;  %18460 = vst [vmem:[#allocation56_spill] sm:$0xff] %v14268_v17  ;;  %v3923_v17 = vld [vmem:[#allocation2 + $0x351] sm:$0xff] }
 0x52f   :  { %11745 = vmatmul.msk.f32.gmra.mxu0 %vm96_vm1, %v4454_v24 }
 0x530   :  { %v14260_v48 = vpop.f32.mrf.mxu2 }
 0x531   :  { %18457 = vst [vmem:[#allocation51_spill] sm:$0xff] %v14260_v48  ;;  %v14262_v11 = vpop.f32.mrf.mxu3  ;;  %v4456_v48 = vld [vmem:[#allocation2 + $0x34a] sm:$0xff] }
 0x532   :  { %18458 = vst [vmem:[#allocation52_spill] sm:$0xff] %v14262_v11 }
 0x534   :  { %v14264_v56 = vpop.f32.mrf.mxu0 }
 0x535   :  { %18459 = vst [vmem:[#allocation55_spill] sm:$0xff] %v14264_v56  ;;  %11614 = vmatmul.msk.f32.gmra.mxu2 %vm96_vm1, %v3387_v43  ;;  %v3389_v56 = vld [vmem:[#allocation2 + $0x350] sm:$0xff] }
 0x536   :  { %11680 = vmatmul.msk.f32.gmra.mxu3 %vm96_vm1, %v3921_v37 }
 0x537   :  { %11746 = vmatmul.msk.f32.gmra.mxu0 %vm96_vm1, %v4455_v61  ;;  %v14284_v61 = vpop.f32.mrf.mxu1 }
 0x538   :  { %v14271_v39 = vpop.f32.mrf.mxu2  ;;  %18466 = vst [vmem:[#allocation5_spill] sm:$0xff] %v14284_v61 }
 0x539   :  { %18461 = vst [vmem:[#allocation58_spill] sm:$0xff] %v14271_v39  ;;  %v14273_v24 = vpop.f32.mrf.mxu3  ;;  %v4457_v39 = vld [vmem:[#allocation2 + $0x352] sm:$0xff] }
 0x53a   :  { %18462 = vst [vmem:[#allocation59_spill] sm:$0xff] %v14273_v24 }
 0x53c   :  { %v14275_v11 = vpop.f32.mrf.mxu0 }
 0x53d   :  { %18463 = vst [vmem:[#allocation74_spill] sm:$0xff] %v14275_v11  ;;  %11615 = vmatmul.msk.f32.gmra.mxu2 %vm96_vm1, %v3388_v30 }
 0x53e   :  { %11681 = vmatmul.msk.f32.gmra.mxu3 %vm96_vm1, %v3922_v63 }
 0x53f   :  { %11747 = vmatmul.msk.f32.gmra.mxu0 %vm96_vm1, %v4456_v48  ;;  %v14295_v30 = vpop.f32.mrf.mxu1 }
 0x540   :  { %v14280_v37 = vpop.f32.mrf.mxu2  ;;  %18469 = vst [vmem:[#allocation7_spill] sm:$0xff] %v14295_v30 }
 0x541   :  { %18464 = vst [vmem:[#allocation76_spill] sm:$0xff] %v14280_v37  ;;  %v14282_v43 = vpop.f32.mrf.mxu3 }
 0x542   :  { %18465 = vst [vmem:[#allocation77_spill] sm:$0xff] %v14282_v43 }
 0x544   :  { %v14286_v24 = vpop.f32.mrf.mxu0 }
 0x545   :  { %18467 = vst [vmem:[#allocation4_spill] sm:$0xff] %v14286_v24  ;;  %11616 = vmatmul.msk.f32.gmra.mxu2 %vm96_vm1, %v3389_v56  ;;  %v14310_v56 = vld [vmem:[%s18077_s2] ss:$0 sm:$0xff] }
 0x546   :  { %11682 = vmatmul.msk.f32.gmra.mxu3 %vm96_vm1, %v3923_v17  ;;  %v14314_v17 = vadd.f32 %v14310_v56, %v13968_v3  ;;  %v14332_v30 = vadd.f32 %v14310_v56, %v13980_v16  ;;  %v14350_v16 = vadd.f32 %v14310_v56, %v13992_v54  ;;  %v14366_v54 = vadd.f32 %v14310_v56, %v14004_v23 }
 0x547   :  { %11748 = vmatmul.msk.f32.gmra.mxu0 %vm96_vm1, %v4457_v39  ;;  %v14305_v37 = vpop.f32.mrf.mxu1 }
 0x548   :  { %v14291_v63 = vpop.f32.mrf.mxu2  ;;  %18474 = vst [vmem:[#allocation20_spill] sm:$0xff] %v14305_v37  ;;  %v4998_v37 = vsel %vm4996_vm4, %v14314_v17, 0.0 }
 0x549   :  { %v14293_v48 = vpop.f32.mrf.mxu3  ;;  %18475 = vst [vmem:[#allocation25_spill] sm:$0xff] %v14314_v17  ;;  %v5002_v17 = vsel %vm4996_vm4, %v14332_v30, 0.0 }
 0x54a   :  { %18468 = vst [vmem:[#allocation6_spill] sm:$0xff] %v14293_v48 }
 0x54b   :  { %18480 = vst [vmem:[#allocation50_spill] sm:$0xff] %v14332_v30 }
 0x54c   :  { %v14297_v11 = vpop.f32.mrf.mxu0  ;;  %18483 = vst [vmem:[#allocation60_spill] sm:$0xff] %v14350_v16 }
 0x54d   :  { %18470 = vst [vmem:[#allocation8_spill] sm:$0xff] %v14297_v11 }
 0x54e   :  { %18485 = vst [vmem:[#allocation62_spill] sm:$0xff] %v14366_v54 }
 0x54f   :  { %v14344_v48 = vpop.f32.mrf.mxu1 }
 0x550   :  { %v14299_v61 = vpop.f32.mrf.mxu2 }
 0x551   :  { %18471 = vst [vmem:[#allocation9_spill] sm:$0xff] %v14299_v61  ;;  %v14301_v43 = vpop.f32.mrf.mxu3 }
 0x552   :  { %18472 = vst [vmem:[#allocation12_spill] sm:$0xff] %v14301_v43  ;;  %v14322_v43 = vadd.f32 %v14310_v56, %v13962_v10 }
 0x554   :  { %v14303_v24 = vpop.f32.mrf.mxu0  ;;  %18478 = vst [vmem:[#allocation40_spill] sm:$0xff] %v14322_v43 }
 0x555   :  { %18473 = vst [vmem:[#allocation15_spill] sm:$0xff] %v14303_v24  ;;  %v14326_v24 = vadd.f32 %v14310_v56, %v13974_v55 }
 0x557   :  { %18479 = vst [vmem:[#allocation45_spill] sm:$0xff] %v14326_v24  ;;  %v5000_v10 = vsel %vm4996_vm4, %v14326_v24, 0.0 }
 0x558   :  { %v14316_v39 = vpop.f32.mrf.mxu2 }
 0x559   :  { %18476 = vst [vmem:[#allocation30_spill] sm:$0xff] %v14316_v39  ;;  %v14318_v11 = vpop.f32.mrf.mxu3  ;;  %v14342_v39 = vadd.f32 %v14310_v56, %v13986_v4  ;;  %v14360_v4 = vadd.f32 %v14310_v56, %v13998_v19 }
 0x55a   :  { %18477 = vst [vmem:[#allocation35_spill] sm:$0xff] %v14318_v11  ;;  %v4997_v11 = vsel %vm4996_vm4, %v14322_v43, 0.0 }
 0x55b   :  { %18482 = vst [vmem:[#allocation57_spill] sm:$0xff] %v14342_v39  ;;  %v4999_v55 = vadd.f32 %v4998_v37, %v4997_v11  ;;  %v5004_v24 = vsel %vm4996_vm4, %v14342_v39, 0.0  ;;  %v5006_v37 = vsel %vm4996_vm4, %v14350_v16, 0.0  ;;  %v5008_v30 = vsel %vm4996_vm4, %v14360_v4, 0.0 }
 0x55c   :  { %v14334_v3 = vpop.f32.mrf.mxu0  ;;  %18484 = vst [vmem:[#allocation61_spill] sm:$0xff] %v14360_v4  ;;  %v14374_v39 = vadd.f32 %v14310_v56, %v14010_v45  ;;  %v14392_v45 = vadd.f32 %v14310_v56, %v14022_v57 }
 0x55d   :  { %18481 = vst [vmem:[#allocation54_spill] sm:$0xff] %v14334_v3  ;;  %v5001_v3 = vadd.f32 %v5000_v10, %v4999_v55 }
 0x55e   :  { %18486 = vst [vmem:[#allocation63_spill] sm:$0xff] %v14374_v39  ;;  %v5012_v4 = vsel %vm4996_vm4, %v14374_v39, 0.0  ;;  %v14406_v39 = vadd.f32 %v14310_v56, %v14034_v29  ;;  %v14422_v29 = vadd.f32 %v14310_v56, %v14046_v2  ;;  %v14438_v2 = vadd.f32 %v14310_v56, %v14058_v59 }
 0x55f   :  { %v5003_v11 = vadd.f32 %v5002_v17, %v5001_v3  ;;  %v5010_v17 = vsel %vm4996_vm4, %v14366_v54, 0.0  ;;  %v14380_v3 = vadd.f32 %v14310_v56, %v14016_v0  ;;  %18488 = vst [vmem:[#allocation65_spill] sm:$0xff] %v14392_v45  ;;  %v14398_v0 = vadd.f32 %v14310_v56, %v14028_v12 }
 0x560   :  { %v14352_v61 = vpop.f32.mrf.mxu2  ;;  %v5016_v54 = vsel %vm4996_vm4, %v14392_v45, 0.0  ;;  %18490 = vst [vmem:[#allocation67_spill] sm:$0xff] %v14406_v39  ;;  %v14454_v59 = vadd.f32 %v14310_v56, %v14070_v51  ;;  %v14470_v51 = vadd.f32 %v14310_v56, %v14085_v36  ;;  %v14486_v36 = vadd.f32 %v14310_v56, %v14097_v41 }
 0x561   :  { %v14354_v43 = vpop.f32.mrf.mxu3  ;;  %v5005_v10 = vadd.f32 %v5004_v24, %v5003_v11  ;;  %18487 = vst [vmem:[#allocation64_spill] sm:$0xff] %v14380_v3  ;;  %v14386_v11 = vpop.f32.mrf.mxu1 }
 0x562   :  { %18489 = vst [vmem:[#allocation66_spill] sm:$0xff] %v14398_v0 }
 0x563   :  { %v5007_v19 = vadd.f32 %v5006_v37, %v5005_v10  ;;  %v5014_v10 = vsel %vm4996_vm4, %v14380_v3, 0.0  ;;  %18492 = vst [vmem:[#allocation69_spill] sm:$0xff] %v14422_v29 }
 0x564   :  { %v14368_v55 = vpop.f32.mrf.mxu0  ;;  %18494 = vst [vmem:[#allocation71_spill] sm:$0xff] %v14438_v2 }
 0x565   :  { %v5009_v23 = vadd.f32 %v5008_v30, %v5007_v19  ;;  %18496 = vst [vmem:[#allocation73_spill] sm:$0xff] %v14454_v59 }
 0x566   :  { %18498 = vst [vmem:[#allocation78_spill] sm:$0xff] %v14470_v51 }
 0x567   :  { %v5011_v37 = vadd.f32 %v5010_v17, %v5009_v23  ;;  %v5018_v17 = vsel %vm4996_vm4, %v14398_v0, 0.0  ;;  %v14412_v23 = vadd.f32 %v14310_v56, %v14040_v58  ;;  %v14430_v58 = vadd.f32 %v14310_v56, %v14052_v35  ;;  %18500 = vst [vmem:[#allocation80_spill] sm:$0xff] %v14486_v36 }
 0x568   :  { %v14382_v16 = vpop.f32.mrf.mxu2 }
 0x569   :  { %v14384_v24 = vpop.f32.mrf.mxu3  ;;  %v5013_v30 = vadd.f32 %v5012_v4, %v5011_v37  ;;  %18491 = vst [vmem:[#allocation68_spill] sm:$0xff] %v14412_v23  ;;  %v5020_v37 = vsel %vm4996_vm4, %v14406_v39, 0.0  ;;  %v5022_v0 = vsel %vm4996_vm4, %v14412_v23, 0.0  ;;  %v5024_v39 = vsel %vm4996_vm4, %v14422_v29, 0.0 }
 0x56a   :  { %18493 = vst [vmem:[#allocation70_spill] sm:$0xff] %v14430_v58  ;;  %v14444_v23 = vadd.f32 %v14310_v56, %v14064_v60  ;;  %v14460_v60 = vadd.f32 %v14310_v56, %v14079_v9  ;;  %v14476_v9 = vadd.f32 %v14310_v56, %v14091_v27  ;;  %v14492_v27 = vadd.f32 %v14310_v56, %v14103_v15 }
 0x56b   :  { %v5015_v57 = vadd.f32 %v5014_v10, %v5013_v30  ;;  %v14424_v30 = vpop.f32.mrf.mxu1  ;;  %v14508_v15 = vadd.f32 %v14310_v56, %v14115_v20  ;;  %v14524_v20 = vadd.f32 %v14310_v56, %v14127_v52 }
 0x56c   :  { %v14400_v19 = vpop.f32.mrf.mxu0  ;;  %18495 = vst [vmem:[#allocation72_spill] sm:$0xff] %v14444_v23 }
 0x56d   :  { %v5017_v12 = vadd.f32 %v5016_v54, %v5015_v57  ;;  %18497 = vst [vmem:[#allocation75_spill] sm:$0xff] %v14460_v60 }
 0x56e   :  { %18499 = vst [vmem:[#allocation79_spill] sm:$0xff] %v14476_v9 }
 0x56f   :  { %v5019_v10 = vadd.f32 %v5018_v17, %v5017_v12  ;;  %v5026_v12 = vsel %vm4996_vm4, %v14430_v58, 0.0  ;;  %18501 = vst [vmem:[#allocation81_spill] sm:$0xff] %v14492_v27 }
 0x570   :  { %v14414_v3 = vpop.f32.mrf.mxu2  ;;  %18503 = vst [vmem:[#allocation83_spill] sm:$0xff] %v14508_v15 }
 0x571   :  { %v14416_v4 = vpop.f32.mrf.mxu3  ;;  %v5021_v54 = vadd.f32 %v5020_v37, %v5019_v10  ;;  %v5028_v10 = vsel %vm4996_vm4, %v14438_v2, 0.0  ;;  %v5032_v2 = vsel %vm4996_vm4, %v14454_v59, 0.0  ;;  %v5036_v59 = vsel %vm4996_vm4, %v14470_v51, 0.0  ;;  %18505 = vst [vmem:[#allocation85_spill] sm:$0xff] %v14524_v20 }
 0x572   :  { %v14500_v51 = vadd.f32 %v14310_v56, %v14109_v40  ;;  %v14518_v40 = vadd.f32 %v14310_v56, %v14121_v47 }
 0x573   :  { %v5023_v17 = vadd.f32 %v5022_v0, %v5021_v54  ;;  %v5030_v54 = vsel %vm4996_vm4, %v14444_v23, 0.0  ;;  %v14464_v58 = vpop.f32.mrf.mxu1 }
 0x574   :  { %v14432_v57 = vpop.f32.mrf.mxu0  ;;  %18502 = vst [vmem:[#allocation82_spill] sm:$0xff] %v14500_v51 }
 0x575   :  { %v5025_v35 = vadd.f32 %v5024_v39, %v5023_v17  ;;  %18504 = vst [vmem:[#allocation84_spill] sm:$0xff] %v14518_v40 }
 0x577   :  { %v5027_v0 = vadd.f32 %v5026_v12, %v5025_v35  ;;  %v5034_v35 = vsel %vm4996_vm4, %v14460_v60, 0.0  ;;  %v5040_v60 = vsel %vm4996_vm4, %v14486_v36, 0.0  ;;  %v5044_v36 = vsel %vm4996_vm4, %v14500_v51, 0.0 }
 0x578   :  { %v14446_v45 = vpop.f32.mrf.mxu2  ;;  %v14532_v51 = vadd.f32 %v14310_v56, %v14133_v53  ;;  %v14550_v53 = vadd.f32 %v14310_v56, %v14145_v32 }
 0x579   :  { %v14448_v37 = vpop.f32.mrf.mxu3  ;;  %v5029_v39 = vadd.f32 %v5028_v10, %v5027_v0 }
 0x57a   :  { %18506 = vst [vmem:[#allocation86_spill] sm:$0xff] %v14532_v51 }
 0x57b   :  { %v5031_v12 = vadd.f32 %v5030_v54, %v5029_v39  ;;  %v5038_v39 = vsel %vm4996_vm4, %v14476_v9, 0.0  ;;  %v14502_v29 = vpop.f32.mrf.mxu1  ;;  %18508 = vst [vmem:[#allocation88_spill] sm:$0xff] %v14550_v53  ;;  %v18535_v9 = vld [vmem:[#allocation76_spill] sm:$0xff] }
 0x57c   :  { %v14462_v17 = vpop.f32.mrf.mxu0 }
 0x57d   :  { %v5033_v10 = vadd.f32 %v5032_v2, %v5031_v12 }
 0x57f   :  { %v5035_v54 = vadd.f32 %v5034_v35, %v5033_v10  ;;  %v5042_v35 = vsel %vm4996_vm4, %v14492_v27, 0.0  ;;  %v5048_v27 = vsel %vm4996_vm4, %v14518_v40, 0.0  ;;  %v5052_v40 = vsel %vm4996_vm4, %v14532_v51, 0.0 }
 0x580   :  { %v14478_v0 = vpop.f32.mrf.mxu2  ;;  %v14564_v51 = vadd.f32 %v14310_v56, %v14157_v44  ;;  %v3302_v44 = vadd.f32 %v14175_v49, %v13798_v22  ;;  %v14595_v22 = vadd.f32 %v14310_v56, %v14179_v7 }
 0x581   :  { %v14480_v23 = vpop.f32.mrf.mxu3  ;;  %v5037_v2 = vadd.f32 %v5036_v59, %v5035_v54 }
 0x582   :  { %18511 = vst [vmem:[#allocation91_spill] sm:$0xff] %v14564_v51  ;;  %v3837_v49 = vadd.f32 %v14227_v34, %v3302_v44 }
 0x583   :  { %v5039_v41 = vadd.f32 %v5038_v39, %v5037_v2  ;;  %v5046_v2 = vsel %vm4996_vm4, %v14508_v15, 0.0  ;;  %18514 = vst [vmem:[#allocation94_spill] sm:$0xff] %v14595_v22 }
 0x584   :  { %v14494_v12 = vpop.f32.mrf.mxu0  ;;  %v4371_v44 = vadd.f32 %v14229_v18, %v3837_v49  ;;  %v18525_v18 = vld [vmem:[#allocation51_spill] sm:$0xff] }
 0x585   :  { %v5041_v59 = vadd.f32 %v5040_v60, %v5039_v41 }
 0x587   :  { %v5043_v39 = vadd.f32 %v5042_v35, %v5041_v59  ;;  %v5050_v35 = vsel %vm4996_vm4, %v14524_v20, 0.0  ;;  %v14538_v59 = vadd.f32 %v14310_v56, %v14139_v46  ;;  %v14556_v46 = vadd.f32 %v14310_v56, %v14151_v38 }
 0x588   :  { %v14510_v10 = vpop.f32.mrf.mxu2  ;;  %v5056_v20 = vsel %vm4996_vm4, %v14550_v53, 0.0  ;;  %v14572_v38 = vadd.f32 %v14310_v56, %v14165_v62  ;;  %v3303_v62 = vadd.f32 %v14184_v6, %v13809_v25 }
 0x589   :  { %v14512_v54 = vpop.f32.mrf.mxu3  ;;  %v5045_v60 = vadd.f32 %v5044_v36, %v5043_v39  ;;  %18507 = vst [vmem:[#allocation87_spill] sm:$0xff] %v14538_v59  ;;  %v14544_v39 = vpop.f32.mrf.mxu1 }
 0x58a   :  { %18509 = vst [vmem:[#allocation89_spill] sm:$0xff] %v14556_v46  ;;  %v3838_v7 = vadd.f32 %v14238_v33, %v3303_v62 }
 0x58b   :  { %v5047_v47 = vadd.f32 %v5046_v2, %v5045_v60  ;;  %v5054_v60 = vsel %vm4996_vm4, %v14538_v59, 0.0  ;;  %18512 = vst [vmem:[#allocation92_spill] sm:$0xff] %v14572_v38 }
 0x58c   :  { %v14526_v41 = vpop.f32.mrf.mxu0 }
 0x58d   :  { %v5049_v52 = vadd.f32 %v5048_v27, %v5047_v47 }
 0x58f   :  { %v5051_v2 = vadd.f32 %v5050_v35, %v5049_v52  ;;  %v3301_v35 = vadd.f32 %v14163_v50, %v13787_v8  ;;  %v5058_v52 = vsel %vm4996_vm4, %v14556_v46, 0.0  ;;  %v14584_v8 = vadd.f32 %v14310_v56, %v14171_v5 }
 0x590   :  { %v14540_v15 = vpop.f32.mrf.mxu2  ;;  %v3304_v5 = vadd.f32 %v14193_v31, %v13816_v26  ;;  %v5066_v31 = vsel %vm4996_vm4, %v14595_v22, 0.0  ;;  %v18526_v22 = vld [vmem:[#allocation11_spill] sm:$0xff] }
 0x591   :  { %v14542_v36 = vpop.f32.mrf.mxu3  ;;  %v5053_v27 = vadd.f32 %v5052_v40, %v5051_v2  ;;  %18513 = vst [vmem:[#allocation93_spill] sm:$0xff] %v14584_v8  ;;  %v3836_v50 = vadd.f32 %v14218_v13, %v3301_v35  ;;  %v14602_v13 = vadd.f32 %v14310_v56, %v14187_v42  ;;  %v5064_v6 = vsel %vm4996_vm4, %v14584_v8, 0.0 }
 0x592   :  { %v3839_v34 = vadd.f32 %v14249_v1, %v3304_v5  ;;  %v14617_v42 = vadd.f32 %v14310_v56, %v14195_v28  ;;  %v18524_v5 = vld [vmem:[#allocation48_spill] sm:$0xff] }
 0x593   :  { %v5055_v32 = vadd.f32 %v5054_v60, %v5053_v27  ;;  %v5060_v60 = vsel %vm4996_vm4, %v14564_v51, 0.0  ;;  %18515 = vst [vmem:[#allocation95_spill] sm:$0xff] %v14602_v13  ;;  %v4370_v35 = vadd.f32 %v14220_v21, %v3836_v50  ;;  %v5068_v33 = vsel %vm4996_vm4, %v14602_v13, 0.0 }
 0x594   :  { %v14558_v47 = vpop.f32.mrf.mxu0  ;;  %v5070_v8 = vsel %vm4996_vm4, %v14617_v42, 0.0 }
 0x595   :  { %18510 = vst [vmem:[#allocation90_spill] sm:$0xff] %v14558_v47  ;;  %v5057_v40 = vadd.f32 %v5056_v20, %v5055_v32  ;;  %v14589_v20 = vpop.f32.mrf.mxu1  ;;  %v5062_v32 = vsel %vm4996_vm4, %v14572_v38, 0.0  ;;  %v18529_v38 = vld [vmem:[#allocation32_spill] sm:$0xff] }
 0x596   :  { %v14642_v46 = vadd.f32 %v14310_v56, %v18529_v38 }
 0x597   :  { %v5059_v27 = vadd.f32 %v5058_v52, %v5057_v40  ;;  %v18517_v40 = vld [vmem:[#allocation19_spill] sm:$0xff] }
 0x598   :  { %v14574_v2 = vpop.f32.mrf.mxu2  ;;  %v3305_v26 = vadd.f32 %v14201_v14, %v18517_v40  ;;  %18518 = vst [vmem:[#allocation19_spill] sm:$0xff] %v14617_v42  ;;  %v18521_v14 = vld [vmem:[#allocation44_spill] sm:$0xff]  ;;  %v4372_v40 = vadd.f32 %v18524_v5, %v3838_v7  ;;  %v18533_v7 = vld [vmem:[#allocation18_spill] sm:$0xff]  ;;  %v18534_v5 = vld [vmem:[#allocation41_spill] sm:$0xff] }
 0x599   :  { %v14576_v59 = vpop.f32.mrf.mxu3  ;;  %v5061_v51 = vadd.f32 %v5060_v60, %v5059_v27  ;;  %v18519_v60 = vld [vmem:[#allocation10_spill] sm:$0xff]  ;;  %v18520_v27 = vld [vmem:[#allocation43_spill] sm:$0xff]  ;;  %v14630_v62 = vadd.f32 %v14310_v56, %v18521_v14  ;;  %v18531_v14 = vld [vmem:[#allocation49_spill] sm:$0xff] }
 0x59a   :  { %v3306_v21 = vadd.f32 %v18520_v27, %v18519_v60  ;;  %v3840_v49 = vadd.f32 %v18525_v18, %v3305_v26  ;;  %v18527_v60 = vld [vmem:[#allocation36_spill] sm:$0xff]  ;;  %v18528_v27 = vld [vmem:[#allocation53_spill] sm:$0xff]  ;;  %18530 = vst [vmem:[#allocation43_spill] sm:$0xff] %v14642_v46  ;;  %v4905_v53 = vadd.f32 %v18531_v14, %v4371_v44  ;;  %v3308_v26 = vadd.f32 %v18534_v5, %v18533_v7 }
 0x59b   :  { %v5063_v52 = vadd.f32 %v5062_v32, %v5061_v51  ;;  %18522 = vst [vmem:[#allocation10_spill] sm:$0xff] %v14630_v62  ;;  %v18523_v32 = vld [vmem:[#allocation31_spill] sm:$0xff]  ;;  %v4373_v13 = vadd.f32 %v18528_v27, %v3839_v34  ;;  %v18539_v27 = vld [vmem:[#allocation52_spill] sm:$0xff] }
 0x59c   :  { %v14604_v25 = vpop.f32.mrf.mxu0  ;;  %v4904_v28 = vadd.f32 %v18523_v32, %v4370_v35  ;;  %v18532_v35 = vld [vmem:[#allocation58_spill] sm:$0xff]  ;;  %v18540_v14 = vld [vmem:[#allocation24_spill] sm:$0xff]  ;;  %v14666_v5 = vadd.f32 %v14310_v56, %v4905_v53 }
 0x59d   :  { %18516 = vst [vmem:[#allocation96_spill] sm:$0xff] %v14604_v25  ;;  %v5065_v50 = vadd.f32 %v5064_v6, %v5063_v52  ;;  %v3307_v6 = vadd.f32 %v18527_v60, %v18526_v22  ;;  %v3841_v32 = vadd.f32 %v18532_v35, %v3306_v21  ;;  %v14651_v34 = vpop.f32.mrf.mxu1  ;;  %v18538_v60 = vld [vmem:[#allocation37_spill] sm:$0xff]  ;;  %v4374_v21 = vadd.f32 %v18539_v27, %v3840_v49  ;;  %v18541_v35 = vld [vmem:[#allocation47_spill] sm:$0xff] }
 0x59e   :  { %v14656_v38 = vadd.f32 %v14310_v56, %v4904_v28  ;;  %v4906_v44 = vadd.f32 %v18538_v60, %v4372_v40  ;;  %v3309_v7 = vadd.f32 %v18541_v35, %v18540_v14  ;;  %v3843_v28 = vadd.f32 %v14291_v63, %v3308_v26  ;;  %v18545_v40 = vld [vmem:[#allocation56_spill] sm:$0xff]  ;;  %v18546_v27 = vld [vmem:[#allocation77_spill] sm:$0xff]  ;;  %v18550_v26 = vld [vmem:[#allocation14_spill] sm:$0xff] }
 0x59f   :  { %v5067_v52 = vadd.f32 %v5066_v31, %v5065_v50  ;;  %v3842_v22 = vadd.f32 %v18535_v9, %v3307_v6  ;;  %v5072_v50 = vsel %vm4996_vm4, %v14630_v62, 0.0  ;;  %v5074_v6 = vsel %vm4996_vm4, %v14642_v46, 0.0  ;;  %v18543_v62 = vld [vmem:[#allocation59_spill] sm:$0xff]  ;;  %v18551_v35 = vld [vmem:[#allocation5_spill] sm:$0xff] }
 0x5a0   :  { %v14624_v1 = vpop.f32.mrf.mxu2  ;;  %18537 = vst [vmem:[#allocation31_spill] sm:$0xff] %v14656_v38  ;;  %v4375_v42 = vadd.f32 %v18543_v62, %v3841_v32  ;;  %v14680_v53 = vadd.f32 %v14310_v56, %v4906_v44  ;;  %v18549_v32 = vld [vmem:[#allocation9_spill] sm:$0xff]  ;;  %v18554_v44 = vld [vmem:[#allocation30_spill] sm:$0xff] }
 0x5a1   :  { %v14626_v51 = vpop.f32.mrf.mxu3  ;;  %v5069_v18 = vadd.f32 %v5068_v33, %v5067_v52  ;;  %v18542_v52 = vld [vmem:[#allocation42_spill] sm:$0xff]  ;;  %v4376_v25 = vadd.f32 %v18546_v27, %v3842_v22  ;;  %v3844_v63 = vadd.f32 %v18549_v32, %v3309_v7 }
 0x5a2   :  { %v4907_v9 = vadd.f32 %v18542_v52, %v4373_v13  ;;  %v5076_v13 = vsel %vm4996_vm4, %v14656_v38, 0.0  ;;  %v18552_v52 = vld [vmem:[#allocation55_spill] sm:$0xff]  ;;  %v18553_v27 = vld [vmem:[#allocation6_spill] sm:$0xff] }
 0x5a3   :  { %v5071_v33 = vadd.f32 %v5070_v8, %v5069_v18  ;;  %v18548_v18 = vld [vmem:[#allocation46_spill] sm:$0xff]  ;;  %v4377_v38 = vadd.f32 %v18553_v27, %v3843_v28  ;;  %v18559_v28 = vld [vmem:[#allocation29_spill] sm:$0xff] }
 0x5a4   :  { %v14649_v31 = vpop.f32.mrf.mxu0  ;;  %v4908_v62 = vadd.f32 %v18548_v18, %v4374_v21  ;;  %v14687_v22 = vadd.f32 %v14310_v56, %v4907_v9  ;;  %v18556_v21 = vld [vmem:[#allocation7_spill] sm:$0xff]  ;;  %v18557_v32 = vld [vmem:[#allocation74_spill] sm:$0xff] }
 0x5a5   :  { %18536 = vst [vmem:[#allocation44_spill] sm:$0xff] %v14649_v31  ;;  %v18544_v31 = vld [vmem:[#allocation13_spill] sm:$0xff]  ;;  %v5073_v49 = vadd.f32 %v5072_v50, %v5071_v33  ;;  %v5078_v33 = vsel %vm4996_vm4, %v14666_v5, 0.0  ;;  %v4910_v47 = vadd.f32 %v18557_v32, %v4376_v25  ;;  %v14710_v25 = vpop.f32.mrf.mxu1 }
 0x5a6   :  { %v3310_v60 = vadd.f32 %v18545_v40, %v18544_v31  ;;  %v3311_v31 = vadd.f32 %v18551_v35, %v18550_v26  ;;  %v4909_v40 = vadd.f32 %v18552_v52, %v4375_v42  ;;  %v14700_v9 = vadd.f32 %v14310_v56, %v4908_v62  ;;  %v18561_v62 = vld [vmem:[#allocation4_spill] sm:$0xff] }
 0x5a7   :  { %v5075_v50 = vadd.f32 %v5074_v6, %v5073_v49  ;;  %v5080_v6 = vsel %vm4996_vm4, %v14680_v53, 0.0  ;;  %v18558_v49 = vld [vmem:[#allocation12_spill] sm:$0xff] }
 0x5a8   :  { %v14673_v14 = vpop.f32.mrf.mxu2  ;;  %v3845_v46 = vadd.f32 %v18554_v44, %v3310_v60  ;;  %v4378_v26 = vadd.f32 %v18558_v49, %v3844_v63  ;;  %v3846_v42 = vadd.f32 %v14352_v61, %v3311_v31  ;;  %v18560_v60 = vld [vmem:[#allocation20_spill] sm:$0xff]  ;;  %v18562_v44 = vld [vmem:[#allocation35_spill] sm:$0xff] }
 0x5a9   :  { %v14675_v8 = vpop.f32.mrf.mxu3  ;;  %v5077_v7 = vadd.f32 %v5076_v13, %v5075_v50  ;;  %v3313_v52 = vadd.f32 %v18560_v60, %v18559_v28  ;;  %v14713_v13 = vadd.f32 %v14310_v56, %v4909_v40  ;;  %v4911_v50 = vadd.f32 %v18561_v62, %v4377_v38  ;;  %v18563_v31 = vld [vmem:[#allocation16_spill] sm:$0xff]  ;;  %v18566_v62 = vld [vmem:[#allocation15_spill] sm:$0xff] }
 0x5aa   :  { %18547 = vst [vmem:[#allocation48_spill] sm:$0xff] %v14675_v8  ;;  %v18555_v8 = vld [vmem:[#allocation23_spill] sm:$0xff]  ;;  %v4379_v63 = vadd.f32 %v18562_v44, %v3845_v46  ;;  %v5084_v40 = vsel %vm4996_vm4, %v14700_v9, 0.0  ;;  %v18564_v28 = vld [vmem:[#allocation8_spill] sm:$0xff]  ;;  %v4380_v46 = vadd.f32 %v14354_v43, %v3846_v42 }
 0x5ab   :  { %v3312_v18 = vadd.f32 %v18556_v21, %v18555_v8  ;;  %v5079_v27 = vadd.f32 %v5078_v33, %v5077_v7  ;;  %v5082_v8 = vsel %vm4996_vm4, %v14687_v22, 0.0  ;;  %v3314_v21 = vadd.f32 %v14344_v48, %v18563_v31  ;;  %v18567_v31 = vld [vmem:[#allocation28_spill] sm:$0xff] }
 0x5ac   :  { %v14704_v35 = vpop.f32.mrf.mxu0  ;;  %v14721_v33 = vadd.f32 %v14310_v56, %v4910_v47  ;;  %v4912_v38 = vadd.f32 %v18564_v28, %v4378_v26  ;;  %v5086_v60 = vsel %vm4996_vm4, %v14713_v13, 0.0  ;;  %v4913_v44 = vadd.f32 %v18566_v62, %v4379_v63 }
 0x5ad   :  { %v3847_v61 = vadd.f32 %v14382_v16, %v3312_v18  ;;  %v5081_v32 = vadd.f32 %v5080_v6, %v5079_v27  ;;  %v3848_v16 = vadd.f32 %v14414_v3, %v3313_v52  ;;  %v18565_v18 = vld [vmem:[#allocation17_spill] sm:$0xff]  ;;  %v3849_v47 = vadd.f32 %v14446_v45, %v3314_v21  ;;  %v18568_v45 = vld [vmem:[#allocation54_spill] sm:$0xff] }
 0x5ae   :  { %v3315_v48 = vadd.f32 %v14386_v11, %v18565_v18  ;;  %v14738_v27 = vadd.f32 %v14310_v56, %v4911_v50  ;;  %v3316_v43 = vadd.f32 %v14424_v30, %v18567_v31  ;;  %v5088_v11 = vsel %vm4996_vm4, %v14721_v33, 0.0  ;;  %v18569_v21 = vld [vmem:[#allocation34_spill] sm:$0xff]  ;;  %v3255_v18 = vpop.f32.mrf.mxu1 }
 0x5af   :  { %v5083_v6 = vadd.f32 %v5082_v8, %v5081_v32  ;;  %v4381_v26 = vadd.f32 %v14384_v24, %v3847_v61  ;;  %v14747_v42 = vadd.f32 %v14310_v56, %v4912_v38  ;;  %v4914_v52 = vadd.f32 %v18568_v45, %v4380_v46 }
 0x5b0   :  { %v14723_v7 = vpop.f32.mrf.mxu2  ;;  %v4382_v8 = vadd.f32 %v14416_v4, %v3848_v16  ;;  %v3850_v50 = vadd.f32 %v14478_v0, %v3315_v48  ;;  %v3317_v63 = vadd.f32 %v14464_v58, %v18569_v21  ;;  %v4383_v61 = vadd.f32 %v14448_v37, %v3849_v47  ;;  %v18570_v4 = vld [vmem:[#allocation21_spill] sm:$0xff]  ;;  %v18571_v47 = vld [vmem:[#allocation22_spill] sm:$0xff] }
 0x5b1   :  { %v14725_v49 = vpop.f32.mrf.mxu3  ;;  %v5085_v3 = vadd.f32 %v5084_v40, %v5083_v6  ;;  %v5090_v30 = vsel %vm4996_vm4, %v14738_v27, 0.0  ;;  %v14758_v32 = vadd.f32 %v14310_v56, %v4913_v44  ;;  %v4915_v40 = vadd.f32 %v14368_v55, %v4381_v26 }
 0x5b2   :  { %v3851_v28 = vadd.f32 %v14510_v10, %v3316_v43  ;;  %v3318_v0 = vadd.f32 %v14502_v29, %v18570_v4  ;;  %v3852_v58 = vadd.f32 %v14540_v15, %v3317_v63  ;;  %v5092_v48 = vsel %vm4996_vm4, %v14747_v42, 0.0  ;;  %v18572_v43 = vld [vmem:[#allocation33_spill] sm:$0xff]  ;;  %v18574_v63 = vld [vmem:[#allocation26_spill] sm:$0xff] }
 0x5b3   :  { %v5087_v24 = vadd.f32 %v5086_v60, %v5085_v3  ;;  %v14770_v6 = vadd.f32 %v14310_v56, %v4914_v52  ;;  %v4916_v55 = vadd.f32 %v14400_v19, %v4382_v8  ;;  %v4384_v10 = vadd.f32 %v14480_v23, %v3850_v50  ;;  %v18573_v52 = vld [vmem:[#allocation39_spill] sm:$0xff] }
 0x5b4   :  { %v14762_v38 = vpop.f32.mrf.mxu0  ;;  %v3319_v60 = vadd.f32 %v14544_v39, %v18571_v47  ;;  %v4917_v62 = vadd.f32 %v14432_v57, %v4383_v61  ;;  %v5094_v15 = vsel %vm4996_vm4, %v14758_v32, 0.0  ;;  %v14780_v44 = vadd.f32 %v14310_v56, %v4915_v40 }
 0x5b5   :  { %v5089_v46 = vadd.f32 %v5088_v11, %v5087_v24  ;;  %v4385_v26 = vadd.f32 %v14512_v54, %v3851_v28  ;;  %v3853_v31 = vadd.f32 %v14574_v2, %v3318_v0  ;;  %v3320_v19 = vadd.f32 %v14589_v20, %v18572_v43  ;;  %v18575_v28 = vld [vmem:[#allocation27_spill] sm:$0xff] }
 0x5b6   :  { %v4386_v3 = vadd.f32 %v14542_v36, %v3852_v58  ;;  %v5096_v39 = vsel %vm4996_vm4, %v14770_v6, 0.0  ;;  %v14790_v57 = vadd.f32 %v14310_v56, %v4916_v55  ;;  %v4918_v11 = vadd.f32 %v14462_v17, %v4384_v10  ;;  %v18576_v58 = vld [vmem:[#allocation90_spill] sm:$0xff]  ;;  %v18577_v55 = vld [vmem:[#allocation48_spill] sm:$0xff] }
 0x5b7   :  { %v5091_v29 = vadd.f32 %v5090_v30, %v5089_v46  ;;  %v3854_v45 = vadd.f32 %v14624_v1, %v3319_v60  ;;  %v3321_v54 = vadd.f32 %v14651_v34, %v18573_v52  ;;  %v14797_v8 = vadd.f32 %v14310_v56, %v4917_v62 }
 0x5b8   :  { %v3787_v16 = vpop.f32.mrf.mxu2  ;;  %v5098_v36 = vsel %vm4996_vm4, %v14780_v44, 0.0  ;;  %v4919_v20 = vadd.f32 %v14494_v12, %v4385_v26  ;;  %v4387_v50 = vadd.f32 %v14576_v59, %v3853_v31  ;;  %v3855_v21 = vadd.f32 %v14673_v14, %v3320_v19  ;;  %v18579_v26 = vld [vmem:[#allocation38_spill] sm:$0xff] }
 0x5b9   :  { %v4321_v37 = vpop.f32.mrf.mxu3  ;;  %v5093_v23 = vadd.f32 %v5092_v48, %v5091_v29  ;;  %v3322_v17 = vadd.f32 %v14710_v25, %v18574_v63  ;;  %v4920_v24 = vadd.f32 %v14526_v41, %v4386_v3  ;;  %v5100_v30 = vsel %vm4996_vm4, %v14790_v57, 0.0  ;;  %v3258_v41 = vpop.f32.mrf.mxu1 }
 0x5ba   :  { %v14810_v40 = vadd.f32 %v14310_v56, %v4918_v11  ;;  %v4388_v12 = vadd.f32 %v14626_v51, %v3854_v45  ;;  %v3856_v59 = vadd.f32 %v14723_v7, %v3321_v54  ;;  %v3323_v14 = vadd.f32 %v3255_v18, %v18575_v28  ;;  %v18578_v18 = vld [vmem:[#allocation96_spill] sm:$0xff] }
 0x5bb   :  { %v5095_v2 = vadd.f32 %v5094_v15, %v5093_v23  ;;  %v5102_v25 = vsel %vm4996_vm4, %v14797_v8, 0.0  ;;  %v14818_v46 = vadd.f32 %v14310_v56, %v4919_v20  ;;  %v4921_v48 = vadd.f32 %v18576_v58, %v4387_v50  ;;  %v18580_v23 = vld [vmem:[#allocation44_spill] sm:$0xff] }
 0x5bc   :  { %v4858_v0 = vpop.f32.mrf.mxu0  ;;  %v4389_v10 = vadd.f32 %v18577_v55, %v3855_v21  ;;  %v3857_v47 = vadd.f32 %v3787_v16, %v3322_v17  ;;  %v14823_v51 = vadd.f32 %v14310_v56, %v4920_v24  ;;  %v5104_v7 = vsel %vm4996_vm4, %v14810_v40, 0.0 }
 0x5bd   :  { %v5097_v1 = vadd.f32 %v5096_v39, %v5095_v2  ;;  %v4922_v29 = vadd.f32 %v18578_v18, %v4388_v12  ;;  %v4390_v62 = vadd.f32 %v14725_v49, %v3856_v59  ;;  %v3324_v31 = vadd.f32 %v3258_v41, %v18579_v26 }
 0x5be   :  { %v5106_v19 = vsel %vm4996_vm4, %v14818_v46, 0.0  ;;  %v14833_v16 = vadd.f32 %v14310_v56, %v4921_v48  ;;  %v4923_v3 = vadd.f32 %v18580_v23, %v4389_v10  ;;  %v4391_v39 = vadd.f32 %v4321_v37, %v3857_v47 }
 0x5bf   :  { %v5099_v4 = vadd.f32 %v5098_v36, %v5097_v1  ;;  %v5108_v45 = vsel %vm4996_vm4, %v14823_v51, 0.0  ;;  %v14839_v49 = vadd.f32 %v14310_v56, %v4922_v29  ;;  %v4924_v2 = vadd.f32 %v14704_v35, %v4390_v62 }
 0x5c0   :  { %v3790_v34 = vpop.f32.mrf.mxu2  ;;  %v5110_v21 = vsel %vm4996_vm4, %v14833_v16, 0.0  ;;  %v14845_v63 = vadd.f32 %v14310_v56, %v4923_v3  ;;  %v4925_v37 = vadd.f32 %v14762_v38, %v4391_v39  ;;  %v18587_v3 = vld [vmem:[#allocation45_spill] sm:$0xff] }
 0x5c1   :  { %v4324_v61 = vpop.f32.mrf.mxu3  ;;  %v5101_v60 = vadd.f32 %v5100_v30, %v5099_v4  ;;  %v3858_v15 = vadd.f32 %v3790_v34, %v3323_v14  ;;  %v5112_v34 = vsel %vm4996_vm4, %v14839_v49, 0.0  ;;  %v14851_v30 = vadd.f32 %v14310_v56, %v4924_v2  ;;  %v18589_v2 = vld [vmem:[#allocation57_spill] sm:$0xff] }
 0x5c2   :  { %18581 = vst [vmem:[#allocation51_spill] sm:$0xff] %v14845_v63  ;;  %v5114_v12 = vsel %vm4996_vm4, %v14845_v63, 0.0  ;;  %v14856_v59 = vadd.f32 %v14310_v56, %v4925_v37 }
 0x5c3   :  { %v5103_v43 = vadd.f32 %v5102_v25, %v5101_v60  ;;  %v4392_v36 = vadd.f32 %v4324_v61, %v3858_v15  ;;  %18582 = vst [vmem:[#allocation11_spill] sm:$0xff] %v14851_v30  ;;  %v5116_v38 = vsel %vm4996_vm4, %v14851_v30, 0.0 }
 0x5c4   :  { %v4861_v24 = vpop.f32.mrf.mxu0  ;;  %18583 = vst [vmem:[#allocation36_spill] sm:$0xff] %v14856_v59  ;;  %v5118_v41 = vsel %vm4996_vm4, %v14856_v59, 0.0 }
 0x5c5   :  { %v5105_v11 = vadd.f32 %v5104_v7, %v5103_v43  ;;  %v4926_v35 = vadd.f32 %v4858_v0, %v4392_v36 }
 0x5c7   :  { %v5107_v50 = vadd.f32 %v5106_v19, %v5105_v11  ;;  %v14861_v4 = vadd.f32 %v14310_v56, %v4926_v35  ;;  %v18586_v19 = vld [vmem:[#allocation25_spill] sm:$0xff]  ;;  %v18588_v11 = vld [vmem:[#allocation50_spill] sm:$0xff] }
 0x5c8   :  { %v3793_v52 = vpop.f32.mrf.mxu2 }
 0x5c9   :  { %v4327_v54 = vpop.f32.mrf.mxu3  ;;  %v3859_v20 = vadd.f32 %v3793_v52, %v3324_v31  ;;  %v5109_v1 = vadd.f32 %v5108_v45, %v5107_v50  ;;  %18584 = vst [vmem:[#allocation53_spill] sm:$0xff] %v14861_v4  ;;  %v5120_v48 = vsel %vm4996_vm4, %v14861_v4, 0.0  ;;  %v18590_v50 = vld [vmem:[#allocation60_spill] sm:$0xff] }
 0x5cb   :  { %v4393_v17 = vadd.f32 %v4327_v54, %v3859_v20  ;;  %v5111_v61 = vadd.f32 %v5110_v21, %v5109_v1 }
 0x5cd   :  { %v4927_v28 = vadd.f32 %v4861_v24, %v4393_v17  ;;  %v5113_v14 = vadd.f32 %v5112_v34, %v5111_v61  ;;  %v18591_v34 = vld [vmem:[#allocation61_spill] sm:$0xff] }
 0x5cf   :  { %v5115_v25 = vadd.f32 %v5114_v12, %v5113_v14  ;;  %v14866_v0 = vadd.f32 %v14310_v56, %v4927_v28  ;;  %v18585_v56 = vld [vmem:[#allocation40_spill] sm:$0xff]  ;;  %v18592_v14 = vld [vmem:[#allocation62_spill] sm:$0xff] }
 0x5d1   :  { %v5117_v58 = vadd.f32 %v5116_v38, %v5115_v25  ;;  %v5122_v10 = vsel %vm4996_vm4, %v14866_v0, 0.0 }
 0x5d3   :  { %v5119_v55 = vadd.f32 %v5118_v41, %v5117_v58 }
 0x5d5   :  { %v5121_v47 = vadd.f32 %v5120_v48, %v5119_v55  ;;  %v18593_v48 = vld [vmem:[#allocation63_spill] sm:$0xff] }
 0x5d7   :  { %v5123_v60 = vadd.f32 %v5122_v10, %v5121_v47 }
 0x5d9   :  { %v5124_v7 = vrot.slane %v5123_v60, 4 }
 0x5db   :  { %v5125_v18 = vadd.f32 %v5124_v7, %v5123_v60  ;;  %v18594_v7 = vld [vmem:[#allocation64_spill] sm:$0xff] }
 0x5dd   :  { %v5126_v29 = vrot.slane %v5125_v18, 2 }
 0x5df   :  { %v5127_v62 = vadd.f32 %v5126_v29, %v5125_v18 }
 0x5e1   :  { %v5128_v15 = vrot.slane %v5127_v62, 1 }
 0x5e3   :  { %v5129_v26 = vadd.f32 %v5128_v15, %v5127_v62 }
 0x5e5   :  { %v14872_v31 = vmul.f32 0.001953125, %v5129_v26  ;;  %v18595_v26 = vld [vmem:[#allocation65_spill] sm:$0xff] }
 0x5e7   :  { %v5131_v43 = vsub.f32 %v18585_v56, %v14872_v31  ;;  %v5132_v23 = vsub.f32 %v18586_v19, %v14872_v31  ;;  %v5133_v39 = vsub.f32 %v18587_v3, %v14872_v31  ;;  %v5134_v45 = vsub.f32 %v18588_v11, %v14872_v31 }
 0x5e8   :  { %v5135_v36 = vsub.f32 %v18589_v2, %v14872_v31  ;;  %v5136_v21 = vsub.f32 %v18590_v50, %v14872_v31  ;;  %v5137_v35 = vsub.f32 %v18591_v34, %v14872_v31  ;;  %v5138_v38 = vsub.f32 %v18592_v14, %v14872_v31 }
 0x5e9   :  { %v5195_v52 = vmul.f32 %v5131_v43, %v5131_v43  ;;  %v5196_v54 = vmul.f32 %v5132_v23, %v5132_v23  ;;  %v5197_v20 = vmul.f32 %v5133_v39, %v5133_v39  ;;  %v5198_v37 = vmul.f32 %v5134_v45, %v5134_v45 }
 0x5ea   :  { %v5199_v61 = vmul.f32 %v5135_v36, %v5135_v36  ;;  %v5200_v25 = vmul.f32 %v5136_v21, %v5136_v21  ;;  %v5139_v55 = vsub.f32 %v18593_v48, %v14872_v31  ;;  %v5201_v10 = vmul.f32 %v5137_v35, %v5137_v35 }
 0x5eb   :  { %v5259_v17 = vsel %vm4996_vm4, %v5195_v52, 0.0  ;;  %v5260_v1 = vsel %vm4996_vm4, %v5196_v54, 0.0  ;;  %v5262_v12 = vsel %vm4996_vm4, %v5197_v20, 0.0  ;;  %v5264_v41 = vsel %vm4996_vm4, %v5198_v37, 0.0  ;;  %v18596_v52 = vld [vmem:[#allocation66_spill] sm:$0xff]  ;;  %v18597_v37 = vld [vmem:[#allocation67_spill] sm:$0xff] }
 0x5ec   :  { %v5261_v24 = vadd.f32 %v5260_v1, %v5259_v17  ;;  %v5266_v47 = vsel %vm4996_vm4, %v5199_v61, 0.0  ;;  %v5140_v18 = vsub.f32 %v18594_v7, %v14872_v31  ;;  %v5202_v29 = vmul.f32 %v5138_v38, %v5138_v38  ;;  %v18598_v61 = vld [vmem:[#allocation68_spill] sm:$0xff] }
 0x5ed   :  { %v5268_v62 = vsel %vm4996_vm4, %v5200_v25, 0.0  ;;  %v5141_v43 = vsub.f32 %v18595_v26, %v14872_v31  ;;  %v5203_v23 = vmul.f32 %v5139_v55, %v5139_v55  ;;  %v5270_v39 = vsel %vm4996_vm4, %v5201_v10, 0.0 }
 0x5ee   :  { %v5263_v28 = vadd.f32 %v5262_v12, %v5261_v24  ;;  %v5142_v54 = vsub.f32 %v18596_v52, %v14872_v31  ;;  %v5204_v36 = vmul.f32 %v5140_v18, %v5140_v18  ;;  %v5272_v20 = vsel %vm4996_vm4, %v5202_v29, 0.0 }
 0x5ef   :  { %v5143_v17 = vsub.f32 %v18597_v37, %v14872_v31  ;;  %v5205_v1 = vmul.f32 %v5141_v43, %v5141_v43  ;;  %v5274_v24 = vsel %vm4996_vm4, %v5203_v23, 0.0  ;;  %v5144_v12 = vsub.f32 %v18598_v61, %v14872_v31  ;;  %v18601_v43 = vld [vmem:[#allocation71_spill] sm:$0xff] }
 0x5f0   :  { %v5265_v58 = vadd.f32 %v5264_v41, %v5263_v28  ;;  %v5206_v28 = vmul.f32 %v5142_v54, %v5142_v54  ;;  %v5276_v38 = vsel %vm4996_vm4, %v5204_v36, 0.0  ;;  %v18599_v41 = vld [vmem:[#allocation69_spill] sm:$0xff]  ;;  %v5147_v23 = vsub.f32 %v18601_v43, %v14872_v31  ;;  %v18602_v36 = vld [vmem:[#allocation72_spill] sm:$0xff] }
 0x5f1   :  { %v5207_v55 = vmul.f32 %v5143_v17, %v5143_v17  ;;  %v5278_v10 = vsel %vm4996_vm4, %v5205_v1, 0.0  ;;  %v5208_v29 = vmul.f32 %v5144_v12, %v5144_v12 }
 0x5f2   :  { %v5267_v60 = vadd.f32 %v5266_v47, %v5265_v58  ;;  %v5145_v58 = vsub.f32 %v18599_v41, %v14872_v31  ;;  %v5211_v12 = vmul.f32 %v5147_v23, %v5147_v23 }
 0x5f3   :  { %v5284_v17 = vsel %vm4996_vm4, %v5208_v29, 0.0 }
 0x5f4   :  { %v5269_v15 = vadd.f32 %v5268_v62, %v5267_v60  ;;  %v18600_v60 = vld [vmem:[#allocation70_spill] sm:$0xff]  ;;  %v5280_v62 = vsel %vm4996_vm4, %v5206_v28, 0.0  ;;  %v5290_v29 = vsel %vm4996_vm4, %v5211_v12, 0.0 }
 0x5f5   :  { %v5146_v18 = vsub.f32 %v18600_v60, %v14872_v31 }
 0x5f6   :  { %v5271_v45 = vadd.f32 %v5270_v39, %v5269_v15  ;;  %v5209_v39 = vmul.f32 %v5145_v58, %v5145_v58 }
 0x5f8   :  { %v5273_v21 = vadd.f32 %v5272_v20, %v5271_v45  ;;  %v5282_v45 = vsel %vm4996_vm4, %v5207_v55, 0.0  ;;  %v5148_v20 = vsub.f32 %v18602_v36, %v14872_v31  ;;  %v5286_v28 = vsel %vm4996_vm4, %v5209_v39, 0.0 }
 0x5fa   :  { %v5275_v35 = vadd.f32 %v5274_v24, %v5273_v21  ;;  %v5210_v21 = vmul.f32 %v5146_v18, %v5146_v18  ;;  %v18603_v24 = vld [vmem:[#allocation73_spill] sm:$0xff] }
 0x5fc   :  { %v5277_v25 = vadd.f32 %v5276_v38, %v5275_v35  ;;  %v5149_v35 = vsub.f32 %v18603_v24, %v14872_v31  ;;  %v5288_v55 = vsel %vm4996_vm4, %v5210_v21, 0.0 }
 0x5fe   :  { %v5279_v47 = vadd.f32 %v5278_v10, %v5277_v25  ;;  %v18604_v25 = vld [vmem:[#allocation75_spill] sm:$0xff]  ;;  %v5212_v10 = vmul.f32 %v5148_v20, %v5148_v20 }
 0x5ff   :  { %v5150_v58 = vsub.f32 %v18604_v25, %v14872_v31 }
 0x600   :  { %v5281_v15 = vadd.f32 %v5280_v62, %v5279_v47  ;;  %v18605_v62 = vld [vmem:[#allocation78_spill] sm:$0xff]  ;;  %v5292_v39 = vsel %vm4996_vm4, %v5212_v10, 0.0 }
 0x601   :  { %v5151_v18 = vsub.f32 %v18605_v62, %v14872_v31 }
 0x602   :  { %v5283_v54 = vadd.f32 %v5282_v45, %v5281_v15  ;;  %v5213_v15 = vmul.f32 %v5149_v35, %v5149_v35 }
 0x603   :  { %v5215_v2 = vmul.f32 %v5151_v18, %v5151_v18 }
 0x604   :  { %v5285_v1 = vadd.f32 %v5284_v17, %v5283_v54  ;;  %v18606_v54 = vld [vmem:[#allocation79_spill] sm:$0xff]  ;;  %v5214_v17 = vmul.f32 %v5150_v58, %v5150_v58  ;;  %v5294_v21 = vsel %vm4996_vm4, %v5213_v15, 0.0 }
 0x605   :  { %v5152_v23 = vsub.f32 %v18606_v54, %v14872_v31  ;;  %v5298_v10 = vsel %vm4996_vm4, %v5215_v2, 0.0 }
 0x606   :  { %v5287_v38 = vadd.f32 %v5286_v28, %v5285_v1  ;;  %v18607_v28 = vld [vmem:[#allocation80_spill] sm:$0xff]  ;;  %v5296_v12 = vsel %vm4996_vm4, %v5214_v17, 0.0 }
 0x607   :  { %v5153_v20 = vsub.f32 %v18607_v28, %v14872_v31  ;;  %v5216_v11 = vmul.f32 %v5152_v23, %v5152_v23 }
 0x608   :  { %v5289_v47 = vadd.f32 %v5288_v55, %v5287_v38  ;;  %v18608_v55 = vld [vmem:[#allocation81_spill] sm:$0xff] }
 0x609   :  { %v5154_v35 = vsub.f32 %v18608_v55, %v14872_v31  ;;  %v5217_v3 = vmul.f32 %v5153_v20, %v5153_v20  ;;  %v5300_v15 = vsel %vm4996_vm4, %v5216_v11, 0.0 }
 0x60a   :  { %v5291_v45 = vadd.f32 %v5290_v29, %v5289_v47  ;;  %v18609_v29 = vld [vmem:[#allocation82_spill] sm:$0xff] }
 0x60b   :  { %v5155_v58 = vsub.f32 %v18609_v29, %v14872_v31  ;;  %v5218_v19 = vmul.f32 %v5154_v35, %v5154_v35  ;;  %v5302_v17 = vsel %vm4996_vm4, %v5217_v3, 0.0 }
 0x60c   :  { %v5293_v1 = vadd.f32 %v5292_v39, %v5291_v45  ;;  %v18610_v39 = vld [vmem:[#allocation83_spill] sm:$0xff] }
 0x60d   :  { %v5156_v18 = vsub.f32 %v18610_v39, %v14872_v31  ;;  %v5219_v56 = vmul.f32 %v5155_v58, %v5155_v58  ;;  %v5304_v2 = vsel %vm4996_vm4, %v5218_v19, 0.0 }
 0x60e   :  { %v5295_v38 = vadd.f32 %v5294_v21, %v5293_v1  ;;  %v18611_v21 = vld [vmem:[#allocation84_spill] sm:$0xff] }
 0x60f   :  { %v5157_v23 = vsub.f32 %v18611_v21, %v14872_v31  ;;  %v5220_v29 = vmul.f32 %v5156_v18, %v5156_v18  ;;  %v5306_v11 = vsel %vm4996_vm4, %v5219_v56, 0.0 }
 0x610   :  { %v5297_v47 = vadd.f32 %v5296_v12, %v5295_v38  ;;  %v18612_v12 = vld [vmem:[#allocation85_spill] sm:$0xff] }
 0x611   :  { %v5158_v20 = vsub.f32 %v18612_v12, %v14872_v31  ;;  %v5221_v39 = vmul.f32 %v5157_v23, %v5157_v23  ;;  %v5308_v3 = vsel %vm4996_vm4, %v5220_v29, 0.0 }
 0x612   :  { %v5299_v45 = vadd.f32 %v5298_v10, %v5297_v47  ;;  %v18613_v10 = vld [vmem:[#allocation86_spill] sm:$0xff] }
 0x613   :  { %v5159_v35 = vsub.f32 %v18613_v10, %v14872_v31  ;;  %v5222_v21 = vmul.f32 %v5158_v20, %v5158_v20  ;;  %v5310_v19 = vsel %vm4996_vm4, %v5221_v39, 0.0 }
 0x614   :  { %v5301_v1 = vadd.f32 %v5300_v15, %v5299_v45  ;;  %v18614_v15 = vld [vmem:[#allocation87_spill] sm:$0xff] }
 0x615   :  { %v5160_v58 = vsub.f32 %v18614_v15, %v14872_v31  ;;  %v5223_v12 = vmul.f32 %v5159_v35, %v5159_v35  ;;  %v5312_v56 = vsel %vm4996_vm4, %v5222_v21, 0.0 }
 0x616   :  { %v5303_v38 = vadd.f32 %v5302_v17, %v5301_v1  ;;  %v18615_v17 = vld [vmem:[#allocation88_spill] sm:$0xff] }
 0x617   :  { %v5161_v18 = vsub.f32 %v18615_v17, %v14872_v31  ;;  %v5224_v10 = vmul.f32 %v5160_v58, %v5160_v58  ;;  %v5314_v29 = vsel %vm4996_vm4, %v5223_v12, 0.0 }
 0x618   :  { %v5305_v47 = vadd.f32 %v5304_v2, %v5303_v38  ;;  %v18616_v2 = vld [vmem:[#allocation89_spill] sm:$0xff] }
 0x619   :  { %v5162_v23 = vsub.f32 %v18616_v2, %v14872_v31  ;;  %v5225_v15 = vmul.f32 %v5161_v18, %v5161_v18  ;;  %v5316_v39 = vsel %vm4996_vm4, %v5224_v10, 0.0 }
 0x61a   :  { %v5307_v45 = vadd.f32 %v5306_v11, %v5305_v47  ;;  %v18617_v11 = vld [vmem:[#allocation91_spill] sm:$0xff] }
 0x61b   :  { %v5163_v20 = vsub.f32 %v18617_v11, %v14872_v31  ;;  %v5226_v17 = vmul.f32 %v5162_v23, %v5162_v23  ;;  %v5318_v21 = vsel %vm4996_vm4, %v5225_v15, 0.0 }
 0x61c   :  { %v5309_v1 = vadd.f32 %v5308_v3, %v5307_v45  ;;  %v18618_v3 = vld [vmem:[#allocation92_spill] sm:$0xff] }
 0x61d   :  { %v5164_v35 = vsub.f32 %v18618_v3, %v14872_v31  ;;  %v5227_v2 = vmul.f32 %v5163_v20, %v5163_v20  ;;  %v5320_v12 = vsel %vm4996_vm4, %v5226_v17, 0.0 }
 0x61e   :  { %v5311_v38 = vadd.f32 %v5310_v19, %v5309_v1  ;;  %v18619_v19 = vld [vmem:[#allocation93_spill] sm:$0xff] }
 0x61f   :  { %v5165_v58 = vsub.f32 %v18619_v19, %v14872_v31  ;;  %v5228_v11 = vmul.f32 %v5164_v35, %v5164_v35  ;;  %v5322_v10 = vsel %vm4996_vm4, %v5227_v2, 0.0 }
 0x620   :  { %v5313_v47 = vadd.f32 %v5312_v56, %v5311_v38  ;;  %v18620_v56 = vld [vmem:[#allocation94_spill] sm:$0xff] }
 0x621   :  { %v5166_v18 = vsub.f32 %v18620_v56, %v14872_v31  ;;  %v5229_v3 = vmul.f32 %v5165_v58, %v5165_v58  ;;  %v5324_v15 = vsel %vm4996_vm4, %v5228_v11, 0.0 }
 0x622   :  { %v5315_v45 = vadd.f32 %v5314_v29, %v5313_v47  ;;  %v18621_v29 = vld [vmem:[#allocation95_spill] sm:$0xff] }
 0x623   :  { %v5167_v23 = vsub.f32 %v18621_v29, %v14872_v31  ;;  %v5230_v19 = vmul.f32 %v5166_v18, %v5166_v18  ;;  %v5326_v17 = vsel %vm4996_vm4, %v5229_v3, 0.0 }
 0x624   :  { %v5317_v1 = vadd.f32 %v5316_v39, %v5315_v45  ;;  %v18622_v39 = vld [vmem:[#allocation19_spill] sm:$0xff] }
 0x625   :  { %v5168_v20 = vsub.f32 %v18622_v39, %v14872_v31  ;;  %v5231_v56 = vmul.f32 %v5167_v23, %v5167_v23  ;;  %v5328_v2 = vsel %vm4996_vm4, %v5230_v19, 0.0  ;;  %v5172_v23 = vsub.f32 %v14666_v5, %v14872_v31 }
 0x626   :  { %v5319_v38 = vadd.f32 %v5318_v21, %v5317_v1  ;;  %v18623_v21 = vld [vmem:[#allocation10_spill] sm:$0xff] }
 0x627   :  { %v5169_v35 = vsub.f32 %v18623_v21, %v14872_v31  ;;  %v5232_v29 = vmul.f32 %v5168_v20, %v5168_v20  ;;  %v5330_v11 = vsel %vm4996_vm4, %v5231_v56, 0.0  ;;  %v5173_v20 = vsub.f32 %v14680_v53, %v14872_v31 }
 0x628   :  { %v5321_v47 = vadd.f32 %v5320_v12, %v5319_v38  ;;  %v18624_v12 = vld [vmem:[#allocation43_spill] sm:$0xff] }
 0x629   :  { %v5170_v58 = vsub.f32 %v18624_v12, %v14872_v31  ;;  %v5233_v39 = vmul.f32 %v5169_v35, %v5169_v35  ;;  %v5332_v3 = vsel %vm4996_vm4, %v5232_v29, 0.0  ;;  %v5174_v35 = vsub.f32 %v14687_v22, %v14872_v31 }
 0x62a   :  { %v5323_v45 = vadd.f32 %v5322_v10, %v5321_v47  ;;  %v18625_v10 = vld [vmem:[#allocation31_spill] sm:$0xff] }
 0x62b   :  { %v5171_v18 = vsub.f32 %v18625_v10, %v14872_v31  ;;  %v5334_v19 = vsel %vm4996_vm4, %v5233_v39, 0.0 }
 0x62c   :  { %v5325_v1 = vadd.f32 %v5324_v15, %v5323_v45  ;;  %v5234_v15 = vmul.f32 %v5170_v58, %v5170_v58  ;;  %v5175_v58 = vsub.f32 %v14700_v9, %v14872_v31 }
 0x62e   :  { %v5327_v38 = vadd.f32 %v5326_v17, %v5325_v1  ;;  %v5235_v17 = vmul.f32 %v5171_v18, %v5171_v18  ;;  %v5336_v56 = vsel %vm4996_vm4, %v5234_v15, 0.0  ;;  %v5176_v18 = vsub.f32 %v14713_v13, %v14872_v31 }
 0x630   :  { %v5329_v47 = vadd.f32 %v5328_v2, %v5327_v38  ;;  %v5236_v2 = vmul.f32 %v5172_v23, %v5172_v23  ;;  %v5338_v29 = vsel %vm4996_vm4, %v5235_v17, 0.0  ;;  %v5177_v23 = vsub.f32 %v14721_v33, %v14872_v31 }
 0x632   :  { %v5331_v45 = vadd.f32 %v5330_v11, %v5329_v47  ;;  %v5237_v11 = vmul.f32 %v5173_v20, %v5173_v20  ;;  %v5340_v39 = vsel %vm4996_vm4, %v5236_v2, 0.0  ;;  %v5178_v20 = vsub.f32 %v14738_v27, %v14872_v31 }
 0x634   :  { %v5333_v1 = vadd.f32 %v5332_v3, %v5331_v45  ;;  %v5238_v3 = vmul.f32 %v5174_v35, %v5174_v35  ;;  %v5342_v15 = vsel %vm4996_vm4, %v5237_v11, 0.0  ;;  %v5179_v35 = vsub.f32 %v14747_v42, %v14872_v31 }
 0x636   :  { %v5335_v38 = vadd.f32 %v5334_v19, %v5333_v1  ;;  %v5239_v19 = vmul.f32 %v5175_v58, %v5175_v58  ;;  %v5344_v17 = vsel %vm4996_vm4, %v5238_v3, 0.0  ;;  %v5180_v58 = vsub.f32 %v14758_v32, %v14872_v31 }
 0x638   :  { %v5337_v47 = vadd.f32 %v5336_v56, %v5335_v38  ;;  %v5240_v56 = vmul.f32 %v5176_v18, %v5176_v18  ;;  %v5346_v2 = vsel %vm4996_vm4, %v5239_v19, 0.0  ;;  %v5181_v18 = vsub.f32 %v14770_v6, %v14872_v31 }
 0x63a   :  { %v5339_v45 = vadd.f32 %v5338_v29, %v5337_v47  ;;  %v5241_v29 = vmul.f32 %v5177_v23, %v5177_v23  ;;  %v5348_v11 = vsel %vm4996_vm4, %v5240_v56, 0.0  ;;  %v5182_v23 = vsub.f32 %v14780_v44, %v14872_v31 }
 0x63c   :  { %v5341_v1 = vadd.f32 %v5340_v39, %v5339_v45  ;;  %v5242_v39 = vmul.f32 %v5178_v20, %v5178_v20  ;;  %v5350_v3 = vsel %vm4996_vm4, %v5241_v29, 0.0  ;;  %v5183_v20 = vsub.f32 %v14790_v57, %v14872_v31 }
 0x63e   :  { %v5343_v38 = vadd.f32 %v5342_v15, %v5341_v1  ;;  %v5243_v15 = vmul.f32 %v5179_v35, %v5179_v35  ;;  %v5352_v19 = vsel %vm4996_vm4, %v5242_v39, 0.0  ;;  %v5184_v35 = vsub.f32 %v14797_v8, %v14872_v31 }
 0x640   :  { %v5345_v47 = vadd.f32 %v5344_v17, %v5343_v38  ;;  %v5244_v17 = vmul.f32 %v5180_v58, %v5180_v58  ;;  %v5354_v56 = vsel %vm4996_vm4, %v5243_v15, 0.0  ;;  %v5185_v58 = vsub.f32 %v14810_v40, %v14872_v31 }
 0x642   :  { %v5347_v45 = vadd.f32 %v5346_v2, %v5345_v47  ;;  %v5245_v2 = vmul.f32 %v5181_v18, %v5181_v18  ;;  %v5356_v29 = vsel %vm4996_vm4, %v5244_v17, 0.0  ;;  %v5186_v18 = vsub.f32 %v14818_v46, %v14872_v31 }
 0x644   :  { %v5349_v1 = vadd.f32 %v5348_v11, %v5347_v45  ;;  %v5246_v11 = vmul.f32 %v5182_v23, %v5182_v23  ;;  %v5358_v39 = vsel %vm4996_vm4, %v5245_v2, 0.0  ;;  %v5187_v23 = vsub.f32 %v14823_v51, %v14872_v31 }
 0x646   :  { %v5351_v38 = vadd.f32 %v5350_v3, %v5349_v1  ;;  %v5247_v3 = vmul.f32 %v5183_v20, %v5183_v20  ;;  %v5360_v15 = vsel %vm4996_vm4, %v5246_v11, 0.0  ;;  %v5188_v20 = vsub.f32 %v14833_v16, %v14872_v31 }
 0x648   :  { %v5353_v47 = vadd.f32 %v5352_v19, %v5351_v38  ;;  %v5248_v19 = vmul.f32 %v5184_v35, %v5184_v35  ;;  %v5362_v17 = vsel %vm4996_vm4, %v5247_v3, 0.0  ;;  %v5189_v35 = vsub.f32 %v14839_v49, %v14872_v31 }
 0x64a   :  { %v5355_v45 = vadd.f32 %v5354_v56, %v5353_v47  ;;  %v5249_v56 = vmul.f32 %v5185_v58, %v5185_v58  ;;  %v5364_v2 = vsel %vm4996_vm4, %v5248_v19, 0.0  ;;  %v5190_v58 = vsub.f32 %v14845_v63, %v14872_v31 }
 0x64c   :  { %v5357_v1 = vadd.f32 %v5356_v29, %v5355_v45  ;;  %v5250_v29 = vmul.f32 %v5186_v18, %v5186_v18  ;;  %v5366_v11 = vsel %vm4996_vm4, %v5249_v56, 0.0  ;;  %v5191_v18 = vsub.f32 %v14851_v30, %v14872_v31 }
 0x64e   :  { %v5359_v38 = vadd.f32 %v5358_v39, %v5357_v1  ;;  %v5251_v39 = vmul.f32 %v5187_v23, %v5187_v23  ;;  %v5368_v3 = vsel %vm4996_vm4, %v5250_v29, 0.0  ;;  %v5192_v23 = vsub.f32 %v14856_v59, %v14872_v31 }
 0x650   :  { %v5361_v47 = vadd.f32 %v5360_v15, %v5359_v38  ;;  %v5252_v15 = vmul.f32 %v5188_v20, %v5188_v20  ;;  %v5370_v19 = vsel %vm4996_vm4, %v5251_v39, 0.0  ;;  %v5193_v20 = vsub.f32 %v14861_v4, %v14872_v31 }
 0x652   :  { %v5363_v45 = vadd.f32 %v5362_v17, %v5361_v47  ;;  %v5253_v17 = vmul.f32 %v5189_v35, %v5189_v35  ;;  %v5372_v56 = vsel %vm4996_vm4, %v5252_v15, 0.0  ;;  %v5194_v35 = vsub.f32 %v14866_v0, %v14872_v31 }
 0x654   :  { %v5365_v1 = vadd.f32 %v5364_v2, %v5363_v45  ;;  %v5254_v2 = vmul.f32 %v5190_v58, %v5190_v58  ;;  %v5374_v29 = vsel %vm4996_vm4, %v5253_v17, 0.0  ;;  %v5258_v15 = vmul.f32 %v5194_v35, %v5194_v35 }
 0x656   :  { %v5367_v38 = vadd.f32 %v5366_v11, %v5365_v1  ;;  %v5255_v11 = vmul.f32 %v5191_v18, %v5191_v18  ;;  %v5376_v39 = vsel %vm4996_vm4, %v5254_v2, 0.0  ;;  %v5384_v17 = vsel %vm4996_vm4, %v5258_v15, 0.0 }
 0x658   :  { %v5369_v47 = vadd.f32 %v5368_v3, %v5367_v38  ;;  %v5256_v3 = vmul.f32 %v5192_v23, %v5192_v23  ;;  %v5378_v58 = vsel %vm4996_vm4, %v5255_v11, 0.0  ;;  %v5823_v11 = vld [vmem:[%s18078_s5] sm:$0xff] }
 0x659   :  { %6498 = vmatpush.msrb.mxu2 %v5823_v11 }
 0x65a   :  { %v5371_v45 = vadd.f32 %v5370_v19, %v5369_v47  ;;  %v5257_v19 = vmul.f32 %v5193_v20, %v5193_v20 }
 0x65c   :  { %v5373_v1 = vadd.f32 %v5372_v56, %v5371_v45  ;;  %v5380_v45 = vsel %vm4996_vm4, %v5256_v3, 0.0  ;;  %v5382_v18 = vsel %vm4996_vm4, %v5257_v19, 0.0 }
 0x65e   :  { %v5375_v38 = vadd.f32 %v5374_v29, %v5373_v1 }
 0x660   :  { %v5377_v47 = vadd.f32 %v5376_v39, %v5375_v38 }
 0x662   :  { %v5379_v59 = vadd.f32 %v5378_v58, %v5377_v47 }
 0x664   :  { %v5381_v56 = vadd.f32 %v5380_v45, %v5379_v59  ;;  %v18626_v45 = vmov 0.0  }
 0x665   :  { %5622 = vst.msk [vmem:[#allocation3] sm:$0x1] %vm5621_vm8, %v18626_v45 }
 0x666   :  { %v5383_v4 = vadd.f32 %v5382_v18, %v5381_v56  ;;  %v5406_v56 = vld [vmem:[%s18080_s4] sm:$0x1]  ;;  %5623 = vst.msk [vmem:[#allocation3 + $0x18] sm:$0x1] %vm5621_vm8, %v18626_v45 }
 0x667   :  { %5624 = vst.msk [vmem:[#allocation3 + $0x30] sm:$0x1] %vm5621_vm8, %v18626_v45 }
 0x668   :  { %v5385_v1 = vadd.f32 %v5384_v17, %v5383_v4  ;;  %v11878_v4 = vld [vmem:[%s18078_s5 + $0x10] sm:$0xff]  ;;  %5625 = vst.msk [vmem:[#allocation3 + $0x48] sm:$0x1] %vm5621_vm8, %v18626_v45 }
 0x669   :  { %6965 = vmatpush.msrb.mxu3 %v11878_v4  ;;  %5626 = vst.msk [vmem:[#allocation3 + $0x60] sm:$0x1] %vm5621_vm8, %v18626_v45  ;;  %v18630_v4 = vld [vmem:[#allocation85_spill] sm:$0xff] }
 0x66a   :  { %v5386_v29 = vrot.slane %v5385_v1, 4  ;;  %5627 = vst.msk [vmem:[#allocation3 + $0x78] sm:$0x1] %vm5621_vm8, %v18626_v45 }
 0x66b   :  { %5628 = vst.msk [vmem:[#allocation3 + $0x90] sm:$0x1] %vm5621_vm8, %v18626_v45 }
 0x66c   :  { %v5387_v30 = vadd.f32 %v5386_v29, %v5385_v1  ;;  %5629 = vst.msk [vmem:[#allocation3 + $0xa8] sm:$0x1] %vm5621_vm8, %v18626_v45 }
 0x66d   :  { %5630 = vst.msk [vmem:[#allocation3 + $0xc0] sm:$0x1] %vm5621_vm8, %v18626_v45 }
 0x66e   :  { %v5388_v23 = vrot.slane %v5387_v30, 2  ;;  %5631 = vst.msk [vmem:[#allocation3 + $0xd8] sm:$0x1] %vm5621_vm8, %v18626_v45 }
 0x66f   :  { %5632 = vst.msk [vmem:[#allocation3 + $0xf0] sm:$0x1] %vm5621_vm8, %v18626_v45 }
 0x670   :  { %v5389_v63 = vadd.f32 %v5388_v23, %v5387_v30  ;;  %5633 = vst.msk [vmem:[#allocation3 + $0x108] sm:$0x1] %vm5621_vm8, %v18626_v45 }
 0x671   :  { %5634 = vst.msk [vmem:[#allocation3 + $0x120] sm:$0x1] %vm5621_vm8, %v18626_v45 }
 0x672   :  { %v5390_v2 = vrot.slane %v5389_v63, 1  ;;  %5635 = vst.msk [vmem:[#allocation3 + $0x138] sm:$0x1] %vm5621_vm8, %v18626_v45 }
 0x673   :  { %5636 = vst.msk [vmem:[#allocation3 + $0x150] sm:$0x1] %vm5621_vm8, %v18626_v45 }
 0x674   :  { %v5391_v38 = vadd.f32 %v5390_v2, %v5389_v63  ;;  %v5393_v63 = vld [vmem:[%s18079_s3] sm:$0x1]  ;;  %5637 = vst.msk [vmem:[#allocation3 + $0x168] sm:$0x1] %vm5621_vm8, %v18626_v45 }
 0x675   :  { %5638 = vst.msk [vmem:[#allocation3 + $0x180] sm:$0x1] %vm5621_vm8, %v18626_v45 }
 0x676   :  { %v5392_v20 = vmul.f32 0.001953125, %v5391_v38  ;;  %5639 = vst.msk [vmem:[#allocation3 + $0x198] sm:$0x1] %vm5621_vm8, %v18626_v45 }
 0x677   :  { %5640 = vst.msk [vmem:[#allocation3 + $0x1b0] sm:$0x1] %vm5621_vm8, %v18626_v45 }
 0x678   :  { %v5394_v39 = vadd.f32 1e-05, %v5392_v20  ;;  %v5759_v20 = vld [vmem:[#allocation3] sm:$0xff]  ;;  %5641 = vst.msk [vmem:[#allocation3 + $0x1c8] sm:$0x1] %vm5621_vm8, %v18626_v45 }
 0x679   :  { %11814 = vmatmul.msk.f32.vlgmr.msrb.gmra.mxu2 %vm4996_vm4, %v5759_v20  ;;  %v18636_v20 = vld [vmem:[#allocation92_spill] sm:$0xff]  ;;  %5642 = vst.msk [vmem:[#allocation3 + $0x1e0] sm:$0x1] %vm5621_vm8, %v18626_v45 }
 0x67a   :  { %12338 = vrsqrt.f32 %v5394_v39  ;;  %vm5401_vm6 = vweird.f32 %v5394_v39  ;;  %5643 = vst.msk [vmem:[#allocation3 + $0x1f8] sm:$0x1] %vm5621_vm8, %v18626_v45 }
 0x67b   :  { %5644 = vst.msk [vmem:[#allocation3 + $0x210] sm:$0x1] %vm5621_vm8, %v18626_v45 }
 0x67c   :  { %5645 = vst.msk [vmem:[#allocation3 + $0x228] sm:$0x1] %vm5621_vm8, %v18626_v45 }
 0x67d   :  { %5646 = vst.msk [vmem:[#allocation3 + $0x240] sm:$0x1] %vm5621_vm8, %v18626_v45 }
 0x67e   :  { %5647 = vst.msk [vmem:[#allocation3 + $0x258] sm:$0x1] %vm5621_vm8, %v18626_v45 }
 0x67f   :  { %5648 = vst.msk [vmem:[#allocation3 + $0x270] sm:$0x1] %vm5621_vm8, %v18626_v45 }
 0x680   :  { %v12339_v59 = vpop.eup %12338  ;;  %5649 = vst.msk [vmem:[#allocation3 + $0x288] sm:$0x1] %vm5621_vm8, %v18626_v45 }
 0x681   :  { %v5396_v35 = vmul.f32 %v12339_v59, %v5394_v39  ;;  %vm5402_vm5 = vweird.f32 %v12339_v59  ;;  %5650 = vst.msk [vmem:[#allocation3 + $0x2a0] sm:$0x1] %vm5621_vm8, %v18626_v45 }
 0x682   :  { %vm5403_vm7 = vmor %vm5401_vm6, %vm5402_vm5  ;;  %5651 = vst.msk [vmem:[#allocation3 + $0x2b8] sm:$0x1] %vm5621_vm8, %v18626_v45 }
 0x683   :  { %v5397_v3 = vmul.f32 %v12339_v59, %v5396_v35  ;;  %v18628_v35 = vld [vmem:[#allocation83_spill] sm:$0xff]  ;;  %5652 = vst.msk [vmem:[#allocation3 + $0x2d0] sm:$0x1] %vm5621_vm8, %v18626_v45 }
 0x684   :  { %5653 = vst.msk [vmem:[#allocation3 + $0x2e8] sm:$0x1] %vm5621_vm8, %v18626_v45 }
 0x685   :  { %v5398_v47 = vmul.f32 0.5, %v5397_v3  ;;  %v18629_v3 = vld [vmem:[#allocation84_spill] sm:$0xff]  ;;  %5654 = vst.msk [vmem:[#allocation3 + $0x300] sm:$0x1] %vm5621_vm8, %v18626_v45 }
 0x686   :  { %5655 = vst.msk [vmem:[#allocation3 + $0x318] sm:$0x1] %vm5621_vm8, %v18626_v45 }
 0x687   :  { %v5399_v19 = vsub.f32 1.5, %v5398_v47  ;;  %5656 = vst.msk [vmem:[#allocation3 + $0x330] sm:$0x1] %vm5621_vm8, %v18626_v45 }
 0x688   :  { %5657 = vst.msk [vmem:[#allocation3 + $0x348] sm:$0x1] %vm5621_vm8, %v18626_v45 }
 0x689   :  { %v5400_v30 = vmul.f32 %v12339_v59, %v5399_v19  ;;  %v18631_v19 = vld [vmem:[#allocation86_spill] sm:$0xff]  ;;  %5659 = vst.msk [vmem:[#allocation3 + $0x29] sm:$0x1] %vm5621_vm8, %v18626_v45 }
 0x68a   :  { %5660 = vst.msk [vmem:[#allocation3 + $0x41] sm:$0x1] %vm5621_vm8, %v18626_v45 }
 0x68b   :  { %v5404_v58 = vsel %vm5403_vm7, %v12339_v59, %v5400_v30  ;;  %5661 = vst.msk [vmem:[#allocation3 + $0x59] sm:$0x1] %vm5621_vm8, %v18626_v45 }
 0x68c   :  { %v5405_v15 = vmul.f32 %v5404_v58, %v5393_v63  ;;  %v18632_v63 = vld [vmem:[#allocation87_spill] sm:$0xff]  ;;  %v18633_v58 = vld [vmem:[#allocation88_spill] sm:$0xff]  ;;  %5662 = vst.msk [vmem:[#allocation3 + $0x71] sm:$0x1] %vm5621_vm8, %v18626_v45 }
 0x68d   :  { %5663 = vst.msk [vmem:[#allocation3 + $0x89] sm:$0x1] %vm5621_vm8, %v18626_v45 }
 0x68e   :  { %v5407_v18 = vmul.f32 %v5405_v15, %v14872_v31  ;;  %v15083_v17 = vperm.slane %v5405_v15, 0  ;;  %5664 = vst.msk [vmem:[#allocation3 + $0xa1] sm:$0x1] %vm5621_vm8, %v18626_v45 }
 0x68f   :  { %5665 = vst.msk [vmem:[#allocation3 + $0xb9] sm:$0x1] %vm5621_vm8, %v18626_v45 }
 0x690   :  { %v5408_v1 = vsub.f32 %v5406_v56, %v5407_v18  ;;  %v5475_v29 = vmul.f32 %v15083_v17, %v14866_v0  ;;  %v15101_v31 = vmul.f32 %v15083_v17, %v18590_v50  ;;  %v15105_v2 = vmul.f32 %v15083_v17, %v18591_v34  ;;  %v18634_v56 = vld [vmem:[#allocation89_spill] sm:$0xff]  ;;  %5666 = vst.msk [vmem:[#allocation3 + $0xd1] sm:$0x1] %vm5621_vm8, %v18626_v45 }
 0x691   :  { %v15109_v38 = vmul.f32 %v15083_v17, %v18592_v14  ;;  %v15116_v39 = vmul.f32 %v15083_v17, %v18593_v48  ;;  %v15120_v50 = vmul.f32 %v15083_v17, %v18594_v7  ;;  %v15124_v34 = vmul.f32 %v15083_v17, %v18595_v26  ;;  %5667 = vst.msk [vmem:[#allocation3 + $0xe9] sm:$0x1] %vm5621_vm8, %v18626_v45 }
 0x692   :  { %v15095_v23 = vperm.slane %v5408_v1, 0  ;;  %v15129_v14 = vmul.f32 %v15083_v17, %v18596_v52  ;;  %v15133_v11 = vmul.f32 %v15083_v17, %v18597_v37  ;;  %v15137_v48 = vmul.f32 %v15083_v17, %v18598_v61  ;;  %v18635_v1 = vld [vmem:[#allocation91_spill] sm:$0xff]  ;;  %5668 = vst.msk [vmem:[#allocation3 + $0x101] sm:$0x1] %vm5621_vm8, %v18626_v45 }
 0x693   :  { %v15141_v7 = vmul.f32 %v15083_v17, %v18599_v41  ;;  %v15147_v52 = vmul.f32 %v15083_v17, %v18600_v60  ;;  %v15151_v37 = vmul.f32 %v15083_v17, %v18601_v43  ;;  %v15155_v61 = vmul.f32 %v15083_v17, %v18602_v36  ;;  %5669 = vst.msk [vmem:[#allocation3 + $0x119] sm:$0x1] %vm5621_vm8, %v18626_v45 }
 0x694   :  { %v5542_v0 = vadd.f32 %v15095_v23, %v5475_v29  ;;  %v15161_v41 = vmul.f32 %v15083_v17, %v18603_v24  ;;  %v15165_v59 = vmul.f32 %v15083_v17, %v18604_v25  ;;  %v15169_v60 = vmul.f32 %v15083_v17, %v18605_v62  ;;  %v18627_v25 = vld [vmem:[#allocation82_spill] sm:$0xff]  ;;  %5670 = vst.msk [vmem:[#allocation3 + $0x131] sm:$0x1] %vm5621_vm8, %v18626_v45 }
 0x695   :  { %v15173_v43 = vmul.f32 %v15083_v17, %v18606_v54  ;;  %v15180_v36 = vmul.f32 %v15083_v17, %v18607_v28  ;;  %v15184_v24 = vmul.f32 %v15083_v17, %v18608_v55  ;;  %v15188_v62 = vmul.f32 %v15083_v17, %v18627_v25  ;;  %5671 = vst.msk [vmem:[#allocation3 + $0x149] sm:$0x1] %vm5621_vm8, %v18626_v45 }
 0x696   :  { %v5606_v26 = vmax.f32 %v5542_v0, 0.0  ;;  %v15192_v54 = vmul.f32 %v15083_v17, %v18628_v35  ;;  %v15196_v47 = vmul.f32 %v15083_v17, %v18629_v3  ;;  %v15200_v28 = vmul.f32 %v15083_v17, %v18630_v4  ;;  %v18638_v35 = vld [vmem:[#allocation94_spill] sm:$0xff]  ;;  %v18639_v4 = vld [vmem:[#allocation95_spill] sm:$0xff]  ;;  %5672 = vst.msk [vmem:[#allocation3 + $0x161] sm:$0x1] %vm5621_vm8, %v18626_v45 }
 0x697   :  { %v15204_v55 = vmul.f32 %v15083_v17, %v18631_v19  ;;  %v15208_v30 = vmul.f32 %v15083_v17, %v18632_v63  ;;  %v15214_v15 = vmul.f32 %v15083_v17, %v18633_v58  ;;  %v15218_v18 = vmul.f32 %v15083_v17, %v18634_v56  ;;  %v18640_v63 = vld [vmem:[#allocation19_spill] sm:$0xff]  ;;  %5673 = vst.msk [vmem:[#allocation3 + $0x179] sm:$0x1] %vm5621_vm8, %v18626_v45 }
 0x698   :  { %5758 = vst.msk [vmem:[#allocation3 + $0x339] sm:$0xff] %vm4996_vm4, %v5606_v26  ;;  %v15222_v29 = vmul.f32 %v15083_v17, %v18635_v1  ;;  %v15226_v0 = vmul.f32 %v15083_v17, %v18636_v20  ;;  %v18637_v26 = vld [vmem:[#allocation93_spill] sm:$0xff]  ;;  %v15236_v3 = vmul.f32 %v15083_v17, %v18638_v35  ;;  %v15240_v19 = vmul.f32 %v15083_v17, %v18639_v4 }
 0x699   :  { %v15232_v25 = vmul.f32 %v15083_v17, %v18637_v26  ;;  %v15244_v58 = vmul.f32 %v15083_v17, %v18640_v63  ;;  %v15250_v56 = vmul.f32 %v15083_v17, %v18623_v21  ;;  %v15254_v1 = vmul.f32 %v15083_v17, %v18624_v12  ;;  %5674 = vst.msk [vmem:[#allocation3 + $0x191] sm:$0x1] %vm5621_vm8, %v18626_v45 }
 0x69a   :  { %v15258_v20 = vmul.f32 %v15083_v17, %v18625_v10  ;;  %v15262_v26 = vmul.f32 %v15083_v17, %v14666_v5  ;;  %v15268_v35 = vmul.f32 %v15083_v17, %v14680_v53  ;;  %v15272_v21 = vmul.f32 %v15083_v17, %v14687_v22  ;;  %5677 = vst.msk [vmem:[#allocation3 + $0x1d9] sm:$0x1] %vm5621_vm8, %v18626_v45 }
 0x69b   :  { %v15276_v12 = vmul.f32 %v15083_v17, %v14700_v9  ;;  %v15280_v10 = vmul.f32 %v15083_v17, %v14713_v13  ;;  %v15286_v5 = vmul.f32 %v15083_v17, %v14721_v33  ;;  %v15290_v53 = vmul.f32 %v15083_v17, %v14738_v27  ;;  %5678 = vst.msk [vmem:[#allocation3 + $0x1f1] sm:$0x1] %vm5621_vm8, %v18626_v45 }
 0x69c   :  { %v15294_v22 = vmul.f32 %v15083_v17, %v14747_v42  ;;  %v15298_v9 = vmul.f32 %v15083_v17, %v14758_v32  ;;  %v15304_v13 = vmul.f32 %v15083_v17, %v14770_v6  ;;  %v15308_v33 = vmul.f32 %v15083_v17, %v14780_v44  ;;  %5679 = vst.msk [vmem:[#allocation3 + $0x209] sm:$0x1] %vm5621_vm8, %v18626_v45 }
 0x69d   :  { %v15312_v27 = vmul.f32 %v15083_v17, %v14790_v57  ;;  %v15316_v42 = vmul.f32 %v15083_v17, %v14797_v8  ;;  %v15322_v32 = vmul.f32 %v15083_v17, %v14810_v40  ;;  %v15326_v6 = vmul.f32 %v15083_v17, %v14818_v46  ;;  %v18643_v40 = vld [vmem:[#allocation51_spill] sm:$0xff]  ;;  %5680 = vst.msk [vmem:[#allocation3 + $0x221] sm:$0x1] %vm5621_vm8, %v18626_v45 }
 0x69e   :  { %v15330_v44 = vmul.f32 %v15083_v17, %v14823_v51  ;;  %v15334_v57 = vmul.f32 %v15083_v17, %v14833_v16  ;;  %v15340_v8 = vmul.f32 %v15083_v17, %v14839_v49  ;;  %v15344_v4 = vmul.f32 %v15083_v17, %v18643_v40  ;;  %v18644_v46 = vld [vmem:[#allocation11_spill] sm:$0xff]  ;;  %v18645_v51 = vld [vmem:[#allocation36_spill] sm:$0xff]  ;;  %v18646_v16 = vld [vmem:[#allocation53_spill] sm:$0xff]  ;;  %5681 = vst.msk [vmem:[#allocation3 + $0x239] sm:$0x1] %vm5621_vm8, %v18626_v45 }
 0x69f   :  { %v15348_v63 = vmul.f32 %v15083_v17, %v18644_v46  ;;  %v15362_v49 = vadd.f32 %v15095_v23, %v15101_v31  ;;  %v15366_v40 = vadd.f32 %v15095_v23, %v15105_v2  ;;  %v15370_v46 = vadd.f32 %v15095_v23, %v15109_v38  ;;  %5682 = vst.msk [vmem:[#allocation3 + $0x251] sm:$0x1] %vm5621_vm8, %v18626_v45 }
 0x6a0   :  { %18641 = vst [vmem:[#allocation32_spill] sm:$0xff] %v15330_v44  ;;  %v15352_v44 = vmul.f32 %v15083_v17, %v18645_v51  ;;  %v15376_v51 = vadd.f32 %v15095_v23, %v15116_v39  ;;  %v15384_v31 = vadd.f32 %v15095_v23, %v15124_v34  ;;  %v15388_v2 = vadd.f32 %v15095_v23, %v15129_v14 }
 0x6a1   :  { %18642 = vst [vmem:[#allocation49_spill] sm:$0xff] %v15334_v57  ;;  %v15358_v57 = vmul.f32 %v15083_v17, %v18646_v16  ;;  %v15380_v16 = vadd.f32 %v15095_v23, %v15120_v50  ;;  %v15394_v38 = vadd.f32 %v15095_v23, %v15133_v11  ;;  %v15398_v39 = vadd.f32 %v15095_v23, %v15137_v48 }
 0x6a2   :  { %v15402_v50 = vadd.f32 %v15095_v23, %v15141_v7  ;;  %v15406_v34 = vadd.f32 %v15095_v23, %v15147_v52  ;;  %v15412_v14 = vadd.f32 %v15095_v23, %v15151_v37  ;;  %v15416_v11 = vadd.f32 %v15095_v23, %v15155_v61  ;;  %5683 = vst.msk [vmem:[#allocation3 + $0x269] sm:$0x1] %vm5621_vm8, %v18626_v45 }
 0x6a3   :  { %v15420_v48 = vadd.f32 %v15095_v23, %v15161_v41  ;;  %v15424_v7 = vadd.f32 %v15095_v23, %v15165_v59  ;;  %v15430_v52 = vadd.f32 %v15095_v23, %v15169_v60  ;;  %v15434_v37 = vadd.f32 %v15095_v23, %v15173_v43  ;;  %5684 = vst.msk [vmem:[#allocation3 + $0x281] sm:$0x1] %vm5621_vm8, %v18626_v45 }
 0x6a4   :  { %v15438_v61 = vadd.f32 %v15095_v23, %v15180_v36  ;;  %v15442_v41 = vadd.f32 %v15095_v23, %v15184_v24  ;;  %v15448_v59 = vadd.f32 %v15095_v23, %v15188_v62  ;;  %v15452_v60 = vadd.f32 %v15095_v23, %v15192_v54  ;;  %5685 = vst.msk [vmem:[#allocation3 + $0x299] sm:$0x1] %vm5621_vm8, %v18626_v45 }
 0x6a5   :  { %v15456_v43 = vadd.f32 %v15095_v23, %v15196_v47  ;;  %v15460_v36 = vadd.f32 %v15095_v23, %v15200_v28  ;;  %v15466_v24 = vadd.f32 %v15095_v23, %v15204_v55  ;;  %v15470_v62 = vadd.f32 %v15095_v23, %v15208_v30  ;;  %5686 = vst.msk [vmem:[#allocation3 + $0x2b1] sm:$0x1] %vm5621_vm8, %v18626_v45 }
 0x6a6   :  { %v15474_v54 = vadd.f32 %v15095_v23, %v15214_v15  ;;  %v15478_v47 = vadd.f32 %v15095_v23, %v15218_v18  ;;  %v15484_v28 = vadd.f32 %v15095_v23, %v15222_v29  ;;  %v15488_v55 = vadd.f32 %v15095_v23, %v15226_v0  ;;  %5687 = vst.msk [vmem:[#allocation3 + $0x2c9] sm:$0x1] %vm5621_vm8, %v18626_v45 }
 0x6a7   :  { %v15492_v30 = vadd.f32 %v15095_v23, %v15232_v25  ;;  %v15496_v15 = vadd.f32 %v15095_v23, %v15236_v3  ;;  %v15502_v18 = vadd.f32 %v15095_v23, %v15240_v19  ;;  %v15506_v29 = vadd.f32 %v15095_v23, %v15244_v58  ;;  %5688 = vst.msk [vmem:[#allocation3 + $0x2e1] sm:$0x1] %vm5621_vm8, %v18626_v45 }
 0x6a8   :  { %v15510_v0 = vadd.f32 %v15095_v23, %v15250_v56  ;;  %v15514_v25 = vadd.f32 %v15095_v23, %v15254_v1  ;;  %v15520_v3 = vadd.f32 %v15095_v23, %v15258_v20  ;;  %v15524_v19 = vadd.f32 %v15095_v23, %v15262_v26  ;;  %5689 = vst.msk [vmem:[#allocation3 + $0x2f9] sm:$0x1] %vm5621_vm8, %v18626_v45 }
 0x6a9   :  { %v15528_v58 = vadd.f32 %v15095_v23, %v15268_v35  ;;  %v15532_v56 = vadd.f32 %v15095_v23, %v15272_v21  ;;  %v15538_v1 = vadd.f32 %v15095_v23, %v15276_v12  ;;  %v15542_v20 = vadd.f32 %v15095_v23, %v15280_v10  ;;  %5690 = vst.msk [vmem:[#allocation3 + $0x311] sm:$0x1] %vm5621_vm8, %v18626_v45 }
 0x6aa   :  { %v15546_v26 = vadd.f32 %v15095_v23, %v15286_v5  ;;  %v15550_v35 = vadd.f32 %v15095_v23, %v15290_v53  ;;  %v15556_v21 = vadd.f32 %v15095_v23, %v15294_v22  ;;  %v15560_v12 = vadd.f32 %v15095_v23, %v15298_v9  ;;  %5691 = vst.msk [vmem:[#allocation3 + $0x329] sm:$0x1] %vm5621_vm8, %v18626_v45 }
 0x6ab   :  { %v15564_v10 = vadd.f32 %v15095_v23, %v15304_v13  ;;  %v15568_v5 = vadd.f32 %v15095_v23, %v15308_v33  ;;  %v15574_v53 = vadd.f32 %v15095_v23, %v15312_v27  ;;  %v15578_v22 = vadd.f32 %v15095_v23, %v15316_v42  ;;  %v18649_v33 = vld [vmem:[#allocation32_spill] sm:$0xff]  ;;  %v18650_v27 = vld [vmem:[#allocation49_spill] sm:$0xff]  ;;  %5692 = vst.msk [vmem:[#allocation3 + $0x341] sm:$0x1] %vm5621_vm8, %v18626_v45 }
 0x6ac   :  { %v15582_v9 = vadd.f32 %v15095_v23, %v15322_v32  ;;  %v15586_v13 = vadd.f32 %v15095_v23, %v15326_v6  ;;  %v15600_v42 = vadd.f32 %v15095_v23, %v15340_v8  ;;  %v15604_v32 = vadd.f32 %v15095_v23, %v15344_v4  ;;  %v18658_v8 = vld [vmem:[#allocation25_spill] sm:$0xff]  ;;  %5610 = vst.msk [vmem:[#allocation3 + $0x10] sm:$0x3] %vm5609_vm9, %v18626_v45 }
 0x6ad   :  { %18647 = vst [vmem:[#allocation58_spill] sm:$0xff] %v15568_v5  ;;  %v15592_v5 = vadd.f32 %v15095_v23, %v18649_v33  ;;  %v15610_v6 = vadd.f32 %v15095_v23, %v15348_v63  ;;  %v15614_v33 = vadd.f32 %v15095_v23, %v15352_v44  ;;  %v18657_v44 = vld [vmem:[#allocation40_spill] sm:$0xff]  ;;  %v5413_v4 = vmul.f32 %v15083_v17, %v18658_v8  ;;  %v18659_v63 = vld [vmem:[#allocation45_spill] sm:$0xff] }
 0x6ae   :  { %18648 = vst [vmem:[#allocation18_spill] sm:$0xff] %v15574_v53  ;;  %v15596_v53 = vadd.f32 %v15095_v23, %v18650_v27  ;;  %v15618_v27 = vadd.f32 %v15095_v23, %v15358_v57  ;;  %v5412_v57 = vmul.f32 %v15083_v17, %v18657_v44  ;;  %v18661_v8 = vld [vmem:[#allocation57_spill] sm:$0xff] }
 0x6af   :  { %18652 = vst [vmem:[#allocation76_spill] sm:$0xff] %v15600_v42  ;;  %v5416_v42 = vmul.f32 %v15083_v17, %v18661_v8  ;;  %v6692_v8 = vld [vmem:[#allocation3 + $0x2] sm:$0xff] }
 0x6b0   :  { %18651 = vst [vmem:[#allocation41_spill] sm:$0xff] %v15596_v53  ;;  %11879 = vmatmul.msk.f32.vlgmr.msrb.gmra.mxu3 %vm4996_vm4, %v6692_v8 }
 0x6b1   :  { %18653 = vst [vmem:[#allocation37_spill] sm:$0xff] %v15604_v32  ;;  %v5480_v32 = vadd.f32 %v15095_v23, %v5413_v4 }
 0x6b2   :  { %18654 = vst [vmem:[#allocation52_spill] sm:$0xff] %v15610_v6  ;;  %v18660_v6 = vld [vmem:[#allocation50_spill] sm:$0xff] }
 0x6b3   :  { %18655 = vst [vmem:[#allocation24_spill] sm:$0xff] %v15614_v33  ;;  %v5479_v33 = vadd.f32 %v15095_v23, %v5412_v57  ;;  %v5415_v44 = vmul.f32 %v15083_v17, %v18660_v6  ;;  %v5483_v6 = vadd.f32 %v15095_v23, %v5416_v42  ;;  %v5544_v4 = vmax.f32 %v5480_v32, 0.0 }
 0x6b4   :  { %18656 = vst [vmem:[#allocation47_spill] sm:$0xff] %v15618_v27  ;;  %v5414_v27 = vmul.f32 %v15083_v17, %v18659_v63  ;;  %v5549_v42 = vmax.f32 %v15366_v40, 0.0  ;;  %v5551_v32 = vmax.f32 %v15376_v51, 0.0  ;;  %v5554_v40 = vmax.f32 %v15388_v2, 0.0 }
 0x6b5   :  { %v5482_v57 = vadd.f32 %v15095_v23, %v5415_v44  ;;  %v5543_v63 = vmax.f32 %v5479_v33, 0.0  ;;  %v5547_v44 = vmax.f32 %v5483_v6, 0.0  ;;  %5696 = vst.msk [vmem:[#allocation3 + $0x21] sm:$0xff] %vm4996_vm4, %v5544_v4  ;;  %v5552_v33 = vmax.f32 %v15380_v16, 0.0 }
 0x6b6   :  { %v5481_v53 = vadd.f32 %v15095_v23, %v5414_v27  ;;  %v5548_v23 = vmax.f32 %v15362_v49, 0.0  ;;  %v5553_v49 = vmax.f32 %v15384_v31, 0.0  ;;  %5701 = vst.msk [vmem:[#allocation3 + $0x61] sm:$0xff] %vm4996_vm4, %v5549_v42  ;;  %v5556_v51 = vmax.f32 %v15398_v39, 0.0 }
 0x6b7   :  { %v5546_v27 = vmax.f32 %v5482_v57, 0.0  ;;  %5695 = vst.msk [vmem:[#allocation3 + $0x19] sm:$0xff] %vm4996_vm4, %v5543_v63  ;;  %v5557_v16 = vmax.f32 %v15402_v50, 0.0  ;;  %v5558_v31 = vmax.f32 %v15406_v34, 0.0  ;;  %v5559_v2 = vmax.f32 %v15412_v14, 0.0  ;;  %v18664_v42 = vld [vmem:[#allocation41_spill] sm:$0xff] }
 0x6b8   :  { %v5545_v17 = vmax.f32 %v5481_v53, 0.0  ;;  %v5550_v53 = vmax.f32 %v15370_v46, 0.0  ;;  %5699 = vst.msk [vmem:[#allocation3 + $0x49] sm:$0xff] %vm4996_vm4, %v5547_v44  ;;  %v5555_v46 = vmax.f32 %v15394_v38, 0.0  ;;  %v5560_v38 = vmax.f32 %v15416_v11, 0.0 }
 0x6b9   :  { %5698 = vst.msk [vmem:[#allocation3 + $0x39] sm:$0xff] %vm4996_vm4, %v5546_v27  ;;  %v5561_v39 = vmax.f32 %v15420_v48, 0.0  ;;  %v5562_v50 = vmax.f32 %v15424_v7, 0.0  ;;  %v5563_v34 = vmax.f32 %v15430_v52, 0.0  ;;  %v5564_v14 = vmax.f32 %v15434_v37, 0.0  ;;  %v5824_v37 = vld [vmem:[#allocation3 + $0x1] sm:$0xff] }
 0x6ba   :  { %5697 = vst.msk [vmem:[#allocation3 + $0x31] sm:$0xff] %vm4996_vm4, %v5545_v17  ;;  %v5565_v11 = vmax.f32 %v15438_v61, 0.0  ;;  %v5566_v48 = vmax.f32 %v15442_v41, 0.0  ;;  %v5567_v7 = vmax.f32 %v15448_v59, 0.0  ;;  %v5568_v52 = vmax.f32 %v15452_v60, 0.0  ;;  %11750 = vmatmul.msk.f32.vlgmr.msra.gmra.mxu1 %vm4996_vm4, %v5824_v37  ;;  %v5760_v41 = vld [vmem:[#allocation3 + $0x8] sm:$0xff] }
 0x6bb   :  { %5700 = vst.msk [vmem:[#allocation3 + $0x51] sm:$0xff] %vm4996_vm4, %v5548_v23  ;;  %v5569_v57 = vmax.f32 %v15456_v43, 0.0  ;;  %v5570_v61 = vmax.f32 %v15460_v36, 0.0  ;;  %v5571_v59 = vmax.f32 %v15466_v24, 0.0  ;;  %11815 = vmatmul.msk.f32.gmra.mxu2 %vm4996_vm4, %v5760_v41  ;;  %v5572_v60 = vmax.f32 %v15470_v62, 0.0  ;;  %v18662_v17 = vld [vmem:[#allocation58_spill] sm:$0xff] }
 0x6bc   :  { %5702 = vst.msk [vmem:[#allocation3 + $0x69] sm:$0xff] %vm4996_vm4, %v5550_v53  ;;  %v5573_v43 = vmax.f32 %v15474_v54, 0.0  ;;  %v5574_v6 = vmax.f32 %v15478_v47, 0.0  ;;  %v5575_v36 = vmax.f32 %v15484_v28, 0.0  ;;  %v5576_v24 = vmax.f32 %v15488_v55, 0.0  ;;  %v11943_v54 = vld [vmem:[%s18078_s5 + $0x18] sm:$0xff] }
 0x6bd   :  { %5703 = vst.msk [vmem:[#allocation3 + $0x79] sm:$0xff] %vm4996_vm4, %v5551_v32  ;;  %v5577_v62 = vmax.f32 %v15492_v30, 0.0  ;;  %v12008_v47 = vld [vmem:[%s18078_s5 + $0x20] sm:$0xff]  ;;  %v5578_v28 = vmax.f32 %v15496_v15, 0.0  ;;  %7496 = vmatpush.msrb.mxu0 %v11943_v54  ;;  %v5579_v55 = vmax.f32 %v15502_v18, 0.0  ;;  %v5580_v30 = vmax.f32 %v15506_v29, 0.0 }
 0x6be   :  { %5704 = vst.msk [vmem:[#allocation3 + $0x81] sm:$0xff] %vm4996_vm4, %v5552_v33  ;;  %8027 = vmatpush.msrb.mxu1 %v12008_v47  ;;  %v5581_v63 = vmax.f32 %v15510_v0, 0.0  ;;  %v5582_v4 = vmax.f32 %v15514_v25, 0.0  ;;  %v5583_v15 = vmax.f32 %v15520_v3, 0.0  ;;  %v5584_v18 = vmax.f32 %v15524_v19, 0.0  ;;  %v5761_v27 = vld [vmem:[#allocation3 + $0x18] sm:$0xff] }
 0x6bf   :  { %5705 = vst.msk [vmem:[#allocation3 + $0x91] sm:$0xff] %vm4996_vm4, %v5553_v49  ;;  %v5585_v29 = vmax.f32 %v15528_v58, 0.0  ;;  %v5586_v0 = vmax.f32 %v15532_v56, 0.0  ;;  %v5587_v25 = vmax.f32 %v15538_v1, 0.0  ;;  %v5588_v3 = vmax.f32 %v15542_v20, 0.0  ;;  %11944 = vmatmul.msk.f32.vlgmr.msrb.gmra.mxu0 %vm4996_vm4, %v5761_v27  ;;  %v18665_v32 = vld [vmem:[#allocation76_spill] sm:$0xff] }
 0x6c0   :  { %5706 = vst.msk [vmem:[#allocation3 + $0x99] sm:$0xff] %vm4996_vm4, %v5554_v40  ;;  %v5589_v19 = vmax.f32 %v15546_v26, 0.0  ;;  %v5590_v58 = vmax.f32 %v15550_v35, 0.0  ;;  %v5591_v56 = vmax.f32 %v15556_v21, 0.0  ;;  %v5592_v1 = vmax.f32 %v15560_v12, 0.0  ;;  %v18663_v35 = vld [vmem:[#allocation18_spill] sm:$0xff] }
 0x6c1   :  { %5707 = vst.msk [vmem:[#allocation3 + $0xa9] sm:$0xff] %vm4996_vm4, %v5555_v46  ;;  %v5593_v20 = vmax.f32 %v15564_v10, 0.0  ;;  %v5594_v26 = vmax.f32 %v18662_v17, 0.0  ;;  %v5595_v44 = vmax.f32 %v18663_v35, 0.0  ;;  %v5596_v21 = vmax.f32 %v15578_v22, 0.0  ;;  %v18666_v33 = vld [vmem:[#allocation37_spill] sm:$0xff] }
 0x6c2   :  { %5708 = vst.msk [vmem:[#allocation3 + $0xb1] sm:$0xff] %vm4996_vm4, %v5556_v51  ;;  %v5597_v12 = vmax.f32 %v15582_v9, 0.0  ;;  %v5598_v10 = vmax.f32 %v15586_v13, 0.0  ;;  %v5599_v23 = vmax.f32 %v15592_v5, 0.0  ;;  %v5600_v53 = vmax.f32 %v18664_v42, 0.0  ;;  %v5762_v49 = vld [vmem:[#allocation3 + $0x20] sm:$0xff] }
 0x6c3   :  { %5709 = vst.msk [vmem:[#allocation3 + $0xc1] sm:$0xff] %vm4996_vm4, %v5557_v16  ;;  %11816 = vmatmul.msk.f32.gmra.mxu2 %vm4996_vm4, %v5761_v27  ;;  %v5601_v22 = vmax.f32 %v18665_v32, 0.0  ;;  %v5602_v9 = vmax.f32 %v18666_v33, 0.0  ;;  %v18667_v13 = vld [vmem:[#allocation52_spill] sm:$0xff]  ;;  %v18669_v51 = vld [vmem:[#allocation47_spill] sm:$0xff]  ;;  %v5830_v41 = vld [vmem:[#allocation3 + $0x49] sm:$0xff] }
 0x6c4   :  { %5710 = vst.msk [vmem:[#allocation3 + $0xc9] sm:$0xff] %vm4996_vm4, %v5558_v31  ;;  %v5603_v40 = vmax.f32 %v18667_v13, 0.0  ;;  %v18668_v5 = vld [vmem:[#allocation24_spill] sm:$0xff]  ;;  %v5605_v16 = vmax.f32 %v18669_v51, 0.0  ;;  %v5763_v31 = vld [vmem:[#allocation3 + $0x30] sm:$0xff] }
 0x6c5   :  { %5711 = vst.msk [vmem:[#allocation3 + $0xd9] sm:$0xff] %vm4996_vm4, %v5559_v2  ;;  %v5604_v46 = vmax.f32 %v18668_v5, 0.0  ;;  %v5825_v2 = vld [vmem:[#allocation3 + $0x9] sm:$0xff]  ;;  %v5829_v37 = vld [vmem:[#allocation3 + $0x39] sm:$0xff] }
 0x6c6   :  { %5712 = vst.msk [vmem:[#allocation3 + $0xe1] sm:$0xff] %vm4996_vm4, %v5560_v38  ;;  %11751 = vmatmul.msk.f32.gmra.mxu1 %vm4996_vm4, %v5825_v2  ;;  %v6695_v8 = vld [vmem:[#allocation3 + $0x22] sm:$0xff]  ;;  %v5771_v54 = vld [vmem:[#allocation3 + $0x90] sm:$0xff] }
 0x6c7   :  { %5713 = vst.msk [vmem:[#allocation3 + $0xf1] sm:$0xff] %vm4996_vm4, %v5561_v39  ;;  %11945 = vmatmul.msk.f32.gmra.mxu0 %vm4996_vm4, %v5762_v49  ;;  %v5764_v39 = vld [vmem:[#allocation3 + $0x38] sm:$0xff]  ;;  %v5833_v47 = vld [vmem:[#allocation3 + $0x69] sm:$0xff] }
 0x6c8   :  { %5714 = vst.msk [vmem:[#allocation3 + $0xf9] sm:$0xff] %vm4996_vm4, %v5562_v50  ;;  %v5826_v50 = vld [vmem:[#allocation3 + $0x19] sm:$0xff] }
 0x6c9   :  { %5715 = vst.msk [vmem:[#allocation3 + $0x109] sm:$0xff] %vm4996_vm4, %v5563_v34  ;;  %v6694_v34 = vld [vmem:[#allocation3 + $0x1a] sm:$0xff]  ;;  %v6706_v27 = vld [vmem:[#allocation3 + $0xaa] sm:$0xff] }
 0x6ca   :  { %5716 = vst.msk [vmem:[#allocation3 + $0x111] sm:$0xff] %vm4996_vm4, %v5564_v14  ;;  %v5765_v14 = vld [vmem:[#allocation3 + $0x48] sm:$0xff] }
 0x6cb   :  { %5717 = vst.msk [vmem:[#allocation3 + $0x121] sm:$0xff] %vm4996_vm4, %v5565_v11  ;;  %11817 = vmatmul.msk.f32.gmra.mxu2 %vm4996_vm4, %v5762_v49  ;;  %v5766_v11 = vld [vmem:[#allocation3 + $0x50] sm:$0xff]  ;;  %v6708_v33 = vld [vmem:[#allocation3 + $0xc2] sm:$0xff] }
 0x6cc   :  { %5718 = vst.msk [vmem:[#allocation3 + $0x129] sm:$0xff] %vm4996_vm4, %v5566_v48  ;;  %v5828_v48 = vld [vmem:[#allocation3 + $0x31] sm:$0xff]  ;;  %v5841_v5 = vld [vmem:[#allocation3 + $0xc9] sm:$0xff] }
 0x6cd   :  { %5719 = vst.msk [vmem:[#allocation3 + $0x139] sm:$0xff] %vm4996_vm4, %v5567_v7  ;;  %v6696_v7 = vld [vmem:[#allocation3 + $0x32] sm:$0xff]  ;;  %v6709_v51 = vld [vmem:[#allocation3 + $0xca] sm:$0xff] }
 0x6ce   :  { %5720 = vst.msk [vmem:[#allocation3 + $0x141] sm:$0xff] %vm4996_vm4, %v5568_v52  ;;  %11752 = vmatmul.msk.f32.gmra.mxu1 %vm4996_vm4, %v5826_v50  ;;  %v5767_v52 = vld [vmem:[#allocation3 + $0x60] sm:$0xff]  ;;  %v5777_v35 = vld [vmem:[#allocation3 + $0xd8] sm:$0xff] }
 0x6cf   :  { %5721 = vst.msk [vmem:[#allocation3 + $0x151] sm:$0xff] %vm4996_vm4, %v5569_v57  ;;  %11946 = vmatmul.msk.f32.gmra.mxu0 %vm4996_vm4, %v5763_v31  ;;  %v6697_v57 = vld [vmem:[#allocation3 + $0x3a] sm:$0xff] }
 0x6d0   :  { %5722 = vst.msk [vmem:[#allocation3 + $0x159] sm:$0xff] %vm4996_vm4, %v5570_v61  ;;  %v5768_v61 = vld [vmem:[#allocation3 + $0x68] sm:$0xff] }
 0x6d1   :  { %5723 = vst.msk [vmem:[#allocation3 + $0x169] sm:$0xff] %vm4996_vm4, %v5571_v59  ;;  %v6698_v59 = vld [vmem:[#allocation3 + $0x4a] sm:$0xff] }
 0x6d2   :  { %5724 = vst.msk [vmem:[#allocation3 + $0x171] sm:$0xff] %vm4996_vm4, %v5572_v60  ;;  %v5769_v60 = vld [vmem:[#allocation3 + $0x78] sm:$0xff] }
 0x6d3   :  { %5725 = vst.msk [vmem:[#allocation3 + $0x181] sm:$0xff] %vm4996_vm4, %v5573_v43  ;;  %11818 = vmatmul.msk.f32.gmra.mxu2 %vm4996_vm4, %v5763_v31  ;;  %v5831_v43 = vld [vmem:[#allocation3 + $0x51] sm:$0xff] }
 0x6d4   :  { %5726 = vst.msk [vmem:[#allocation3 + $0x189] sm:$0xff] %vm4996_vm4, %v5574_v6  ;;  %v6699_v6 = vld [vmem:[#allocation3 + $0x52] sm:$0xff] }
 0x6d5   :  { %5727 = vst.msk [vmem:[#allocation3 + $0x1c9] sm:$0xff] %vm4996_vm4, %v5575_v36  ;;  %v5770_v36 = vld [vmem:[#allocation3 + $0x80] sm:$0xff] }
 0x6d6   :  { %5728 = vst.msk [vmem:[#allocation3 + $0x1d1] sm:$0xff] %vm4996_vm4, %v5576_v24  ;;  %v5832_v24 = vld [vmem:[#allocation3 + $0x61] sm:$0xff] }
 0x6d7   :  { %5729 = vst.msk [vmem:[#allocation3 + $0x1e1] sm:$0xff] %vm4996_vm4, %v5577_v62  ;;  %11947 = vmatmul.msk.f32.gmra.mxu0 %vm4996_vm4, %v5764_v39  ;;  %v6700_v62 = vld [vmem:[#allocation3 + $0x62] sm:$0xff] }
 0x6d8   :  { %5730 = vst.msk [vmem:[#allocation3 + $0x1e9] sm:$0xff] %vm4996_vm4, %v5578_v28  ;;  %v6701_v28 = vld [vmem:[#allocation3 + $0x6a] sm:$0xff] }
 0x6d9   :  { %5731 = vst.msk [vmem:[#allocation3 + $0x1f9] sm:$0xff] %vm4996_vm4, %v5579_v55  ;;  %v5772_v55 = vld [vmem:[#allocation3 + $0x98] sm:$0xff] }
 0x6da   :  { %5732 = vst.msk [vmem:[#allocation3 + $0x201] sm:$0xff] %vm4996_vm4, %v5580_v30  ;;  %v5834_v30 = vld [vmem:[#allocation3 + $0x79] sm:$0xff] }
 0x6db   :  { %5733 = vst.msk [vmem:[#allocation3 + $0x211] sm:$0xff] %vm4996_vm4, %v5581_v63  ;;  %11819 = vmatmul.msk.f32.gmra.mxu2 %vm4996_vm4, %v5764_v39  ;;  %v6702_v63 = vld [vmem:[#allocation3 + $0x7a] sm:$0xff] }
 0x6dc   :  { %5734 = vst.msk [vmem:[#allocation3 + $0x219] sm:$0xff] %vm4996_vm4, %v5582_v4  ;;  %v5773_v4 = vld [vmem:[#allocation3 + $0xa8] sm:$0xff] }
 0x6dd   :  { %5735 = vst.msk [vmem:[#allocation3 + $0x229] sm:$0xff] %vm4996_vm4, %v5583_v15  ;;  %v5835_v15 = vld [vmem:[#allocation3 + $0x81] sm:$0xff] }
 0x6de   :  { %5736 = vst.msk [vmem:[#allocation3 + $0x231] sm:$0xff] %vm4996_vm4, %v5584_v18  ;;  %v6703_v18 = vld [vmem:[#allocation3 + $0x82] sm:$0xff] }
 0x6df   :  { %5737 = vst.msk [vmem:[#allocation3 + $0x241] sm:$0xff] %vm4996_vm4, %v5585_v29  ;;  %11948 = vmatmul.msk.f32.gmra.mxu0 %vm4996_vm4, %v5765_v14  ;;  %v5774_v29 = vld [vmem:[#allocation3 + $0xb0] sm:$0xff] }
 0x6e0   :  { %5738 = vst.msk [vmem:[#allocation3 + $0x249] sm:$0xff] %vm4996_vm4, %v5586_v0  ;;  %v5836_v0 = vld [vmem:[#allocation3 + $0x91] sm:$0xff] }
 0x6e1   :  { %5739 = vst.msk [vmem:[#allocation3 + $0x259] sm:$0xff] %vm4996_vm4, %v5587_v25  ;;  %v6704_v25 = vld [vmem:[#allocation3 + $0x92] sm:$0xff] }
 0x6e2   :  { %5740 = vst.msk [vmem:[#allocation3 + $0x261] sm:$0xff] %vm4996_vm4, %v5588_v3  ;;  %v5775_v3 = vld [vmem:[#allocation3 + $0xc0] sm:$0xff] }
 0x6e3   :  { %5741 = vst.msk [vmem:[#allocation3 + $0x271] sm:$0xff] %vm4996_vm4, %v5589_v19  ;;  %11820 = vmatmul.msk.f32.gmra.mxu2 %vm4996_vm4, %v5765_v14 }
 0x6e4   :  { %5742 = vst.msk [vmem:[#allocation3 + $0x279] sm:$0xff] %vm4996_vm4, %v5590_v58  ;;  %v5837_v58 = vld [vmem:[#allocation3 + $0x99] sm:$0xff] }
 0x6e5   :  { %5743 = vst.msk [vmem:[#allocation3 + $0x289] sm:$0xff] %vm4996_vm4, %v5591_v56  ;;  %v6705_v56 = vld [vmem:[#allocation3 + $0x9a] sm:$0xff] }
 0x6e6   :  { %5744 = vst.msk [vmem:[#allocation3 + $0x291] sm:$0xff] %vm4996_vm4, %v5592_v1  ;;  %v5776_v1 = vld [vmem:[#allocation3 + $0xc8] sm:$0xff] }
 0x6e7   :  { %5745 = vst.msk [vmem:[#allocation3 + $0x2a1] sm:$0xff] %vm4996_vm4, %v5593_v20  ;;  %11949 = vmatmul.msk.f32.gmra.mxu0 %vm4996_vm4, %v5766_v11 }
 0x6e8   :  { %5746 = vst.msk [vmem:[#allocation3 + $0x2a9] sm:$0xff] %vm4996_vm4, %v5594_v26  ;;  %v5838_v26 = vld [vmem:[#allocation3 + $0xa9] sm:$0xff] }
 0x6e9   :  { %5747 = vst.msk [vmem:[#allocation3 + $0x2b9] sm:$0xff] %vm4996_vm4, %v5595_v44 }
 0x6ea   :  { %5748 = vst.msk [vmem:[#allocation3 + $0x2c1] sm:$0xff] %vm4996_vm4, %v5596_v21 }
 0x6eb   :  { %5749 = vst.msk [vmem:[#allocation3 + $0x2d1] sm:$0xff] %vm4996_vm4, %v5597_v12  ;;  %11821 = vmatmul.msk.f32.gmra.mxu2 %vm4996_vm4, %v5766_v11  ;;  %v5839_v12 = vld [vmem:[#allocation3 + $0xb1] sm:$0xff]  ;;  %v5781_v11 = vld [vmem:[#allocation3 + $0x108] sm:$0xff] }
 0x6ec   :  { %5750 = vst.msk [vmem:[#allocation3 + $0x2d9] sm:$0xff] %vm4996_vm4, %v5598_v10  ;;  %v6707_v10 = vld [vmem:[#allocation3 + $0xb2] sm:$0xff] }
 0x6ed   :  { %5751 = vst.msk [vmem:[#allocation3 + $0x2e9] sm:$0xff] %vm4996_vm4, %v5599_v23  ;;  %v5778_v23 = vld [vmem:[#allocation3 + $0xe0] sm:$0xff] }
 0x6ee   :  { %5752 = vst.msk [vmem:[#allocation3 + $0x2f1] sm:$0xff] %vm4996_vm4, %v5600_v53 }
 0x6ef   :  { %5753 = vst.msk [vmem:[#allocation3 + $0x301] sm:$0xff] %vm4996_vm4, %v5601_v22  ;;  %11950 = vmatmul.msk.f32.gmra.mxu0 %vm4996_vm4, %v5767_v52  ;;  %v5840_v22 = vld [vmem:[#allocation3 + $0xc1] sm:$0xff] }
 0x6f0   :  { %5754 = vst.msk [vmem:[#allocation3 + $0x309] sm:$0xff] %vm4996_vm4, %v5602_v9  ;;  %v5779_v9 = vld [vmem:[#allocation3 + $0xf0] sm:$0xff] }
 0x6f1   :  { %5755 = vst.msk [vmem:[#allocation3 + $0x319] sm:$0xff] %vm4996_vm4, %v5603_v40 }
 0x6f2   :  { %5756 = vst.msk [vmem:[#allocation3 + $0x321] sm:$0xff] %vm4996_vm4, %v5604_v46 }
 0x6f3   :  { %5757 = vst.msk [vmem:[#allocation3 + $0x331] sm:$0xff] %vm4996_vm4, %v5605_v16  ;;  %11822 = vmatmul.msk.f32.gmra.mxu2 %vm4996_vm4, %v5767_v52  ;;  %v5780_v16 = vld [vmem:[#allocation3 + $0xf8] sm:$0xff] }
 0x6f4   :  { %5658 = vst.msk [vmem:[#allocation3 + $0x11] sm:$0x1] %vm5621_vm8, %v18626_v45 }
 0x6f5   :  { %5613 = vst.msk [vmem:[#allocation3 + $0x1c0] sm:$0x3] %vm5609_vm9, %v18626_v45 }
 0x6f6   :  { %5617 = vst.msk [vmem:[#allocation3 + $0x1a8] sm:$0x3] %vm5609_vm9, %v18626_v45 }
 0x6f7   :  { %5620 = vst.msk [vmem:[#allocation3 + $0x358] sm:$0x3] %vm5609_vm9, %v18626_v45  ;;  %11951 = vmatmul.msk.f32.gmra.mxu0 %vm4996_vm4, %v5768_v61 }
 0x6f8   :  { %5675 = vst.msk [vmem:[#allocation3 + $0x1a9] sm:$0x1] %vm5621_vm8, %v18626_v45 }
 0x6f9   :  { %5676 = vst.msk [vmem:[#allocation3 + $0x1c1] sm:$0x1] %vm5621_vm8, %v18626_v45 }
 0x6fa   :  { %5693 = vst.msk [vmem:[#allocation3 + $0x359] sm:$0x1] %vm5621_vm8, %v18626_v45  ;;  %v5827_v45 = vld [vmem:[#allocation3 + $0x21] sm:$0xff] }
 0x6fb   :  { %v6693_v38 = vld [vmem:[#allocation3 + $0xa] sm:$0xff]  ;;  %11753 = vmatmul.msk.f32.gmra.mxu1 %vm4996_vm4, %v5827_v45  ;;  %11823 = vmatmul.msk.f32.gmra.mxu2 %vm4996_vm4, %v5768_v61  ;;  %v5843_v61 = vld [vmem:[#allocation3 + $0xe1] sm:$0xff] }
 0x6fc   :  { %11880 = vmatmul.msk.f32.gmra.mxu3 %vm4996_vm4, %v6693_v38  ;;  %v15898_v19 = vpop.f32.mrf.mxu2 }
 0x6ff   :  { %11952 = vmatmul.msk.f32.gmra.mxu0 %vm4996_vm4, %v5769_v60 }
 0x703   :  { %11754 = vmatmul.msk.f32.gmra.mxu1 %vm4996_vm4, %v5828_v48  ;;  %11824 = vmatmul.msk.f32.gmra.mxu2 %vm4996_vm4, %v5769_v60  ;;  %v6711_v60 = vld [vmem:[#allocation3 + $0xe2] sm:$0xff] }
 0x704   :  { %11881 = vmatmul.msk.f32.gmra.mxu3 %vm4996_vm4, %v6694_v34  ;;  %v5842_v34 = vld [vmem:[#allocation3 + $0xd9] sm:$0xff] }
 0x707   :  { %11953 = vmatmul.msk.f32.gmra.mxu0 %vm4996_vm4, %v5770_v36 }
 0x70b   :  { %11755 = vmatmul.msk.f32.gmra.mxu1 %vm4996_vm4, %v5829_v37  ;;  %11825 = vmatmul.msk.f32.gmra.mxu2 %vm4996_vm4, %v5770_v36 }
 0x70c   :  { %11882 = vmatmul.msk.f32.gmra.mxu3 %vm4996_vm4, %v6695_v8  ;;  %v6710_v8 = vld [vmem:[#allocation3 + $0xda] sm:$0xff] }
 0x70f   :  { %11954 = vmatmul.msk.f32.gmra.mxu0 %vm4996_vm4, %v5771_v54 }
 0x713   :  { %11756 = vmatmul.msk.f32.gmra.mxu1 %vm4996_vm4, %v5830_v41  ;;  %11826 = vmatmul.msk.f32.gmra.mxu2 %vm4996_vm4, %v5771_v54 }
 0x714   :  { %11883 = vmatmul.msk.f32.gmra.mxu3 %vm4996_vm4, %v6696_v7 }
 0x717   :  { %11955 = vmatmul.msk.f32.gmra.mxu0 %vm4996_vm4, %v5772_v55 }
 0x71b   :  { %11757 = vmatmul.msk.f32.gmra.mxu1 %vm4996_vm4, %v5831_v43  ;;  %11827 = vmatmul.msk.f32.gmra.mxu2 %vm4996_vm4, %v5772_v55  ;;  %v5782_v43 = vld [vmem:[#allocation3 + $0x110] sm:$0xff] }
 0x71c   :  { %11884 = vmatmul.msk.f32.gmra.mxu3 %vm4996_vm4, %v6697_v57 }
 0x71f   :  { %11956 = vmatmul.msk.f32.gmra.mxu0 %vm4996_vm4, %v5773_v4 }
 0x723   :  { %11758 = vmatmul.msk.f32.gmra.mxu1 %vm4996_vm4, %v5832_v24  ;;  %11828 = vmatmul.msk.f32.gmra.mxu2 %vm4996_vm4, %v5773_v4 }
 0x724   :  { %11885 = vmatmul.msk.f32.gmra.mxu3 %vm4996_vm4, %v6698_v59 }
 0x727   :  { %11957 = vmatmul.msk.f32.gmra.mxu0 %vm4996_vm4, %v5774_v29 }
 0x72b   :  { %11759 = vmatmul.msk.f32.gmra.mxu1 %vm4996_vm4, %v5833_v47  ;;  %11829 = vmatmul.msk.f32.gmra.mxu2 %vm4996_vm4, %v5774_v29  ;;  %v5844_v47 = vld [vmem:[#allocation3 + $0xf1] sm:$0xff] }
 0x72c   :  { %11886 = vmatmul.msk.f32.gmra.mxu3 %vm4996_vm4, %v6699_v6 }
 0x72f   :  { %11958 = vmatmul.msk.f32.gmra.mxu0 %vm4996_vm4, %v5775_v3 }
 0x733   :  { %11760 = vmatmul.msk.f32.gmra.mxu1 %vm4996_vm4, %v5834_v30  ;;  %11830 = vmatmul.msk.f32.gmra.mxu2 %vm4996_vm4, %v5775_v3  ;;  %v15920_v49 = vpop.f32.mrf.mxu3  ;;  %v6712_v30 = vld [vmem:[#allocation3 + $0xf2] sm:$0xff] }
 0x734   :  { %11887 = vmatmul.msk.f32.gmra.mxu3 %vm4996_vm4, %v6700_v62 }
 0x737   :  { %11959 = vmatmul.msk.f32.gmra.mxu0 %vm4996_vm4, %v5776_v1  ;;  %v15915_v42 = vpop.f32.mrf.mxu1 }
 0x73b   :  { %11761 = vmatmul.msk.f32.gmra.mxu1 %vm4996_vm4, %v5835_v15  ;;  %11831 = vmatmul.msk.f32.gmra.mxu2 %vm4996_vm4, %v5776_v1  ;;  %v5784_v1 = vld [vmem:[#allocation3 + $0x128] sm:$0xff] }
 0x73c   :  { %11888 = vmatmul.msk.f32.gmra.mxu3 %vm4996_vm4, %v6701_v28  ;;  %v15905_v17 = vpop.f32.mrf.mxu0 }
 0x73e   :  { %v6503_v20 = vpop.f32.mrf.mxu2 }
 0x73f   :  { %11960 = vmatmul.msk.f32.gmra.mxu0 %vm4996_vm4, %v5777_v35 }
 0x743   :  { %11762 = vmatmul.msk.f32.gmra.mxu1 %vm4996_vm4, %v5836_v0  ;;  %11832 = vmatmul.msk.f32.gmra.mxu2 %vm4996_vm4, %v5777_v35  ;;  %v6102_v40 = vpop.f32.mrf.mxu1 }
 0x744   :  { %11889 = vmatmul.msk.f32.gmra.mxu3 %vm4996_vm4, %v6702_v63  ;;  %v7501_v21 = vpop.f32.mrf.mxu0  ;;  %v6504_v31 = vadd.f32 %v6503_v20, %v6102_v40  ;;  %v5783_v63 = vld [vmem:[#allocation3 + $0x120] sm:$0xff]  ;;  %v5847_v40 = vld [vmem:[#allocation3 + $0x111] sm:$0xff] }
 0x746   :  { %v6506_v44 = vpop.f32.mrf.mxu2 }
 0x747   :  { %11961 = vmatmul.msk.f32.gmra.mxu0 %vm4996_vm4, %v5778_v23 }
 0x74b   :  { %11763 = vmatmul.msk.f32.gmra.mxu1 %vm4996_vm4, %v5837_v58  ;;  %11833 = vmatmul.msk.f32.gmra.mxu2 %vm4996_vm4, %v5778_v23  ;;  %v6105_v50 = vpop.f32.mrf.mxu1  ;;  %v6714_v23 = vld [vmem:[#allocation3 + $0x10a] sm:$0xff] }
 0x74c   :  { %11890 = vmatmul.msk.f32.gmra.mxu3 %vm4996_vm4, %v6703_v18  ;;  %v7504_v32 = vpop.f32.mrf.mxu0  ;;  %v6507_v48 = vadd.f32 %v6506_v44, %v6105_v50 }
 0x74e   :  { %v6509_v53 = vpop.f32.mrf.mxu2 }
 0x74f   :  { %11962 = vmatmul.msk.f32.gmra.mxu0 %vm4996_vm4, %v5779_v9 }
 0x753   :  { %11764 = vmatmul.msk.f32.gmra.mxu1 %vm4996_vm4, %v5838_v26  ;;  %11834 = vmatmul.msk.f32.gmra.mxu2 %vm4996_vm4, %v5779_v9 }
 0x754   :  { %11891 = vmatmul.msk.f32.gmra.mxu3 %vm4996_vm4, %v6704_v25  ;;  %v7507_v46 = vpop.f32.mrf.mxu0  ;;  %v5845_v25 = vld [vmem:[#allocation3 + $0xf9] sm:$0xff] }
 0x756   :  { %v6512_v13 = vpop.f32.mrf.mxu2 }
 0x757   :  { %11963 = vmatmul.msk.f32.gmra.mxu0 %vm4996_vm4, %v5780_v16 }
 0x75b   :  { %11765 = vmatmul.msk.f32.gmra.mxu1 %vm4996_vm4, %v5839_v12  ;;  %11835 = vmatmul.msk.f32.gmra.mxu2 %vm4996_vm4, %v5780_v16  ;;  %v5786_v16 = vld [vmem:[#allocation3 + $0x140] sm:$0xff] }
 0x75c   :  { %11892 = vmatmul.msk.f32.gmra.mxu3 %vm4996_vm4, %v6705_v56  ;;  %v7510_v45 = vpop.f32.mrf.mxu0  ;;  %v6713_v56 = vld [vmem:[#allocation3 + $0xfa] sm:$0xff] }
 0x75e   :  { %v6515_v38 = vpop.f32.mrf.mxu2 }
 0x75f   :  { %11964 = vmatmul.msk.f32.gmra.mxu0 %vm4996_vm4, %v5781_v11 }
 0x763   :  { %11766 = vmatmul.msk.f32.gmra.mxu1 %vm4996_vm4, %v5840_v22  ;;  %11836 = vmatmul.msk.f32.gmra.mxu2 %vm4996_vm4, %v5781_v11  ;;  %v6716_v11 = vld [vmem:[#allocation3 + $0x122] sm:$0xff] }
 0x764   :  { %11893 = vmatmul.msk.f32.gmra.mxu3 %vm4996_vm4, %v6706_v27  ;;  %v7513_v59 = vpop.f32.mrf.mxu0 }
 0x766   :  { %v6518_v52 = vpop.f32.mrf.mxu2 }
 0x767   :  { %11965 = vmatmul.msk.f32.gmra.mxu0 %vm4996_vm4, %v5782_v43 }
 0x76b   :  { %11767 = vmatmul.msk.f32.gmra.mxu1 %vm4996_vm4, %v5841_v5  ;;  %11837 = vmatmul.msk.f32.gmra.mxu2 %vm4996_vm4, %v5782_v43 }
 0x76c   :  { %11894 = vmatmul.msk.f32.gmra.mxu3 %vm4996_vm4, %v6707_v10  ;;  %v7516_v55 = vpop.f32.mrf.mxu0 }
 0x76e   :  { %v6521_v24 = vpop.f32.mrf.mxu2 }
 0x76f   :  { %11966 = vmatmul.msk.f32.gmra.mxu0 %vm4996_vm4, %v5783_v63 }
 0x773   :  { %11768 = vmatmul.msk.f32.gmra.mxu1 %vm4996_vm4, %v5842_v34  ;;  %11838 = vmatmul.msk.f32.gmra.mxu2 %vm4996_vm4, %v5783_v63  ;;  %v5848_v34 = vld [vmem:[#allocation3 + $0x121] sm:$0xff] }
 0x774   :  { %11895 = vmatmul.msk.f32.gmra.mxu3 %vm4996_vm4, %v6708_v33  ;;  %v7519_v58 = vpop.f32.mrf.mxu0 }
 0x776   :  { %v6524_v18 = vpop.f32.mrf.mxu2 }
 0x777   :  { %11967 = vmatmul.msk.f32.gmra.mxu0 %vm4996_vm4, %v5784_v1 }
 0x778   :  { %v6108_v57 = vpop.f32.mrf.mxu1 }
 0x779   :  { %v6510_v6 = vadd.f32 %v6509_v53, %v6108_v57  ;;  %v5785_v53 = vld [vmem:[#allocation3 + $0x138] sm:$0xff] }
 0x77b   :  { %11769 = vmatmul.msk.f32.gmra.mxu1 %vm4996_vm4, %v5843_v61  ;;  %11839 = vmatmul.msk.f32.gmra.mxu2 %vm4996_vm4, %v5784_v1  ;;  %v5851_v1 = vld [vmem:[#allocation3 + $0x141] sm:$0xff] }
 0x77c   :  { %11896 = vmatmul.msk.f32.gmra.mxu3 %vm4996_vm4, %v6709_v51  ;;  %v7522_v10 = vpop.f32.mrf.mxu0  ;;  %v6715_v51 = vld [vmem:[#allocation3 + $0x112] sm:$0xff] }
 0x77e   :  { %v6527_v27 = vpop.f32.mrf.mxu2 }
 0x77f   :  { %v6970_v2 = vpop.f32.mrf.mxu3  ;;  %11968 = vmatmul.msk.f32.gmra.mxu0 %vm4996_vm4, %v5785_v53 }
 0x780   :  { %v7160_v39 = vadd.f32 %v6970_v2, %v6504_v31  ;;  %v6111_v54 = vpop.f32.mrf.mxu1 }
 0x781   :  { %v6513_v4 = vadd.f32 %v6512_v13, %v6111_v54 }
 0x782   :  { %v15927_v14 = vadd.f32 %v7501_v21, %v7160_v39  ;;  %v5846_v21 = vld [vmem:[#allocation3 + $0x109] sm:$0xff] }
 0x783   :  { %11770 = vmatmul.msk.f32.gmra.mxu1 %vm4996_vm4, %v5844_v47  ;;  %11840 = vmatmul.msk.f32.gmra.mxu2 %vm4996_vm4, %v5785_v53 }
 0x784   :  { %11897 = vmatmul.msk.f32.gmra.mxu3 %vm4996_vm4, %v6710_v8 }
 0x786   :  { %v6530_v33 = vpop.f32.mrf.mxu2 }
 0x787   :  { %v6973_v7 = vpop.f32.mrf.mxu3  ;;  %11969 = vmatmul.msk.f32.gmra.mxu0 %vm4996_vm4, %v5786_v16 }
 0x788   :  { %v7161_v37 = vadd.f32 %v6973_v7, %v6507_v48  ;;  %v6114_v0 = vpop.f32.mrf.mxu1  ;;  %v5787_v48 = vld [vmem:[#allocation3 + $0x150] sm:$0xff] }
 0x789   :  { %v6516_v20 = vadd.f32 %v6515_v38, %v6114_v0 }
 0x78a   :  { %v15933_v41 = vadd.f32 %v7504_v32, %v7161_v37 }
 0x78b   :  { %11771 = vmatmul.msk.f32.gmra.mxu1 %vm4996_vm4, %v5845_v25  ;;  %11841 = vmatmul.msk.f32.gmra.mxu2 %vm4996_vm4, %v5786_v16 }
 0x78c   :  { %11898 = vmatmul.msk.f32.gmra.mxu3 %vm4996_vm4, %v6711_v60 }
 0x78e   :  { %v6533_v38 = vpop.f32.mrf.mxu2 }
 0x78f   :  { %v6976_v36 = vpop.f32.mrf.mxu3  ;;  %11970 = vmatmul.msk.f32.gmra.mxu0 %vm4996_vm4, %v5787_v48 }
 0x790   :  { %v7162_v62 = vadd.f32 %v6976_v36, %v6510_v6  ;;  %v6117_v44 = vpop.f32.mrf.mxu1  ;;  %v6717_v6 = vld [vmem:[#allocation3 + $0x12a] sm:$0xff]  ;;  %v5788_v36 = vld [vmem:[#allocation3 + $0x158] sm:$0xff] }
 0x791   :  { %v6519_v32 = vadd.f32 %v6518_v52, %v6117_v44 }
 0x792   :  { %v15939_v28 = vadd.f32 %v7507_v46, %v7162_v62  ;;  %v7525_v46 = vpop.f32.mrf.mxu0 }
 0x793   :  { %11772 = vmatmul.msk.f32.gmra.mxu1 %vm4996_vm4, %v5846_v21  ;;  %11842 = vmatmul.msk.f32.gmra.mxu2 %vm4996_vm4, %v5787_v48  ;;  %v7254_v48 = vld [vmem:[#allocation3 + $0x188] sm:$0xff] }
 0x794   :  { %11899 = vmatmul.msk.f32.gmra.mxu3 %vm4996_vm4, %v6712_v30  ;;  %v5850_v30 = vld [vmem:[#allocation3 + $0x139] sm:$0xff] }
 0x796   :  { %v6536_v37 = vpop.f32.mrf.mxu2 }
 0x797   :  { %v6979_v15 = vpop.f32.mrf.mxu3  ;;  %11971 = vmatmul.msk.f32.gmra.mxu0 %vm4996_vm4, %v5788_v36 }
 0x798   :  { %v7163_v29 = vadd.f32 %v6979_v15, %v6513_v4  ;;  %v6120_v13 = vpop.f32.mrf.mxu1  ;;  %v6718_v15 = vld [vmem:[#allocation3 + $0x13a] sm:$0xff] }
 0x799   :  { %v6522_v31 = vadd.f32 %v6521_v24, %v6120_v13  ;;  %v5791_v13 = vld [vmem:[#allocation3 + $0x1b0] sm:$0xff] }
 0x79a   :  { %v15945_v3 = vadd.f32 %v7510_v45, %v7163_v29  ;;  %v7528_v8 = vpop.f32.mrf.mxu0 }
 0x79b   :  { %11773 = vmatmul.msk.f32.gmra.mxu1 %vm4996_vm4, %v5847_v40  ;;  %11843 = vmatmul.msk.f32.gmra.mxu2 %vm4996_vm4, %v5788_v36  ;;  %v5793_v36 = vld [vmem:[#allocation3 + $0x1c8] sm:$0xff] }
 0x79c   :  { %11900 = vmatmul.msk.f32.gmra.mxu3 %vm4996_vm4, %v6713_v56 }
 0x79e   :  { %v6539_v54 = vpop.f32.mrf.mxu2 }
 0x79f   :  { %v6982_v26 = vpop.f32.mrf.mxu3 }
 0x7a0   :  { %v7164_v35 = vadd.f32 %v6982_v26, %v6516_v20  ;;  %v6123_v50 = vpop.f32.mrf.mxu1 }
 0x7a1   :  { %v6525_v7 = vadd.f32 %v6524_v18, %v6123_v50  ;;  %v5789_v18 = vld [vmem:[#allocation3 + $0x168] sm:$0xff] }
 0x7a2   :  { %v15951_v12 = vadd.f32 %v7513_v59, %v7164_v35  ;;  %v5849_v59 = vld [vmem:[#allocation3 + $0x129] sm:$0xff]  ;;  %v7531_v43 = vpop.f32.mrf.mxu0  ;;  %11972 = vmatmul.msk.f32.gmra.mxu0 %vm4996_vm4, %v5789_v18 }
 0x7a3   :  { %11774 = vmatmul.msk.f32.gmra.mxu1 %vm4996_vm4, %v5848_v34  ;;  %11844 = vmatmul.msk.f32.gmra.mxu2 %vm4996_vm4, %v5789_v18  ;;  %v5790_v35 = vld [vmem:[#allocation3 + $0x170] sm:$0xff]  ;;  %v6721_v34 = vld [vmem:[#allocation3 + $0x15a] sm:$0xff] }
 0x7a4   :  { %11901 = vmatmul.msk.f32.gmra.mxu3 %vm4996_vm4, %v6714_v23  ;;  %v6723_v18 = vld [vmem:[#allocation3 + $0x172] sm:$0xff] }
 0x7a6   :  { %v6542_v25 = vpop.f32.mrf.mxu2 }
 0x7a7   :  { %v6985_v22 = vpop.f32.mrf.mxu3 }
 0x7a8   :  { %v7165_v9 = vadd.f32 %v6985_v22, %v6519_v32  ;;  %v6126_v61 = vpop.f32.mrf.mxu1  ;;  %v5852_v32 = vld [vmem:[#allocation3 + $0x151] sm:$0xff] }
 0x7a9   :  { %v6528_v24 = vadd.f32 %v6527_v27, %v6126_v61  ;;  %v6719_v27 = vld [vmem:[#allocation3 + $0x142] sm:$0xff] }
 0x7aa   :  { %v15957_v5 = vadd.f32 %v7516_v55, %v7165_v9  ;;  %v7534_v4 = vpop.f32.mrf.mxu0  ;;  %11973 = vmatmul.msk.f32.gmra.mxu0 %vm4996_vm4, %v5790_v35  ;;  %v6720_v9 = vld [vmem:[#allocation3 + $0x152] sm:$0xff]  ;;  %v5854_v61 = vld [vmem:[#allocation3 + $0x169] sm:$0xff] }
 0x7ab   :  { %11775 = vmatmul.msk.f32.gmra.mxu1 %vm4996_vm4, %v5849_v59  ;;  %11845 = vmatmul.msk.f32.gmra.mxu2 %vm4996_vm4, %v5790_v35 }
 0x7ac   :  { %11902 = vmatmul.msk.f32.gmra.mxu3 %vm4996_vm4, %v6715_v51 }
 0x7af   :  { %v6988_v2 = vpop.f32.mrf.mxu3 }
 0x7b0   :  { %v7166_v39 = vadd.f32 %v6988_v2, %v6522_v31  ;;  %v6129_v55 = vpop.f32.mrf.mxu1 }
 0x7b1   :  { %v6531_v29 = vadd.f32 %v6530_v33, %v6129_v55 }
 0x7b2   :  { %v15963_v45 = vadd.f32 %v7519_v58, %v7166_v39  ;;  %v7537_v26 = vpop.f32.mrf.mxu0 }
 0x7b3   :  { %11776 = vmatmul.msk.f32.gmra.mxu1 %vm4996_vm4, %v5850_v30  ;;  %11846 = vmatmul.msk.f32.gmra.mxu2 %vm4996_vm4, %v5791_v13  ;;  %v5855_v30 = vld [vmem:[#allocation3 + $0x171] sm:$0xff]  ;;  %v6725_v13 = vld [vmem:[#allocation3 + $0x1ba] sm:$0xff] }
 0x7b4   :  { %11903 = vmatmul.msk.f32.gmra.mxu3 %vm4996_vm4, %v6716_v11 }
 0x7b7   :  { %v6991_v52 = vpop.f32.mrf.mxu3 }
 0x7b8   :  { %v7167_v57 = vadd.f32 %v6991_v52, %v6525_v7  ;;  %v6132_v56 = vpop.f32.mrf.mxu1 }
 0x7b9   :  { %v6534_v44 = vadd.f32 %v6533_v38, %v6132_v56  ;;  %v5853_v38 = vld [vmem:[#allocation3 + $0x159] sm:$0xff] }
 0x7ba   :  { %v15969_v60 = vadd.f32 %v7522_v10, %v7167_v57  ;;  %v6545_v10 = vpop.f32.mrf.mxu2  ;;  %v7540_v33 = vpop.f32.mrf.mxu0 }
 0x7bb   :  { %11777 = vmatmul.msk.f32.gmra.mxu1 %vm4996_vm4, %v5851_v1 }
 0x7bc   :  { %11904 = vmatmul.msk.f32.gmra.mxu3 %vm4996_vm4, %v6717_v6  ;;  %v6722_v6 = vld [vmem:[#allocation3 + $0x16a] sm:$0xff] }
 0x7bf   :  { %v6994_v62 = vpop.f32.mrf.mxu3 }
 0x7c0   :  { %v7168_v47 = vadd.f32 %v6994_v62, %v6528_v24  ;;  %v6135_v53 = vpop.f32.mrf.mxu1 }
 0x7c1   :  { %v6537_v40 = vadd.f32 %v6536_v37, %v6135_v53 }
 0x7c2   :  { %v15975_v63 = vadd.f32 %v7525_v46, %v7168_v47  ;;  %v7253_v46 = vld [vmem:[#allocation3 + $0x180] sm:$0xff]  ;;  %v6548_v16 = vpop.f32.mrf.mxu2  ;;  %v7543_v50 = vpop.f32.mrf.mxu0 }
 0x7c3   :  { %11778 = vmatmul.msk.f32.gmra.mxu1 %vm4996_vm4, %v5852_v32  ;;  %11974 = vmatmul.msk.f32.gmra.mxu0 %vm4996_vm4, %v7253_v46 }
 0x7c4   :  { %11905 = vmatmul.msk.f32.gmra.mxu3 %vm4996_vm4, %v6718_v15 }
 0x7c7   :  { %v6997_v0 = vpop.f32.mrf.mxu3 }
 0x7c8   :  { %v7169_v58 = vadd.f32 %v6997_v0, %v6531_v29  ;;  %v6138_v2 = vpop.f32.mrf.mxu1  ;;  %v5794_v29 = vld [vmem:[#allocation3 + $0x1d0] sm:$0xff] }
 0x7c9   :  { %v6540_v11 = vadd.f32 %v6539_v54, %v6138_v2 }
 0x7ca   :  { %v15981_v20 = vadd.f32 %v7528_v8, %v7169_v58  ;;  %v5792_v8 = vld [vmem:[#allocation3 + $0x1b8] sm:$0xff]  ;;  %v6551_v52 = vpop.f32.mrf.mxu2 }
 0x7cb   :  { %11779 = vmatmul.msk.f32.gmra.mxu1 %vm4996_vm4, %v5853_v38  ;;  %11847 = vmatmul.msk.f32.gmra.mxu2 %vm4996_vm4, %v5792_v8 }
 0x7cc   :  { %11906 = vmatmul.msk.f32.gmra.mxu3 %vm4996_vm4, %v6719_v27  ;;  %11975 = vmatmul.msk.f32.gmra.mxu0 %vm4996_vm4, %v7254_v48  ;;  %v6724_v27 = vld [vmem:[#allocation3 + $0x1b2] sm:$0xff]  ;;  %v6726_v48 = vld [vmem:[#allocation3 + $0x1ca] sm:$0xff] }
 0x7cf   :  { %v7000_v21 = vpop.f32.mrf.mxu3 }
 0x7d0   :  { %v7170_v23 = vadd.f32 %v7000_v21, %v6534_v44  ;;  %v6141_v57 = vpop.f32.mrf.mxu1  ;;  %v5795_v21 = vld [vmem:[#allocation3 + $0x1e0] sm:$0xff] }
 0x7d1   :  { %v6543_v24 = vadd.f32 %v6542_v25, %v6141_v57 }
 0x7d2   :  { %v15987_v22 = vadd.f32 %v7531_v43, %v7170_v23  ;;  %v7546_v43 = vpop.f32.mrf.mxu0  ;;  %v6554_v54 = vpop.f32.mrf.mxu2 }
 0x7d3   :  { %11780 = vmatmul.msk.f32.gmra.mxu1 %vm4996_vm4, %v5854_v61  ;;  %11848 = vmatmul.msk.f32.gmra.mxu2 %vm4996_vm4, %v5793_v36 }
 0x7d4   :  { %11907 = vmatmul.msk.f32.gmra.mxu3 %vm4996_vm4, %v6720_v9  ;;  %11976 = vmatmul.msk.f32.gmra.mxu0 %vm4996_vm4, %v5793_v36  ;;  %v5857_v9 = vld [vmem:[#allocation3 + $0x1b9] sm:$0xff] }
 0x7d7   :  { %v7003_v51 = vpop.f32.mrf.mxu3 }
 0x7d8   :  { %v7171_v31 = vadd.f32 %v7003_v51, %v6537_v40  ;;  %v6144_v55 = vpop.f32.mrf.mxu1  ;;  %v5796_v51 = vld [vmem:[#allocation3 + $0x1e8] sm:$0xff] }
 0x7d9   :  { %v6546_v0 = vadd.f32 %v6545_v10, %v6144_v55 }
 0x7da   :  { %v15993_v39 = vadd.f32 %v7534_v4, %v7171_v31  ;;  %v7549_v15 = vpop.f32.mrf.mxu0  ;;  %v6557_v58 = vpop.f32.mrf.mxu2 }
 0x7db   :  { %11781 = vmatmul.msk.f32.gmra.mxu1 %vm4996_vm4, %v5855_v30  ;;  %11849 = vmatmul.msk.f32.gmra.mxu2 %vm4996_vm4, %v5794_v29 }
 0x7dc   :  { %11908 = vmatmul.msk.f32.gmra.mxu3 %vm4996_vm4, %v6721_v34  ;;  %11977 = vmatmul.msk.f32.gmra.mxu0 %vm4996_vm4, %v5794_v29  ;;  %v5858_v34 = vld [vmem:[#allocation3 + $0x1c9] sm:$0xff]  ;;  %v5860_v29 = vld [vmem:[#allocation3 + $0x1e1] sm:$0xff] }
 0x7df   :  { %v7006_v7 = vpop.f32.mrf.mxu3 }
 0x7e0   :  { %v7172_v37 = vadd.f32 %v7006_v7, %v6540_v11  ;;  %v6147_v1 = vpop.f32.mrf.mxu1  ;;  %v5797_v7 = vld [vmem:[#allocation3 + $0x1f8] sm:$0xff] }
 0x7e1   :  { %v6549_v23 = vadd.f32 %v6548_v16, %v6147_v1  ;;  %v5799_v1 = vld [vmem:[#allocation3 + $0x210] sm:$0xff] }
 0x7e2   :  { %v15999_v59 = vadd.f32 %v7537_v26, %v7172_v37  ;;  %v5856_v26 = vld [vmem:[#allocation3 + $0x1b1] sm:$0xff]  ;;  %v7552_v44 = vpop.f32.mrf.mxu0  ;;  %v6560_v53 = vpop.f32.mrf.mxu2 }
 0x7e3   :  { %11782 = vmatmul.msk.f32.gmra.mxu1 %vm4996_vm4, %v5856_v26  ;;  %11850 = vmatmul.msk.f32.gmra.mxu2 %vm4996_vm4, %v5795_v21 }
 0x7e4   :  { %11909 = vmatmul.msk.f32.gmra.mxu3 %vm4996_vm4, %v6722_v6  ;;  %11978 = vmatmul.msk.f32.gmra.mxu0 %vm4996_vm4, %v5795_v21  ;;  %v5859_v6 = vld [vmem:[#allocation3 + $0x1d1] sm:$0xff] }
 0x7e7   :  { %v7009_v62 = vpop.f32.mrf.mxu3 }
 0x7e8   :  { %v7173_v47 = vadd.f32 %v7009_v62, %v6543_v24  ;;  %v6727_v62 = vld [vmem:[#allocation3 + $0x1d2] sm:$0xff] }
 0x7ea   :  { %v16005_v4 = vadd.f32 %v7540_v33, %v7173_v47  ;;  %v6150_v33 = vpop.f32.mrf.mxu1  ;;  %v7555_v46 = vpop.f32.mrf.mxu0  ;;  %v5798_v47 = vld [vmem:[#allocation3 + $0x200] sm:$0xff] }
 0x7eb   :  { %11783 = vmatmul.msk.f32.gmra.mxu1 %vm4996_vm4, %v5857_v9  ;;  %v6552_v31 = vadd.f32 %v6551_v52, %v6150_v33  ;;  %11851 = vmatmul.msk.f32.gmra.mxu2 %vm4996_vm4, %v5796_v51  ;;  %v6563_v2 = vpop.f32.mrf.mxu2  ;;  %v6729_v33 = vld [vmem:[#allocation3 + $0x1ea] sm:$0xff]  ;;  %v5800_v9 = vld [vmem:[#allocation3 + $0x218] sm:$0xff] }
 0x7ec   :  { %11910 = vmatmul.msk.f32.gmra.mxu3 %vm4996_vm4, %v6723_v18  ;;  %11979 = vmatmul.msk.f32.gmra.mxu0 %vm4996_vm4, %v5796_v51 }
 0x7ef   :  { %v7012_v25 = vpop.f32.mrf.mxu3 }
 0x7f0   :  { %v7174_v56 = vadd.f32 %v7012_v25, %v6546_v0 }
 0x7f2   :  { %v16011_v35 = vadd.f32 %v7543_v50, %v7174_v56  ;;  %v6153_v50 = vpop.f32.mrf.mxu1  ;;  %v7558_v11 = vpop.f32.mrf.mxu0  ;;  %v6728_v56 = vld [vmem:[#allocation3 + $0x1e2] sm:$0xff] }
 0x7f3   :  { %11784 = vmatmul.msk.f32.gmra.mxu1 %vm4996_vm4, %v5858_v34  ;;  %v6555_v37 = vadd.f32 %v6554_v54, %v6153_v50  ;;  %11852 = vmatmul.msk.f32.gmra.mxu2 %vm4996_vm4, %v5797_v7  ;;  %v6566_v57 = vpop.f32.mrf.mxu2  ;;  %v6730_v34 = vld [vmem:[#allocation3 + $0x1fa] sm:$0xff] }
 0x7f4   :  { %11911 = vmatmul.msk.f32.gmra.mxu3 %vm4996_vm4, %v6724_v27  ;;  %11980 = vmatmul.msk.f32.gmra.mxu0 %vm4996_vm4, %v5797_v7 }
 0x7f7   :  { %v7015_v10 = vpop.f32.mrf.mxu3 }
 0x7f8   :  { %v7175_v32 = vadd.f32 %v7015_v10, %v6549_v23  ;;  %v5861_v23 = vld [vmem:[#allocation3 + $0x1e9] sm:$0xff] }
 0x7fa   :  { %v16017_v40 = vadd.f32 %v7546_v43, %v7175_v32  ;;  %v6156_v43 = vpop.f32.mrf.mxu1  ;;  %v7561_v24 = vpop.f32.mrf.mxu0 }
 0x7fb   :  { %11785 = vmatmul.msk.f32.gmra.mxu1 %vm4996_vm4, %v5859_v6  ;;  %v6558_v55 = vadd.f32 %v6557_v58, %v6156_v43  ;;  %11853 = vmatmul.msk.f32.gmra.mxu2 %vm4996_vm4, %v5798_v47  ;;  %v6569_v30 = vpop.f32.mrf.mxu2 }
 0x7fc   :  { %11912 = vmatmul.msk.f32.gmra.mxu3 %vm4996_vm4, %v6725_v13  ;;  %11981 = vmatmul.msk.f32.gmra.mxu0 %vm4996_vm4, %v5798_v47 }
 0x7ff   :  { %v7018_v16 = vpop.f32.mrf.mxu3 }
 0x800   :  { %v7176_v38 = vadd.f32 %v7018_v16, %v6552_v31  ;;  %v5862_v16 = vld [vmem:[#allocation3 + $0x1f9] sm:$0xff] }
 0x802   :  { %v16023_v8 = vadd.f32 %v7549_v15, %v7176_v38  ;;  %v6159_v18 = vpop.f32.mrf.mxu1  ;;  %v7564_v25 = vpop.f32.mrf.mxu0 }
 0x803   :  { %11786 = vmatmul.msk.f32.gmra.mxu1 %vm4996_vm4, %v5860_v29  ;;  %v6561_v26 = vadd.f32 %v6560_v53, %v6159_v18  ;;  %11854 = vmatmul.msk.f32.gmra.mxu2 %vm4996_vm4, %v5799_v1  ;;  %v6572_v27 = vpop.f32.mrf.mxu2  ;;  %v5864_v18 = vld [vmem:[#allocation3 + $0x211] sm:$0xff] }
 0x804   :  { %11913 = vmatmul.msk.f32.gmra.mxu3 %vm4996_vm4, %v6726_v48  ;;  %11982 = vmatmul.msk.f32.gmra.mxu0 %vm4996_vm4, %v5799_v1  ;;  %v5803_v1 = vld [vmem:[#allocation3 + $0x240] sm:$0xff] }
 0x807   :  { %v7021_v52 = vpop.f32.mrf.mxu3 }
 0x808   :  { %v7177_v61 = vadd.f32 %v7021_v52, %v6555_v37 }
 0x80a   :  { %v16029_v36 = vadd.f32 %v7552_v44, %v7177_v61  ;;  %v6162_v21 = vpop.f32.mrf.mxu1  ;;  %v7567_v32 = vpop.f32.mrf.mxu0  ;;  %v5863_v61 = vld [vmem:[#allocation3 + $0x201] sm:$0xff] }
 0x80b   :  { %11787 = vmatmul.msk.f32.gmra.mxu1 %vm4996_vm4, %v5861_v23  ;;  %v6564_v13 = vadd.f32 %v6563_v2, %v6162_v21  ;;  %11855 = vmatmul.msk.f32.gmra.mxu2 %vm4996_vm4, %v5800_v9  ;;  %v5865_v23 = vld [vmem:[#allocation3 + $0x219] sm:$0xff] }
 0x80c   :  { %11914 = vmatmul.msk.f32.gmra.mxu3 %vm4996_vm4, %v6727_v62  ;;  %11983 = vmatmul.msk.f32.gmra.mxu0 %vm4996_vm4, %v5800_v9  ;;  %v5802_v62 = vld [vmem:[#allocation3 + $0x230] sm:$0xff]  ;;  %v6733_v9 = vld [vmem:[#allocation3 + $0x21a] sm:$0xff] }
 0x80f   :  { %v7024_v54 = vpop.f32.mrf.mxu3 }
 0x810   :  { %v7178_v15 = vadd.f32 %v7024_v54, %v6558_v55 }
 0x812   :  { %v16035_v0 = vadd.f32 %v7555_v46, %v7178_v15  ;;  %v6575_v46 = vpop.f32.mrf.mxu2  ;;  %v6165_v31 = vpop.f32.mrf.mxu1 }
 0x813   :  { %v7570_v50 = vpop.f32.mrf.mxu0  ;;  %11788 = vmatmul.msk.f32.gmra.mxu1 %vm4996_vm4, %v5862_v16  ;;  %v6567_v48 = vadd.f32 %v6566_v57, %v6165_v31 }
 0x814   :  { %11915 = vmatmul.msk.f32.gmra.mxu3 %vm4996_vm4, %v6728_v56  ;;  %v6732_v56 = vld [vmem:[#allocation3 + $0x212] sm:$0xff] }
 0x817   :  { %v7027_v58 = vpop.f32.mrf.mxu3 }
 0x818   :  { %v7179_v44 = vadd.f32 %v7027_v58, %v6561_v26 }
 0x81a   :  { %v16041_v10 = vadd.f32 %v7558_v11, %v7179_v44  ;;  %v5801_v11 = vld [vmem:[#allocation3 + $0x228] sm:$0xff]  ;;  %v6578_v7 = vpop.f32.mrf.mxu2  ;;  %v6168_v52 = vpop.f32.mrf.mxu1 }
 0x81b   :  { %11856 = vmatmul.msk.f32.gmra.mxu2 %vm4996_vm4, %v5801_v11  ;;  %11984 = vmatmul.msk.f32.gmra.mxu0 %vm4996_vm4, %v5801_v11  ;;  %v7573_v6 = vpop.f32.mrf.mxu0  ;;  %v6570_v47 = vadd.f32 %v6569_v30, %v6168_v52 }
 0x81c   :  { %11916 = vmatmul.msk.f32.gmra.mxu3 %vm4996_vm4, %v6729_v33  ;;  %11789 = vmatmul.msk.f32.gmra.mxu1 %vm4996_vm4, %v5863_v61 }
 0x81f   :  { %v7030_v53 = vpop.f32.mrf.mxu3 }
 0x820   :  { %v7180_v51 = vadd.f32 %v7030_v53, %v6564_v13  ;;  %v5804_v13 = vld [vmem:[#allocation3 + $0x248] sm:$0xff] }
 0x822   :  { %v16047_v38 = vadd.f32 %v7561_v24, %v7180_v51  ;;  %v6731_v24 = vld [vmem:[#allocation3 + $0x202] sm:$0xff]  ;;  %v6581_v55 = vpop.f32.mrf.mxu2  ;;  %v6171_v15 = vpop.f32.mrf.mxu1 }
 0x823   :  { %11857 = vmatmul.msk.f32.gmra.mxu2 %vm4996_vm4, %v5802_v62  ;;  %11985 = vmatmul.msk.f32.gmra.mxu0 %vm4996_vm4, %v5802_v62  ;;  %v6573_v26 = vadd.f32 %v6572_v27, %v6171_v15  ;;  %v5867_v62 = vld [vmem:[#allocation3 + $0x231] sm:$0xff] }
 0x824   :  { %11917 = vmatmul.msk.f32.gmra.mxu3 %vm4996_vm4, %v6730_v34  ;;  %11790 = vmatmul.msk.f32.gmra.mxu1 %vm4996_vm4, %v5864_v18  ;;  %v5866_v34 = vld [vmem:[#allocation3 + $0x229] sm:$0xff] }
 0x827   :  { %v7033_v2 = vpop.f32.mrf.mxu3 }
 0x828   :  { %v7181_v37 = vadd.f32 %v7033_v2, %v6567_v48  ;;  %v6734_v48 = vld [vmem:[#allocation3 + $0x22a] sm:$0xff]  ;;  %v5805_v2 = vld [vmem:[#allocation3 + $0x258] sm:$0xff] }
 0x82a   :  { %v16053_v43 = vadd.f32 %v7564_v25, %v7181_v37  ;;  %v7576_v25 = vpop.f32.mrf.mxu0  ;;  %v6584_v58 = vpop.f32.mrf.mxu2 }
 0x82b   :  { %11858 = vmatmul.msk.f32.gmra.mxu2 %vm4996_vm4, %v5803_v1  ;;  %11986 = vmatmul.msk.f32.gmra.mxu0 %vm4996_vm4, %v5803_v1  ;;  %v6174_v21 = vpop.f32.mrf.mxu1 }
 0x82c   :  { %11918 = vmatmul.msk.f32.gmra.mxu3 %vm4996_vm4, %v6731_v24  ;;  %11791 = vmatmul.msk.f32.gmra.mxu1 %vm4996_vm4, %v5865_v23  ;;  %v6576_v53 = vadd.f32 %v6575_v46, %v6174_v21  ;;  %v5807_v21 = vld [vmem:[#allocation3 + $0x270] sm:$0xff] }
 0x82f   :  { %v7036_v57 = vpop.f32.mrf.mxu3 }
 0x830   :  { %v7182_v54 = vadd.f32 %v7036_v57, %v6570_v47  ;;  %v6735_v57 = vld [vmem:[#allocation3 + $0x232] sm:$0xff] }
 0x832   :  { %v16059_v29 = vadd.f32 %v7567_v32, %v7182_v54  ;;  %v7579_v32 = vpop.f32.mrf.mxu0  ;;  %v6587_v51 = vpop.f32.mrf.mxu2  ;;  %v5806_v54 = vld [vmem:[#allocation3 + $0x260] sm:$0xff] }
 0x833   :  { %11859 = vmatmul.msk.f32.gmra.mxu2 %vm4996_vm4, %v5804_v13  ;;  %11987 = vmatmul.msk.f32.gmra.mxu0 %vm4996_vm4, %v5804_v13  ;;  %v6177_v16 = vpop.f32.mrf.mxu1 }
 0x834   :  { %11919 = vmatmul.msk.f32.gmra.mxu3 %vm4996_vm4, %v6732_v56  ;;  %11792 = vmatmul.msk.f32.gmra.mxu1 %vm4996_vm4, %v5866_v34  ;;  %v6579_v37 = vadd.f32 %v6578_v7, %v6177_v16  ;;  %v6737_v16 = vld [vmem:[#allocation3 + $0x24a] sm:$0xff]  ;;  %v5808_v34 = vld [vmem:[#allocation3 + $0x278] sm:$0xff] }
 0x837   :  { %v7039_v30 = vpop.f32.mrf.mxu3 }
 0x838   :  { %v7183_v44 = vadd.f32 %v7039_v30, %v6573_v26  ;;  %v5868_v26 = vld [vmem:[#allocation3 + $0x241] sm:$0xff] }
 0x83a   :  { %v16065_v33 = vadd.f32 %v7570_v50, %v7183_v44  ;;  %v7582_v50 = vpop.f32.mrf.mxu0  ;;  %v6590_v52 = vpop.f32.mrf.mxu2  ;;  %v6736_v44 = vld [vmem:[#allocation3 + $0x242] sm:$0xff] }
 0x83b   :  { %11860 = vmatmul.msk.f32.gmra.mxu2 %vm4996_vm4, %v5805_v2  ;;  %11988 = vmatmul.msk.f32.gmra.mxu0 %vm4996_vm4, %v5805_v2  ;;  %v6180_v24 = vpop.f32.mrf.mxu1 }
 0x83c   :  { %11920 = vmatmul.msk.f32.gmra.mxu3 %vm4996_vm4, %v6733_v9  ;;  %11793 = vmatmul.msk.f32.gmra.mxu1 %vm4996_vm4, %v5867_v62  ;;  %v6582_v15 = vadd.f32 %v6581_v55, %v6180_v24  ;;  %v6738_v62 = vld [vmem:[#allocation3 + $0x25a] sm:$0xff] }
 0x83f   :  { %v7042_v27 = vpop.f32.mrf.mxu3 }
 0x840   :  { %v7184_v31 = vadd.f32 %v7042_v27, %v6576_v53  ;;  %v5869_v27 = vld [vmem:[#allocation3 + $0x249] sm:$0xff] }
 0x842   :  { %v16071_v11 = vadd.f32 %v7573_v6, %v7184_v31  ;;  %v7585_v6 = vpop.f32.mrf.mxu0  ;;  %v6593_v18 = vpop.f32.mrf.mxu2 }
 0x843   :  { %11861 = vmatmul.msk.f32.gmra.mxu2 %vm4996_vm4, %v5806_v54  ;;  %11989 = vmatmul.msk.f32.gmra.mxu0 %vm4996_vm4, %v5806_v54  ;;  %v6183_v1 = vpop.f32.mrf.mxu1 }
 0x844   :  { %11921 = vmatmul.msk.f32.gmra.mxu3 %vm4996_vm4, %v6734_v48  ;;  %11794 = vmatmul.msk.f32.gmra.mxu1 %vm4996_vm4, %v5868_v26  ;;  %v6585_v23 = vadd.f32 %v6584_v58, %v6183_v1  ;;  %v5871_v1 = vld [vmem:[#allocation3 + $0x261] sm:$0xff] }
 0x847   :  { %v7045_v46 = vpop.f32.mrf.mxu3 }
 0x848   :  { %v7185_v61 = vadd.f32 %v7045_v46, %v6579_v37 }
 0x84a   :  { %v16077_v47 = vadd.f32 %v7576_v25, %v7185_v61  ;;  %v7588_v25 = vpop.f32.mrf.mxu0  ;;  %v6596_v9 = vpop.f32.mrf.mxu2  ;;  %v5870_v61 = vld [vmem:[#allocation3 + $0x259] sm:$0xff] }
 0x84b   :  { %11862 = vmatmul.msk.f32.gmra.mxu2 %vm4996_vm4, %v5807_v21  ;;  %11990 = vmatmul.msk.f32.gmra.mxu0 %vm4996_vm4, %v5807_v21  ;;  %v6186_v53 = vpop.f32.mrf.mxu1  ;;  %v5810_v21 = vld [vmem:[#allocation3 + $0x290] sm:$0xff] }
 0x84c   :  { %11922 = vmatmul.msk.f32.gmra.mxu3 %vm4996_vm4, %v6735_v57  ;;  %11795 = vmatmul.msk.f32.gmra.mxu1 %vm4996_vm4, %v5869_v27  ;;  %v6588_v48 = vadd.f32 %v6587_v51, %v6186_v53  ;;  %v5809_v57 = vld [vmem:[#allocation3 + $0x288] sm:$0xff]  ;;  %v5872_v27 = vld [vmem:[#allocation3 + $0x271] sm:$0xff] }
 0x84f   :  { %v7048_v7 = vpop.f32.mrf.mxu3 }
 0x850   :  { %v7186_v56 = vadd.f32 %v7048_v7, %v6582_v15 }
 0x852   :  { %v16083_v30 = vadd.f32 %v7579_v32, %v7186_v56  ;;  %v7591_v32 = vpop.f32.mrf.mxu0  ;;  %v6599_v2 = vpop.f32.mrf.mxu2 }
 0x853   :  { %11863 = vmatmul.msk.f32.gmra.mxu2 %vm4996_vm4, %v5808_v34  ;;  %11991 = vmatmul.msk.f32.gmra.mxu0 %vm4996_vm4, %v5808_v34  ;;  %v6189_v46 = vpop.f32.mrf.mxu1  ;;  %v6740_v34 = vld [vmem:[#allocation3 + $0x272] sm:$0xff] }
 0x854   :  { %11923 = vmatmul.msk.f32.gmra.mxu3 %vm4996_vm4, %v6736_v44  ;;  %11796 = vmatmul.msk.f32.gmra.mxu1 %vm4996_vm4, %v5870_v61  ;;  %v6591_v54 = vadd.f32 %v6590_v52, %v6189_v46  ;;  %v6739_v44 = vld [vmem:[#allocation3 + $0x262] sm:$0xff] }
 0x857   :  { %v7051_v55 = vpop.f32.mrf.mxu3 }
 0x858   :  { %v7187_v13 = vadd.f32 %v7051_v55, %v6585_v23 }
 0x85a   :  { %v16089_v31 = vadd.f32 %v7582_v50, %v7187_v13  ;;  %v7594_v50 = vpop.f32.mrf.mxu0  ;;  %v6602_v15 = vpop.f32.mrf.mxu2 }
 0x85b   :  { %11864 = vmatmul.msk.f32.gmra.mxu2 %vm4996_vm4, %v5809_v57  ;;  %11992 = vmatmul.msk.f32.gmra.mxu0 %vm4996_vm4, %v5809_v57  ;;  %v6192_v56 = vpop.f32.mrf.mxu1 }
 0x85c   :  { %11924 = vmatmul.msk.f32.gmra.mxu3 %vm4996_vm4, %v6737_v16  ;;  %11797 = vmatmul.msk.f32.gmra.mxu1 %vm4996_vm4, %v5871_v1  ;;  %v6594_v23 = vadd.f32 %v6593_v18, %v6192_v56 }
 0x85f   :  { %v7054_v58 = vpop.f32.mrf.mxu3 }
 0x860   :  { %v7188_v37 = vadd.f32 %v7054_v58, %v6588_v48  ;;  %v5811_v48 = vld [vmem:[#allocation3 + $0x2a0] sm:$0xff] }
 0x862   :  { %v16095_v24 = vadd.f32 %v7585_v6, %v7188_v37  ;;  %v7597_v6 = vpop.f32.mrf.mxu0  ;;  %v6605_v55 = vpop.f32.mrf.mxu2 }
 0x863   :  { %11865 = vmatmul.msk.f32.gmra.mxu2 %vm4996_vm4, %v5810_v21  ;;  %11993 = vmatmul.msk.f32.gmra.mxu0 %vm4996_vm4, %v5810_v21  ;;  %v6195_v53 = vpop.f32.mrf.mxu1  ;;  %v5874_v21 = vld [vmem:[#allocation3 + $0x289] sm:$0xff] }
 0x864   :  { %11925 = vmatmul.msk.f32.gmra.mxu3 %vm4996_vm4, %v6738_v62  ;;  %11798 = vmatmul.msk.f32.gmra.mxu1 %vm4996_vm4, %v5872_v27  ;;  %v6597_v58 = vadd.f32 %v6596_v9, %v6195_v53  ;;  %v5873_v62 = vld [vmem:[#allocation3 + $0x279] sm:$0xff] }
 0x867   :  { %v7057_v51 = vpop.f32.mrf.mxu3 }
 0x868   :  { %v7189_v7 = vadd.f32 %v7057_v51, %v6591_v54  ;;  %v6741_v54 = vld [vmem:[#allocation3 + $0x27a] sm:$0xff]  ;;  %v5812_v51 = vld [vmem:[#allocation3 + $0x2a8] sm:$0xff] }
 0x86a   :  { %v16101_v26 = vadd.f32 %v7588_v25, %v7189_v7  ;;  %v7600_v25 = vpop.f32.mrf.mxu0  ;;  %v6608_v37 = vpop.f32.mrf.mxu2 }
 0x86b   :  { %11866 = vmatmul.msk.f32.gmra.mxu2 %vm4996_vm4, %v5811_v48  ;;  %11994 = vmatmul.msk.f32.gmra.mxu0 %vm4996_vm4, %v5811_v48  ;;  %v6198_v61 = vpop.f32.mrf.mxu1 }
 0x86c   :  { %11926 = vmatmul.msk.f32.gmra.mxu3 %vm4996_vm4, %v6739_v44  ;;  %11799 = vmatmul.msk.f32.gmra.mxu1 %vm4996_vm4, %v5873_v62  ;;  %v6600_v7 = vadd.f32 %v6599_v2, %v6198_v61  ;;  %v5814_v61 = vld [vmem:[#allocation3 + $0x2c0] sm:$0xff] }
 0x86f   :  { %v7060_v52 = vpop.f32.mrf.mxu3 }
 0x870   :  { %v7190_v13 = vadd.f32 %v7060_v52, %v6594_v23  ;;  %v6742_v52 = vld [vmem:[#allocation3 + $0x28a] sm:$0xff] }
 0x872   :  { %v16107_v16 = vadd.f32 %v7591_v32, %v7190_v13  ;;  %v7603_v32 = vpop.f32.mrf.mxu0  ;;  %v6611_v56 = vpop.f32.mrf.mxu2  ;;  %v5813_v13 = vld [vmem:[#allocation3 + $0x2b8] sm:$0xff] }
 0x873   :  { %11867 = vmatmul.msk.f32.gmra.mxu2 %vm4996_vm4, %v5812_v51  ;;  %11995 = vmatmul.msk.f32.gmra.mxu0 %vm4996_vm4, %v5812_v51  ;;  %v6201_v44 = vpop.f32.mrf.mxu1 }
 0x874   :  { %11927 = vmatmul.msk.f32.gmra.mxu3 %vm4996_vm4, %v6740_v34  ;;  %11800 = vmatmul.msk.f32.gmra.mxu1 %vm4996_vm4, %v5874_v21  ;;  %v6603_v53 = vadd.f32 %v6602_v15, %v6201_v44  ;;  %v6744_v44 = vld [vmem:[#allocation3 + $0x2a2] sm:$0xff]  ;;  %v5815_v21 = vld [vmem:[#allocation3 + $0x2d0] sm:$0xff] }
 0x877   :  { %v7063_v18 = vpop.f32.mrf.mxu3 }
 0x878   :  { %v7191_v46 = vadd.f32 %v7063_v18, %v6597_v58  ;;  %v5875_v58 = vld [vmem:[#allocation3 + $0x291] sm:$0xff] }
 0x87a   :  { %v16113_v57 = vadd.f32 %v7594_v50, %v7191_v46  ;;  %v7606_v50 = vpop.f32.mrf.mxu0  ;;  %v6614_v27 = vpop.f32.mrf.mxu2  ;;  %v6743_v46 = vld [vmem:[#allocation3 + $0x292] sm:$0xff] }
 0x87b   :  { %11868 = vmatmul.msk.f32.gmra.mxu2 %vm4996_vm4, %v5813_v13  ;;  %11996 = vmatmul.msk.f32.gmra.mxu0 %vm4996_vm4, %v5813_v13  ;;  %v6204_v48 = vpop.f32.mrf.mxu1 }
 0x87c   :  { %11928 = vmatmul.msk.f32.gmra.mxu3 %vm4996_vm4, %v6741_v54  ;;  %11801 = vmatmul.msk.f32.gmra.mxu1 %vm4996_vm4, %v5875_v58  ;;  %v6606_v62 = vadd.f32 %v6605_v55, %v6204_v48  ;;  %v6745_v58 = vld [vmem:[#allocation3 + $0x2aa] sm:$0xff] }
 0x87f   :  { %v7066_v9 = vpop.f32.mrf.mxu3 }
 0x880   :  { %v7192_v1 = vadd.f32 %v7066_v9, %v6600_v7  ;;  %v5876_v9 = vld [vmem:[#allocation3 + $0x2a1] sm:$0xff] }
 0x882   :  { %v16119_v23 = vadd.f32 %v7597_v6, %v7192_v1  ;;  %v7609_v6 = vpop.f32.mrf.mxu0  ;;  %v6617_v54 = vpop.f32.mrf.mxu2 }
 0x883   :  { %11869 = vmatmul.msk.f32.gmra.mxu2 %vm4996_vm4, %v5814_v61  ;;  %11997 = vmatmul.msk.f32.gmra.mxu0 %vm4996_vm4, %v5814_v61  ;;  %v6207_v7 = vpop.f32.mrf.mxu1 }
 0x884   :  { %11929 = vmatmul.msk.f32.gmra.mxu3 %vm4996_vm4, %v6742_v52  ;;  %11802 = vmatmul.msk.f32.gmra.mxu1 %vm4996_vm4, %v5876_v9  ;;  %v6609_v52 = vadd.f32 %v6608_v37, %v6207_v7  ;;  %v5878_v7 = vld [vmem:[#allocation3 + $0x2b9] sm:$0xff] }
 0x887   :  { %v7069_v2 = vpop.f32.mrf.mxu3 }
 0x888   :  { %v7193_v34 = vadd.f32 %v7069_v2, %v6603_v53 }
 0x88a   :  { %v16125_v18 = vadd.f32 %v7600_v25, %v7193_v34  ;;  %v7612_v25 = vpop.f32.mrf.mxu0  ;;  %v6620_v13 = vpop.f32.mrf.mxu2  ;;  %v5877_v34 = vld [vmem:[#allocation3 + $0x2a9] sm:$0xff] }
 0x88b   :  { %11870 = vmatmul.msk.f32.gmra.mxu2 %vm4996_vm4, %v5815_v21  ;;  %11998 = vmatmul.msk.f32.gmra.mxu0 %vm4996_vm4, %v5815_v21  ;;  %v6210_v2 = vpop.f32.mrf.mxu1  ;;  %v5817_v21 = vld [vmem:[#allocation3 + $0x2e8] sm:$0xff] }
 0x88c   :  { %11930 = vmatmul.msk.f32.gmra.mxu3 %vm4996_vm4, %v6743_v46  ;;  %11803 = vmatmul.msk.f32.gmra.mxu1 %vm4996_vm4, %v5877_v34  ;;  %v5816_v46 = vld [vmem:[#allocation3 + $0x2d8] sm:$0xff]  ;;  %v6612_v61 = vadd.f32 %v6611_v56, %v6210_v2  ;;  %v5879_v34 = vld [vmem:[#allocation3 + $0x2c1] sm:$0xff] }
 0x88f   :  { %v7072_v15 = vpop.f32.mrf.mxu3 }
 0x890   :  { %v7194_v51 = vadd.f32 %v7072_v15, %v6606_v62 }
 0x892   :  { %v16131_v1 = vadd.f32 %v7603_v32, %v7194_v51  ;;  %v7615_v32 = vpop.f32.mrf.mxu0  ;;  %v6623_v62 = vpop.f32.mrf.mxu2 }
 0x893   :  { %11871 = vmatmul.msk.f32.gmra.mxu2 %vm4996_vm4, %v5816_v46  ;;  %11999 = vmatmul.msk.f32.gmra.mxu0 %vm4996_vm4, %v5816_v46  ;;  %v6213_v51 = vpop.f32.mrf.mxu1  ;;  %v6747_v46 = vld [vmem:[#allocation3 + $0x2c2] sm:$0xff] }
 0x894   :  { %11931 = vmatmul.msk.f32.gmra.mxu3 %vm4996_vm4, %v6744_v44  ;;  %11804 = vmatmul.msk.f32.gmra.mxu1 %vm4996_vm4, %v5878_v7  ;;  %v6746_v44 = vld [vmem:[#allocation3 + $0x2ba] sm:$0xff] }
 0x897   :  { %v7075_v55 = vpop.f32.mrf.mxu3 }
 0x898   :  { %v7195_v53 = vadd.f32 %v7075_v55, %v6609_v52  ;;  %v6615_v52 = vadd.f32 %v6614_v27, %v6213_v51 }
 0x89a   :  { %v16137_v48 = vadd.f32 %v7606_v50, %v7195_v53  ;;  %v7618_v50 = vpop.f32.mrf.mxu0 }
 0x89b   :  { %11872 = vmatmul.msk.f32.gmra.mxu2 %vm4996_vm4, %v5817_v21  ;;  %12000 = vmatmul.msk.f32.gmra.mxu0 %vm4996_vm4, %v5817_v21  ;;  %v6216_v2 = vpop.f32.mrf.mxu1 }
 0x89c   :  { %11932 = vmatmul.msk.f32.gmra.mxu3 %vm4996_vm4, %v6745_v58  ;;  %11805 = vmatmul.msk.f32.gmra.mxu1 %vm4996_vm4, %v5879_v34 }
 0x89e   :  { %v6626_v55 = vpop.f32.mrf.mxu2 }
 0x89f   :  { %v7078_v37 = vpop.f32.mrf.mxu3 }
 0x8a0   :  { %v7196_v15 = vadd.f32 %v7078_v37, %v6612_v61  ;;  %v5818_v61 = vld [vmem:[#allocation3 + $0x2f0] sm:$0xff]  ;;  %v6618_v37 = vadd.f32 %v6617_v54, %v6216_v2 }
 0x8a2   :  { %v16143_v9 = vadd.f32 %v7609_v6, %v7196_v15  ;;  %v7621_v6 = vpop.f32.mrf.mxu0 }
 0x8a3   :  { %11873 = vmatmul.msk.f32.gmra.mxu2 %vm4996_vm4, %v5818_v61  ;;  %12001 = vmatmul.msk.f32.gmra.mxu0 %vm4996_vm4, %v5818_v61  ;;  %v6219_v7 = vpop.f32.mrf.mxu1  ;;  %v5881_v61 = vld [vmem:[#allocation3 + $0x2d9] sm:$0xff] }
 0x8a4   :  { %18670 = vst [vmem:[#allocation42_spill] sm:$0xff] %v16143_v9  ;;  %11933 = vmatmul.msk.f32.gmra.mxu3 %vm4996_vm4, %v6746_v44  ;;  %v5880_v44 = vld [vmem:[#allocation3 + $0x2d1] sm:$0xff] }
 0x8a5   :  { %11806 = vmatmul.msk.f32.gmra.mxu1 %vm4996_vm4, %v5880_v44 }
 0x8a6   :  { %v6629_v15 = vpop.f32.mrf.mxu2 }
 0x8a7   :  { %v7081_v56 = vpop.f32.mrf.mxu3 }
 0x8a8   :  { %v7197_v53 = vadd.f32 %v7081_v56, %v6615_v52  ;;  %v6748_v52 = vld [vmem:[#allocation3 + $0x2d2] sm:$0xff]  ;;  %v5819_v56 = vld [vmem:[#allocation3 + $0x300] sm:$0xff] }
 0x8aa   :  { %v16149_v58 = vadd.f32 %v7612_v25, %v7197_v53  ;;  %v7624_v25 = vpop.f32.mrf.mxu0  ;;  %v6621_v53 = vadd.f32 %v6620_v13, %v6219_v7 }
 0x8ab   :  { %11874 = vmatmul.msk.f32.gmra.mxu2 %vm4996_vm4, %v5819_v56  ;;  %12002 = vmatmul.msk.f32.gmra.mxu0 %vm4996_vm4, %v5819_v56 }
 0x8ac   :  { %18671 = vst [vmem:[#allocation59_spill] sm:$0xff] %v16149_v58  ;;  %11934 = vmatmul.msk.f32.gmra.mxu3 %vm4996_vm4, %v6747_v46  ;;  %v6222_v46 = vpop.f32.mrf.mxu1  ;;  %v7755_v58 = vld [vmem:[#allocation3 + $0x21] sm:$0xff] }
 0x8ad   :  { %11807 = vmatmul.msk.f32.gmra.mxu1 %vm4996_vm4, %v5881_v61  ;;  %v6624_v44 = vadd.f32 %v6623_v62, %v6222_v46  ;;  %v5821_v61 = vld [vmem:[#allocation3 + $0x318] sm:$0xff] }
 0x8ae   :  { %v6632_v2 = vpop.f32.mrf.mxu2 }
 0x8af   :  { %v7084_v27 = vpop.f32.mrf.mxu3 }
 0x8b0   :  { %v7198_v51 = vadd.f32 %v7084_v27, %v6618_v37  ;;  %v6749_v27 = vld [vmem:[#allocation3 + $0x2da] sm:$0xff] }
 0x8b2   :  { %v16155_v21 = vadd.f32 %v7615_v32, %v7198_v51  ;;  %v7627_v32 = vpop.f32.mrf.mxu0  ;;  %v5820_v51 = vld [vmem:[#allocation3 + $0x308] sm:$0xff] }
 0x8b3   :  { %11875 = vmatmul.msk.f32.gmra.mxu2 %vm4996_vm4, %v5820_v51  ;;  %12003 = vmatmul.msk.f32.gmra.mxu0 %vm4996_vm4, %v5820_v51 }
 0x8b4   :  { %18672 = vst [vmem:[#allocation13_spill] sm:$0xff] %v16155_v21  ;;  %11935 = vmatmul.msk.f32.gmra.mxu3 %vm4996_vm4, %v6748_v52  ;;  %v6225_v56 = vpop.f32.mrf.mxu1  ;;  %v7754_v21 = vld [vmem:[#allocation3 + $0x19] sm:$0xff] }
 0x8b6   :  { %v6635_v7 = vpop.f32.mrf.mxu2 }
 0x8b7   :  { %v7087_v54 = vpop.f32.mrf.mxu3 }
 0x8b8   :  { %v7199_v34 = vadd.f32 %v7087_v54, %v6621_v53  ;;  %v5882_v53 = vld [vmem:[#allocation3 + $0x2e9] sm:$0xff] }
 0x8b9   :  { %11808 = vmatmul.msk.f32.gmra.mxu1 %vm4996_vm4, %v5882_v53  ;;  %v6751_v53 = vld [vmem:[#allocation3 + $0x2f2] sm:$0xff] }
 0x8ba   :  { %v16161_v37 = vadd.f32 %v7618_v50, %v7199_v34  ;;  %v7630_v50 = vpop.f32.mrf.mxu0  ;;  %v6750_v34 = vld [vmem:[#allocation3 + $0x2ea] sm:$0xff] }
 0x8bb   :  { %11876 = vmatmul.msk.f32.gmra.mxu2 %vm4996_vm4, %v5821_v61  ;;  %12004 = vmatmul.msk.f32.gmra.mxu0 %vm4996_vm4, %v5821_v61 }
 0x8bc   :  { %18673 = vst [vmem:[#allocation56_spill] sm:$0xff] %v16161_v37  ;;  %11936 = vmatmul.msk.f32.gmra.mxu3 %vm4996_vm4, %v6749_v27  ;;  %v6627_v27 = vadd.f32 %v6626_v55, %v6225_v56  ;;  %v5886_v37 = vld [vmem:[#allocation3 + $0x319] sm:$0xff] }
 0x8be   :  { %v6638_v46 = vpop.f32.mrf.mxu2 }
 0x8bf   :  { %v7090_v13 = vpop.f32.mrf.mxu3 }
 0x8c0   :  { %v7200_v52 = vadd.f32 %v7090_v13, %v6624_v44  ;;  %v6228_v44 = vpop.f32.mrf.mxu1  ;;  %v12138_v13 = vld [vmem:[%s18078_s5 + $0x30] sm:$0xff] }
 0x8c1   :  { %9090 = vmatpush.msra.mxu3 %v12138_v13  ;;  %v6630_v61 = vadd.f32 %v6629_v15, %v6228_v44  ;;  %v6752_v15 = vld [vmem:[#allocation3 + $0x302] sm:$0xff]  ;;  %v8285_v44 = vld [vmem:[#allocation3 + $0x1a] sm:$0xff] }
 0x8c2   :  { %v16167_v54 = vadd.f32 %v7621_v6, %v7200_v52  ;;  %v12073_v6 = vld [vmem:[%s18078_s5 + $0x28] sm:$0xff]  ;;  %v5883_v52 = vld [vmem:[#allocation3 + $0x2f1] sm:$0xff]  ;;  %v7633_v56 = vpop.f32.mrf.mxu0 }
 0x8c3   :  { %8558 = vmatpush.msra.mxu2 %v12073_v6  ;;  %11809 = vmatmul.msk.f32.gmra.mxu1 %vm4996_vm4, %v5883_v52 }
 0x8c4   :  { %18674 = vst [vmem:[#allocation77_spill] sm:$0xff] %v16167_v54  ;;  %11937 = vmatmul.msk.f32.gmra.mxu3 %vm4996_vm4, %v6750_v34  ;;  %v5822_v34 = vld [vmem:[#allocation3 + $0x320] sm:$0xff] }
 0x8c5   :  { %11877 = vmatmul.msk.f32.gmra.mxu2 %vm4996_vm4, %v5822_v34  ;;  %12005 = vmatmul.msk.f32.gmra.mxu0 %vm4996_vm4, %v5822_v34  ;;  %v7285_v34 = vld [vmem:[#allocation3 + $0x330] sm:$0xff] }
 0x8c7   :  { %v7093_v62 = vpop.f32.mrf.mxu3 }
 0x8c8   :  { %v7201_v51 = vadd.f32 %v7093_v62, %v6627_v27  ;;  %v6641_v62 = vpop.f32.mrf.mxu2  ;;  %v6231_v6 = vpop.f32.mrf.mxu1 }
 0x8ca   :  { %v16179_v55 = vadd.f32 %v7624_v25, %v7201_v51  ;;  %v12203_v25 = vld [vmem:[%s18078_s5 + $0x38] sm:$0xff]  ;;  %v5884_v51 = vld [vmem:[#allocation3 + $0x301] sm:$0xff]  ;;  %v7636_v52 = vpop.f32.mrf.mxu0 }
 0x8cb   :  { %9621 = vmatpush.msra.mxu0 %v12203_v25  ;;  %11810 = vmatmul.msk.f32.gmra.mxu1 %vm4996_vm4, %v5884_v51  ;;  %v5885_v51 = vld [vmem:[#allocation3 + $0x309] sm:$0xff] }
 0x8cc   :  { %18675 = vst [vmem:[#allocation46_spill] sm:$0xff] %v16179_v55  ;;  %11938 = vmatmul.msk.f32.gmra.mxu3 %vm4996_vm4, %v6751_v53  ;;  %v6633_v53 = vadd.f32 %v6632_v2, %v6231_v6  ;;  %v6753_v2 = vld [vmem:[#allocation3 + $0x30a] sm:$0xff]  ;;  %v8286_v6 = vld [vmem:[#allocation3 + $0x22] sm:$0xff] }
 0x8cd   :  { %12074 = vmatmul.msk.f32.vlgmr.msra.gmra.mxu2 %vm4996_vm4, %v8285_v44  ;;  %12006 = vmatmul.msk.f32.gmra.mxu0 %vm4996_vm4, %v7285_v34  ;;  %v7286_v44 = vld [vmem:[#allocation3 + $0x338] sm:$0xff] }
 0x8cf   :  { %v7096_v27 = vpop.f32.mrf.mxu3 }
 0x8d0   :  { %v7202_v54 = vadd.f32 %v7096_v27, %v6630_v61  ;;  %v12268_v61 = vld [vmem:[%s18078_s5 + $0x40] sm:$0xff]  ;;  %v6234_v25 = vpop.f32.mrf.mxu1 }
 0x8d1   :  { %10152 = vmatpush.msra.mxu1 %v12268_v61 }
 0x8d2   :  { %v16188_v13 = vadd.f32 %v7627_v32, %v7202_v54  ;;  %v6644_v54 = vpop.f32.mrf.mxu2  ;;  %v7639_v55 = vpop.f32.mrf.mxu0 }
 0x8d3   :  { %11811 = vmatmul.msk.f32.gmra.mxu1 %vm4996_vm4, %v5885_v51  ;;  %v6754_v51 = vld [vmem:[#allocation3 + $0x31a] sm:$0xff] }
 0x8d4   :  { %18676 = vst [vmem:[#allocation9_spill] sm:$0xff] %v16188_v13  ;;  %11939 = vmatmul.msk.f32.gmra.mxu3 %vm4996_vm4, %v6752_v15  ;;  %v6636_v15 = vadd.f32 %v6635_v7, %v6234_v25  ;;  %v7756_v25 = vld [vmem:[#allocation3 + $0x31] sm:$0xff] }
 0x8d5   :  { %12075 = vmatmul.msk.f32.gmra.mxu2 %vm4996_vm4, %v8286_v6  ;;  %12007 = vmatmul.msk.f32.gmra.mxu0 %vm4996_vm4, %v7286_v44 }
 0x8d7   :  { %v7099_v32 = vpop.f32.mrf.mxu3 }
 0x8d8   :  { %v7203_v27 = vadd.f32 %v7099_v32, %v6633_v53  ;;  %v6237_v32 = vpop.f32.mrf.mxu1 }
 0x8d9   :  { %v6639_v7 = vadd.f32 %v6638_v46, %v6237_v32  ;;  %v7757_v32 = vld [vmem:[#allocation3 + $0x39] sm:$0xff] }
 0x8da   :  { %v16197_v13 = vadd.f32 %v7630_v50, %v7203_v27  ;;  %v6647_v61 = vpop.f32.mrf.mxu2  ;;  %v7642_v27 = vpop.f32.mrf.mxu0 }
 0x8db   :  { %11812 = vmatmul.msk.f32.gmra.mxu1 %vm4996_vm4, %v5886_v37  ;;  %v6755_v37 = vld [vmem:[#allocation3 + $0x322] sm:$0xff] }
 0x8dc   :  { %18677 = vst [vmem:[#allocation14_spill] sm:$0xff] %v16197_v13  ;;  %11940 = vmatmul.msk.f32.gmra.mxu3 %vm4996_vm4, %v6753_v2  ;;  %v8287_v13 = vld [vmem:[#allocation3 + $0x32] sm:$0xff] }
 0x8dd   :  { %12076 = vmatmul.msk.f32.gmra.mxu2 %vm4996_vm4, %v8287_v13  ;;  %12204 = vmatmul.msk.f32.vlgmr.msra.gmra.mxu0 %vm4996_vm4, %v7756_v25 }
 0x8df   :  { %v7102_v34 = vpop.f32.mrf.mxu3 }
 0x8e0   :  { %v7204_v53 = vadd.f32 %v7102_v34, %v6636_v15  ;;  %v6240_v44 = vpop.f32.mrf.mxu1  ;;  %v5887_v34 = vld [vmem:[#allocation3 + $0x321] sm:$0xff] }
 0x8e1   :  { %v6642_v46 = vadd.f32 %v6641_v62, %v6240_v44  ;;  %v7758_v44 = vld [vmem:[#allocation3 + $0x49] sm:$0xff] }
 0x8e2   :  { %v16203_v50 = vadd.f32 %v7633_v56, %v7204_v53  ;;  %v6650_v6 = vpop.f32.mrf.mxu2  ;;  %v7645_v53 = vpop.f32.mrf.mxu0 }
 0x8e3   :  { %11813 = vmatmul.msk.f32.gmra.mxu1 %vm4996_vm4, %v5887_v34  ;;  %v8817_v34 = vld [vmem:[#allocation3 + $0x30] sm:$0xff] }
 0x8e4   :  { %18678 = vst [vmem:[#allocation5_spill] sm:$0xff] %v16203_v50  ;;  %11941 = vmatmul.msk.f32.gmra.mxu3 %vm4996_vm4, %v6754_v51  ;;  %v8288_v50 = vld [vmem:[#allocation3 + $0x3a] sm:$0xff] }
 0x8e5   :  { %12077 = vmatmul.msk.f32.gmra.mxu2 %vm4996_vm4, %v8288_v50  ;;  %12205 = vmatmul.msk.f32.gmra.mxu0 %vm4996_vm4, %v7757_v32 }
 0x8e7   :  { %v7105_v2 = vpop.f32.mrf.mxu3 }
 0x8e8   :  { %v7205_v15 = vadd.f32 %v7105_v2, %v6639_v7  ;;  %v6243_v2 = vpop.f32.mrf.mxu1 }
 0x8e9   :  { %v6645_v62 = vadd.f32 %v6644_v54, %v6243_v2  ;;  %v7759_v2 = vld [vmem:[#allocation3 + $0x51] sm:$0xff] }
 0x8ea   :  { %v16209_v56 = vadd.f32 %v7636_v52, %v7205_v15  ;;  %v6653_v51 = vpop.f32.mrf.mxu2  ;;  %v7648_v15 = vpop.f32.mrf.mxu0 }
 0x8eb   :  { %12009 = vmatmul.msk.f32.vlgmr.msrb.gmra.mxu1 %vm4996_vm4, %v7754_v21  ;;  %v8818_v21 = vld [vmem:[#allocation3 + $0x38] sm:$0xff] }
 0x8ec   :  { %18679 = vst [vmem:[#allocation55_spill] sm:$0xff] %v16209_v56  ;;  %11942 = vmatmul.msk.f32.gmra.mxu3 %vm4996_vm4, %v6755_v37  ;;  %v8289_v56 = vld [vmem:[#allocation3 + $0x4a] sm:$0xff] }
 0x8ed   :  { %12078 = vmatmul.msk.f32.gmra.mxu2 %vm4996_vm4, %v8289_v56  ;;  %12206 = vmatmul.msk.f32.gmra.mxu0 %vm4996_vm4, %v7758_v44 }
 0x8ef   :  { %v7108_v13 = vpop.f32.mrf.mxu3 }
 0x8f0   :  { %v7206_v7 = vadd.f32 %v7108_v13, %v6642_v46  ;;  %v6246_v13 = vpop.f32.mrf.mxu1 }
 0x8f1   :  { %v6648_v54 = vadd.f32 %v6647_v61, %v6246_v13  ;;  %v7760_v61 = vld [vmem:[#allocation3 + $0x61] sm:$0xff] }
 0x8f2   :  { %v16215_v52 = vadd.f32 %v7639_v55, %v7206_v7  ;;  %v6656_v37 = vpop.f32.mrf.mxu2  ;;  %v7651_v7 = vpop.f32.mrf.mxu0 }
 0x8f3   :  { %12010 = vmatmul.msk.f32.gmra.mxu1 %vm4996_vm4, %v7755_v58  ;;  %v8819_v58 = vld [vmem:[#allocation3 + $0x48] sm:$0xff] }
 0x8f4   :  { %18680 = vst [vmem:[#allocation6_spill] sm:$0xff] %v16215_v52  ;;  %12139 = vmatmul.msk.f32.vlgmr.msra.gmra.mxu3 %vm4996_vm4, %v8817_v34  ;;  %v8290_v52 = vld [vmem:[#allocation3 + $0x52] sm:$0xff] }
 0x8f5   :  { %12079 = vmatmul.msk.f32.gmra.mxu2 %vm4996_vm4, %v8290_v52  ;;  %12207 = vmatmul.msk.f32.gmra.mxu0 %vm4996_vm4, %v7759_v2 }
 0x8f7   :  { %v7111_v50 = vpop.f32.mrf.mxu3 }
 0x8f8   :  { %v7207_v46 = vadd.f32 %v7111_v50, %v6645_v62  ;;  %v6249_v50 = vpop.f32.mrf.mxu1 }
 0x8fa   :  { %v16221_v55 = vadd.f32 %v7642_v27, %v7207_v46  ;;  %v6659_v34 = vpop.f32.mrf.mxu2  ;;  %v7654_v27 = vpop.f32.mrf.mxu0  ;;  %v8291_v46 = vld [vmem:[#allocation3 + $0x62] sm:$0xff] }
 0x8fb   :  { %12011 = vmatmul.msk.f32.gmra.mxu1 %vm4996_vm4, %v7756_v25  ;;  %v8820_v25 = vld [vmem:[#allocation3 + $0x50] sm:$0xff] }
 0x8fc   :  { %18681 = vst [vmem:[#allocation30_spill] sm:$0xff] %v16221_v55  ;;  %12140 = vmatmul.msk.f32.gmra.mxu3 %vm4996_vm4, %v8818_v21  ;;  %v6651_v21 = vadd.f32 %v6650_v6, %v6249_v50  ;;  %v7761_v6 = vld [vmem:[#allocation3 + $0x69] sm:$0xff] }
 0x8fd   :  { %12080 = vmatmul.msk.f32.gmra.mxu2 %vm4996_vm4, %v8291_v46  ;;  %12208 = vmatmul.msk.f32.gmra.mxu0 %vm4996_vm4, %v7760_v61 }
 0x8ff   :  { %v7114_v56 = vpop.f32.mrf.mxu3 }
 0x900   :  { %v7208_v62 = vadd.f32 %v7114_v56, %v6648_v54  ;;  %v6252_v54 = vpop.f32.mrf.mxu1 }
 0x902   :  { %v16227_v9 = vadd.f32 %v7645_v53, %v7208_v62  ;;  %v6662_v13 = vpop.f32.mrf.mxu2  ;;  %v7657_v53 = vpop.f32.mrf.mxu0  ;;  %v8292_v62 = vld [vmem:[#allocation3 + $0x6a] sm:$0xff] }
 0x903   :  { %12012 = vmatmul.msk.f32.gmra.mxu1 %vm4996_vm4, %v7757_v32  ;;  %v8821_v32 = vld [vmem:[#allocation3 + $0x60] sm:$0xff] }
 0x904   :  { %18682 = vst [vmem:[#allocation23_spill] sm:$0xff] %v16227_v9  ;;  %12141 = vmatmul.msk.f32.gmra.mxu3 %vm4996_vm4, %v8819_v58  ;;  %v6654_v58 = vadd.f32 %v6653_v51, %v6252_v54  ;;  %v7762_v51 = vld [vmem:[#allocation3 + $0x79] sm:$0xff] }
 0x905   :  { %12081 = vmatmul.msk.f32.gmra.mxu2 %vm4996_vm4, %v8292_v62  ;;  %12209 = vmatmul.msk.f32.gmra.mxu0 %vm4996_vm4, %v7761_v6 }
 0x907   :  { %v7117_v52 = vpop.f32.mrf.mxu3 }
 0x908   :  { %v7209_v55 = vadd.f32 %v7117_v52, %v6651_v21  ;;  %v6255_v21 = vpop.f32.mrf.mxu1 }
 0x90a   :  { %v16233_v56 = vadd.f32 %v7648_v15, %v7209_v55  ;;  %v6665_v46 = vpop.f32.mrf.mxu2  ;;  %v7660_v15 = vpop.f32.mrf.mxu0  ;;  %v8293_v55 = vld [vmem:[#allocation3 + $0x7a] sm:$0xff] }
 0x90b   :  { %12013 = vmatmul.msk.f32.gmra.mxu1 %vm4996_vm4, %v7758_v44  ;;  %v8822_v44 = vld [vmem:[#allocation3 + $0x68] sm:$0xff] }
 0x90c   :  { %18683 = vst [vmem:[#allocation7_spill] sm:$0xff] %v16233_v56  ;;  %12142 = vmatmul.msk.f32.gmra.mxu3 %vm4996_vm4, %v8820_v25  ;;  %v6657_v25 = vadd.f32 %v6656_v37, %v6255_v21  ;;  %v7763_v37 = vld [vmem:[#allocation3 + $0x81] sm:$0xff] }
 0x90d   :  { %12082 = vmatmul.msk.f32.gmra.mxu2 %vm4996_vm4, %v8293_v55  ;;  %12210 = vmatmul.msk.f32.gmra.mxu0 %vm4996_vm4, %v7762_v51 }
 0x90f   :  { %v7120_v50 = vpop.f32.mrf.mxu3 }
 0x910   :  { %v7210_v9 = vadd.f32 %v7120_v50, %v6654_v58  ;;  %v6258_v58 = vpop.f32.mrf.mxu1 }
 0x912   :  { %v16239_v52 = vadd.f32 %v7651_v7, %v7210_v9  ;;  %v6668_v62 = vpop.f32.mrf.mxu2  ;;  %v7663_v9 = vpop.f32.mrf.mxu0  ;;  %v8294_v7 = vld [vmem:[#allocation3 + $0x82] sm:$0xff] }
 0x913   :  { %12014 = vmatmul.msk.f32.gmra.mxu1 %vm4996_vm4, %v7759_v2  ;;  %v8823_v2 = vld [vmem:[#allocation3 + $0x78] sm:$0xff] }
 0x914   :  { %18684 = vst [vmem:[#allocation74_spill] sm:$0xff] %v16239_v52  ;;  %12143 = vmatmul.msk.f32.gmra.mxu3 %vm4996_vm4, %v8821_v32  ;;  %v6660_v32 = vadd.f32 %v6659_v34, %v6258_v58  ;;  %v7764_v34 = vld [vmem:[#allocation3 + $0x91] sm:$0xff] }
 0x915   :  { %12083 = vmatmul.msk.f32.gmra.mxu2 %vm4996_vm4, %v8294_v7  ;;  %12211 = vmatmul.msk.f32.gmra.mxu0 %vm4996_vm4, %v7763_v37 }
 0x917   :  { %v7123_v54 = vpop.f32.mrf.mxu3 }
 0x918   :  { %v7211_v56 = vadd.f32 %v7123_v54, %v6657_v25  ;;  %v6261_v25 = vpop.f32.mrf.mxu1 }
 0x91a   :  { %v16245_v50 = vadd.f32 %v7654_v27, %v7211_v56  ;;  %v6671_v55 = vpop.f32.mrf.mxu2  ;;  %v7666_v27 = vpop.f32.mrf.mxu0  ;;  %v8295_v56 = vld [vmem:[#allocation3 + $0x92] sm:$0xff] }
 0x91b   :  { %12015 = vmatmul.msk.f32.gmra.mxu1 %vm4996_vm4, %v7760_v61  ;;  %v8824_v61 = vld [vmem:[#allocation3 + $0x80] sm:$0xff] }
 0x91c   :  { %18685 = vst [vmem:[#allocation12_spill] sm:$0xff] %v16245_v50  ;;  %12144 = vmatmul.msk.f32.gmra.mxu3 %vm4996_vm4, %v8822_v44  ;;  %v6663_v44 = vadd.f32 %v6662_v13, %v6261_v25  ;;  %v7765_v13 = vld [vmem:[#allocation3 + $0x99] sm:$0xff] }
 0x91d   :  { %12084 = vmatmul.msk.f32.gmra.mxu2 %vm4996_vm4, %v8295_v56  ;;  %12212 = vmatmul.msk.f32.gmra.mxu0 %vm4996_vm4, %v7764_v34 }
 0x91f   :  { %v7126_v21 = vpop.f32.mrf.mxu3 }
 0x920   :  { %v7212_v52 = vadd.f32 %v7126_v21, %v6660_v32  ;;  %v6264_v32 = vpop.f32.mrf.mxu1 }
 0x922   :  { %v16251_v54 = vadd.f32 %v7657_v53, %v7212_v52  ;;  %v6674_v7 = vpop.f32.mrf.mxu2  ;;  %v7669_v53 = vpop.f32.mrf.mxu0  ;;  %v8296_v52 = vld [vmem:[#allocation3 + $0x9a] sm:$0xff] }
 0x923   :  { %12016 = vmatmul.msk.f32.gmra.mxu1 %vm4996_vm4, %v7761_v6  ;;  %v8825_v6 = vld [vmem:[#allocation3 + $0x90] sm:$0xff] }
 0x924   :  { %18686 = vst [vmem:[#allocation29_spill] sm:$0xff] %v16251_v54  ;;  %12145 = vmatmul.msk.f32.gmra.mxu3 %vm4996_vm4, %v8823_v2  ;;  %v6666_v2 = vadd.f32 %v6665_v46, %v6264_v32  ;;  %v7766_v46 = vld [vmem:[#allocation3 + $0xa9] sm:$0xff] }
 0x925   :  { %12085 = vmatmul.msk.f32.gmra.mxu2 %vm4996_vm4, %v8296_v52  ;;  %12213 = vmatmul.msk.f32.gmra.mxu0 %vm4996_vm4, %v7765_v13 }
 0x927   :  { %v7129_v58 = vpop.f32.mrf.mxu3 }
 0x928   :  { %v7213_v50 = vadd.f32 %v7129_v58, %v6663_v44  ;;  %v6267_v44 = vpop.f32.mrf.mxu1 }
 0x92a   :  { %v16257_v21 = vadd.f32 %v7660_v15, %v7213_v50  ;;  %v6677_v56 = vpop.f32.mrf.mxu2  ;;  %v7672_v15 = vpop.f32.mrf.mxu0  ;;  %v8297_v50 = vld [vmem:[#allocation3 + $0xaa] sm:$0xff] }
 0x92b   :  { %12017 = vmatmul.msk.f32.gmra.mxu1 %vm4996_vm4, %v7762_v51  ;;  %v8826_v51 = vld [vmem:[#allocation3 + $0x98] sm:$0xff] }
 0x92c   :  { %18687 = vst [vmem:[#allocation20_spill] sm:$0xff] %v16257_v21  ;;  %12146 = vmatmul.msk.f32.gmra.mxu3 %vm4996_vm4, %v8824_v61  ;;  %v6669_v61 = vadd.f32 %v6668_v62, %v6267_v44  ;;  %v7767_v62 = vld [vmem:[#allocation3 + $0xb1] sm:$0xff] }
 0x92d   :  { %12086 = vmatmul.msk.f32.gmra.mxu2 %vm4996_vm4, %v8297_v50  ;;  %12214 = vmatmul.msk.f32.gmra.mxu0 %vm4996_vm4, %v7766_v46 }
 0x92f   :  { %v7132_v25 = vpop.f32.mrf.mxu3 }
 0x930   :  { %v7214_v54 = vadd.f32 %v7132_v25, %v6666_v2  ;;  %v6270_v2 = vpop.f32.mrf.mxu1 }
 0x932   :  { %v16263_v58 = vadd.f32 %v7663_v9, %v7214_v54  ;;  %v6680_v52 = vpop.f32.mrf.mxu2  ;;  %v7675_v9 = vpop.f32.mrf.mxu0  ;;  %v8298_v54 = vld [vmem:[#allocation3 + $0xb2] sm:$0xff] }
 0x933   :  { %12018 = vmatmul.msk.f32.gmra.mxu1 %vm4996_vm4, %v7763_v37  ;;  %v8827_v37 = vld [vmem:[#allocation3 + $0xa8] sm:$0xff] }
 0x934   :  { %18688 = vst [vmem:[#allocation4_spill] sm:$0xff] %v16263_v58  ;;  %12147 = vmatmul.msk.f32.gmra.mxu3 %vm4996_vm4, %v8825_v6  ;;  %v6672_v6 = vadd.f32 %v6671_v55, %v6270_v2  ;;  %v7768_v55 = vld [vmem:[#allocation3 + $0xc1] sm:$0xff] }
 0x935   :  { %12087 = vmatmul.msk.f32.gmra.mxu2 %vm4996_vm4, %v8298_v54  ;;  %12215 = vmatmul.msk.f32.gmra.mxu0 %vm4996_vm4, %v7767_v62 }
 0x937   :  { %v7135_v32 = vpop.f32.mrf.mxu3 }
 0x938   :  { %v7215_v21 = vadd.f32 %v7135_v32, %v6669_v61  ;;  %v6273_v61 = vpop.f32.mrf.mxu1 }
 0x93a   :  { %v16269_v25 = vadd.f32 %v7666_v27, %v7215_v21  ;;  %v6683_v50 = vpop.f32.mrf.mxu2  ;;  %v7678_v27 = vpop.f32.mrf.mxu0  ;;  %v8299_v21 = vld [vmem:[#allocation3 + $0xc2] sm:$0xff] }
 0x93b   :  { %12019 = vmatmul.msk.f32.gmra.mxu1 %vm4996_vm4, %v7764_v34  ;;  %v8828_v34 = vld [vmem:[#allocation3 + $0xb0] sm:$0xff] }
 0x93c   :  { %18689 = vst [vmem:[#allocation35_spill] sm:$0xff] %v16269_v25  ;;  %12148 = vmatmul.msk.f32.gmra.mxu3 %vm4996_vm4, %v8826_v51  ;;  %v6675_v51 = vadd.f32 %v6674_v7, %v6273_v61  ;;  %v7769_v7 = vld [vmem:[#allocation3 + $0xc9] sm:$0xff] }
 0x93d   :  { %12088 = vmatmul.msk.f32.gmra.mxu2 %vm4996_vm4, %v8299_v21  ;;  %12216 = vmatmul.msk.f32.gmra.mxu0 %vm4996_vm4, %v7768_v55 }
 0x93f   :  { %v7138_v44 = vpop.f32.mrf.mxu3 }
 0x940   :  { %v7216_v58 = vadd.f32 %v7138_v44, %v6672_v6  ;;  %v6276_v6 = vpop.f32.mrf.mxu1 }
 0x942   :  { %v16275_v32 = vadd.f32 %v7669_v53, %v7216_v58  ;;  %v6686_v54 = vpop.f32.mrf.mxu2  ;;  %v7681_v53 = vpop.f32.mrf.mxu0  ;;  %v8300_v58 = vld [vmem:[#allocation3 + $0xca] sm:$0xff] }
 0x943   :  { %12020 = vmatmul.msk.f32.gmra.mxu1 %vm4996_vm4, %v7765_v13  ;;  %v8829_v13 = vld [vmem:[#allocation3 + $0xc0] sm:$0xff] }
 0x944   :  { %18690 = vst [vmem:[#allocation16_spill] sm:$0xff] %v16275_v32  ;;  %12149 = vmatmul.msk.f32.gmra.mxu3 %vm4996_vm4, %v8827_v37  ;;  %v6678_v37 = vadd.f32 %v6677_v56, %v6276_v6  ;;  %v7770_v56 = vld [vmem:[#allocation3 + $0xd9] sm:$0xff] }
 0x945   :  { %12089 = vmatmul.msk.f32.gmra.mxu2 %vm4996_vm4, %v8300_v58  ;;  %12217 = vmatmul.msk.f32.gmra.mxu0 %vm4996_vm4, %v7769_v7 }
 0x947   :  { %v7141_v2 = vpop.f32.mrf.mxu3 }
 0x948   :  { %v7217_v25 = vadd.f32 %v7141_v2, %v6675_v51  ;;  %v6279_v51 = vpop.f32.mrf.mxu1 }
 0x94a   :  { %v16281_v44 = vadd.f32 %v7672_v15, %v7217_v25  ;;  %v6689_v21 = vpop.f32.mrf.mxu2  ;;  %v7684_v15 = vpop.f32.mrf.mxu0  ;;  %v8301_v25 = vld [vmem:[#allocation3 + $0xda] sm:$0xff] }
 0x94b   :  { %12021 = vmatmul.msk.f32.gmra.mxu1 %vm4996_vm4, %v7766_v46  ;;  %v8830_v46 = vld [vmem:[#allocation3 + $0xc8] sm:$0xff] }
 0x94c   :  { %18691 = vst [vmem:[#allocation8_spill] sm:$0xff] %v16281_v44  ;;  %12150 = vmatmul.msk.f32.gmra.mxu3 %vm4996_vm4, %v8828_v34  ;;  %v6681_v34 = vadd.f32 %v6680_v52, %v6279_v51  ;;  %v7771_v52 = vld [vmem:[#allocation3 + $0xe1] sm:$0xff] }
 0x94d   :  { %12090 = vmatmul.msk.f32.gmra.mxu2 %vm4996_vm4, %v8301_v25  ;;  %12218 = vmatmul.msk.f32.gmra.mxu0 %vm4996_vm4, %v7770_v56 }
 0x94f   :  { %v7144_v61 = vpop.f32.mrf.mxu3 }
 0x950   :  { %v7218_v32 = vadd.f32 %v7144_v61, %v6678_v37  ;;  %v6282_v37 = vpop.f32.mrf.mxu1 }
 0x952   :  { %v16287_v2 = vadd.f32 %v7675_v9, %v7218_v32  ;;  %v8560_v58 = vpop.f32.mrf.mxu2  ;;  %v7687_v9 = vpop.f32.mrf.mxu0  ;;  %v8302_v32 = vld [vmem:[#allocation3 + $0xe2] sm:$0xff] }
 0x953   :  { %12022 = vmatmul.msk.f32.gmra.mxu1 %vm4996_vm4, %v7767_v62  ;;  %v8831_v62 = vld [vmem:[#allocation3 + $0xd8] sm:$0xff] }
 0x954   :  { %18692 = vst [vmem:[#allocation17_spill] sm:$0xff] %v16287_v2  ;;  %12151 = vmatmul.msk.f32.gmra.mxu3 %vm4996_vm4, %v8829_v13  ;;  %v6684_v13 = vadd.f32 %v6683_v50, %v6282_v37  ;;  %v7772_v50 = vld [vmem:[#allocation3 + $0xf1] sm:$0xff] }
 0x955   :  { %12091 = vmatmul.msk.f32.gmra.mxu2 %vm4996_vm4, %v8302_v32  ;;  %12219 = vmatmul.msk.f32.gmra.mxu0 %vm4996_vm4, %v7771_v52 }
 0x957   :  { %v7147_v6 = vpop.f32.mrf.mxu3 }
 0x958   :  { %v7219_v44 = vadd.f32 %v7147_v6, %v6681_v34  ;;  %v6285_v34 = vpop.f32.mrf.mxu1 }
 0x95a   :  { %v16293_v61 = vadd.f32 %v7678_v27, %v7219_v44  ;;  %v8563_v25 = vpop.f32.mrf.mxu2  ;;  %v9623_v27 = vpop.f32.mrf.mxu0  ;;  %v8303_v44 = vld [vmem:[#allocation3 + $0xf2] sm:$0xff] }
 0x95b   :  { %12023 = vmatmul.msk.f32.gmra.mxu1 %vm4996_vm4, %v7768_v55 }
 0x95c   :  { %18693 = vst [vmem:[#allocation15_spill] sm:$0xff] %v16293_v61  ;;  %12152 = vmatmul.msk.f32.gmra.mxu3 %vm4996_vm4, %v8830_v46  ;;  %v6687_v46 = vadd.f32 %v6686_v54, %v6285_v34  ;;  %v7773_v34 = vld [vmem:[#allocation3 + $0xf9] sm:$0xff] }
 0x95d   :  { %12092 = vmatmul.msk.f32.gmra.mxu2 %vm4996_vm4, %v8303_v44  ;;  %12220 = vmatmul.msk.f32.gmra.mxu0 %vm4996_vm4, %v7772_v50 }
 0x95f   :  { %v7150_v51 = vpop.f32.mrf.mxu3 }
 0x960   :  { %v7220_v2 = vadd.f32 %v7150_v51, %v6684_v13  ;;  %v6288_v13 = vpop.f32.mrf.mxu1  ;;  %v8832_v51 = vld [vmem:[#allocation3 + $0xe0] sm:$0xff] }
 0x961   :  { %v6690_v54 = vadd.f32 %v6689_v21, %v6288_v13  ;;  %v8833_v21 = vld [vmem:[#allocation3 + $0xf0] sm:$0xff] }
 0x962   :  { %v16299_v6 = vadd.f32 %v7681_v53, %v7220_v2  ;;  %v8566_v32 = vpop.f32.mrf.mxu2  ;;  %v6501_v53 = vadd.f32 %v15898_v19, %v15915_v42  ;;  %v9626_v55 = vpop.f32.mrf.mxu0  ;;  %v8305_v13 = vld [vmem:[#allocation3 + $0x10a] sm:$0xff] }
 0x963   :  { %12024 = vmatmul.msk.f32.gmra.mxu1 %vm4996_vm4, %v7769_v7 }
 0x964   :  { %18694 = vst [vmem:[#allocation28_spill] sm:$0xff] %v16299_v6  ;;  %12153 = vmatmul.msk.f32.gmra.mxu3 %vm4996_vm4, %v8831_v62  ;;  %v8304_v62 = vld [vmem:[#allocation3 + $0xfa] sm:$0xff]  ;;  %v7159_v44 = vadd.f32 %v15920_v49, %v6501_v53 }
 0x965   :  { %12093 = vmatmul.msk.f32.gmra.mxu2 %vm4996_vm4, %v8304_v62  ;;  %12221 = vmatmul.msk.f32.gmra.mxu0 %vm4996_vm4, %v7773_v34  ;;  %v7774_v62 = vld [vmem:[#allocation3 + $0x109] sm:$0xff] }
 0x966   :  { %v7690_v19 = vadd.f32 %v15905_v17, %v7159_v44 }
 0x967   :  { %v7153_v37 = vpop.f32.mrf.mxu3 }
 0x968   :  { %v7221_v61 = vadd.f32 %v7153_v37, %v6687_v46 }
 0x96a   :  { %v16307_v2 = vadd.f32 %v7684_v15, %v7221_v61  ;;  %v8569_v37 = vpop.f32.mrf.mxu2  ;;  %v8029_v15 = vpop.f32.mrf.mxu1 }
 0x96b   :  { %v8221_v61 = vadd.f32 %v8029_v15, %v7690_v19  ;;  %12025 = vmatmul.msk.f32.gmra.mxu1 %vm4996_vm4, %v7770_v56  ;;  %v8834_v56 = vld [vmem:[#allocation3 + $0xf8] sm:$0xff] }
 0x96c   :  { %18695 = vst [vmem:[#allocation54_spill] sm:$0xff] %v16307_v2  ;;  %12154 = vmatmul.msk.f32.gmra.mxu3 %vm4996_vm4, %v8832_v51  ;;  %v9629_v2 = vpop.f32.mrf.mxu0 }
 0x96d   :  { %v8752_v51 = vadd.f32 %v8560_v58, %v8221_v61  ;;  %12094 = vmatmul.msk.f32.gmra.mxu2 %vm4996_vm4, %v8305_v13  ;;  %12222 = vmatmul.msk.f32.gmra.mxu0 %vm4996_vm4, %v7774_v62  ;;  %v7775_v58 = vld [vmem:[#allocation3 + $0x111] sm:$0xff] }
 0x96f   :  { %v7156_v46 = vpop.f32.mrf.mxu3 }
 0x970   :  { %v7222_v42 = vadd.f32 %v7156_v46, %v6690_v54 }
 0x972   :  { %v16315_v7 = vadd.f32 %v7687_v9, %v7222_v42  ;;  %v8572_v17 = vpop.f32.mrf.mxu2  ;;  %v8032_v54 = vpop.f32.mrf.mxu1  ;;  %v8306_v42 = vld [vmem:[#allocation3 + $0x112] sm:$0xff] }
 0x973   :  { %v8222_v9 = vadd.f32 %v8032_v54, %v15927_v14  ;;  %12026 = vmatmul.msk.f32.gmra.mxu1 %vm4996_vm4, %v7771_v52  ;;  %v8835_v52 = vld [vmem:[#allocation3 + $0x108] sm:$0xff] }
 0x974   :  { %18696 = vst [vmem:[#allocation34_spill] sm:$0xff] %v16315_v7  ;;  %12155 = vmatmul.msk.f32.gmra.mxu3 %vm4996_vm4, %v8833_v21  ;;  %v9632_v46 = vpop.f32.mrf.mxu0 }
 0x975   :  { %v8753_v19 = vadd.f32 %v8563_v25, %v8222_v9  ;;  %12095 = vmatmul.msk.f32.gmra.mxu2 %vm4996_vm4, %v8306_v42  ;;  %12223 = vmatmul.msk.f32.gmra.mxu0 %vm4996_vm4, %v7775_v58 }
 0x977   :  { %v9092_v49 = vpop.f32.mrf.mxu3 }
 0x978   :  { %v9284_v53 = vadd.f32 %v9092_v49, %v8752_v51  ;;  %v8307_v49 = vld [vmem:[#allocation3 + $0x122] sm:$0xff] }
 0x97a   :  { %v16322_v44 = vadd.f32 %v9623_v27, %v9284_v53  ;;  %v8575_v61 = vpop.f32.mrf.mxu2  ;;  %v8035_v13 = vpop.f32.mrf.mxu1  ;;  %v7776_v53 = vld [vmem:[#allocation3 + $0x121] sm:$0xff] }
 0x97b   :  { %v8223_v14 = vadd.f32 %v8035_v13, %v15933_v41  ;;  %12027 = vmatmul.msk.f32.gmra.mxu1 %vm4996_vm4, %v7772_v50  ;;  %v8836_v50 = vld [vmem:[#allocation3 + $0x110] sm:$0xff] }
 0x97c   :  { %12156 = vmatmul.msk.f32.gmra.mxu3 %vm4996_vm4, %v8834_v56  ;;  %v9635_v51 = vpop.f32.mrf.mxu0 }
 0x97d   :  { %v8754_v25 = vadd.f32 %v8566_v32, %v8223_v14  ;;  %12096 = vmatmul.msk.f32.gmra.mxu2 %vm4996_vm4, %v8307_v49  ;;  %12224 = vmatmul.msk.f32.gmra.mxu0 %vm4996_vm4, %v7776_v53 }
 0x97f   :  { %v9095_v15 = vpop.f32.mrf.mxu3 }
 0x980   :  { %v9285_v21 = vadd.f32 %v9095_v15, %v8753_v19  ;;  %v8308_v15 = vld [vmem:[#allocation3 + $0x12a] sm:$0xff] }
 0x982   :  { %v16329_v27 = vadd.f32 %v9626_v55, %v9285_v21  ;;  %v8578_v9 = vpop.f32.mrf.mxu2  ;;  %v8038_v19 = vpop.f32.mrf.mxu1  ;;  %v7777_v21 = vld [vmem:[#allocation3 + $0x129] sm:$0xff] }
 0x983   :  { %v8224_v41 = vadd.f32 %v8038_v19, %v15939_v28  ;;  %12028 = vmatmul.msk.f32.gmra.mxu1 %vm4996_vm4, %v7773_v34  ;;  %v8837_v34 = vld [vmem:[#allocation3 + $0x120] sm:$0xff] }
 0x984   :  { %12157 = vmatmul.msk.f32.gmra.mxu3 %vm4996_vm4, %v8835_v52  ;;  %v9638_v42 = vpop.f32.mrf.mxu0 }
 0x985   :  { %v8755_v32 = vadd.f32 %v8569_v37, %v8224_v41  ;;  %12097 = vmatmul.msk.f32.gmra.mxu2 %vm4996_vm4, %v8308_v15  ;;  %12225 = vmatmul.msk.f32.gmra.mxu0 %vm4996_vm4, %v7777_v21 }
 0x987   :  { %v9098_v54 = vpop.f32.mrf.mxu3 }
 0x988   :  { %v9286_v56 = vadd.f32 %v9098_v54, %v8754_v25  ;;  %v8309_v54 = vld [vmem:[#allocation3 + $0x13a] sm:$0xff] }
 0x98a   :  { %v16336_v55 = vadd.f32 %v9629_v2, %v9286_v56  ;;  %v8581_v14 = vpop.f32.mrf.mxu2  ;;  %v8041_v25 = vpop.f32.mrf.mxu1  ;;  %v7778_v56 = vld [vmem:[#allocation3 + $0x139] sm:$0xff] }
 0x98b   :  { %v8225_v28 = vadd.f32 %v8041_v25, %v15945_v3  ;;  %12029 = vmatmul.msk.f32.gmra.mxu1 %vm4996_vm4, %v7774_v62  ;;  %v8838_v62 = vld [vmem:[#allocation3 + $0x128] sm:$0xff] }
 0x98c   :  { %12158 = vmatmul.msk.f32.gmra.mxu3 %vm4996_vm4, %v8836_v50  ;;  %v9641_v49 = vpop.f32.mrf.mxu0 }
 0x98d   :  { %v8756_v37 = vadd.f32 %v8572_v17, %v8225_v28  ;;  %12098 = vmatmul.msk.f32.gmra.mxu2 %vm4996_vm4, %v8309_v54  ;;  %12226 = vmatmul.msk.f32.gmra.mxu0 %vm4996_vm4, %v7778_v56 }
 0x98f   :  { %v9101_v13 = vpop.f32.mrf.mxu3 }
 0x990   :  { %v9287_v52 = vadd.f32 %v9101_v13, %v8755_v32  ;;  %v8310_v13 = vld [vmem:[#allocation3 + $0x142] sm:$0xff] }
 0x992   :  { %v16343_v2 = vadd.f32 %v9632_v46, %v9287_v52  ;;  %v8584_v41 = vpop.f32.mrf.mxu2  ;;  %v8044_v32 = vpop.f32.mrf.mxu1  ;;  %v7779_v52 = vld [vmem:[#allocation3 + $0x141] sm:$0xff] }
 0x993   :  { %v8226_v3 = vadd.f32 %v8044_v32, %v15951_v12  ;;  %12030 = vmatmul.msk.f32.gmra.mxu1 %vm4996_vm4, %v7775_v58  ;;  %v8839_v58 = vld [vmem:[#allocation3 + $0x138] sm:$0xff] }
 0x994   :  { %12159 = vmatmul.msk.f32.gmra.mxu3 %vm4996_vm4, %v8837_v34  ;;  %v9644_v15 = vpop.f32.mrf.mxu0 }
 0x995   :  { %v8757_v17 = vadd.f32 %v8575_v61, %v8226_v3  ;;  %12099 = vmatmul.msk.f32.gmra.mxu2 %vm4996_vm4, %v8310_v13  ;;  %12227 = vmatmul.msk.f32.gmra.mxu0 %vm4996_vm4, %v7779_v52 }
 0x997   :  { %v9104_v19 = vpop.f32.mrf.mxu3 }
 0x998   :  { %v9288_v50 = vadd.f32 %v9104_v19, %v8756_v37  ;;  %v8311_v19 = vld [vmem:[#allocation3 + $0x152] sm:$0xff] }
 0x99a   :  { %v16350_v46 = vadd.f32 %v9635_v51, %v9288_v50  ;;  %v8587_v28 = vpop.f32.mrf.mxu2  ;;  %v8047_v37 = vpop.f32.mrf.mxu1  ;;  %v7780_v50 = vld [vmem:[#allocation3 + $0x151] sm:$0xff] }
 0x99b   :  { %v8227_v12 = vadd.f32 %v8047_v37, %v15957_v5  ;;  %12031 = vmatmul.msk.f32.gmra.mxu1 %vm4996_vm4, %v7776_v53  ;;  %v8840_v53 = vld [vmem:[#allocation3 + $0x140] sm:$0xff] }
 0x99c   :  { %12160 = vmatmul.msk.f32.gmra.mxu3 %vm4996_vm4, %v8838_v62  ;;  %v9647_v54 = vpop.f32.mrf.mxu0 }
 0x99d   :  { %v8758_v61 = vadd.f32 %v8578_v9, %v8227_v12  ;;  %12100 = vmatmul.msk.f32.gmra.mxu2 %vm4996_vm4, %v8311_v19  ;;  %12228 = vmatmul.msk.f32.gmra.mxu0 %vm4996_vm4, %v7780_v50 }
 0x99f   :  { %v9107_v25 = vpop.f32.mrf.mxu3 }
 0x9a0   :  { %v9289_v34 = vadd.f32 %v9107_v25, %v8757_v17  ;;  %v8312_v25 = vld [vmem:[#allocation3 + $0x15a] sm:$0xff] }
 0x9a2   :  { %v16357_v51 = vadd.f32 %v9638_v42, %v9289_v34  ;;  %v8590_v3 = vpop.f32.mrf.mxu2  ;;  %v8050_v17 = vpop.f32.mrf.mxu1  ;;  %v7781_v34 = vld [vmem:[#allocation3 + $0x159] sm:$0xff] }
 0x9a3   :  { %v8228_v5 = vadd.f32 %v8050_v17, %v15963_v45  ;;  %12032 = vmatmul.msk.f32.gmra.mxu1 %vm4996_vm4, %v7777_v21  ;;  %v8841_v21 = vld [vmem:[#allocation3 + $0x150] sm:$0xff] }
 0x9a4   :  { %12161 = vmatmul.msk.f32.gmra.mxu3 %vm4996_vm4, %v8839_v58  ;;  %v9650_v13 = vpop.f32.mrf.mxu0 }
 0x9a5   :  { %v8759_v9 = vadd.f32 %v8581_v14, %v8228_v5  ;;  %12101 = vmatmul.msk.f32.gmra.mxu2 %vm4996_vm4, %v8312_v25  ;;  %12229 = vmatmul.msk.f32.gmra.mxu0 %vm4996_vm4, %v7781_v34 }
 0x9a7   :  { %v9110_v32 = vpop.f32.mrf.mxu3 }
 0x9a8   :  { %v9290_v62 = vadd.f32 %v9110_v32, %v8758_v61  ;;  %v8313_v32 = vld [vmem:[#allocation3 + $0x16a] sm:$0xff] }
 0x9aa   :  { %v16364_v42 = vadd.f32 %v9641_v49, %v9290_v62  ;;  %v8593_v12 = vpop.f32.mrf.mxu2  ;;  %v8053_v61 = vpop.f32.mrf.mxu1  ;;  %v7782_v62 = vld [vmem:[#allocation3 + $0x169] sm:$0xff] }
 0x9ab   :  { %v8229_v45 = vadd.f32 %v8053_v61, %v15969_v60  ;;  %12033 = vmatmul.msk.f32.gmra.mxu1 %vm4996_vm4, %v7778_v56  ;;  %v8842_v56 = vld [vmem:[#allocation3 + $0x158] sm:$0xff] }
 0x9ac   :  { %12162 = vmatmul.msk.f32.gmra.mxu3 %vm4996_vm4, %v8840_v53  ;;  %v9653_v19 = vpop.f32.mrf.mxu0 }
 0x9ad   :  { %v8760_v14 = vadd.f32 %v8584_v41, %v8229_v45  ;;  %12102 = vmatmul.msk.f32.gmra.mxu2 %vm4996_vm4, %v8313_v32  ;;  %12230 = vmatmul.msk.f32.gmra.mxu0 %vm4996_vm4, %v7782_v62 }
 0x9af   :  { %v9113_v37 = vpop.f32.mrf.mxu3 }
 0x9b0   :  { %v9291_v58 = vadd.f32 %v9113_v37, %v8759_v9  ;;  %v8314_v37 = vld [vmem:[#allocation3 + $0x172] sm:$0xff] }
 0x9b2   :  { %v16371_v49 = vadd.f32 %v9644_v15, %v9291_v58  ;;  %v8596_v5 = vpop.f32.mrf.mxu2  ;;  %v8056_v9 = vpop.f32.mrf.mxu1  ;;  %v7783_v58 = vld [vmem:[#allocation3 + $0x171] sm:$0xff] }
 0x9b3   :  { %v8230_v60 = vadd.f32 %v8056_v9, %v15975_v63  ;;  %12034 = vmatmul.msk.f32.gmra.mxu1 %vm4996_vm4, %v7779_v52  ;;  %v8843_v52 = vld [vmem:[#allocation3 + $0x168] sm:$0xff] }
 0x9b4   :  { %12163 = vmatmul.msk.f32.gmra.mxu3 %vm4996_vm4, %v8841_v21  ;;  %v9656_v25 = vpop.f32.mrf.mxu0 }
 0x9b5   :  { %v8761_v41 = vadd.f32 %v8587_v28, %v8230_v60  ;;  %12103 = vmatmul.msk.f32.gmra.mxu2 %vm4996_vm4, %v8314_v37  ;;  %12231 = vmatmul.msk.f32.gmra.mxu0 %vm4996_vm4, %v7783_v58 }
 0x9b7   :  { %v9116_v17 = vpop.f32.mrf.mxu3 }
 0x9b8   :  { %v9292_v53 = vadd.f32 %v9116_v17, %v8760_v14  ;;  %v8315_v17 = vld [vmem:[#allocation3 + $0x182] sm:$0xff] }
 0x9ba   :  { %v16378_v15 = vadd.f32 %v9647_v54, %v9292_v53  ;;  %v8599_v45 = vpop.f32.mrf.mxu2  ;;  %v8059_v14 = vpop.f32.mrf.mxu1  ;;  %v7784_v53 = vld [vmem:[#allocation3 + $0x181] sm:$0xff] }
 0x9bb   :  { %v8231_v63 = vadd.f32 %v8059_v14, %v15981_v20  ;;  %12035 = vmatmul.msk.f32.gmra.mxu1 %vm4996_vm4, %v7780_v50  ;;  %v8844_v50 = vld [vmem:[#allocation3 + $0x170] sm:$0xff] }
 0x9bc   :  { %12164 = vmatmul.msk.f32.gmra.mxu3 %vm4996_vm4, %v8842_v56  ;;  %v9659_v32 = vpop.f32.mrf.mxu0 }
 0x9bd   :  { %v8762_v28 = vadd.f32 %v8590_v3, %v8231_v63  ;;  %12104 = vmatmul.msk.f32.gmra.mxu2 %vm4996_vm4, %v8315_v17  ;;  %12232 = vmatmul.msk.f32.gmra.mxu0 %vm4996_vm4, %v7784_v53 }
 0x9bf   :  { %v9119_v61 = vpop.f32.mrf.mxu3 }
 0x9c0   :  { %v9293_v21 = vadd.f32 %v9119_v61, %v8761_v41  ;;  %v8316_v61 = vld [vmem:[#allocation3 + $0x18a] sm:$0xff] }
 0x9c2   :  { %v16385_v54 = vadd.f32 %v9650_v13, %v9293_v21  ;;  %v8602_v60 = vpop.f32.mrf.mxu2  ;;  %v8062_v41 = vpop.f32.mrf.mxu1  ;;  %v7785_v21 = vld [vmem:[#allocation3 + $0x189] sm:$0xff] }
 0x9c3   :  { %v8232_v20 = vadd.f32 %v8062_v41, %v15987_v22  ;;  %12036 = vmatmul.msk.f32.gmra.mxu1 %vm4996_vm4, %v7781_v34  ;;  %v8845_v34 = vld [vmem:[#allocation3 + $0x180] sm:$0xff] }
 0x9c4   :  { %12165 = vmatmul.msk.f32.gmra.mxu3 %vm4996_vm4, %v8843_v52  ;;  %v9662_v37 = vpop.f32.mrf.mxu0 }
 0x9c5   :  { %v8763_v3 = vadd.f32 %v8593_v12, %v8232_v20  ;;  %12105 = vmatmul.msk.f32.gmra.mxu2 %vm4996_vm4, %v8316_v61  ;;  %12233 = vmatmul.msk.f32.gmra.mxu0 %vm4996_vm4, %v7785_v21 }
 0x9c7   :  { %v9122_v9 = vpop.f32.mrf.mxu3 }
 0x9c8   :  { %v9294_v56 = vadd.f32 %v9122_v9, %v8762_v28  ;;  %v8317_v9 = vld [vmem:[#allocation3 + $0x1ca] sm:$0xff] }
 0x9ca   :  { %v16392_v13 = vadd.f32 %v9653_v19, %v9294_v56  ;;  %v8605_v63 = vpop.f32.mrf.mxu2  ;;  %v8065_v28 = vpop.f32.mrf.mxu1  ;;  %v9378_v56 = vld [vmem:[#allocation3 + $0x199] sm:$0xff] }
 0x9cb   :  { %v8233_v22 = vadd.f32 %v8065_v28, %v15993_v39  ;;  %12037 = vmatmul.msk.f32.gmra.mxu1 %vm4996_vm4, %v7782_v62  ;;  %v8846_v62 = vld [vmem:[#allocation3 + $0x188] sm:$0xff] }
 0x9cc   :  { %12166 = vmatmul.msk.f32.gmra.mxu3 %vm4996_vm4, %v8844_v50  ;;  %v9665_v17 = vpop.f32.mrf.mxu0 }
 0x9cd   :  { %v8764_v12 = vadd.f32 %v8596_v5, %v8233_v22  ;;  %12106 = vmatmul.msk.f32.gmra.mxu2 %vm4996_vm4, %v8317_v9  ;;  %12234 = vmatmul.msk.f32.gmra.mxu0 %vm4996_vm4, %v9378_v56  ;;  %v8319_v56 = vld [vmem:[#allocation3 + $0x1e2] sm:$0xff] }
 0x9cf   :  { %v9125_v14 = vpop.f32.mrf.mxu3 }
 0x9d0   :  { %v9295_v52 = vadd.f32 %v9125_v14, %v8763_v3  ;;  %v8318_v14 = vld [vmem:[#allocation3 + $0x1d2] sm:$0xff] }
 0x9d2   :  { %v16399_v19 = vadd.f32 %v9656_v25, %v9295_v52  ;;  %v8608_v20 = vpop.f32.mrf.mxu2  ;;  %v8068_v3 = vpop.f32.mrf.mxu1  ;;  %v9379_v52 = vld [vmem:[#allocation3 + $0x1a1] sm:$0xff] }
 0x9d3   :  { %v8234_v39 = vadd.f32 %v8068_v3, %v15999_v59  ;;  %12038 = vmatmul.msk.f32.gmra.mxu1 %vm4996_vm4, %v7783_v58 }
 0x9d4   :  { %12167 = vmatmul.msk.f32.gmra.mxu3 %vm4996_vm4, %v8845_v34  ;;  %v9668_v61 = vpop.f32.mrf.mxu0 }
 0x9d5   :  { %v8765_v5 = vadd.f32 %v8599_v45, %v8234_v39  ;;  %12107 = vmatmul.msk.f32.gmra.mxu2 %vm4996_vm4, %v8318_v14  ;;  %12235 = vmatmul.msk.f32.gmra.mxu0 %vm4996_vm4, %v9379_v52  ;;  %v7789_v52 = vld [vmem:[#allocation3 + $0x1e9] sm:$0xff] }
 0x9d7   :  { %v9128_v41 = vpop.f32.mrf.mxu3 }
 0x9d8   :  { %v9296_v50 = vadd.f32 %v9128_v41, %v8764_v12  ;;  %v7788_v41 = vld [vmem:[#allocation3 + $0x1e1] sm:$0xff] }
 0x9da   :  { %v16406_v25 = vadd.f32 %v9659_v32, %v9296_v50  ;;  %v8611_v22 = vpop.f32.mrf.mxu2  ;;  %v8071_v12 = vpop.f32.mrf.mxu1  ;;  %v8847_v32 = vld [vmem:[#allocation3 + $0x198] sm:$0xff] }
 0x9db   :  { %v8235_v59 = vadd.f32 %v8071_v12, %v16005_v4  ;;  %12039 = vmatmul.msk.f32.gmra.mxu1 %vm4996_vm4, %v7784_v53 }
 0x9dc   :  { %12168 = vmatmul.msk.f32.gmra.mxu3 %vm4996_vm4, %v8846_v62  ;;  %v9671_v58 = vpop.f32.mrf.mxu0 }
 0x9dd   :  { %v8766_v45 = vadd.f32 %v8602_v60, %v8235_v59  ;;  %12108 = vmatmul.msk.f32.gmra.mxu2 %vm4996_vm4, %v8319_v56  ;;  %12236 = vmatmul.msk.f32.gmra.mxu0 %vm4996_vm4, %v7788_v41  ;;  %v8320_v60 = vld [vmem:[#allocation3 + $0x1ea] sm:$0xff]  ;;  %v8321_v56 = vld [vmem:[#allocation3 + $0x1fa] sm:$0xff] }
 0x9df   :  { %v9131_v28 = vpop.f32.mrf.mxu3 }
 0x9e0   :  { %v9297_v34 = vadd.f32 %v9131_v28, %v8765_v5 }
 0x9e2   :  { %v16413_v9 = vadd.f32 %v9662_v37, %v9297_v34  ;;  %v8614_v3 = vpop.f32.mrf.mxu2  ;;  %v8074_v62 = vpop.f32.mrf.mxu1  ;;  %v8848_v37 = vld [vmem:[#allocation3 + $0x1a0] sm:$0xff] }
 0x9e3   :  { %v8236_v4 = vadd.f32 %v8074_v62, %v16011_v35  ;;  %12040 = vmatmul.msk.f32.gmra.mxu1 %vm4996_vm4, %v7785_v21  ;;  %v8849_v21 = vld [vmem:[#allocation3 + $0x1e0] sm:$0xff] }
 0x9e4   :  { %12169 = vmatmul.msk.f32.gmra.mxu3 %vm4996_vm4, %v8847_v32  ;;  %v9674_v14 = vpop.f32.mrf.mxu0 }
 0x9e5   :  { %v8767_v53 = vadd.f32 %v8605_v63, %v8236_v4  ;;  %12109 = vmatmul.msk.f32.gmra.mxu2 %vm4996_vm4, %v8320_v60  ;;  %12237 = vmatmul.msk.f32.gmra.mxu0 %vm4996_vm4, %v7789_v52 }
 0x9e7   :  { %v9134_v50 = vpop.f32.mrf.mxu3 }
 0x9e8   :  { %v9298_v39 = vadd.f32 %v9134_v50, %v8766_v45  ;;  %v7790_v50 = vld [vmem:[#allocation3 + $0x1f9] sm:$0xff] }
 0x9ea   :  { %v16420_v5 = vadd.f32 %v9665_v17, %v9298_v39  ;;  %v8617_v34 = vpop.f32.mrf.mxu2  ;;  %v8077_v59 = vpop.f32.mrf.mxu1  ;;  %v7786_v17 = vld [vmem:[#allocation3 + $0x1c9] sm:$0xff] }
 0x9eb   :  { %v8237_v35 = vadd.f32 %v8077_v59, %v16017_v40  ;;  %12041 = vmatmul.msk.f32.gmra.mxu1 %vm4996_vm4, %v7786_v17  ;;  %v7791_v59 = vld [vmem:[#allocation3 + $0x201] sm:$0xff] }
 0x9ec   :  { %12170 = vmatmul.msk.f32.gmra.mxu3 %vm4996_vm4, %v8848_v37  ;;  %v9677_v45 = vpop.f32.mrf.mxu0  ;;  %v7787_v37 = vld [vmem:[#allocation3 + $0x1d1] sm:$0xff] }
 0x9ed   :  { %v8768_v63 = vadd.f32 %v8608_v20, %v8237_v35  ;;  %12110 = vmatmul.msk.f32.gmra.mxu2 %vm4996_vm4, %v8321_v56  ;;  %12238 = vmatmul.msk.f32.gmra.mxu0 %vm4996_vm4, %v7790_v50  ;;  %v8850_v20 = vld [vmem:[#allocation3 + $0x1e8] sm:$0xff] }
 0x9ef   :  { %v9137_v28 = vpop.f32.mrf.mxu3 }
 0x9f0   :  { %v9299_v12 = vadd.f32 %v9137_v28, %v8767_v53 }
 0x9f2   :  { %v16427_v32 = vadd.f32 %v9668_v61, %v9299_v12  ;;  %v8620_v62 = vpop.f32.mrf.mxu2  ;;  %v8080_v40 = vpop.f32.mrf.mxu1  ;;  %v8322_v12 = vld [vmem:[#allocation3 + $0x202] sm:$0xff] }
 0x9f3   :  { %v8238_v61 = vadd.f32 %v8080_v40, %v16023_v8  ;;  %12042 = vmatmul.msk.f32.gmra.mxu1 %vm4996_vm4, %v7787_v37  ;;  %v7792_v40 = vld [vmem:[#allocation3 + $0x211] sm:$0xff] }
 0x9f4   :  { %12171 = vmatmul.msk.f32.gmra.mxu3 %vm4996_vm4, %v8849_v21  ;;  %v9680_v60 = vpop.f32.mrf.mxu0 }
 0x9f5   :  { %v8769_v28 = vadd.f32 %v8611_v22, %v8238_v61  ;;  %12111 = vmatmul.msk.f32.gmra.mxu2 %vm4996_vm4, %v8322_v12  ;;  %12239 = vmatmul.msk.f32.gmra.mxu0 %vm4996_vm4, %v7791_v59  ;;  %v8851_v22 = vld [vmem:[#allocation3 + $0x1f8] sm:$0xff] }
 0x9f7   :  { %v9140_v39 = vpop.f32.mrf.mxu3 }
 0x9f8   :  { %v9300_v4 = vadd.f32 %v9140_v39, %v8768_v63 }
 0x9fa   :  { %v16434_v53 = vadd.f32 %v9671_v58, %v9300_v4  ;;  %v8623_v17 = vpop.f32.mrf.mxu2  ;;  %v8083_v8 = vpop.f32.mrf.mxu1  ;;  %v8323_v4 = vld [vmem:[#allocation3 + $0x212] sm:$0xff] }
 0x9fb   :  { %v8239_v58 = vadd.f32 %v8083_v8, %v16029_v36  ;;  %12043 = vmatmul.msk.f32.gmra.mxu1 %vm4996_vm4, %v7788_v41  ;;  %v8852_v41 = vld [vmem:[#allocation3 + $0x200] sm:$0xff] }
 0x9fc   :  { %12172 = vmatmul.msk.f32.gmra.mxu3 %vm4996_vm4, %v8850_v20  ;;  %v9683_v56 = vpop.f32.mrf.mxu0 }
 0x9fd   :  { %v8770_v39 = vadd.f32 %v8614_v3, %v8239_v58  ;;  %12112 = vmatmul.msk.f32.gmra.mxu2 %vm4996_vm4, %v8323_v4  ;;  %12240 = vmatmul.msk.f32.gmra.mxu0 %vm4996_vm4, %v7792_v40 }
 0x9ff   :  { %v9143_v35 = vpop.f32.mrf.mxu3 }
 0xa00   :  { %v9301_v21 = vadd.f32 %v9143_v35, %v8769_v28  ;;  %v8324_v35 = vld [vmem:[#allocation3 + $0x21a] sm:$0xff] }
 0xa02   :  { %v16441_v63 = vadd.f32 %v9674_v14, %v9301_v21  ;;  %v8626_v37 = vpop.f32.mrf.mxu2  ;;  %v8086_v28 = vpop.f32.mrf.mxu1  ;;  %v7793_v21 = vld [vmem:[#allocation3 + $0x219] sm:$0xff] }
 0xa03   :  { %v8240_v36 = vadd.f32 %v8086_v28, %v16035_v0  ;;  %12044 = vmatmul.msk.f32.gmra.mxu1 %vm4996_vm4, %v7789_v52  ;;  %v8853_v52 = vld [vmem:[#allocation3 + $0x210] sm:$0xff] }
 0xa04   :  { %12173 = vmatmul.msk.f32.gmra.mxu3 %vm4996_vm4, %v8851_v22  ;;  %v9686_v12 = vpop.f32.mrf.mxu0 }
 0xa05   :  { %v8771_v3 = vadd.f32 %v8617_v34, %v8240_v36  ;;  %12113 = vmatmul.msk.f32.gmra.mxu2 %vm4996_vm4, %v8324_v35  ;;  %12241 = vmatmul.msk.f32.gmra.mxu0 %vm4996_vm4, %v7793_v21 }
 0xa07   :  { %v9146_v61 = vpop.f32.mrf.mxu3 }
 0xa08   :  { %v9302_v20 = vadd.f32 %v9146_v61, %v8770_v39  ;;  %v8325_v61 = vld [vmem:[#allocation3 + $0x22a] sm:$0xff] }
 0xa0a   :  { %v16448_v14 = vadd.f32 %v9677_v45, %v9302_v20  ;;  %v8629_v58 = vpop.f32.mrf.mxu2  ;;  %v8089_v39 = vpop.f32.mrf.mxu1  ;;  %v7794_v20 = vld [vmem:[#allocation3 + $0x229] sm:$0xff] }
 0xa0b   :  { %v8241_v0 = vadd.f32 %v8089_v39, %v16041_v10  ;;  %12045 = vmatmul.msk.f32.gmra.mxu1 %vm4996_vm4, %v7790_v50  ;;  %v8854_v50 = vld [vmem:[#allocation3 + $0x218] sm:$0xff] }
 0xa0c   :  { %12174 = vmatmul.msk.f32.gmra.mxu3 %vm4996_vm4, %v8852_v41  ;;  %v9689_v4 = vpop.f32.mrf.mxu0 }
 0xa0d   :  { %v8772_v34 = vadd.f32 %v8620_v62, %v8241_v0  ;;  %12114 = vmatmul.msk.f32.gmra.mxu2 %vm4996_vm4, %v8325_v61  ;;  %12242 = vmatmul.msk.f32.gmra.mxu0 %vm4996_vm4, %v7794_v20 }
 0xa0f   :  { %v9149_v8 = vpop.f32.mrf.mxu3 }
 0xa10   :  { %v9303_v22 = vadd.f32 %v9149_v8, %v8771_v3  ;;  %v8326_v8 = vld [vmem:[#allocation3 + $0x232] sm:$0xff] }
 0xa12   :  { %v16455_v45 = vadd.f32 %v9680_v60, %v9303_v22  ;;  %v8632_v36 = vpop.f32.mrf.mxu2  ;;  %v8092_v3 = vpop.f32.mrf.mxu1  ;;  %v7795_v22 = vld [vmem:[#allocation3 + $0x231] sm:$0xff] }
 0xa13   :  { %v8242_v10 = vadd.f32 %v8092_v3, %v16047_v38  ;;  %12046 = vmatmul.msk.f32.gmra.mxu1 %vm4996_vm4, %v7791_v59  ;;  %v8855_v59 = vld [vmem:[#allocation3 + $0x228] sm:$0xff] }
 0xa14   :  { %12175 = vmatmul.msk.f32.gmra.mxu3 %vm4996_vm4, %v8853_v52  ;;  %v9692_v35 = vpop.f32.mrf.mxu0 }
 0xa15   :  { %v8773_v62 = vadd.f32 %v8623_v17, %v8242_v10  ;;  %12115 = vmatmul.msk.f32.gmra.mxu2 %vm4996_vm4, %v8326_v8  ;;  %12243 = vmatmul.msk.f32.gmra.mxu0 %vm4996_vm4, %v7795_v22 }
 0xa17   :  { %v9152_v28 = vpop.f32.mrf.mxu3 }
 0xa18   :  { %v9304_v41 = vadd.f32 %v9152_v28, %v8772_v34  ;;  %v8327_v28 = vld [vmem:[#allocation3 + $0x242] sm:$0xff] }
 0xa1a   :  { %v16462_v60 = vadd.f32 %v9683_v56, %v9304_v41  ;;  %v8635_v0 = vpop.f32.mrf.mxu2  ;;  %v8095_v34 = vpop.f32.mrf.mxu1  ;;  %v7796_v41 = vld [vmem:[#allocation3 + $0x241] sm:$0xff] }
 0xa1b   :  { %v8243_v38 = vadd.f32 %v8095_v34, %v16053_v43  ;;  %12047 = vmatmul.msk.f32.gmra.mxu1 %vm4996_vm4, %v7792_v40  ;;  %v8856_v40 = vld [vmem:[#allocation3 + $0x230] sm:$0xff] }
 0xa1c   :  { %18697 = vst [vmem:[#allocation21_spill] sm:$0xff] %v16462_v60  ;;  %12176 = vmatmul.msk.f32.gmra.mxu3 %vm4996_vm4, %v8854_v50  ;;  %v9695_v61 = vpop.f32.mrf.mxu0  ;;  %v9918_v60 = vld [vmem:[#allocation3 + $0x232] sm:$0xff] }
 0xa1d   :  { %v8774_v17 = vadd.f32 %v8626_v37, %v8243_v38  ;;  %12116 = vmatmul.msk.f32.gmra.mxu2 %vm4996_vm4, %v8327_v28  ;;  %12244 = vmatmul.msk.f32.gmra.mxu0 %vm4996_vm4, %v7796_v41 }
 0xa1f   :  { %v9155_v39 = vpop.f32.mrf.mxu3 }
 0xa20   :  { %v9305_v52 = vadd.f32 %v9155_v39, %v8773_v62  ;;  %v8328_v39 = vld [vmem:[#allocation3 + $0x24a] sm:$0xff] }
 0xa22   :  { %v16469_v56 = vadd.f32 %v9686_v12, %v9305_v52  ;;  %v8638_v10 = vpop.f32.mrf.mxu2  ;;  %v8098_v62 = vpop.f32.mrf.mxu1  ;;  %v7797_v52 = vld [vmem:[#allocation3 + $0x249] sm:$0xff] }
 0xa23   :  { %v8244_v43 = vadd.f32 %v8098_v62, %v16059_v29  ;;  %12048 = vmatmul.msk.f32.gmra.mxu1 %vm4996_vm4, %v7793_v21  ;;  %v8857_v21 = vld [vmem:[#allocation3 + $0x240] sm:$0xff] }
 0xa24   :  { %18698 = vst [vmem:[#allocation22_spill] sm:$0xff] %v16469_v56  ;;  %12177 = vmatmul.msk.f32.gmra.mxu3 %vm4996_vm4, %v8855_v59  ;;  %v9698_v8 = vpop.f32.mrf.mxu0  ;;  %v9917_v56 = vld [vmem:[#allocation3 + $0x22a] sm:$0xff] }
 0xa25   :  { %v8775_v37 = vadd.f32 %v8629_v58, %v8244_v43  ;;  %12117 = vmatmul.msk.f32.gmra.mxu2 %vm4996_vm4, %v8328_v39  ;;  %12245 = vmatmul.msk.f32.gmra.mxu0 %vm4996_vm4, %v7797_v52 }
 0xa27   :  { %v9158_v3 = vpop.f32.mrf.mxu3 }
 0xa28   :  { %v9306_v50 = vadd.f32 %v9158_v3, %v8774_v17  ;;  %v8329_v3 = vld [vmem:[#allocation3 + $0x25a] sm:$0xff] }
 0xa2a   :  { %v16476_v12 = vadd.f32 %v9689_v4, %v9306_v50  ;;  %v8641_v38 = vpop.f32.mrf.mxu2  ;;  %v8101_v17 = vpop.f32.mrf.mxu1  ;;  %v7798_v50 = vld [vmem:[#allocation3 + $0x259] sm:$0xff] }
 0xa2b   :  { %v8245_v29 = vadd.f32 %v8101_v17, %v16065_v33  ;;  %12049 = vmatmul.msk.f32.gmra.mxu1 %vm4996_vm4, %v7794_v20  ;;  %v8858_v20 = vld [vmem:[#allocation3 + $0x248] sm:$0xff] }
 0xa2c   :  { %18699 = vst [vmem:[#allocation33_spill] sm:$0xff] %v16476_v12  ;;  %12178 = vmatmul.msk.f32.gmra.mxu3 %vm4996_vm4, %v8856_v40  ;;  %v9701_v28 = vpop.f32.mrf.mxu0  ;;  %v9916_v12 = vld [vmem:[#allocation3 + $0x21a] sm:$0xff] }
 0xa2d   :  { %v8776_v58 = vadd.f32 %v8632_v36, %v8245_v29  ;;  %12118 = vmatmul.msk.f32.gmra.mxu2 %vm4996_vm4, %v8329_v3  ;;  %12246 = vmatmul.msk.f32.gmra.mxu0 %vm4996_vm4, %v7798_v50 }
 0xa2f   :  { %v9161_v34 = vpop.f32.mrf.mxu3 }
 0xa30   :  { %v9307_v59 = vadd.f32 %v9161_v34, %v8775_v37  ;;  %v8330_v34 = vld [vmem:[#allocation3 + $0x262] sm:$0xff] }
 0xa32   :  { %v16483_v4 = vadd.f32 %v9692_v35, %v9307_v59  ;;  %v8644_v43 = vpop.f32.mrf.mxu2  ;;  %v8104_v37 = vpop.f32.mrf.mxu1  ;;  %v7799_v59 = vld [vmem:[#allocation3 + $0x261] sm:$0xff] }
 0xa33   :  { %v8246_v33 = vadd.f32 %v8104_v37, %v16071_v11  ;;  %12050 = vmatmul.msk.f32.gmra.mxu1 %vm4996_vm4, %v7795_v22  ;;  %v8859_v22 = vld [vmem:[#allocation3 + $0x258] sm:$0xff] }
 0xa34   :  { %18700 = vst [vmem:[#allocation39_spill] sm:$0xff] %v16483_v4  ;;  %12179 = vmatmul.msk.f32.gmra.mxu3 %vm4996_vm4, %v8857_v21  ;;  %v9704_v39 = vpop.f32.mrf.mxu0  ;;  %v9915_v4 = vld [vmem:[#allocation3 + $0x212] sm:$0xff] }
 0xa35   :  { %v8777_v36 = vadd.f32 %v8635_v0, %v8246_v33  ;;  %12119 = vmatmul.msk.f32.gmra.mxu2 %vm4996_vm4, %v8330_v34  ;;  %12247 = vmatmul.msk.f32.gmra.mxu0 %vm4996_vm4, %v7799_v59 }
 0xa37   :  { %v9164_v62 = vpop.f32.mrf.mxu3 }
 0xa38   :  { %v9308_v40 = vadd.f32 %v9164_v62, %v8776_v58  ;;  %v8331_v62 = vld [vmem:[#allocation3 + $0x272] sm:$0xff] }
 0xa3a   :  { %v16490_v35 = vadd.f32 %v9695_v61, %v9308_v40  ;;  %v8647_v29 = vpop.f32.mrf.mxu2  ;;  %v8107_v58 = vpop.f32.mrf.mxu1  ;;  %v7800_v40 = vld [vmem:[#allocation3 + $0x271] sm:$0xff] }
 0xa3b   :  { %v8247_v11 = vadd.f32 %v8107_v58, %v16077_v47  ;;  %12051 = vmatmul.msk.f32.gmra.mxu1 %vm4996_vm4, %v7796_v41  ;;  %v8860_v41 = vld [vmem:[#allocation3 + $0x260] sm:$0xff] }
 0xa3c   :  { %18701 = vst [vmem:[#allocation26_spill] sm:$0xff] %v16490_v35  ;;  %12180 = vmatmul.msk.f32.gmra.mxu3 %vm4996_vm4, %v8858_v20  ;;  %v9707_v3 = vpop.f32.mrf.mxu0  ;;  %v9914_v35 = vld [vmem:[#allocation3 + $0x202] sm:$0xff] }
 0xa3d   :  { %v8778_v0 = vadd.f32 %v8638_v10, %v8247_v11  ;;  %12120 = vmatmul.msk.f32.gmra.mxu2 %vm4996_vm4, %v8331_v62  ;;  %12248 = vmatmul.msk.f32.gmra.mxu0 %vm4996_vm4, %v7800_v40 }
 0xa3f   :  { %v9167_v17 = vpop.f32.mrf.mxu3 }
 0xa40   :  { %v9309_v21 = vadd.f32 %v9167_v17, %v8777_v36  ;;  %v8332_v17 = vld [vmem:[#allocation3 + $0x27a] sm:$0xff] }
 0xa42   :  { %v16497_v61 = vadd.f32 %v9698_v8, %v9309_v21  ;;  %v8650_v33 = vpop.f32.mrf.mxu2  ;;  %v8110_v36 = vpop.f32.mrf.mxu1  ;;  %v7801_v21 = vld [vmem:[#allocation3 + $0x279] sm:$0xff] }
 0xa43   :  { %v8248_v47 = vadd.f32 %v8110_v36, %v16083_v30  ;;  %12052 = vmatmul.msk.f32.gmra.mxu1 %vm4996_vm4, %v7797_v52  ;;  %v8861_v52 = vld [vmem:[#allocation3 + $0x270] sm:$0xff] }
 0xa44   :  { %18702 = vst [vmem:[#allocation27_spill] sm:$0xff] %v16497_v61  ;;  %12181 = vmatmul.msk.f32.gmra.mxu3 %vm4996_vm4, %v8859_v22  ;;  %v9710_v34 = vpop.f32.mrf.mxu0  ;;  %v9913_v61 = vld [vmem:[#allocation3 + $0x1fa] sm:$0xff] }
 0xa45   :  { %v8779_v10 = vadd.f32 %v8641_v38, %v8248_v47  ;;  %12121 = vmatmul.msk.f32.gmra.mxu2 %vm4996_vm4, %v8332_v17  ;;  %12249 = vmatmul.msk.f32.gmra.mxu0 %vm4996_vm4, %v7801_v21 }
 0xa47   :  { %v9170_v37 = vpop.f32.mrf.mxu3 }
 0xa48   :  { %v9310_v20 = vadd.f32 %v9170_v37, %v8778_v0  ;;  %v8333_v37 = vld [vmem:[#allocation3 + $0x28a] sm:$0xff] }
 0xa4a   :  { %v16504_v8 = vadd.f32 %v9701_v28, %v9310_v20  ;;  %v8653_v11 = vpop.f32.mrf.mxu2  ;;  %v8113_v0 = vpop.f32.mrf.mxu1  ;;  %v7802_v20 = vld [vmem:[#allocation3 + $0x289] sm:$0xff] }
 0xa4b   :  { %v8249_v30 = vadd.f32 %v8113_v0, %v16089_v31  ;;  %12053 = vmatmul.msk.f32.gmra.mxu1 %vm4996_vm4, %v7798_v50  ;;  %v8862_v50 = vld [vmem:[#allocation3 + $0x278] sm:$0xff] }
 0xa4c   :  { %18703 = vst [vmem:[#allocation90_spill] sm:$0xff] %v16504_v8  ;;  %12182 = vmatmul.msk.f32.gmra.mxu3 %vm4996_vm4, %v8860_v41  ;;  %v9713_v62 = vpop.f32.mrf.mxu0  ;;  %v9912_v8 = vld [vmem:[#allocation3 + $0x1ea] sm:$0xff] }
 0xa4d   :  { %v8780_v38 = vadd.f32 %v8644_v43, %v8249_v30  ;;  %12122 = vmatmul.msk.f32.gmra.mxu2 %vm4996_vm4, %v8333_v37  ;;  %12250 = vmatmul.msk.f32.gmra.mxu0 %vm4996_vm4, %v7802_v20 }
 0xa4f   :  { %v9173_v58 = vpop.f32.mrf.mxu3 }
 0xa50   :  { %v9311_v22 = vadd.f32 %v9173_v58, %v8779_v10  ;;  %v8334_v58 = vld [vmem:[#allocation3 + $0x292] sm:$0xff] }
 0xa52   :  { %v16511_v28 = vadd.f32 %v9704_v39, %v9311_v22  ;;  %v8656_v47 = vpop.f32.mrf.mxu2  ;;  %v8116_v10 = vpop.f32.mrf.mxu1  ;;  %v7803_v22 = vld [vmem:[#allocation3 + $0x291] sm:$0xff] }
 0xa53   :  { %v8250_v31 = vadd.f32 %v8116_v10, %v16095_v24  ;;  %12054 = vmatmul.msk.f32.gmra.mxu1 %vm4996_vm4, %v7799_v59  ;;  %v8863_v59 = vld [vmem:[#allocation3 + $0x288] sm:$0xff] }
 0xa54   :  { %18704 = vst [vmem:[#allocation48_spill] sm:$0xff] %v16511_v28  ;;  %12183 = vmatmul.msk.f32.gmra.mxu3 %vm4996_vm4, %v8861_v52  ;;  %v9716_v17 = vpop.f32.mrf.mxu0  ;;  %v9911_v28 = vld [vmem:[#allocation3 + $0x1e2] sm:$0xff] }
 0xa55   :  { %v8781_v43 = vadd.f32 %v8647_v29, %v8250_v31  ;;  %12123 = vmatmul.msk.f32.gmra.mxu2 %vm4996_vm4, %v8334_v58  ;;  %12251 = vmatmul.msk.f32.gmra.mxu0 %vm4996_vm4, %v7803_v22 }
 0xa57   :  { %v9176_v36 = vpop.f32.mrf.mxu3 }
 0xa58   :  { %v9312_v41 = vadd.f32 %v9176_v36, %v8780_v38  ;;  %v8335_v36 = vld [vmem:[#allocation3 + $0x2a2] sm:$0xff] }
 0xa5a   :  { %v16518_v39 = vadd.f32 %v9707_v3, %v9312_v41  ;;  %v8659_v30 = vpop.f32.mrf.mxu2  ;;  %v8119_v38 = vpop.f32.mrf.mxu1  ;;  %v7804_v41 = vld [vmem:[#allocation3 + $0x2a1] sm:$0xff] }
 0xa5b   :  { %v8251_v24 = vadd.f32 %v8119_v38, %v16101_v26  ;;  %12055 = vmatmul.msk.f32.gmra.mxu1 %vm4996_vm4, %v7800_v40  ;;  %v8864_v40 = vld [vmem:[#allocation3 + $0x290] sm:$0xff] }
 0xa5c   :  { %18705 = vst [vmem:[#allocation96_spill] sm:$0xff] %v16518_v39  ;;  %12184 = vmatmul.msk.f32.gmra.mxu3 %vm4996_vm4, %v8862_v50  ;;  %v9719_v37 = vpop.f32.mrf.mxu0  ;;  %v9910_v39 = vld [vmem:[#allocation3 + $0x1a2] sm:$0xff] }
 0xa5d   :  { %v8782_v29 = vadd.f32 %v8650_v33, %v8251_v24  ;;  %12124 = vmatmul.msk.f32.gmra.mxu2 %vm4996_vm4, %v8335_v36  ;;  %12252 = vmatmul.msk.f32.gmra.mxu0 %vm4996_vm4, %v7804_v41 }
 0xa5f   :  { %v9179_v0 = vpop.f32.mrf.mxu3 }
 0xa60   :  { %v9313_v52 = vadd.f32 %v9179_v0, %v8781_v43  ;;  %v8336_v0 = vld [vmem:[#allocation3 + $0x2aa] sm:$0xff] }
 0xa62   :  { %v16525_v3 = vadd.f32 %v9710_v34, %v9313_v52  ;;  %v8662_v31 = vpop.f32.mrf.mxu2  ;;  %v8122_v43 = vpop.f32.mrf.mxu1  ;;  %v7805_v52 = vld [vmem:[#allocation3 + $0x2a9] sm:$0xff] }
 0xa63   :  { %v8252_v26 = vadd.f32 %v8122_v43, %v16107_v16  ;;  %12056 = vmatmul.msk.f32.gmra.mxu1 %vm4996_vm4, %v7801_v21  ;;  %v8865_v21 = vld [vmem:[#allocation3 + $0x2a0] sm:$0xff] }
 0xa64   :  { %18706 = vst [vmem:[#allocation38_spill] sm:$0xff] %v16525_v3  ;;  %12185 = vmatmul.msk.f32.gmra.mxu3 %vm4996_vm4, %v8863_v59  ;;  %v9722_v58 = vpop.f32.mrf.mxu0  ;;  %v9909_v3 = vld [vmem:[#allocation3 + $0x19a] sm:$0xff] }
 0xa65   :  { %v8783_v33 = vadd.f32 %v8653_v11, %v8252_v26  ;;  %12125 = vmatmul.msk.f32.gmra.mxu2 %vm4996_vm4, %v8336_v0  ;;  %12253 = vmatmul.msk.f32.gmra.mxu0 %vm4996_vm4, %v7805_v52 }
 0xa67   :  { %v9182_v10 = vpop.f32.mrf.mxu3 }
 0xa68   :  { %v9314_v50 = vadd.f32 %v9182_v10, %v8782_v29  ;;  %v8337_v10 = vld [vmem:[#allocation3 + $0x2ba] sm:$0xff] }
 0xa6a   :  { %v16532_v34 = vadd.f32 %v9713_v62, %v9314_v50  ;;  %v8665_v24 = vpop.f32.mrf.mxu2  ;;  %v8125_v29 = vpop.f32.mrf.mxu1  ;;  %v7806_v50 = vld [vmem:[#allocation3 + $0x2b9] sm:$0xff] }
 0xa6b   :  { %v8253_v16 = vadd.f32 %v8125_v29, %v16113_v57  ;;  %12057 = vmatmul.msk.f32.gmra.mxu1 %vm4996_vm4, %v7802_v20  ;;  %v8866_v20 = vld [vmem:[#allocation3 + $0x2a8] sm:$0xff] }
 0xa6c   :  { %18707 = vst [vmem:[#allocation44_spill] sm:$0xff] %v16532_v34  ;;  %12186 = vmatmul.msk.f32.gmra.mxu3 %vm4996_vm4, %v8864_v40  ;;  %v9725_v36 = vpop.f32.mrf.mxu0  ;;  %v9908_v34 = vld [vmem:[#allocation3 + $0x18a] sm:$0xff] }
 0xa6d   :  { %v8784_v11 = vadd.f32 %v8656_v47, %v8253_v16  ;;  %12126 = vmatmul.msk.f32.gmra.mxu2 %vm4996_vm4, %v8337_v10  ;;  %12254 = vmatmul.msk.f32.gmra.mxu0 %vm4996_vm4, %v7806_v50 }
 0xa6f   :  { %v9185_v38 = vpop.f32.mrf.mxu3 }
 0xa70   :  { %v9315_v59 = vadd.f32 %v9185_v38, %v8783_v33  ;;  %v8338_v38 = vld [vmem:[#allocation3 + $0x2c2] sm:$0xff] }
 0xa72   :  { %v16539_v62 = vadd.f32 %v9716_v17, %v9315_v59  ;;  %v8668_v26 = vpop.f32.mrf.mxu2  ;;  %v8128_v33 = vpop.f32.mrf.mxu1  ;;  %v7807_v59 = vld [vmem:[#allocation3 + $0x2c1] sm:$0xff] }
 0xa73   :  { %v8254_v57 = vadd.f32 %v8128_v33, %v16119_v23  ;;  %12058 = vmatmul.msk.f32.gmra.mxu1 %vm4996_vm4, %v7803_v22  ;;  %v8867_v22 = vld [vmem:[#allocation3 + $0x2b8] sm:$0xff] }
 0xa74   :  { %18708 = vst [vmem:[#allocation60_spill] sm:$0xff] %v16539_v62  ;;  %12187 = vmatmul.msk.f32.gmra.mxu3 %vm4996_vm4, %v8865_v21  ;;  %v9728_v0 = vpop.f32.mrf.mxu0  ;;  %v9907_v62 = vld [vmem:[#allocation3 + $0x182] sm:$0xff] }
 0xa75   :  { %v8785_v47 = vadd.f32 %v8659_v30, %v8254_v57  ;;  %12127 = vmatmul.msk.f32.gmra.mxu2 %vm4996_vm4, %v8338_v38  ;;  %12255 = vmatmul.msk.f32.gmra.mxu0 %vm4996_vm4, %v7807_v59 }
 0xa77   :  { %v9188_v43 = vpop.f32.mrf.mxu3 }
 0xa78   :  { %v9316_v40 = vadd.f32 %v9188_v43, %v8784_v11  ;;  %v8339_v43 = vld [vmem:[#allocation3 + $0x2d2] sm:$0xff] }
 0xa7a   :  { %v16546_v17 = vadd.f32 %v9719_v37, %v9316_v40  ;;  %v8671_v16 = vpop.f32.mrf.mxu2  ;;  %v8131_v11 = vpop.f32.mrf.mxu1  ;;  %v7808_v40 = vld [vmem:[#allocation3 + $0x2d1] sm:$0xff] }
 0xa7b   :  { %v8255_v23 = vadd.f32 %v8131_v11, %v16125_v18  ;;  %12059 = vmatmul.msk.f32.gmra.mxu1 %vm4996_vm4, %v7804_v41  ;;  %v8868_v41 = vld [vmem:[#allocation3 + $0x2c0] sm:$0xff] }
 0xa7c   :  { %18709 = vst [vmem:[#allocation61_spill] sm:$0xff] %v16546_v17  ;;  %12188 = vmatmul.msk.f32.gmra.mxu3 %vm4996_vm4, %v8866_v20  ;;  %v9731_v10 = vpop.f32.mrf.mxu0 }
 0xa7d   :  { %v8786_v30 = vadd.f32 %v8662_v31, %v8255_v23  ;;  %12128 = vmatmul.msk.f32.gmra.mxu2 %vm4996_vm4, %v8339_v43  ;;  %12256 = vmatmul.msk.f32.gmra.mxu0 %vm4996_vm4, %v7808_v40 }
 0xa7f   :  { %v9191_v29 = vpop.f32.mrf.mxu3 }
 0xa80   :  { %v9317_v21 = vadd.f32 %v9191_v29, %v8785_v47  ;;  %v8340_v29 = vld [vmem:[#allocation3 + $0x2da] sm:$0xff] }
 0xa82   :  { %v16553_v37 = vadd.f32 %v9722_v58, %v9317_v21  ;;  %v8674_v57 = vpop.f32.mrf.mxu2  ;;  %v8134_v47 = vpop.f32.mrf.mxu1  ;;  %v7809_v21 = vld [vmem:[#allocation3 + $0x2d9] sm:$0xff] }
 0xa83   :  { %v8256_v18 = vadd.f32 %v8134_v47, %v16131_v1  ;;  %12060 = vmatmul.msk.f32.gmra.mxu1 %vm4996_vm4, %v7805_v52  ;;  %v8869_v52 = vld [vmem:[#allocation3 + $0x2d0] sm:$0xff] }
 0xa84   :  { %18710 = vst [vmem:[#allocation62_spill] sm:$0xff] %v16553_v37  ;;  %12189 = vmatmul.msk.f32.gmra.mxu3 %vm4996_vm4, %v8867_v22  ;;  %v9734_v38 = vpop.f32.mrf.mxu0 }
 0xa85   :  { %v8787_v31 = vadd.f32 %v8665_v24, %v8256_v18  ;;  %12129 = vmatmul.msk.f32.gmra.mxu2 %vm4996_vm4, %v8340_v29  ;;  %12257 = vmatmul.msk.f32.gmra.mxu0 %vm4996_vm4, %v7809_v21 }
 0xa87   :  { %v9194_v33 = vpop.f32.mrf.mxu3 }
 0xa88   :  { %v9318_v20 = vadd.f32 %v9194_v33, %v8786_v30  ;;  %v8341_v33 = vld [vmem:[#allocation3 + $0x2ea] sm:$0xff] }
 0xa8a   :  { %v16560_v58 = vadd.f32 %v9725_v36, %v9318_v20  ;;  %v8677_v23 = vpop.f32.mrf.mxu2  ;;  %v8137_v30 = vpop.f32.mrf.mxu1  ;;  %v7810_v20 = vld [vmem:[#allocation3 + $0x2e9] sm:$0xff] }
 0xa8b   :  { %v8257_v1 = vadd.f32 %v8137_v30, %v16137_v48  ;;  %12061 = vmatmul.msk.f32.gmra.mxu1 %vm4996_vm4, %v7806_v50  ;;  %v18713_v48 = vld [vmem:[#allocation42_spill] sm:$0xff]  ;;  %v8870_v50 = vld [vmem:[#allocation3 + $0x2d8] sm:$0xff] }
 0xa8c   :  { %18711 = vst [vmem:[#allocation63_spill] sm:$0xff] %v16560_v58  ;;  %12190 = vmatmul.msk.f32.gmra.mxu3 %vm4996_vm4, %v8868_v41  ;;  %v9737_v43 = vpop.f32.mrf.mxu0  ;;  %v7811_v30 = vld [vmem:[#allocation3 + $0x2f1] sm:$0xff] }
 0xa8d   :  { %v8788_v24 = vadd.f32 %v8668_v26, %v8257_v1  ;;  %12130 = vmatmul.msk.f32.gmra.mxu2 %vm4996_vm4, %v8341_v33  ;;  %12258 = vmatmul.msk.f32.gmra.mxu0 %vm4996_vm4, %v7810_v20  ;;  %v18715_v33 = vld [vmem:[#allocation59_spill] sm:$0xff]  ;;  %v8880_v58 = vld [vmem:[#allocation3 + $0x350] sm:$0xff] }
 0xa8f   :  { %v9197_v11 = vpop.f32.mrf.mxu3 }
 0xa90   :  { %v9319_v22 = vadd.f32 %v9197_v11, %v8787_v31 }
 0xa92   :  { %v16567_v36 = vadd.f32 %v9728_v0, %v9319_v22  ;;  %v8140_v41 = vpop.f32.mrf.mxu1  ;;  %v8680_v31 = vpop.f32.mrf.mxu2  ;;  %v8342_v22 = vld [vmem:[#allocation3 + $0x2f2] sm:$0xff] }
 0xa93   :  { %v8258_v0 = vadd.f32 %v8140_v41, %v18713_v48  ;;  %12062 = vmatmul.msk.f32.gmra.mxu1 %vm4996_vm4, %v7807_v59  ;;  %v8871_v59 = vld [vmem:[#allocation3 + $0x2e8] sm:$0xff] }
 0xa94   :  { %18712 = vst [vmem:[#allocation64_spill] sm:$0xff] %v16567_v36  ;;  %12191 = vmatmul.msk.f32.gmra.mxu3 %vm4996_vm4, %v8869_v52  ;;  %v9740_v11 = vpop.f32.mrf.mxu0  ;;  %v8343_v48 = vld [vmem:[#allocation3 + $0x302] sm:$0xff] }
 0xa95   :  { %v8789_v26 = vadd.f32 %v8671_v16, %v8258_v0  ;;  %12131 = vmatmul.msk.f32.gmra.mxu2 %vm4996_vm4, %v8342_v22  ;;  %12259 = vmatmul.msk.f32.gmra.mxu0 %vm4996_vm4, %v7811_v30  ;;  %v7812_v0 = vld [vmem:[#allocation3 + $0x301] sm:$0xff] }
 0xa97   :  { %v9200_v47 = vpop.f32.mrf.mxu3 }
 0xa98   :  { %v9320_v18 = vadd.f32 %v9200_v47, %v8788_v24 }
 0xa9a   :  { %v16574_v29 = vadd.f32 %v9731_v10, %v9320_v18  ;;  %v8143_v24 = vpop.f32.mrf.mxu1  ;;  %v8683_v18 = vpop.f32.mrf.mxu2 }
 0xa9b   :  { %v8259_v47 = vadd.f32 %v8143_v24, %v18715_v33  ;;  %12063 = vmatmul.msk.f32.gmra.mxu1 %vm4996_vm4, %v7808_v40  ;;  %v8872_v40 = vld [vmem:[#allocation3 + $0x2f0] sm:$0xff] }
 0xa9c   :  { %18714 = vst [vmem:[#allocation65_spill] sm:$0xff] %v16574_v29  ;;  %12192 = vmatmul.msk.f32.gmra.mxu3 %vm4996_vm4, %v8870_v50  ;;  %v9743_v41 = vpop.f32.mrf.mxu0  ;;  %v8344_v33 = vld [vmem:[#allocation3 + $0x30a] sm:$0xff] }
 0xa9d   :  { %v8790_v16 = vadd.f32 %v8674_v57, %v8259_v47  ;;  %12132 = vmatmul.msk.f32.gmra.mxu2 %vm4996_vm4, %v8343_v48  ;;  %12260 = vmatmul.msk.f32.gmra.mxu0 %vm4996_vm4, %v7812_v0 }
 0xa9f   :  { %v9203_v1 = vpop.f32.mrf.mxu3 }
 0xaa0   :  { %v9321_v52 = vadd.f32 %v9203_v1, %v8789_v26  ;;  %v18717_v1 = vld [vmem:[#allocation13_spill] sm:$0xff] }
 0xaa2   :  { %v16581_v10 = vadd.f32 %v9734_v38, %v9321_v52  ;;  %v8146_v22 = vpop.f32.mrf.mxu1  ;;  %v8686_v47 = vpop.f32.mrf.mxu2 }
 0xaa3   :  { %v8260_v38 = vadd.f32 %v8146_v22, %v18717_v1  ;;  %12064 = vmatmul.msk.f32.gmra.mxu1 %vm4996_vm4, %v7809_v21  ;;  %v18719_v22 = vld [vmem:[#allocation56_spill] sm:$0xff] }
 0xaa4   :  { %18716 = vst [vmem:[#allocation66_spill] sm:$0xff] %v16581_v10  ;;  %12193 = vmatmul.msk.f32.gmra.mxu3 %vm4996_vm4, %v8871_v59  ;;  %v9746_v24 = vpop.f32.mrf.mxu0  ;;  %v7813_v59 = vld [vmem:[#allocation3 + $0x309] sm:$0xff]  ;;  %v8873_v21 = vld [vmem:[#allocation3 + $0x300] sm:$0xff] }
 0xaa5   :  { %v8791_v57 = vadd.f32 %v8677_v23, %v8260_v38  ;;  %12133 = vmatmul.msk.f32.gmra.mxu2 %vm4996_vm4, %v8344_v33  ;;  %12261 = vmatmul.msk.f32.gmra.mxu0 %vm4996_vm4, %v7813_v59  ;;  %v8345_v38 = vld [vmem:[#allocation3 + $0x31a] sm:$0xff] }
 0xaa7   :  { %v9206_v50 = vpop.f32.mrf.mxu3 }
 0xaa8   :  { %v9322_v26 = vadd.f32 %v9206_v50, %v8790_v16 }
 0xaaa   :  { %v16588_v52 = vadd.f32 %v9737_v43, %v9322_v26  ;;  %v8149_v50 = vpop.f32.mrf.mxu1  ;;  %v8689_v33 = vpop.f32.mrf.mxu2 }
 0xaab   :  { %v8261_v43 = vadd.f32 %v8149_v50, %v18719_v22  ;;  %12065 = vmatmul.msk.f32.gmra.mxu1 %vm4996_vm4, %v7810_v20  ;;  %v18721_v50 = vld [vmem:[#allocation77_spill] sm:$0xff] }
 0xaac   :  { %18718 = vst [vmem:[#allocation67_spill] sm:$0xff] %v16588_v52  ;;  %12194 = vmatmul.msk.f32.gmra.mxu3 %vm4996_vm4, %v8872_v40  ;;  %v9749_v1 = vpop.f32.mrf.mxu0  ;;  %v7814_v40 = vld [vmem:[#allocation3 + $0x319] sm:$0xff]  ;;  %v8874_v20 = vld [vmem:[#allocation3 + $0x308] sm:$0xff] }
 0xaad   :  { %v8792_v23 = vadd.f32 %v8680_v31, %v8261_v43  ;;  %12134 = vmatmul.msk.f32.gmra.mxu2 %vm4996_vm4, %v8345_v38  ;;  %12262 = vmatmul.msk.f32.gmra.mxu0 %vm4996_vm4, %v7814_v40  ;;  %v8346_v22 = vld [vmem:[#allocation3 + $0x322] sm:$0xff] }
 0xaae   :  { %v7815_v43 = vld [vmem:[#allocation3 + $0x321] sm:$0xff] }
 0xaaf   :  { %v9209_v16 = vpop.f32.mrf.mxu3 }
 0xab0   :  { %v9323_v48 = vadd.f32 %v9209_v16, %v8791_v57 }
 0xab2   :  { %v16595_v26 = vadd.f32 %v9740_v11, %v9323_v48  ;;  %v8152_v7 = vpop.f32.mrf.mxu1  ;;  %v8692_v6 = vpop.f32.mrf.mxu2 }
 0xab3   :  { %v8262_v11 = vadd.f32 %v8152_v7, %v18721_v50  ;;  %12066 = vmatmul.msk.f32.gmra.mxu1 %vm4996_vm4, %v7811_v30  ;;  %v18722_v7 = vld [vmem:[#allocation46_spill] sm:$0xff]  ;;  %v8875_v30 = vld [vmem:[#allocation3 + $0x318] sm:$0xff] }
 0xab4   :  { %18720 = vst [vmem:[#allocation68_spill] sm:$0xff] %v16595_v26  ;;  %12195 = vmatmul.msk.f32.gmra.mxu3 %vm4996_vm4, %v8873_v21  ;;  %v9752_v21 = vpop.f32.mrf.mxu0  ;;  %v16612_v50 = vld [vmem:[#allocation3 + $0x332] sm:$0xff] }
 0xab5   :  { %v8793_v31 = vadd.f32 %v8683_v18, %v8262_v11  ;;  %12135 = vmatmul.msk.f32.gmra.mxu2 %vm4996_vm4, %v8346_v22  ;;  %12263 = vmatmul.msk.f32.gmra.mxu0 %vm4996_vm4, %v7815_v43  ;;  %v7816_v11 = vld [vmem:[#allocation3 + $0x331] sm:$0xff] }
 0xab7   :  { %v9212_v57 = vpop.f32.mrf.mxu3 }
 0xab8   :  { %v9324_v16 = vadd.f32 %v9212_v57, %v8792_v23 }
 0xaba   :  { %v16602_v48 = vadd.f32 %v9743_v41, %v9324_v16  ;;  %v8155_v57 = vpop.f32.mrf.mxu1 }
 0xabb   :  { %v8263_v41 = vadd.f32 %v8155_v57, %v18722_v7  ;;  %12067 = vmatmul.msk.f32.gmra.mxu1 %vm4996_vm4, %v7812_v0  ;;  %v8695_v0 = vpop.f32.mrf.mxu2 }
 0xabc   :  { %12196 = vmatmul.msk.f32.gmra.mxu3 %vm4996_vm4, %v8874_v20 }
 0xabd   :  { %v8794_v18 = vadd.f32 %v8686_v47, %v8263_v41  ;;  %12136 = vmatmul.msk.f32.gmra.mxu2 %vm4996_vm4, %v16612_v50  ;;  %12264 = vmatmul.msk.f32.gmra.mxu0 %vm4996_vm4, %v7816_v11  ;;  %v8876_v47 = vld [vmem:[#allocation3 + $0x320] sm:$0xff] }
 0xabe   :  { %v16622_v41 = vld [vmem:[#allocation3 + $0x33a] sm:$0xff] }
 0xabf   :  { %v9215_v38 = vpop.f32.mrf.mxu3 }
 0xac0   :  { %v9325_v23 = vadd.f32 %v9215_v38, %v8793_v31  ;;  %v9755_v31 = vpop.f32.mrf.mxu0 }
 0xac2   :  { %v16609_v16 = vadd.f32 %v9746_v24, %v9325_v23  ;;  %v8158_v38 = vpop.f32.mrf.mxu1  ;;  %v18723_v24 = vld [vmem:[#allocation9_spill] sm:$0xff] }
 0xac3   :  { %v8264_v23 = vadd.f32 %v8158_v38, %v18723_v24  ;;  %12068 = vmatmul.msk.f32.gmra.mxu1 %vm4996_vm4, %v7813_v59  ;;  %v9410_v59 = vld [vmem:[#allocation3 + $0x349] sm:$0xff] }
 0xac4   :  { %12197 = vmatmul.msk.f32.gmra.mxu3 %vm4996_vm4, %v8875_v30  ;;  %v7817_v30 = vld [vmem:[#allocation3 + $0x339] sm:$0xff] }
 0xac5   :  { %v8795_v7 = vadd.f32 %v8689_v33, %v8264_v23  ;;  %12137 = vmatmul.msk.f32.gmra.mxu2 %vm4996_vm4, %v16622_v41  ;;  %12265 = vmatmul.msk.f32.gmra.mxu0 %vm4996_vm4, %v7817_v30  ;;  %v8877_v33 = vld [vmem:[#allocation3 + $0x330] sm:$0xff] }
 0xac7   :  { %v9218_v20 = vpop.f32.mrf.mxu3 }
 0xac8   :  { %v9326_v22 = vadd.f32 %v9218_v20, %v8794_v18  ;;  %v9758_v24 = vpop.f32.mrf.mxu0 }
 0xaca   :  { %v16619_v57 = vadd.f32 %v9749_v1, %v9326_v22  ;;  %v8161_v38 = vpop.f32.mrf.mxu1  ;;  %v18724_v1 = vld [vmem:[#allocation14_spill] sm:$0xff] }
 0xacb   :  { %v8265_v22 = vadd.f32 %v8161_v38, %v18724_v1  ;;  %12069 = vmatmul.msk.f32.gmra.mxu1 %vm4996_vm4, %v7814_v40  ;;  %v9411_v38 = vld [vmem:[#allocation3 + $0x351] sm:$0xff] }
 0xacc   :  { %12198 = vmatmul.msk.f32.gmra.mxu3 %vm4996_vm4, %v8876_v47  ;;  %v8698_v47 = vpop.f32.mrf.mxu2 }
 0xacd   :  { %v8796_v23 = vadd.f32 %v8692_v6, %v8265_v22  ;;  %12266 = vmatmul.msk.f32.gmra.mxu0 %vm4996_vm4, %v9410_v59 }
 0xacf   :  { %v9221_v18 = vpop.f32.mrf.mxu3 }
 0xad0   :  { %v9327_v20 = vadd.f32 %v9221_v18, %v8795_v7  ;;  %v18725_v7 = vld [vmem:[#allocation5_spill] sm:$0xff]  ;;  %v9761_v40 = vpop.f32.mrf.mxu0 }
 0xad2   :  { %v16629_v26 = vadd.f32 %v9752_v21, %v9327_v20  ;;  %v8164_v29 = vpop.f32.mrf.mxu1  ;;  %v8878_v21 = vld [vmem:[#allocation3 + $0x338] sm:$0xff] }
 0xad3   :  { %v8266_v18 = vadd.f32 %v8164_v29, %v18725_v7  ;;  %12070 = vmatmul.msk.f32.gmra.mxu1 %vm4996_vm4, %v7815_v43 }
 0xad4   :  { %12199 = vmatmul.msk.f32.gmra.mxu3 %vm4996_vm4, %v8877_v33  ;;  %v8701_v6 = vpop.f32.mrf.mxu2 }
 0xad5   :  { %v8797_v20 = vadd.f32 %v8695_v0, %v8266_v18  ;;  %12267 = vmatmul.msk.f32.gmra.mxu0 %vm4996_vm4, %v9411_v38  ;;  %v18727_v38 = vld [vmem:[#allocation6_spill] sm:$0xff] }
 0xad7   :  { %v9224_v52 = vpop.f32.mrf.mxu3 }
 0xad8   :  { %v9328_v10 = vadd.f32 %v9224_v52, %v8796_v23  ;;  %v18726_v52 = vld [vmem:[#allocation55_spill] sm:$0xff]  ;;  %v8879_v23 = vld [vmem:[#allocation3 + $0x348] sm:$0xff]  ;;  %v9764_v43 = vpop.f32.mrf.mxu0 }
 0xada   :  { %v16635_v36 = vadd.f32 %v9755_v31, %v9328_v10  ;;  %v8167_v59 = vpop.f32.mrf.mxu1 }
 0xadb   :  { %v8267_v33 = vadd.f32 %v8167_v59, %v18726_v52  ;;  %12071 = vmatmul.msk.f32.gmra.mxu1 %vm4996_vm4, %v7816_v11  ;;  %v18728_v59 = vld [vmem:[#allocation30_spill] sm:$0xff] }
 0xadc   :  { %12200 = vmatmul.msk.f32.gmra.mxu3 %vm4996_vm4, %v8878_v21  ;;  %v8704_v18 = vpop.f32.mrf.mxu2 }
 0xadd   :  { %v8798_v10 = vadd.f32 %v8698_v47, %v8267_v33  ;;  %v9879_v33 = vld [vmem:[#allocation3 + $0x32] sm:$0xff] }
 0xadf   :  { %v9227_v1 = vpop.f32.mrf.mxu3 }
 0xae0   :  { %v9329_v22 = vadd.f32 %v9227_v1, %v8797_v20  ;;  %v9767_v11 = vpop.f32.mrf.mxu0 }
 0xae2   :  { %v16641_v29 = vadd.f32 %v9758_v24, %v9329_v22  ;;  %v8170_v7 = vpop.f32.mrf.mxu1 }
 0xae3   :  { %v8268_v21 = vadd.f32 %v8170_v7, %v18727_v38  ;;  %12072 = vmatmul.msk.f32.gmra.mxu1 %vm4996_vm4, %v7817_v30  ;;  %v18729_v30 = vld [vmem:[#allocation23_spill] sm:$0xff] }
 0xae4   :  { %12201 = vmatmul.msk.f32.gmra.mxu3 %vm4996_vm4, %v8879_v23 }
 0xae5   :  { %v8799_v1 = vadd.f32 %v8701_v6, %v8268_v21 }
 0xae7   :  { %v9230_v31 = vpop.f32.mrf.mxu3 }
 0xae8   :  { %v9330_v0 = vadd.f32 %v9230_v31, %v8798_v10  ;;  %v8707_v10 = vpop.f32.mrf.mxu2  ;;  %v9770_v38 = vpop.f32.mrf.mxu0 }
 0xaea   :  { %v16646_v20 = vadd.f32 %v9761_v40, %v9330_v0  ;;  %v8173_v22 = vpop.f32.mrf.mxu1 }
 0xaeb   :  { %v8269_v52 = vadd.f32 %v8173_v22, %v18728_v59  ;;  %12269 = vmatmul.msk.f32.vlgmr.msra.gmra.mxu1 %vm4996_vm4, %v9879_v33  ;;  %v18730_v59 = vld [vmem:[#allocation7_spill] sm:$0xff]  ;;  %v9881_v33 = vld [vmem:[#allocation3 + $0x4a] sm:$0xff] }
 0xaec   :  { %12202 = vmatmul.msk.f32.gmra.mxu3 %vm4996_vm4, %v8880_v58  ;;  %v9880_v58 = vld [vmem:[#allocation3 + $0x3a] sm:$0xff] }
 0xaed   :  { %v8800_v31 = vadd.f32 %v8704_v18, %v8269_v52 }
 0xaef   :  { %v9233_v24 = vpop.f32.mrf.mxu3 }
 0xaf0   :  { %v9331_v47 = vadd.f32 %v9233_v24, %v8799_v1  ;;  %v8710_v24 = vpop.f32.mrf.mxu2 }
 0xaf2   :  { %v16651_v23 = vadd.f32 %v9764_v43, %v9331_v47  ;;  %v8176_v7 = vpop.f32.mrf.mxu1 }
 0xaf3   :  { %v8270_v6 = vadd.f32 %v8176_v7, %v18729_v30  ;;  %12270 = vmatmul.msk.f32.gmra.mxu1 %vm4996_vm4, %v9880_v58  ;;  %v18731_v30 = vld [vmem:[#allocation74_spill] sm:$0xff] }
 0xaf5   :  { %v8801_v1 = vadd.f32 %v8707_v10, %v8270_v6  ;;  %v9882_v10 = vld [vmem:[#allocation3 + $0x52] sm:$0xff] }
 0xaf7   :  { %v9236_v40 = vpop.f32.mrf.mxu3 }
 0xaf8   :  { %v9332_v0 = vadd.f32 %v9236_v40, %v8800_v31  ;;  %v9773_v31 = vpop.f32.mrf.mxu0  ;;  %v8713_v40 = vpop.f32.mrf.mxu2 }
 0xafa   :  { %v16655_v21 = vadd.f32 %v9767_v11, %v9332_v0  ;;  %v8179_v47 = vpop.f32.mrf.mxu1 }
 0xafb   :  { %v8271_v37 = vadd.f32 %v8179_v47, %v18730_v59  ;;  %12271 = vmatmul.msk.f32.gmra.mxu1 %vm4996_vm4, %v9881_v33  ;;  %v18732_v33 = vld [vmem:[#allocation12_spill] sm:$0xff] }
 0xafd   :  { %v8802_v52 = vadd.f32 %v8710_v24, %v8271_v37  ;;  %v9883_v24 = vld [vmem:[#allocation3 + $0x62] sm:$0xff] }
 0xaff   :  { %v9239_v22 = vpop.f32.mrf.mxu3 }
 0xb00   :  { %v9333_v43 = vadd.f32 %v9239_v22, %v8801_v1  ;;  %v9776_v22 = vpop.f32.mrf.mxu0  ;;  %v8716_v59 = vpop.f32.mrf.mxu2 }
 0xb02   :  { %v16659_v18 = vadd.f32 %v9770_v38, %v9333_v43  ;;  %v8182_v0 = vpop.f32.mrf.mxu1 }
 0xb03   :  { %v8272_v58 = vadd.f32 %v8182_v0, %v18731_v30  ;;  %12272 = vmatmul.msk.f32.gmra.mxu1 %vm4996_vm4, %v9882_v10  ;;  %v9884_v30 = vld [vmem:[#allocation3 + $0x6a] sm:$0xff]  ;;  %v9885_v10 = vld [vmem:[#allocation3 + $0x7a] sm:$0xff] }
 0xb05   :  { %v8803_v1 = vadd.f32 %v8713_v40, %v8272_v58 }
 0xb07   :  { %v9242_v7 = vpop.f32.mrf.mxu3 }
 0xb08   :  { %v9334_v11 = vadd.f32 %v9242_v7, %v8802_v52  ;;  %v9779_v0 = vpop.f32.mrf.mxu0 }
 0xb0a   :  { %v16663_v6 = vadd.f32 %v9773_v31, %v9334_v11  ;;  %v8185_v43 = vpop.f32.mrf.mxu1 }
 0xb0b   :  { %v8273_v37 = vadd.f32 %v8185_v43, %v18732_v33  ;;  %12273 = vmatmul.msk.f32.gmra.mxu1 %vm4996_vm4, %v9883_v24 }
 0xb0d   :  { %v8804_v52 = vadd.f32 %v8716_v59, %v8273_v37  ;;  %v9888_v59 = vld [vmem:[#allocation3 + $0x9a] sm:$0xff]  ;;  %v9889_v37 = vld [vmem:[#allocation3 + $0xaa] sm:$0xff] }
 0xb0f   :  { %v9245_v47 = vpop.f32.mrf.mxu3 }
 0xb10   :  { %v9335_v38 = vadd.f32 %v9245_v47, %v8803_v1 }
 0xb12   :  { %v16667_v17 = vadd.f32 %v9776_v22, %v9335_v38  ;;  %v16670_v11 = vpop.f32.mrf.mxu1  ;;  %v9886_v22 = vld [vmem:[#allocation3 + $0x82] sm:$0xff]  ;;  %v9887_v38 = vld [vmem:[#allocation3 + $0x92] sm:$0xff] }
 0xb13   :  { %18733 = vst [vmem:[#allocation69_spill] sm:$0xff] %v16670_v11  ;;  %12274 = vmatmul.msk.f32.gmra.mxu1 %vm4996_vm4, %v9884_v30  ;;  %v9892_v30 = vld [vmem:[#allocation3 + $0xca] sm:$0xff]  ;;  %v9906_v11 = vld [vmem:[#allocation3 + $0x172] sm:$0xff] }
 0xb17   :  { %v9248_v7 = vpop.f32.mrf.mxu3 }
 0xb18   :  { %v9336_v31 = vadd.f32 %v9248_v7, %v8804_v52  ;;  %v9890_v52 = vld [vmem:[#allocation3 + $0xb2] sm:$0xff] }
 0xb1a   :  { %v16672_v40 = vadd.f32 %v9779_v0, %v9336_v31  ;;  %v16675_v58 = vpop.f32.mrf.mxu1  ;;  %v9891_v0 = vld [vmem:[#allocation3 + $0xc2] sm:$0xff] }
 0xb1b   :  { %18734 = vst [vmem:[#allocation70_spill] sm:$0xff] %v16675_v58  ;;  %12275 = vmatmul.msk.f32.gmra.mxu1 %vm4996_vm4, %v9885_v10  ;;  %v9905_v58 = vld [vmem:[#allocation3 + $0x16a] sm:$0xff] }
 0xb22   :  { %v16678_v1 = vpop.f32.mrf.mxu1 }
 0xb23   :  { %18735 = vst [vmem:[#allocation71_spill] sm:$0xff] %v16678_v1  ;;  %12276 = vmatmul.msk.f32.gmra.mxu1 %vm4996_vm4, %v9886_v22  ;;  %v9893_v22 = vld [vmem:[#allocation3 + $0xda] sm:$0xff] }
 0xb24   :  { %v9904_v1 = vld [vmem:[#allocation3 + $0x15a] sm:$0xff] }
 0xb2a   :  { %v16681_v47 = vpop.f32.mrf.mxu1 }
 0xb2b   :  { %18736 = vst [vmem:[#allocation72_spill] sm:$0xff] %v16681_v47  ;;  %12277 = vmatmul.msk.f32.gmra.mxu1 %vm4996_vm4, %v9887_v38  ;;  %v9903_v47 = vld [vmem:[#allocation3 + $0x152] sm:$0xff] }
 0xb32   :  { %v16684_v43 = vpop.f32.mrf.mxu1 }
 0xb33   :  { %18737 = vst [vmem:[#allocation73_spill] sm:$0xff] %v16684_v43  ;;  %12278 = vmatmul.msk.f32.gmra.mxu1 %vm4996_vm4, %v9888_v59  ;;  %v9894_v59 = vld [vmem:[#allocation3 + $0xe2] sm:$0xff] }
 0xb34   :  { %v9902_v43 = vld [vmem:[#allocation3 + $0x142] sm:$0xff] }
 0xb3a   :  { %v16687_v33 = vpop.f32.mrf.mxu1 }
 0xb3b   :  { %18738 = vst [vmem:[#allocation75_spill] sm:$0xff] %v16687_v33  ;;  %12279 = vmatmul.msk.f32.gmra.mxu1 %vm4996_vm4, %v9889_v37  ;;  %v9901_v33 = vld [vmem:[#allocation3 + $0x13a] sm:$0xff] }
 0xb42   :  { %v16690_v24 = vpop.f32.mrf.mxu1 }
 0xb43   :  { %18739 = vst [vmem:[#allocation78_spill] sm:$0xff] %v16690_v24  ;;  %12280 = vmatmul.msk.f32.gmra.mxu1 %vm4996_vm4, %v9890_v52  ;;  %v9895_v52 = vld [vmem:[#allocation3 + $0xf2] sm:$0xff]  ;;  %v9900_v24 = vld [vmem:[#allocation3 + $0x12a] sm:$0xff] }
 0xb4a   :  { %v16693_v7 = vpop.f32.mrf.mxu1 }
 0xb4b   :  { %18740 = vst [vmem:[#allocation79_spill] sm:$0xff] %v16693_v7  ;;  %12281 = vmatmul.msk.f32.gmra.mxu1 %vm4996_vm4, %v9891_v0  ;;  %v9899_v7 = vld [vmem:[#allocation3 + $0x122] sm:$0xff] }
 0xb52   :  { %v16696_v31 = vpop.f32.mrf.mxu1 }
 0xb53   :  { %18741 = vst [vmem:[#allocation80_spill] sm:$0xff] %v16696_v31  ;;  %12282 = vmatmul.msk.f32.gmra.mxu1 %vm4996_vm4, %v9892_v30  ;;  %v9896_v31 = vld [vmem:[#allocation3 + $0xfa] sm:$0xff] }
 0xb5a   :  { %v16699_v10 = vpop.f32.mrf.mxu1 }
 0xb5b   :  { %18742 = vst [vmem:[#allocation81_spill] sm:$0xff] %v16699_v10  ;;  %12283 = vmatmul.msk.f32.gmra.mxu1 %vm4996_vm4, %v9893_v22  ;;  %v9897_v10 = vld [vmem:[#allocation3 + $0x10a] sm:$0xff] }
 0xb62   :  { %v16702_v38 = vpop.f32.mrf.mxu1 }
 0xb63   :  { %18743 = vst [vmem:[#allocation10_spill] sm:$0xff] %v16702_v38  ;;  %12284 = vmatmul.msk.f32.gmra.mxu1 %vm4996_vm4, %v9894_v59  ;;  %v9898_v38 = vld [vmem:[#allocation3 + $0x112] sm:$0xff] }
 0xb6a   :  { %v16705_v37 = vpop.f32.mrf.mxu1 }
 0xb6b   :  { %12285 = vmatmul.msk.f32.gmra.mxu1 %vm4996_vm4, %v9895_v52 }
 0xb72   :  { %v16708_v0 = vpop.f32.mrf.mxu1 }
 0xb73   :  { %12286 = vmatmul.msk.f32.gmra.mxu1 %vm4996_vm4, %v9896_v31 }
 0xb7a   :  { %v16711_v30 = vpop.f32.mrf.mxu1 }
 0xb7b   :  { %12287 = vmatmul.msk.f32.gmra.mxu1 %vm4996_vm4, %v9897_v10 }
 0xb82   :  { %v16714_v22 = vpop.f32.mrf.mxu1 }
 0xb83   :  { %12288 = vmatmul.msk.f32.gmra.mxu1 %vm4996_vm4, %v9898_v38 }
 0xb8a   :  { %v16717_v59 = vpop.f32.mrf.mxu1 }
 0xb8b   :  { %12289 = vmatmul.msk.f32.gmra.mxu1 %vm4996_vm4, %v9899_v7 }
 0xb92   :  { %v16720_v52 = vpop.f32.mrf.mxu1 }
 0xb93   :  { %12290 = vmatmul.msk.f32.gmra.mxu1 %vm4996_vm4, %v9900_v24 }
 0xb9a   :  { %v16723_v31 = vpop.f32.mrf.mxu1 }
 0xb9b   :  { %12291 = vmatmul.msk.f32.gmra.mxu1 %vm4996_vm4, %v9901_v33 }
 0xba2   :  { %v16726_v10 = vpop.f32.mrf.mxu1 }
 0xba3   :  { %12292 = vmatmul.msk.f32.gmra.mxu1 %vm4996_vm4, %v9902_v43 }
 0xbaa   :  { %v16729_v38 = vpop.f32.mrf.mxu1 }
 0xbab   :  { %12293 = vmatmul.msk.f32.gmra.mxu1 %vm4996_vm4, %v9903_v47 }
 0xbb2   :  { %v16732_v7 = vpop.f32.mrf.mxu1 }
 0xbb3   :  { %12294 = vmatmul.msk.f32.gmra.mxu1 %vm4996_vm4, %v9904_v1 }
 0xbba   :  { %v16735_v24 = vpop.f32.mrf.mxu1 }
 0xbbb   :  { %12295 = vmatmul.msk.f32.gmra.mxu1 %vm4996_vm4, %v9905_v58 }
 0xbc2   :  { %v16738_v33 = vpop.f32.mrf.mxu1 }
 0xbc3   :  { %12296 = vmatmul.msk.f32.gmra.mxu1 %vm4996_vm4, %v9906_v11 }
 0xbca   :  { %v16741_v43 = vpop.f32.mrf.mxu1 }
 0xbcb   :  { %12297 = vmatmul.msk.f32.gmra.mxu1 %vm4996_vm4, %v9907_v62 }
 0xbd2   :  { %v16744_v47 = vpop.f32.mrf.mxu1 }
 0xbd3   :  { %12298 = vmatmul.msk.f32.gmra.mxu1 %vm4996_vm4, %v9908_v34 }
 0xbda   :  { %v16747_v1 = vpop.f32.mrf.mxu1 }
 0xbdb   :  { %12299 = vmatmul.msk.f32.gmra.mxu1 %vm4996_vm4, %v9909_v3 }
 0xbe2   :  { %v16750_v58 = vpop.f32.mrf.mxu1 }
 0xbe3   :  { %12300 = vmatmul.msk.f32.gmra.mxu1 %vm4996_vm4, %v9910_v39 }
 0xbea   :  { %v16753_v11 = vpop.f32.mrf.mxu1 }
 0xbeb   :  { %12301 = vmatmul.msk.f32.gmra.mxu1 %vm4996_vm4, %v9911_v28 }
 0xbf2   :  { %v16756_v62 = vpop.f32.mrf.mxu1 }
 0xbf3   :  { %12302 = vmatmul.msk.f32.gmra.mxu1 %vm4996_vm4, %v9912_v8 }
 0xbfa   :  { %v16759_v34 = vpop.f32.mrf.mxu1 }
 0xbfb   :  { %12303 = vmatmul.msk.f32.gmra.mxu1 %vm4996_vm4, %v9913_v61 }
 0xc02   :  { %v16762_v3 = vpop.f32.mrf.mxu1 }
 0xc03   :  { %18744 = vst [vmem:[#allocation43_spill] sm:$0xff] %v16762_v3  ;;  %12304 = vmatmul.msk.f32.gmra.mxu1 %vm4996_vm4, %v9914_v35  ;;  %v9937_v3 = vld [vmem:[#allocation3 + $0x31a] sm:$0xff] }
 0xc0a   :  { %v16765_v39 = vpop.f32.mrf.mxu1 }
 0xc0b   :  { %18745 = vst [vmem:[#allocation31_spill] sm:$0xff] %v16765_v39  ;;  %12305 = vmatmul.msk.f32.gmra.mxu1 %vm4996_vm4, %v9915_v4  ;;  %v9919_v39 = vld [vmem:[#allocation3 + $0x242] sm:$0xff] }
 0xc12   :  { %v16768_v28 = vpop.f32.mrf.mxu1 }
 0xc13   :  { %18746 = vst [vmem:[#allocation82_spill] sm:$0xff] %v16768_v28  ;;  %12306 = vmatmul.msk.f32.gmra.mxu1 %vm4996_vm4, %v9916_v12  ;;  %v9920_v28 = vld [vmem:[#allocation3 + $0x24a] sm:$0xff] }
 0xc1a   :  { %v16771_v8 = vpop.f32.mrf.mxu1 }
 0xc1b   :  { %18747 = vst [vmem:[#allocation83_spill] sm:$0xff] %v16771_v8  ;;  %12307 = vmatmul.msk.f32.gmra.mxu1 %vm4996_vm4, %v9917_v56  ;;  %v9921_v8 = vld [vmem:[#allocation3 + $0x25a] sm:$0xff] }
 0xc22   :  { %v16774_v61 = vpop.f32.mrf.mxu1 }
 0xc23   :  { %18748 = vst [vmem:[#allocation84_spill] sm:$0xff] %v16774_v61  ;;  %12308 = vmatmul.msk.f32.gmra.mxu1 %vm4996_vm4, %v9918_v60  ;;  %v9922_v61 = vld [vmem:[#allocation3 + $0x262] sm:$0xff] }
 0xc2a   :  { %v16777_v35 = vpop.f32.mrf.mxu1 }
 0xc2b   :  { %18749 = vst [vmem:[#allocation85_spill] sm:$0xff] %v16777_v35  ;;  %12309 = vmatmul.msk.f32.gmra.mxu1 %vm4996_vm4, %v9919_v39  ;;  %v9923_v35 = vld [vmem:[#allocation3 + $0x272] sm:$0xff] }
 0xc32   :  { %v16780_v4 = vpop.f32.mrf.mxu1 }
 0xc33   :  { %18750 = vst [vmem:[#allocation86_spill] sm:$0xff] %v16780_v4  ;;  %12310 = vmatmul.msk.f32.gmra.mxu1 %vm4996_vm4, %v9920_v28  ;;  %v9924_v4 = vld [vmem:[#allocation3 + $0x27a] sm:$0xff] }
 0xc3a   :  { %v16783_v12 = vpop.f32.mrf.mxu1 }
 0xc3b   :  { %18751 = vst [vmem:[#allocation87_spill] sm:$0xff] %v16783_v12  ;;  %12311 = vmatmul.msk.f32.gmra.mxu1 %vm4996_vm4, %v9921_v8  ;;  %v9925_v12 = vld [vmem:[#allocation3 + $0x28a] sm:$0xff] }
 0xc42   :  { %v16786_v56 = vpop.f32.mrf.mxu1 }
 0xc43   :  { %18752 = vst [vmem:[#allocation88_spill] sm:$0xff] %v16786_v56  ;;  %12312 = vmatmul.msk.f32.gmra.mxu1 %vm4996_vm4, %v9922_v61  ;;  %v9926_v56 = vld [vmem:[#allocation3 + $0x292] sm:$0xff] }
 0xc4a   :  { %v16789_v60 = vpop.f32.mrf.mxu1 }
 0xc4b   :  { %18753 = vst [vmem:[#allocation89_spill] sm:$0xff] %v16789_v60  ;;  %12313 = vmatmul.msk.f32.gmra.mxu1 %vm4996_vm4, %v9923_v35  ;;  %v9927_v60 = vld [vmem:[#allocation3 + $0x2a2] sm:$0xff] }
 0xc52   :  { %v16792_v39 = vpop.f32.mrf.mxu1 }
 0xc53   :  { %18754 = vst [vmem:[#allocation91_spill] sm:$0xff] %v16792_v39  ;;  %12314 = vmatmul.msk.f32.gmra.mxu1 %vm4996_vm4, %v9924_v4  ;;  %v9928_v39 = vld [vmem:[#allocation3 + $0x2aa] sm:$0xff] }
 0xc5a   :  { %v16795_v28 = vpop.f32.mrf.mxu1 }
 0xc5b   :  { %18755 = vst [vmem:[#allocation92_spill] sm:$0xff] %v16795_v28  ;;  %12315 = vmatmul.msk.f32.gmra.mxu1 %vm4996_vm4, %v9925_v12  ;;  %v9929_v28 = vld [vmem:[#allocation3 + $0x2ba] sm:$0xff] }
 0xc62   :  { %v16798_v8 = vpop.f32.mrf.mxu1 }
 0xc63   :  { %18756 = vst [vmem:[#allocation93_spill] sm:$0xff] %v16798_v8  ;;  %12316 = vmatmul.msk.f32.gmra.mxu1 %vm4996_vm4, %v9926_v56  ;;  %v9930_v8 = vld [vmem:[#allocation3 + $0x2c2] sm:$0xff] }
 0xc6a   :  { %v16801_v61 = vpop.f32.mrf.mxu1 }
 0xc6b   :  { %18757 = vst [vmem:[#allocation94_spill] sm:$0xff] %v16801_v61  ;;  %12317 = vmatmul.msk.f32.gmra.mxu1 %vm4996_vm4, %v9927_v60  ;;  %v9931_v61 = vld [vmem:[#allocation3 + $0x2d2] sm:$0xff] }
 0xc72   :  { %v16804_v35 = vpop.f32.mrf.mxu1 }
 0xc73   :  { %18758 = vst [vmem:[#allocation95_spill] sm:$0xff] %v16804_v35  ;;  %12318 = vmatmul.msk.f32.gmra.mxu1 %vm4996_vm4, %v9928_v39  ;;  %v9932_v35 = vld [vmem:[#allocation3 + $0x2da] sm:$0xff] }
 0xc7a   :  { %v16807_v4 = vpop.f32.mrf.mxu1 }
 0xc7b   :  { %18759 = vst [vmem:[#allocation19_spill] sm:$0xff] %v16807_v4  ;;  %12319 = vmatmul.msk.f32.gmra.mxu1 %vm4996_vm4, %v9929_v28  ;;  %v9933_v4 = vld [vmem:[#allocation3 + $0x2ea] sm:$0xff] }
 0xc82   :  { %v16810_v12 = vpop.f32.mrf.mxu1 }
 0xc83   :  { %18760 = vst [vmem:[#allocation51_spill] sm:$0xff] %v16810_v12  ;;  %12320 = vmatmul.msk.f32.gmra.mxu1 %vm4996_vm4, %v9930_v8  ;;  %v9934_v12 = vld [vmem:[#allocation3 + $0x2f2] sm:$0xff] }
 0xc8a   :  { %v16813_v56 = vpop.f32.mrf.mxu1 }
 0xc8b   :  { %18761 = vst [vmem:[#allocation11_spill] sm:$0xff] %v16813_v56  ;;  %12321 = vmatmul.msk.f32.gmra.mxu1 %vm4996_vm4, %v9931_v61  ;;  %v9935_v61 = vld [vmem:[#allocation3 + $0x302] sm:$0xff] }
 0xc92   :  { %v16816_v60 = vpop.f32.mrf.mxu1 }
 0xc93   :  { %18762 = vst [vmem:[#allocation36_spill] sm:$0xff] %v16816_v60  ;;  %12322 = vmatmul.msk.f32.gmra.mxu1 %vm4996_vm4, %v9932_v35 }
 0xc9a   :  { %v16819_v39 = vpop.f32.mrf.mxu1 }
 0xc9b   :  { %18763 = vst [vmem:[#allocation53_spill] sm:$0xff] %v16819_v39  ;;  %12323 = vmatmul.msk.f32.gmra.mxu1 %vm4996_vm4, %v9933_v4  ;;  %v9936_v39 = vld [vmem:[#allocation3 + $0x30a] sm:$0xff] }
 0xca2   :  { %v16822_v28 = vpop.f32.mrf.mxu1 }
 0xca3   :  { %18764 = vst [vmem:[#allocation32_spill] sm:$0xff] %v16822_v28  ;;  %12324 = vmatmul.msk.f32.gmra.mxu1 %vm4996_vm4, %v9934_v12 }
 0xcaa   :  { %v10274_v8 = vpop.f32.mrf.mxu1 }
 0xcab   :  { %v16826_v56 = vadd.f32 %v10274_v8, %v16602_v48  ;;  %12325 = vmatmul.msk.f32.gmra.mxu1 %vm4996_vm4, %v9935_v61  ;;  %v9938_v8 = vld [vmem:[#allocation3 + $0x322] sm:$0xff] }
 0xcb2   :  { %v10277_v60 = vpop.f32.mrf.mxu1 }
 0xcb3   :  { %v16830_v35 = vadd.f32 %v10277_v60, %v16609_v16  ;;  %12326 = vmatmul.msk.f32.gmra.mxu1 %vm4996_vm4, %v9936_v39 }
 0xcba   :  { %v10280_v4 = vpop.f32.mrf.mxu1 }
 0xcbb   :  { %v16834_v28 = vadd.f32 %v10280_v4, %v16619_v57  ;;  %12327 = vmatmul.msk.f32.gmra.mxu1 %vm4996_vm4, %v9937_v3 }
 0xcc2   :  { %v10283_v12 = vpop.f32.mrf.mxu1 }
 0xcc3   :  { %v16838_v48 = vadd.f32 %v10283_v12, %v16629_v26  ;;  %12328 = vmatmul.msk.f32.gmra.mxu1 %vm4996_vm4, %v9938_v8  ;;  %v9941_v26 = vld [vmem:[#allocation3 + $0x34a] sm:$0xff]  ;;  %v10348_v8 = vadd.f32 %v16711_v30, %v16336_v55  ;;  %v10351_v30 = vadd.f32 %v16720_v52, %v16357_v51 }
 0xcca   :  { %v10286_v61 = vpop.f32.mrf.mxu1 }
 0xccb   :  { %v16842_v16 = vadd.f32 %v10286_v61, %v16635_v36  ;;  %12329 = vmatmul.msk.f32.gmra.mxu1 %vm4996_vm4, %v16612_v50  ;;  %v9942_v36 = vld [vmem:[#allocation3 + $0x352] sm:$0xff]  ;;  %v10347_v50 = vadd.f32 %v16708_v0, %v16329_v27  ;;  %v10349_v27 = vadd.f32 %v16714_v22, %v16343_v2  ;;  %v10350_v0 = vadd.f32 %v16717_v59, %v16350_v46 }
 0xccc   :  { %v10352_v46 = vadd.f32 %v16723_v31, %v16364_v42 }
 0xcd2   :  { %v10289_v60 = vpop.f32.mrf.mxu1 }
 0xcd3   :  { %v16847_v57 = vadd.f32 %v10289_v60, %v16641_v29  ;;  %12330 = vmatmul.msk.f32.gmra.mxu1 %vm4996_vm4, %v16622_v41  ;;  %v10346_v41 = vadd.f32 %v16705_v37, %v16322_v44  ;;  %v16866_v29 = vld [vmem:[%s18081_s6] ss:$0 sm:$0xff] }
 0xcd4   :  { %v16874_v61 = vadd.f32 %v16866_v29, %v10347_v50  ;;  %v16882_v37 = vadd.f32 %v16866_v29, %v10348_v8  ;;  %v16908_v52 = vadd.f32 %v16866_v29, %v10351_v30  ;;  %v16917_v42 = vadd.f32 %v16866_v29, %v10352_v46 }
 0xcd5   :  { %v16879_v44 = vadd.f32 %v16866_v29, %v10346_v41 }
 0xcd6   :  { %v10479_v55 = vsel %vm4996_vm4, %v16874_v61, 0.0  ;;  %v10481_v60 = vsel %vm4996_vm4, %v16882_v37, 0.0  ;;  %18765 = vst [vmem:[#allocation49_spill] sm:$0xff] %v16917_v42 }
 0xcd7   :  { %v10478_v2 = vsel %vm4996_vm4, %v16879_v44, 0.0 }
 0xcda   :  { %v10292_v3 = vpop.f32.mrf.mxu1 }
 0xcdb   :  { %v16852_v39 = vadd.f32 %v10292_v3, %v16646_v20  ;;  %12331 = vmatmul.msk.f32.gmra.mxu1 %vm4996_vm4, %v9941_v26  ;;  %v16898_v3 = vadd.f32 %v16866_v29, %v10350_v0  ;;  %v10480_v26 = vadd.f32 %v10479_v55, %v10478_v2  ;;  %v16928_v0 = vpop.f32.mrf.mxu0  ;;  %v10489_v55 = vsel %vm4996_vm4, %v16917_v42, 0.0  ;;  %v16940_v2 = vpop.f32.mrf.mxu3 }
 0xcdd   :  { %v10482_v50 = vadd.f32 %v10481_v60, %v10480_v26  ;;  %v10485_v41 = vsel %vm4996_vm4, %v16898_v3, 0.0  ;;  %v10357_v60 = vadd.f32 %v16738_v33, %v16399_v19  ;;  %v10359_v19 = vadd.f32 %v16744_v47, %v16413_v9 }
 0xcdf   :  { %v16980_v47 = vadd.f32 %v16866_v29, %v10359_v19 }
 0xce1   :  { %18772 = vst [vmem:[#allocation18_spill] sm:$0xff] %v16980_v47 }
 0xce2   :  { %v10295_v4 = vpop.f32.mrf.mxu1 }
 0xce3   :  { %v16856_v12 = vadd.f32 %v10295_v4, %v16651_v23  ;;  %12332 = vmatmul.msk.f32.gmra.mxu1 %vm4996_vm4, %v9942_v36  ;;  %v10353_v4 = vadd.f32 %v16726_v10, %v16371_v49  ;;  %v16912_v36 = vpop.f32.mrf.mxu2  ;;  %v10355_v49 = vadd.f32 %v16732_v7, %v16385_v54 }
 0xce5   :  { %v16924_v8 = vadd.f32 %v16866_v29, %v10353_v4  ;;  %v16945_v7 = vadd.f32 %v16866_v29, %v10355_v49  ;;  %v16975_v49 = vpop.f32.mrf.mxu0 }
 0xce7   :  { %18766 = vst [vmem:[#allocation40_spill] sm:$0xff] %v16924_v8  ;;  %v10491_v54 = vsel %vm4996_vm4, %v16924_v8, 0.0  ;;  %v10495_v4 = vsel %vm4996_vm4, %v16945_v7, 0.0 }
 0xce8   :  { %18768 = vst [vmem:[#allocation45_spill] sm:$0xff] %v16945_v7 }
 0xcea   :  { %v10298_v20 = vpop.f32.mrf.mxu1 }
 0xceb   :  { %v16871_v23 = vadd.f32 %v10298_v20, %v16655_v21  ;;  %v16889_v21 = vadd.f32 %v16866_v29, %v10349_v27  ;;  %v10487_v20 = vsel %vm4996_vm4, %v16908_v52, 0.0 }
 0xced   :  { %v10483_v51 = vsel %vm4996_vm4, %v16889_v21, 0.0 }
 0xcee   :  { %v10484_v31 = vadd.f32 %v10483_v51, %v10482_v50  ;;  %v16961_v50 = vadd.f32 %v16866_v29, %v10357_v60 }
 0xcf0   :  { %v10486_v10 = vadd.f32 %v10485_v41, %v10484_v31  ;;  %18770 = vst [vmem:[#allocation57_spill] sm:$0xff] %v16961_v50  ;;  %v10499_v9 = vsel %vm4996_vm4, %v16961_v50, 0.0 }
 0xcf2   :  { %v10301_v22 = vpop.f32.mrf.mxu1 }
 0xcf3   :  { %v16903_v59 = vadd.f32 %v10301_v22, %v16659_v18  ;;  %v10354_v18 = vadd.f32 %v16729_v38, %v16378_v15  ;;  %v10356_v15 = vadd.f32 %v16735_v24, %v16392_v13  ;;  %v10488_v22 = vadd.f32 %v10487_v20, %v10486_v10  ;;  %v16956_v24 = vpop.f32.mrf.mxu2 }
 0xcf4   :  { %v10361_v10 = vadd.f32 %v16750_v58, %v16427_v32  ;;  %v10363_v32 = vadd.f32 %v16756_v62, %v16441_v63 }
 0xcf5   :  { %v16933_v30 = vadd.f32 %v16866_v29, %v10354_v18  ;;  %v10490_v46 = vadd.f32 %v10489_v55, %v10488_v22  ;;  %v16952_v13 = vadd.f32 %v16866_v29, %v10356_v15  ;;  %v10503_v22 = vsel %vm4996_vm4, %v16980_v47, 0.0 }
 0xcf6   :  { %v17015_v62 = vadd.f32 %v16866_v29, %v10363_v32 }
 0xcf7   :  { %18767 = vst [vmem:[#allocation25_spill] sm:$0xff] %v16933_v30  ;;  %v10493_v26 = vsel %vm4996_vm4, %v16933_v30, 0.0  ;;  %v10492_v51 = vadd.f32 %v10491_v54, %v10490_v46  ;;  %v10497_v18 = vsel %vm4996_vm4, %v16952_v13, 0.0  ;;  %v16996_v54 = vadd.f32 %v16866_v29, %v10361_v10 }
 0xcf8   :  { %18769 = vst [vmem:[#allocation50_spill] sm:$0xff] %v16952_v13  ;;  %v10511_v10 = vsel %vm4996_vm4, %v17015_v62, 0.0 }
 0xcf9   :  { %v10494_v33 = vadd.f32 %v10493_v26, %v10492_v51  ;;  %18774 = vst [vmem:[#allocation76_spill] sm:$0xff] %v16996_v54  ;;  %v10507_v63 = vsel %vm4996_vm4, %v16996_v54, 0.0 }
 0xcfa   :  { %v10304_v27 = vpop.f32.mrf.mxu1  ;;  %18776 = vst [vmem:[#allocation52_spill] sm:$0xff] %v17015_v62 }
 0xcfb   :  { %v16938_v38 = vadd.f32 %v10304_v27, %v16663_v6  ;;  %v10358_v6 = vadd.f32 %v16741_v43, %v16406_v25  ;;  %v10360_v25 = vadd.f32 %v16747_v1, %v16420_v5  ;;  %v10496_v20 = vadd.f32 %v10495_v4, %v10494_v33  ;;  %v16984_v27 = vpop.f32.mrf.mxu3  ;;  %v17000_v58 = vpop.f32.mrf.mxu2  ;;  %v18777_v4 = vld [vmem:[#allocation43_spill] sm:$0xff] }
 0xcfc   :  { %v10362_v1 = vadd.f32 %v16753_v11, %v16434_v53  ;;  %v10364_v53 = vadd.f32 %v16759_v34, %v16448_v14  ;;  %v10365_v19 = vadd.f32 %v18777_v4, %v16455_v45  ;;  %v18780_v34 = vld [vmem:[#allocation31_spill] sm:$0xff] }
 0xcfd   :  { %v16968_v31 = vadd.f32 %v16866_v29, %v10358_v6  ;;  %v10498_v55 = vadd.f32 %v10497_v18, %v10496_v20 }
 0xcfe   :  { %v17005_v6 = vadd.f32 %v16866_v29, %v10362_v1  ;;  %v17024_v14 = vadd.f32 %v16866_v29, %v10364_v53  ;;  %v17033_v45 = vadd.f32 %v16866_v29, %v10365_v19 }
 0xcff   :  { %18771 = vst [vmem:[#allocation58_spill] sm:$0xff] %v16968_v31  ;;  %v10501_v5 = vsel %vm4996_vm4, %v16968_v31, 0.0  ;;  %v10500_v15 = vadd.f32 %v10499_v9, %v10498_v55  ;;  %v18782_v55 = vld [vmem:[#allocation22_spill] sm:$0xff] }
 0xd00   :  { %18775 = vst [vmem:[#allocation37_spill] sm:$0xff] %v17005_v6  ;;  %v10509_v18 = vsel %vm4996_vm4, %v17005_v6, 0.0  ;;  %v10513_v32 = vsel %vm4996_vm4, %v17024_v14, 0.0  ;;  %v10515_v4 = vsel %vm4996_vm4, %v17033_v45, 0.0 }
 0xd01   :  { %v10502_v60 = vadd.f32 %v10501_v5, %v10500_v15  ;;  %18778 = vst [vmem:[#allocation24_spill] sm:$0xff] %v17024_v14  ;;  %v18783_v5 = vld [vmem:[#allocation82_spill] sm:$0xff] }
 0xd02   :  { %v10307_v41 = vpop.f32.mrf.mxu1  ;;  %18781 = vst [vmem:[#allocation47_spill] sm:$0xff] %v17033_v45  ;;  %v10367_v1 = vadd.f32 %v18783_v5, %v18782_v55  ;;  %v18791_v55 = vld [vmem:[#allocation26_spill] sm:$0xff]  ;;  %v18792_v5 = vld [vmem:[#allocation85_spill] sm:$0xff] }
 0xd03   :  { %v16973_v43 = vadd.f32 %v10307_v41, %v16667_v17  ;;  %v16989_v17 = vadd.f32 %v16866_v29, %v10360_v25  ;;  %v10504_v51 = vadd.f32 %v10503_v22, %v10502_v60  ;;  %v17019_v41 = vpop.f32.mrf.mxu0  ;;  %v17028_v20 = vpop.f32.mrf.mxu3 }
 0xd04   :  { %v17051_v19 = vadd.f32 %v16866_v29, %v10367_v1 }
 0xd05   :  { %18773 = vst [vmem:[#allocation41_spill] sm:$0xff] %v16989_v17  ;;  %v10505_v26 = vsel %vm4996_vm4, %v16989_v17, 0.0 }
 0xd06   :  { %v10506_v33 = vadd.f32 %v10505_v26, %v10504_v51  ;;  %v18786_v26 = vld [vmem:[#allocation83_spill] sm:$0xff]  ;;  %v17046_v51 = vpop.f32.mrf.mxu2  ;;  %18787 = vst [vmem:[#allocation59_spill] sm:$0xff] %v17051_v19  ;;  %v10519_v1 = vsel %vm4996_vm4, %v17051_v19, 0.0 }
 0xd08   :  { %v10508_v9 = vadd.f32 %v10507_v63, %v10506_v33  ;;  %v18788_v33 = vld [vmem:[#allocation39_spill] sm:$0xff] }
 0xd0a   :  { %v10310_v46 = vpop.f32.mrf.mxu1  ;;  %v10510_v15 = vadd.f32 %v10509_v18, %v10508_v9  ;;  %v18789_v18 = vld [vmem:[#allocation84_spill] sm:$0xff] }
 0xd0b   :  { %v17010_v11 = vadd.f32 %v10310_v46, %v16672_v40  ;;  %v18779_v40 = vld [vmem:[#allocation21_spill] sm:$0xff] }
 0xd0c   :  { %v10366_v25 = vadd.f32 %v18780_v34, %v18779_v40  ;;  %v18785_v46 = vld [vmem:[#allocation33_spill] sm:$0xff]  ;;  %v10512_v63 = vadd.f32 %v10511_v10, %v10510_v15  ;;  %v10369_v40 = vadd.f32 %v18789_v18, %v18788_v33  ;;  %v17062_v15 = vpop.f32.mrf.mxu0  ;;  %v18794_v33 = vld [vmem:[#allocation27_spill] sm:$0xff]  ;;  %v17071_v18 = vpop.f32.mrf.mxu3 }
 0xd0d   :  { %v10368_v53 = vadd.f32 %v18786_v26, %v18785_v46  ;;  %v10370_v46 = vadd.f32 %v18792_v5, %v18791_v55  ;;  %v18798_v5 = vld [vmem:[#allocation87_spill] sm:$0xff] }
 0xd0e   :  { %v17042_v60 = vadd.f32 %v16866_v29, %v10366_v25  ;;  %v10514_v34 = vadd.f32 %v10513_v32, %v10512_v63  ;;  %v17067_v26 = vadd.f32 %v16866_v29, %v10369_v40  ;;  %v18795_v32 = vld [vmem:[#allocation86_spill] sm:$0xff]  ;;  %v17089_v14 = vpop.f32.mrf.mxu2 }
 0xd0f   :  { %v17058_v9 = vadd.f32 %v16866_v29, %v10368_v53  ;;  %v10371_v63 = vadd.f32 %v18795_v32, %v18794_v33  ;;  %v18800_v32 = vld [vmem:[#allocation48_spill] sm:$0xff] }
 0xd10   :  { %18784 = vst [vmem:[#allocation42_spill] sm:$0xff] %v17042_v60  ;;  %v10517_v25 = vsel %vm4996_vm4, %v17042_v60, 0.0  ;;  %v10516_v10 = vadd.f32 %v10515_v4, %v10514_v34  ;;  %v17078_v4 = vadd.f32 %v16866_v29, %v10370_v46  ;;  %v18797_v34 = vld [vmem:[#allocation90_spill] sm:$0xff]  ;;  %v10523_v40 = vsel %vm4996_vm4, %v17067_v26, 0.0 }
 0xd11   :  { %18790 = vst [vmem:[#allocation13_spill] sm:$0xff] %v17058_v9  ;;  %v10521_v55 = vsel %vm4996_vm4, %v17058_v9, 0.0  ;;  %v10372_v19 = vadd.f32 %v18798_v5, %v18797_v34  ;;  %v17085_v33 = vadd.f32 %v16866_v29, %v10371_v63  ;;  %v18803_v34 = vld [vmem:[#allocation96_spill] sm:$0xff] }
 0xd12   :  { %v17037_v22 = vpop.f32.mrf.mxu1  ;;  %18793 = vst [vmem:[#allocation56_spill] sm:$0xff] %v17067_v26  ;;  %v10518_v60 = vadd.f32 %v10517_v25, %v10516_v10  ;;  %v18801_v25 = vld [vmem:[#allocation88_spill] sm:$0xff]  ;;  %v10525_v46 = vsel %vm4996_vm4, %v17078_v4, 0.0 }
 0xd13   :  { %18796 = vst [vmem:[#allocation77_spill] sm:$0xff] %v17078_v4  ;;  %v10373_v10 = vadd.f32 %v18801_v25, %v18800_v32  ;;  %v17094_v9 = vadd.f32 %v16866_v29, %v10372_v19  ;;  %v10527_v63 = vsel %vm4996_vm4, %v17085_v33, 0.0  ;;  %v18806_v32 = vld [vmem:[#allocation38_spill] sm:$0xff]  ;;  %v18807_v25 = vld [vmem:[#allocation91_spill] sm:$0xff] }
 0xd14   :  { %v10520_v45 = vadd.f32 %v10519_v1, %v10518_v60  ;;  %18799 = vst [vmem:[#allocation46_spill] sm:$0xff] %v17085_v33  ;;  %v18804_v60 = vld [vmem:[#allocation89_spill] sm:$0xff]  ;;  %v10375_v6 = vadd.f32 %v18807_v25, %v18806_v32  ;;  %v17107_v4 = vpop.f32.mrf.mxu0  ;;  %v17116_v33 = vpop.f32.mrf.mxu3 }
 0xd15   :  { %18802 = vst [vmem:[#allocation9_spill] sm:$0xff] %v17094_v9  ;;  %v10374_v1 = vadd.f32 %v18804_v60, %v18803_v34  ;;  %v17101_v26 = vadd.f32 %v16866_v29, %v10373_v10  ;;  %v10529_v19 = vsel %vm4996_vm4, %v17094_v9, 0.0  ;;  %v18813_v25 = vld [vmem:[#allocation93_spill] sm:$0xff] }
 0xd16   :  { %v10522_v62 = vadd.f32 %v10521_v55, %v10520_v45 }
 0xd17   :  { %18805 = vst [vmem:[#allocation14_spill] sm:$0xff] %v17101_v26  ;;  %v17112_v34 = vadd.f32 %v16866_v29, %v10374_v1  ;;  %v10531_v32 = vsel %vm4996_vm4, %v17101_v26, 0.0 }
 0xd18   :  { %v10524_v5 = vadd.f32 %v10523_v40, %v10522_v62  ;;  %v18809_v62 = vld [vmem:[#allocation44_spill] sm:$0xff] }
 0xd19   :  { %18808 = vst [vmem:[#allocation5_spill] sm:$0xff] %v17112_v34  ;;  %v18810_v40 = vld [vmem:[#allocation92_spill] sm:$0xff]  ;;  %v10533_v1 = vsel %vm4996_vm4, %v17112_v34, 0.0 }
 0xd1a   :  { %v17073_v53 = vpop.f32.mrf.mxu1  ;;  %v10526_v45 = vadd.f32 %v10525_v46, %v10524_v5  ;;  %v10376_v60 = vadd.f32 %v18810_v40, %v18809_v62  ;;  %v17121_v46 = vadd.f32 %v16866_v29, %v10375_v6  ;;  %v18812_v5 = vld [vmem:[#allocation60_spill] sm:$0xff]  ;;  %v18815_v62 = vld [vmem:[#allocation61_spill] sm:$0xff]  ;;  %v18816_v40 = vld [vmem:[#allocation94_spill] sm:$0xff] }
 0xd1b   :  { %v10377_v54 = vadd.f32 %v18813_v25, %v18812_v5  ;;  %v10378_v47 = vadd.f32 %v18816_v40, %v18815_v62  ;;  %v18818_v5 = vld [vmem:[#allocation62_spill] sm:$0xff]  ;;  %v18821_v40 = vld [vmem:[#allocation63_spill] sm:$0xff] }
 0xd1c   :  { %v10528_v10 = vadd.f32 %v10527_v63, %v10526_v45  ;;  %18811 = vst [vmem:[#allocation55_spill] sm:$0xff] %v17121_v46  ;;  %v17128_v9 = vadd.f32 %v16866_v29, %v10376_v60  ;;  %v17132_v63 = vpop.f32.mrf.mxu2  ;;  %v10535_v6 = vsel %vm4996_vm4, %v17121_v46, 0.0  ;;  %v17150_v46 = vpop.f32.mrf.mxu0 }
 0xd1d   :  { %v17137_v26 = vadd.f32 %v16866_v29, %v10377_v54  ;;  %v17146_v62 = vadd.f32 %v16866_v29, %v10378_v47  ;;  %v17159_v50 = vpop.f32.mrf.mxu3 }
 0xd1e   :  { %v10530_v17 = vadd.f32 %v10529_v19, %v10528_v10  ;;  %18814 = vst [vmem:[#allocation6_spill] sm:$0xff] %v17128_v9  ;;  %v18819_v19 = vld [vmem:[#allocation95_spill] sm:$0xff]  ;;  %v10537_v60 = vsel %vm4996_vm4, %v17128_v9, 0.0 }
 0xd1f   :  { %18817 = vst [vmem:[#allocation30_spill] sm:$0xff] %v17137_v26  ;;  %v10379_v10 = vadd.f32 %v18819_v19, %v18818_v5  ;;  %v10539_v54 = vsel %vm4996_vm4, %v17137_v26, 0.0  ;;  %v10541_v47 = vsel %vm4996_vm4, %v17146_v62, 0.0 }
 0xd20   :  { %v10532_v45 = vadd.f32 %v10531_v32, %v10530_v17  ;;  %18820 = vst [vmem:[#allocation23_spill] sm:$0xff] %v17146_v62  ;;  %v18822_v17 = vld [vmem:[#allocation19_spill] sm:$0xff] }
 0xd21   :  { %v10380_v32 = vadd.f32 %v18822_v17, %v18821_v40  ;;  %v17155_v5 = vadd.f32 %v16866_v29, %v10379_v10 }
 0xd22   :  { %v17105_v55 = vpop.f32.mrf.mxu1  ;;  %v10534_v25 = vadd.f32 %v10533_v1, %v10532_v45  ;;  %v18824_v1 = vld [vmem:[#allocation64_spill] sm:$0xff]  ;;  %v18825_v45 = vld [vmem:[#allocation51_spill] sm:$0xff] }
 0xd23   :  { %18823 = vst [vmem:[#allocation7_spill] sm:$0xff] %v17155_v5  ;;  %v10381_v19 = vadd.f32 %v18825_v45, %v18824_v1  ;;  %v17164_v40 = vadd.f32 %v16866_v29, %v10380_v32  ;;  %v10543_v10 = vsel %vm4996_vm4, %v17155_v5, 0.0  ;;  %v18830_v1 = vld [vmem:[#allocation66_spill] sm:$0xff]  ;;  %v18831_v45 = vld [vmem:[#allocation36_spill] sm:$0xff] }
 0xd24   :  { %v10536_v31 = vadd.f32 %v10535_v6, %v10534_v25  ;;  %v18827_v6 = vld [vmem:[#allocation65_spill] sm:$0xff]  ;;  %v18828_v25 = vld [vmem:[#allocation11_spill] sm:$0xff]  ;;  %v10383_v7 = vadd.f32 %v18831_v45, %v18830_v1  ;;  %v18836_v45 = vld [vmem:[#allocation68_spill] sm:$0xff]  ;;  %v17193_v8 = vpop.f32.mrf.mxu0 }
 0xd25   :  { %18826 = vst [vmem:[#allocation74_spill] sm:$0xff] %v17164_v40  ;;  %v10382_v17 = vadd.f32 %v18828_v25, %v18827_v6  ;;  %v17171_v26 = vadd.f32 %v16866_v29, %v10381_v19  ;;  %v10545_v32 = vsel %vm4996_vm4, %v17164_v40, 0.0 }
 0xd26   :  { %v10538_v9 = vadd.f32 %v10537_v60, %v10536_v31  ;;  %v17175_v31 = vpop.f32.mrf.mxu2  ;;  %v17189_v1 = vadd.f32 %v16866_v29, %v10383_v7 }
 0xd27   :  { %18829 = vst [vmem:[#allocation12_spill] sm:$0xff] %v17171_v26  ;;  %v17182_v6 = vadd.f32 %v16866_v29, %v10382_v17  ;;  %v10547_v19 = vsel %vm4996_vm4, %v17171_v26, 0.0 }
 0xd28   :  { %v10540_v13 = vadd.f32 %v10539_v54, %v10538_v9  ;;  %v18833_v9 = vld [vmem:[#allocation67_spill] sm:$0xff]  ;;  %v18834_v54 = vld [vmem:[#allocation53_spill] sm:$0xff]  ;;  %18835 = vst [vmem:[#allocation21_spill] sm:$0xff] %v17189_v1 }
 0xd29   :  { %18832 = vst [vmem:[#allocation43_spill] sm:$0xff] %v17182_v6  ;;  %v10384_v25 = vadd.f32 %v18834_v54, %v18833_v9  ;;  %v10549_v17 = vsel %vm4996_vm4, %v17182_v6, 0.0  ;;  %v17200_v9 = vpop.f32.mrf.mxu3 }
 0xd2a   :  { %v17141_v34 = vpop.f32.mrf.mxu1  ;;  %v10542_v60 = vadd.f32 %v10541_v47, %v10540_v13  ;;  %v18837_v13 = vld [vmem:[#allocation32_spill] sm:$0xff] }
 0xd2b   :  { %v10385_v47 = vadd.f32 %v18837_v13, %v18836_v45  ;;  %v17198_v40 = vadd.f32 %v16866_v29, %v10384_v25 }
 0xd2c   :  { %v10544_v5 = vadd.f32 %v10543_v10, %v10542_v60  ;;  %v10551_v60 = vsel %vm4996_vm4, %v17189_v1, 0.0 }
 0xd2d   :  { %18838 = vst [vmem:[#allocation31_spill] sm:$0xff] %v17198_v40  ;;  %v17205_v7 = vadd.f32 %v16866_v29, %v10385_v47 }
 0xd2e   :  { %v10546_v30 = vadd.f32 %v10545_v32, %v10544_v5  ;;  %v10553_v5 = vsel %vm4996_vm4, %v17198_v40, 0.0  ;;  %v17213_v32 = vadd.f32 %v16866_v29, %v16826_v56  ;;  %v17215_v25 = vpop.f32.mrf.mxu2  ;;  %v17229_v40 = vpop.f32.mrf.mxu0 }
 0xd2f   :  { %18839 = vst [vmem:[#allocation22_spill] sm:$0xff] %v17205_v7 }
 0xd30   :  { %v10548_v10 = vadd.f32 %v10547_v19, %v10546_v30  ;;  %18840 = vst [vmem:[#allocation82_spill] sm:$0xff] %v17213_v32  ;;  %v10555_v30 = vsel %vm4996_vm4, %v17205_v7, 0.0  ;;  %v17221_v19 = vadd.f32 %v16866_v29, %v16830_v35  ;;  %v18846_v7 = vld [vmem:[#allocation69_spill] sm:$0xff] }
 0xd31   :  { %v17237_v35 = vpop.f32.mrf.mxu3 }
 0xd32   :  { %v17177_v62 = vpop.f32.mrf.mxu1  ;;  %v10550_v54 = vadd.f32 %v10549_v17, %v10548_v10  ;;  %18841 = vst [vmem:[#allocation33_spill] sm:$0xff] %v17221_v19  ;;  %v10557_v17 = vsel %vm4996_vm4, %v17213_v32, 0.0  ;;  %v17227_v10 = vadd.f32 %v16866_v29, %v16834_v28  ;;  %v17245_v28 = vadd.f32 %v16866_v29, %v16842_v16 }
 0xd33   :  { %v17261_v16 = vadd.f32 %v16866_v29, %v16852_v39 }
 0xd34   :  { %v10552_v13 = vadd.f32 %v10551_v60, %v10550_v54  ;;  %18842 = vst [vmem:[#allocation83_spill] sm:$0xff] %v17227_v10  ;;  %v10559_v60 = vsel %vm4996_vm4, %v17221_v19, 0.0  ;;  %v17235_v54 = vadd.f32 %v16866_v29, %v16838_v48  ;;  %v10561_v32 = vsel %vm4996_vm4, %v17227_v10, 0.0 }
 0xd35   :  { %18844 = vst [vmem:[#allocation84_spill] sm:$0xff] %v17245_v28  ;;  %v17251_v48 = vadd.f32 %v16866_v29, %v16847_v57  ;;  %v10565_v10 = vsel %vm4996_vm4, %v17245_v28, 0.0 }
 0xd36   :  { %v10554_v47 = vadd.f32 %v10553_v5, %v10552_v13  ;;  %18843 = vst [vmem:[#allocation39_spill] sm:$0xff] %v17235_v54  ;;  %v17253_v19 = vpop.f32.mrf.mxu2 }
 0xd37   :  { %18847 = vst [vmem:[#allocation26_spill] sm:$0xff] %v17261_v16  ;;  %v10567_v26 = vsel %vm4996_vm4, %v17251_v48, 0.0 }
 0xd38   :  { %v10556_v56 = vadd.f32 %v10555_v30, %v10554_v47  ;;  %v10563_v47 = vsel %vm4996_vm4, %v17235_v54, 0.0 }
 0xd3a   :  { %v17207_v45 = vpop.f32.mrf.mxu1  ;;  %v10558_v5 = vadd.f32 %v10557_v17, %v10556_v56  ;;  %v18845_v56 = vld [vmem:[#allocation29_spill] sm:$0xff] }
 0xd3b   :  { %v8274_v1 = vadd.f32 %v18846_v7, %v18845_v56  ;;  %v18851_v56 = vld [vmem:[#allocation71_spill] sm:$0xff] }
 0xd3c   :  { %v10560_v30 = vadd.f32 %v10559_v60, %v10558_v5  ;;  %v18848_v60 = vld [vmem:[#allocation20_spill] sm:$0xff]  ;;  %v18849_v5 = vld [vmem:[#allocation70_spill] sm:$0xff] }
 0xd3d   :  { %v8275_v54 = vadd.f32 %v18849_v5, %v18848_v60  ;;  %v8805_v57 = vadd.f32 %v16912_v36, %v8274_v1  ;;  %v17281_v36 = vadd.f32 %v16866_v29, %v16871_v23  ;;  %v17286_v5 = vpop.f32.mrf.mxu3 }
 0xd3e   :  { %v10562_v17 = vadd.f32 %v10561_v32, %v10560_v30  ;;  %v17270_v32 = vadd.f32 %v16866_v29, %v16856_v12  ;;  %v18850_v30 = vld [vmem:[#allocation4_spill] sm:$0xff] }
 0xd3f   :  { %v8806_v7 = vadd.f32 %v16956_v24, %v8275_v54  ;;  %v8276_v28 = vadd.f32 %v18851_v56, %v18850_v30  ;;  %v18853_v12 = vld [vmem:[#allocation72_spill] sm:$0xff]  ;;  %v17288_v24 = vpop.f32.mrf.mxu0  ;;  %v17295_v30 = vadd.f32 %v16866_v29, %v16903_v59  ;;  %v18855_v56 = vld [vmem:[#allocation73_spill] sm:$0xff] }
 0xd40   :  { %v10564_v6 = vadd.f32 %v10563_v47, %v10562_v17  ;;  %v10569_v47 = vsel %vm4996_vm4, %v17261_v16, 0.0  ;;  %v18852_v17 = vld [vmem:[#allocation35_spill] sm:$0xff] }
 0xd41   :  { %v8807_v1 = vadd.f32 %v17000_v58, %v8276_v28  ;;  %v8277_v60 = vadd.f32 %v18853_v12, %v18852_v17  ;;  %v9338_v23 = vadd.f32 %v16984_v27, %v8806_v7  ;;  %v18854_v28 = vld [vmem:[#allocation16_spill] sm:$0xff] }
 0xd42   :  { %v17239_v13 = vpop.f32.mrf.mxu1  ;;  %v10566_v39 = vadd.f32 %v10565_v10, %v10564_v6  ;;  %v9337_v6 = vadd.f32 %v16940_v2, %v8805_v57  ;;  %v10571_v10 = vsel %vm4996_vm4, %v17270_v32, 0.0  ;;  %v8278_v17 = vadd.f32 %v18855_v56, %v18854_v28 }
 0xd43   :  { %v8808_v58 = vadd.f32 %v17046_v51, %v8277_v60  ;;  %v10573_v2 = vsel %vm4996_vm4, %v17281_v36, 0.0  ;;  %v9339_v59 = vadd.f32 %v17028_v20, %v8807_v1  ;;  %v9869_v57 = vadd.f32 %v16975_v49, %v9338_v23  ;;  %v8746_v51 = vpop.f32.mrf.mxu2  ;;  %v18857_v60 = vld [vmem:[#allocation75_spill] sm:$0xff]  ;;  %v18858_v1 = vld [vmem:[#allocation17_spill] sm:$0xff] }
 0xd44   :  { %v10568_v54 = vadd.f32 %v10567_v26, %v10566_v39  ;;  %v9868_v16 = vadd.f32 %v16928_v0, %v9337_v6  ;;  %v17306_v26 = vadd.f32 %v16866_v29, %v16938_v38  ;;  %v8809_v27 = vadd.f32 %v17089_v14, %v8278_v17  ;;  %v18856_v39 = vld [vmem:[#allocation8_spill] sm:$0xff]  ;;  %v18859_v14 = vld [vmem:[#allocation78_spill] sm:$0xff] }
 0xd45   :  { %v10575_v0 = vsel %vm4996_vm4, %v17295_v30, 0.0  ;;  %v9340_v20 = vadd.f32 %v17071_v18, %v8808_v58  ;;  %v9870_v49 = vadd.f32 %v17019_v41, %v9339_v59  ;;  %v8280_v6 = vadd.f32 %v18859_v14, %v18858_v1  ;;  %v18861_v58 = vld [vmem:[#allocation79_spill] sm:$0xff] }
 0xd46   :  { %v10570_v12 = vadd.f32 %v10569_v47, %v10568_v54  ;;  %v8279_v47 = vadd.f32 %v18857_v60, %v18856_v39  ;;  %v17317_v54 = vadd.f32 %v16866_v29, %v16973_v43  ;;  %v10399_v38 = vadd.f32 %v17037_v22, %v9868_v16  ;;  %v18860_v16 = vld [vmem:[#allocation15_spill] sm:$0xff] }
 0xd47   :  { %v10577_v56 = vsel %vm4996_vm4, %v17306_v26, 0.0  ;;  %v17329_v43 = vadd.f32 %v16866_v29, %v17010_v11  ;;  %v10400_v22 = vadd.f32 %v17073_v53, %v9869_v57  ;;  %v9341_v18 = vadd.f32 %v17116_v33, %v8809_v27  ;;  %v18863_v57 = vld [vmem:[#allocation80_spill] sm:$0xff]  ;;  %v9809_v39 = vpop.f32.mrf.mxu0 }
 0xd48   :  { %v10572_v7 = vadd.f32 %v10571_v10, %v10570_v12  ;;  %v8810_v28 = vadd.f32 %v17132_v63, %v8279_v47  ;;  %v8811_v41 = vadd.f32 %v17175_v31, %v8280_v6  ;;  %v8281_v17 = vadd.f32 %v18861_v58, %v18860_v16  ;;  %v9278_v12 = vpop.f32.mrf.mxu3  ;;  %v18862_v31 = vld [vmem:[#allocation28_spill] sm:$0xff] }
 0xd49   :  { %v9871_v63 = vadd.f32 %v17062_v15, %v9340_v20  ;;  %v10579_v59 = vsel %vm4996_vm4, %v17317_v54, 0.0  ;;  %v10401_v11 = vadd.f32 %v17105_v55, %v9870_v49  ;;  %v9872_v53 = vadd.f32 %v17107_v4, %v9341_v18  ;;  %v18865_v20 = vld [vmem:[#allocation81_spill] sm:$0xff]  ;;  %v18866_v18 = vld [vmem:[#allocation34_spill] sm:$0xff] }
 0xd4a   :  { %v17275_v42 = vpop.f32.mrf.mxu1  ;;  %v10574_v10 = vadd.f32 %v10573_v2, %v10572_v7  ;;  %v17340_v7 = vadd.f32 %v16866_v29, %v10399_v38  ;;  %v8812_v33 = vadd.f32 %v17215_v25, %v8281_v17  ;;  %v8282_v27 = vadd.f32 %v18863_v57, %v18862_v31  ;;  %v18864_v25 = vld [vmem:[#allocation54_spill] sm:$0xff] }
 0xd4b   :  { %v9342_v47 = vadd.f32 %v17159_v50, %v8810_v28  ;;  %v10581_v15 = vsel %vm4996_vm4, %v17329_v43, 0.0  ;;  %v10402_v38 = vadd.f32 %v17141_v34, %v9871_v63  ;;  %v9343_v55 = vadd.f32 %v17200_v9, %v8811_v41  ;;  %v18867_v41 = vld [vmem:[#allocation10_spill] sm:$0xff] }
 0xd4c   :  { %v10576_v2 = vadd.f32 %v10575_v0, %v10574_v10  ;;  %v17351_v0 = vadd.f32 %v16866_v29, %v10400_v22  ;;  %v8813_v4 = vadd.f32 %v17253_v19, %v8282_v27  ;;  %v8283_v49 = vadd.f32 %v18865_v20, %v18864_v25  ;;  %v8749_v19 = vpop.f32.mrf.mxu2 }
 0xd4d   :  { %v9873_v14 = vadd.f32 %v17150_v46, %v9342_v47  ;;  %v10583_v50 = vsel %vm4996_vm4, %v17340_v7, 0.0  ;;  %v17362_v6 = vadd.f32 %v16866_v29, %v10401_v11  ;;  %v10403_v10 = vadd.f32 %v17177_v62, %v9872_v53 }
 0xd4e   :  { %v10578_v60 = vadd.f32 %v10577_v56, %v10576_v2  ;;  %v9344_v34 = vadd.f32 %v17237_v35, %v8812_v33  ;;  %v9874_v9 = vadd.f32 %v17193_v8, %v9343_v55  ;;  %v8814_v28 = vadd.f32 %v8746_v51, %v8283_v49 }
 0xd4f   :  { %v8284_v16 = vadd.f32 %v18867_v41, %v18866_v18  ;;  %v10585_v46 = vsel %vm4996_vm4, %v17351_v0, 0.0  ;;  %v17372_v58 = vadd.f32 %v16866_v29, %v10402_v38  ;;  %v10404_v17 = vadd.f32 %v17207_v45, %v9873_v14  ;;  %v9812_v27 = vpop.f32.mrf.mxu0 }
 0xd50   :  { %v10580_v1 = vadd.f32 %v10579_v59, %v10578_v60  ;;  %v9345_v62 = vadd.f32 %v17286_v5, %v8813_v4  ;;  %v9875_v35 = vadd.f32 %v17229_v40, %v9344_v34  ;;  %v10587_v2 = vsel %vm4996_vm4, %v17362_v6, 0.0  ;;  %v9281_v53 = vpop.f32.mrf.mxu3 }
 0xd51   :  { %v8815_v51 = vadd.f32 %v8749_v19, %v8284_v16  ;;  %v17380_v63 = vadd.f32 %v16866_v29, %v10403_v10  ;;  %v10405_v59 = vadd.f32 %v17239_v13, %v9874_v9  ;;  %v9346_v11 = vadd.f32 %v9278_v12, %v8814_v28 }
 0xd52   :  { %v10337_v23 = vpop.f32.mrf.mxu1  ;;  %v10582_v56 = vadd.f32 %v10581_v15, %v10580_v1  ;;  %v9876_v31 = vadd.f32 %v17288_v24, %v9345_v62  ;;  %v10589_v45 = vsel %vm4996_vm4, %v17372_v58, 0.0  ;;  %v17387_v40 = vadd.f32 %v16866_v29, %v10404_v17 }
 0xd53   :  { %v10406_v5 = vadd.f32 %v17275_v42, %v9875_v35  ;;  %v9877_v57 = vadd.f32 %v9809_v39, %v9346_v11  ;;  %v9347_v47 = vadd.f32 %v9281_v53, %v8815_v51  ;;  %v10591_v13 = vsel %vm4996_vm4, %v17380_v63, 0.0 }
 0xd54   :  { %v10584_v8 = vadd.f32 %v10583_v50, %v10582_v56  ;;  %v17393_v12 = vadd.f32 %v16866_v29, %v10405_v59  ;;  %v10407_v15 = vadd.f32 %v10337_v23, %v9876_v31  ;;  %v10593_v4 = vsel %vm4996_vm4, %v17387_v40, 0.0 }
 0xd55   :  { %v9878_v55 = vadd.f32 %v9812_v27, %v9347_v47  ;;  %v17398_v25 = vadd.f32 %v16866_v29, %v10406_v5 }
 0xd56   :  { %v10586_v33 = vadd.f32 %v10585_v46, %v10584_v8  ;;  %18868 = vst [vmem:[#allocation85_spill] sm:$0xff] %v17393_v12  ;;  %v10595_v20 = vsel %vm4996_vm4, %v17393_v12, 0.0  ;;  %v17403_v49 = vadd.f32 %v16866_v29, %v10407_v15 }
 0xd57   :  { %18869 = vst [vmem:[#allocation27_spill] sm:$0xff] %v17398_v25  ;;  %v10597_v23 = vsel %vm4996_vm4, %v17398_v25, 0.0 }
 0xd58   :  { %v10588_v60 = vadd.f32 %v10587_v2, %v10586_v33  ;;  %18870 = vst [vmem:[#allocation86_spill] sm:$0xff] %v17403_v49  ;;  %v10599_v34 = vsel %vm4996_vm4, %v17403_v49, 0.0 }
 0xd5a   :  { %v10340_v22 = vpop.f32.mrf.mxu1  ;;  %v10590_v24 = vadd.f32 %v10589_v45, %v10588_v60 }
 0xd5b   :  { %v10408_v42 = vadd.f32 %v10340_v22, %v9877_v57 }
 0xd5c   :  { %v10592_v39 = vadd.f32 %v10591_v13, %v10590_v24  ;;  %v18872_v13 = vld [vmem:[#allocation49_spill] sm:$0xff] }
 0xd5d   :  { %v17408_v50 = vadd.f32 %v16866_v29, %v10408_v42 }
 0xd5e   :  { %v10594_v14 = vadd.f32 %v10593_v4, %v10592_v39  ;;  %v18873_v4 = vld [vmem:[#allocation40_spill] sm:$0xff] }
 0xd5f   :  { %18871 = vst [vmem:[#allocation90_spill] sm:$0xff] %v17408_v50  ;;  %v10601_v19 = vsel %vm4996_vm4, %v17408_v50, 0.0 }
 0xd60   :  { %v10596_v10 = vadd.f32 %v10595_v20, %v10594_v14  ;;  %v18874_v14 = vld [vmem:[#allocation25_spill] sm:$0xff] }
 0xd62   :  { %v10343_v38 = vpop.f32.mrf.mxu1  ;;  %v10598_v28 = vadd.f32 %v10597_v23, %v10596_v10 }
 0xd63   :  { %v10409_v1 = vadd.f32 %v10343_v38, %v9878_v55 }
 0xd64   :  { %v10600_v56 = vadd.f32 %v10599_v34, %v10598_v28 }
 0xd65   :  { %v17413_v9 = vadd.f32 %v16866_v29, %v10409_v1 }
 0xd66   :  { %v10602_v18 = vadd.f32 %v10601_v19, %v10600_v56  ;;  %v18875_v19 = vld [vmem:[#allocation45_spill] sm:$0xff] }
 0xd67   :  { %v10603_v22 = vsel %vm4996_vm4, %v17413_v9, 0.0 }
 0xd68   :  { %v10604_v41 = vadd.f32 %v10603_v22, %v10602_v18 }
 0xd6a   :  { %v10605_v16 = vrot.slane %v10604_v41, 4 }
 0xd6c   :  { %v10606_v46 = vadd.f32 %v10605_v16, %v10604_v41  ;;  %v18876_v16 = vld [vmem:[#allocation50_spill] sm:$0xff] }
 0xd6e   :  { %v10607_v17 = vrot.slane %v10606_v46, 2 }
 0xd70   :  { %v10608_v62 = vadd.f32 %v10607_v17, %v10606_v46 }
 0xd72   :  { %v10609_v35 = vrot.slane %v10608_v62, 1 }
 0xd74   :  { %v10610_v8 = vadd.f32 %v10609_v35, %v10608_v62 }
 0xd76   :  { %v17419_v51 = vmul.f32 0.001953125, %v10610_v8  ;;  %v18877_v8 = vld [vmem:[#allocation57_spill] sm:$0xff] }
 0xd78   :  { %v10612_v29 = vsub.f32 %v16879_v44, %v17419_v51  ;;  %v10613_v2 = vsub.f32 %v16874_v61, %v17419_v51  ;;  %v10614_v59 = vsub.f32 %v16882_v37, %v17419_v51  ;;  %v10615_v11 = vsub.f32 %v16889_v21, %v17419_v51 }
 0xd79   :  { %v10616_v31 = vsub.f32 %v16898_v3, %v17419_v51  ;;  %v10617_v5 = vsub.f32 %v16908_v52, %v17419_v51  ;;  %v10618_v15 = vsub.f32 %v18872_v13, %v17419_v51  ;;  %v10619_v42 = vsub.f32 %v18873_v4, %v17419_v51 }
 0xd7a   :  { %v10676_v53 = vmul.f32 %v10612_v29, %v10612_v29  ;;  %v10677_v33 = vmul.f32 %v10613_v2, %v10613_v2  ;;  %v10678_v45 = vmul.f32 %v10614_v59, %v10614_v59  ;;  %v10679_v57 = vmul.f32 %v10615_v11, %v10615_v11 }
 0xd7b   :  { %v10680_v24 = vmul.f32 %v10616_v31, %v10616_v31  ;;  %v10681_v39 = vmul.f32 %v10617_v5, %v10617_v5  ;;  %v10620_v23 = vsub.f32 %v18874_v14, %v17419_v51  ;;  %v10682_v10 = vmul.f32 %v10618_v15, %v10618_v15 }
 0xd7c   :  { %v10740_v27 = vsel %vm4996_vm4, %v10676_v53, 0.0  ;;  %v10741_v60 = vsel %vm4996_vm4, %v10677_v33, 0.0  ;;  %v10743_v38 = vsel %vm4996_vm4, %v10678_v45, 0.0  ;;  %v10745_v20 = vsel %vm4996_vm4, %v10679_v57, 0.0  ;;  %v18878_v53 = vld [vmem:[#allocation58_spill] sm:$0xff] }
 0xd7d   :  { %v10742_v47 = vadd.f32 %v10741_v60, %v10740_v27  ;;  %v10747_v34 = vsel %vm4996_vm4, %v10680_v24, 0.0  ;;  %v10621_v56 = vsub.f32 %v18875_v19, %v17419_v51  ;;  %v10683_v22 = vmul.f32 %v10619_v42, %v10619_v42  ;;  %v18879_v57 = vld [vmem:[#allocation18_spill] sm:$0xff]  ;;  %v18880_v24 = vld [vmem:[#allocation41_spill] sm:$0xff] }
 0xd7e   :  { %v10749_v18 = vsel %vm4996_vm4, %v10681_v39, 0.0  ;;  %v10622_v46 = vsub.f32 %v18876_v16, %v17419_v51  ;;  %v10684_v17 = vmul.f32 %v10620_v23, %v10620_v23  ;;  %v10751_v62 = vsel %vm4996_vm4, %v10682_v10, 0.0 }
 0xd7f   :  { %v10744_v55 = vadd.f32 %v10743_v38, %v10742_v47  ;;  %v10623_v29 = vsub.f32 %v18877_v8, %v17419_v51  ;;  %v10685_v2 = vmul.f32 %v10621_v56, %v10621_v56  ;;  %v10753_v59 = vsel %vm4996_vm4, %v10683_v22, 0.0 }
 0xd80   :  { %v10624_v33 = vsub.f32 %v18878_v53, %v17419_v51  ;;  %v10686_v31 = vmul.f32 %v10622_v46, %v10622_v46  ;;  %v10755_v45 = vsel %vm4996_vm4, %v10684_v17, 0.0  ;;  %v10625_v27 = vsub.f32 %v18879_v57, %v17419_v51  ;;  %v18883_v46 = vld [vmem:[#allocation52_spill] sm:$0xff] }
 0xd81   :  { %v10746_v1 = vadd.f32 %v10745_v20, %v10744_v55  ;;  %v10687_v60 = vmul.f32 %v10623_v29, %v10623_v29  ;;  %v10757_v47 = vsel %vm4996_vm4, %v10685_v2, 0.0  ;;  %v10626_v38 = vsub.f32 %v18880_v24, %v17419_v51  ;;  %v18881_v20 = vld [vmem:[#allocation76_spill] sm:$0xff] }
 0xd82   :  { %v10688_v55 = vmul.f32 %v10624_v33, %v10624_v33  ;;  %v10759_v42 = vsel %vm4996_vm4, %v10686_v31, 0.0  ;;  %v10689_v23 = vmul.f32 %v10625_v27, %v10625_v27  ;;  %v10629_v17 = vsub.f32 %v18883_v46, %v17419_v51  ;;  %v18884_v2 = vld [vmem:[#allocation24_spill] sm:$0xff] }
 0xd83   :  { %v10748_v28 = vadd.f32 %v10747_v34, %v10746_v1  ;;  %v10627_v1 = vsub.f32 %v18881_v20, %v17419_v51  ;;  %v10761_v10 = vsel %vm4996_vm4, %v10687_v60, 0.0  ;;  %v10690_v22 = vmul.f32 %v10626_v38, %v10626_v38 }
 0xd84   :  { %v10693_v27 = vmul.f32 %v10629_v17, %v10629_v17 }
 0xd85   :  { %v10750_v41 = vadd.f32 %v10749_v18, %v10748_v28  ;;  %v18882_v28 = vld [vmem:[#allocation37_spill] sm:$0xff]  ;;  %v10763_v18 = vsel %vm4996_vm4, %v10688_v55, 0.0  ;;  %v10767_v33 = vsel %vm4996_vm4, %v10690_v22, 0.0 }
 0xd86   :  { %v10628_v56 = vsub.f32 %v18882_v28, %v17419_v51  ;;  %v18888_v22 = vld [vmem:[#allocation13_spill] sm:$0xff] }
 0xd87   :  { %v10752_v35 = vadd.f32 %v10751_v62, %v10750_v41  ;;  %v10691_v62 = vmul.f32 %v10627_v1, %v10627_v1  ;;  %v18887_v1 = vld [vmem:[#allocation59_spill] sm:$0xff] }
 0xd89   :  { %v10754_v11 = vadd.f32 %v10753_v59, %v10752_v35  ;;  %v10765_v35 = vsel %vm4996_vm4, %v10689_v23, 0.0  ;;  %v10630_v59 = vsub.f32 %v18884_v2, %v17419_v51  ;;  %v10769_v60 = vsel %vm4996_vm4, %v10691_v62, 0.0 }
 0xd8a   :  { %v10633_v23 = vsub.f32 %v18887_v1, %v17419_v51 }
 0xd8b   :  { %v10756_v5 = vadd.f32 %v10755_v45, %v10754_v11  ;;  %v10692_v11 = vmul.f32 %v10628_v56, %v10628_v56  ;;  %v18885_v45 = vld [vmem:[#allocation47_spill] sm:$0xff]  ;;  %v10694_v55 = vmul.f32 %v10630_v59, %v10630_v59 }
 0xd8c   :  { %v10697_v59 = vmul.f32 %v10633_v23, %v10633_v23 }
 0xd8d   :  { %v10758_v15 = vadd.f32 %v10757_v47, %v10756_v5  ;;  %v10631_v5 = vsub.f32 %v18885_v45, %v17419_v51  ;;  %v10775_v17 = vsel %vm4996_vm4, %v10694_v55, 0.0 }
 0xd8e   :  { %v10781_v55 = vsel %vm4996_vm4, %v10697_v59, 0.0 }
 0xd8f   :  { %v10760_v39 = vadd.f32 %v10759_v42, %v10758_v15  ;;  %v18886_v15 = vld [vmem:[#allocation42_spill] sm:$0xff]  ;;  %v10771_v42 = vsel %vm4996_vm4, %v10692_v11, 0.0 }
 0xd90   :  { %v10632_v38 = vsub.f32 %v18886_v15, %v17419_v51 }
 0xd91   :  { %v10762_v34 = vadd.f32 %v10761_v10, %v10760_v39  ;;  %v10695_v10 = vmul.f32 %v10631_v5, %v10631_v5 }
 0xd93   :  { %v10764_v41 = vadd.f32 %v10763_v18, %v10762_v34  ;;  %v10773_v34 = vsel %vm4996_vm4, %v10693_v27, 0.0  ;;  %v10634_v18 = vsub.f32 %v18888_v22, %v17419_v51  ;;  %v10777_v11 = vsel %vm4996_vm4, %v10695_v10, 0.0 }
 0xd95   :  { %v10766_v29 = vadd.f32 %v10765_v35, %v10764_v41  ;;  %v10696_v41 = vmul.f32 %v10632_v38, %v10632_v38  ;;  %v18889_v35 = vld [vmem:[#allocation56_spill] sm:$0xff] }
 0xd97   :  { %v10768_v31 = vadd.f32 %v10767_v33, %v10766_v29  ;;  %v10635_v29 = vsub.f32 %v18889_v35, %v17419_v51  ;;  %v10779_v27 = vsel %vm4996_vm4, %v10696_v41, 0.0 }
 0xd99   :  { %v10770_v47 = vadd.f32 %v10769_v60, %v10768_v31  ;;  %v18890_v31 = vld [vmem:[#allocation77_spill] sm:$0xff]  ;;  %v10698_v60 = vmul.f32 %v10634_v18, %v10634_v18 }
 0xd9a   :  { %v10636_v5 = vsub.f32 %v18890_v31, %v17419_v51 }
 0xd9b   :  { %v10772_v39 = vadd.f32 %v10771_v42, %v10770_v47  ;;  %v18891_v42 = vld [vmem:[#allocation46_spill] sm:$0xff]  ;;  %v10783_v10 = vsel %vm4996_vm4, %v10698_v60, 0.0 }
 0xd9c   :  { %v10637_v38 = vsub.f32 %v18891_v42, %v17419_v51 }
 0xd9d   :  { %v10774_v56 = vadd.f32 %v10773_v34, %v10772_v39  ;;  %v10699_v39 = vmul.f32 %v10635_v29, %v10635_v29 }
 0xd9e   :  { %v10701_v31 = vmul.f32 %v10637_v38, %v10637_v38 }
 0xd9f   :  { %v10776_v62 = vadd.f32 %v10775_v17, %v10774_v56  ;;  %v18892_v56 = vld [vmem:[#allocation9_spill] sm:$0xff]  ;;  %v10700_v17 = vmul.f32 %v10636_v5, %v10636_v5  ;;  %v10785_v41 = vsel %vm4996_vm4, %v10699_v39, 0.0 }
 0xda0   :  { %v10638_v23 = vsub.f32 %v18892_v56, %v17419_v51  ;;  %v10789_v60 = vsel %vm4996_vm4, %v10701_v31, 0.0 }
 0xda1   :  { %v10778_v33 = vadd.f32 %v10777_v11, %v10776_v62  ;;  %v18893_v11 = vld [vmem:[#allocation14_spill] sm:$0xff]  ;;  %v10787_v59 = vsel %vm4996_vm4, %v10700_v17, 0.0 }
 0xda2   :  { %v10639_v18 = vsub.f32 %v18893_v11, %v17419_v51  ;;  %v10702_v42 = vmul.f32 %v10638_v23, %v10638_v23 }
 0xda3   :  { %v10780_v47 = vadd.f32 %v10779_v27, %v10778_v33  ;;  %v18894_v27 = vld [vmem:[#allocation5_spill] sm:$0xff] }
 0xda4   :  { %v10640_v29 = vsub.f32 %v18894_v27, %v17419_v51  ;;  %v10703_v56 = vmul.f32 %v10639_v18, %v10639_v18  ;;  %v10791_v39 = vsel %vm4996_vm4, %v10702_v42, 0.0 }
 0xda5   :  { %v10782_v34 = vadd.f32 %v10781_v55, %v10780_v47  ;;  %v18895_v55 = vld [vmem:[#allocation55_spill] sm:$0xff] }
 0xda6   :  { %v10641_v5 = vsub.f32 %v18895_v55, %v17419_v51  ;;  %v10704_v11 = vmul.f32 %v10640_v29, %v10640_v29  ;;  %v10793_v17 = vsel %vm4996_vm4, %v10703_v56, 0.0 }
 0xda7   :  { %v10784_v62 = vadd.f32 %v10783_v10, %v10782_v34  ;;  %v18896_v10 = vld [vmem:[#allocation6_spill] sm:$0xff] }
 0xda8   :  { %v10642_v38 = vsub.f32 %v18896_v10, %v17419_v51  ;;  %v10705_v27 = vmul.f32 %v10641_v5, %v10641_v5  ;;  %v10795_v31 = vsel %vm4996_vm4, %v10704_v11, 0.0 }
 0xda9   :  { %v10786_v33 = vadd.f32 %v10785_v41, %v10784_v62  ;;  %v18897_v41 = vld [vmem:[#allocation30_spill] sm:$0xff] }
 0xdaa   :  { %v10643_v23 = vsub.f32 %v18897_v41, %v17419_v51  ;;  %v10706_v55 = vmul.f32 %v10642_v38, %v10642_v38  ;;  %v10797_v42 = vsel %vm4996_vm4, %v10705_v27, 0.0 }
 0xdab   :  { %v10788_v47 = vadd.f32 %v10787_v59, %v10786_v33  ;;  %v18898_v59 = vld [vmem:[#allocation23_spill] sm:$0xff] }
 0xdac   :  { %v10644_v18 = vsub.f32 %v18898_v59, %v17419_v51  ;;  %v10707_v10 = vmul.f32 %v10643_v23, %v10643_v23  ;;  %v10799_v56 = vsel %vm4996_vm4, %v10706_v55, 0.0 }
 0xdad   :  { %v10790_v34 = vadd.f32 %v10789_v60, %v10788_v47  ;;  %v18899_v60 = vld [vmem:[#allocation7_spill] sm:$0xff] }
 0xdae   :  { %v10645_v29 = vsub.f32 %v18899_v60, %v17419_v51  ;;  %v10708_v41 = vmul.f32 %v10644_v18, %v10644_v18  ;;  %v10801_v11 = vsel %vm4996_vm4, %v10707_v10, 0.0 }
 0xdaf   :  { %v10792_v62 = vadd.f32 %v10791_v39, %v10790_v34  ;;  %v18900_v39 = vld [vmem:[#allocation74_spill] sm:$0xff] }
 0xdb0   :  { %v10646_v5 = vsub.f32 %v18900_v39, %v17419_v51  ;;  %v10709_v59 = vmul.f32 %v10645_v29, %v10645_v29  ;;  %v10803_v27 = vsel %vm4996_vm4, %v10708_v41, 0.0 }
 0xdb1   :  { %v10794_v33 = vadd.f32 %v10793_v17, %v10792_v62  ;;  %v18901_v17 = vld [vmem:[#allocation12_spill] sm:$0xff] }
 0xdb2   :  { %v10647_v38 = vsub.f32 %v18901_v17, %v17419_v51  ;;  %v10710_v60 = vmul.f32 %v10646_v5, %v10646_v5  ;;  %v10805_v55 = vsel %vm4996_vm4, %v10709_v59, 0.0 }
 0xdb3   :  { %v10796_v47 = vadd.f32 %v10795_v31, %v10794_v33  ;;  %v18902_v31 = vld [vmem:[#allocation43_spill] sm:$0xff] }
 0xdb4   :  { %v10648_v23 = vsub.f32 %v18902_v31, %v17419_v51  ;;  %v10711_v39 = vmul.f32 %v10647_v38, %v10647_v38  ;;  %v10807_v10 = vsel %vm4996_vm4, %v10710_v60, 0.0 }
 0xdb5   :  { %v10798_v34 = vadd.f32 %v10797_v42, %v10796_v47  ;;  %v18903_v42 = vld [vmem:[#allocation21_spill] sm:$0xff] }
 0xdb6   :  { %v10649_v18 = vsub.f32 %v18903_v42, %v17419_v51  ;;  %v10712_v17 = vmul.f32 %v10648_v23, %v10648_v23  ;;  %v10809_v41 = vsel %vm4996_vm4, %v10711_v39, 0.0 }
 0xdb7   :  { %v10800_v62 = vadd.f32 %v10799_v56, %v10798_v34  ;;  %v18904_v56 = vld [vmem:[#allocation31_spill] sm:$0xff] }
 0xdb8   :  { %v10650_v29 = vsub.f32 %v18904_v56, %v17419_v51  ;;  %v10713_v31 = vmul.f32 %v10649_v18, %v10649_v18  ;;  %v10811_v59 = vsel %vm4996_vm4, %v10712_v17, 0.0 }
 0xdb9   :  { %v10802_v33 = vadd.f32 %v10801_v11, %v10800_v62  ;;  %v18905_v11 = vld [vmem:[#allocation22_spill] sm:$0xff] }
 0xdba   :  { %v10651_v5 = vsub.f32 %v18905_v11, %v17419_v51  ;;  %v10714_v42 = vmul.f32 %v10650_v29, %v10650_v29  ;;  %v10813_v60 = vsel %vm4996_vm4, %v10713_v31, 0.0 }
 0xdbb   :  { %v10804_v47 = vadd.f32 %v10803_v27, %v10802_v33  ;;  %v18906_v27 = vld [vmem:[#allocation82_spill] sm:$0xff] }
 0xdbc   :  { %v10652_v38 = vsub.f32 %v18906_v27, %v17419_v51  ;;  %v10715_v56 = vmul.f32 %v10651_v5, %v10651_v5  ;;  %v10815_v39 = vsel %vm4996_vm4, %v10714_v42, 0.0 }
 0xdbd   :  { %v10806_v34 = vadd.f32 %v10805_v55, %v10804_v47  ;;  %v18907_v55 = vld [vmem:[#allocation33_spill] sm:$0xff] }
 0xdbe   :  { %v10653_v23 = vsub.f32 %v18907_v55, %v17419_v51  ;;  %v10716_v11 = vmul.f32 %v10652_v38, %v10652_v38  ;;  %v10817_v17 = vsel %vm4996_vm4, %v10715_v56, 0.0  ;;  %v10657_v38 = vsub.f32 %v17251_v48, %v17419_v51 }
 0xdbf   :  { %v10808_v62 = vadd.f32 %v10807_v10, %v10806_v34  ;;  %v18908_v10 = vld [vmem:[#allocation83_spill] sm:$0xff] }
 0xdc0   :  { %v10654_v18 = vsub.f32 %v18908_v10, %v17419_v51  ;;  %v10717_v27 = vmul.f32 %v10653_v23, %v10653_v23  ;;  %v10819_v31 = vsel %vm4996_vm4, %v10716_v11, 0.0 }
 0xdc1   :  { %v10810_v33 = vadd.f32 %v10809_v41, %v10808_v62  ;;  %v18909_v41 = vld [vmem:[#allocation39_spill] sm:$0xff] }
 0xdc2   :  { %v10655_v29 = vsub.f32 %v18909_v41, %v17419_v51  ;;  %v10718_v55 = vmul.f32 %v10654_v18, %v10654_v18  ;;  %v10821_v42 = vsel %vm4996_vm4, %v10717_v27, 0.0  ;;  %v10659_v18 = vsub.f32 %v17270_v32, %v17419_v51 }
 0xdc3   :  { %v10812_v47 = vadd.f32 %v10811_v59, %v10810_v33  ;;  %v18910_v59 = vld [vmem:[#allocation84_spill] sm:$0xff] }
 0xdc4   :  { %v10656_v5 = vsub.f32 %v18910_v59, %v17419_v51  ;;  %v10823_v56 = vsel %vm4996_vm4, %v10718_v55, 0.0 }
 0xdc5   :  { %v10814_v34 = vadd.f32 %v10813_v60, %v10812_v47  ;;  %v10719_v60 = vmul.f32 %v10655_v29, %v10655_v29  ;;  %v10660_v29 = vsub.f32 %v17281_v36, %v17419_v51 }
 0xdc6   :  { %v10720_v41 = vmul.f32 %v10656_v5, %v10656_v5  ;;  %v10661_v5 = vsub.f32 %v17295_v30, %v17419_v51 }
 0xdc7   :  { %v10816_v62 = vadd.f32 %v10815_v39, %v10814_v34  ;;  %v18911_v39 = vld [vmem:[#allocation26_spill] sm:$0xff]  ;;  %v10825_v11 = vsel %vm4996_vm4, %v10719_v60, 0.0 }
 0xdc8   :  { %v10658_v23 = vsub.f32 %v18911_v39, %v17419_v51  ;;  %v10827_v27 = vsel %vm4996_vm4, %v10720_v41, 0.0 }
 0xdc9   :  { %v10818_v33 = vadd.f32 %v10817_v17, %v10816_v62  ;;  %v10721_v17 = vmul.f32 %v10657_v38, %v10657_v38  ;;  %v10662_v38 = vsub.f32 %v17306_v26, %v17419_v51 }
 0xdcb   :  { %v10820_v47 = vadd.f32 %v10819_v31, %v10818_v33  ;;  %v10722_v31 = vmul.f32 %v10658_v23, %v10658_v23  ;;  %v10829_v55 = vsel %vm4996_vm4, %v10721_v17, 0.0  ;;  %v10663_v23 = vsub.f32 %v17317_v54, %v17419_v51 }
 0xdcd   :  { %v10822_v34 = vadd.f32 %v10821_v42, %v10820_v47  ;;  %v10723_v42 = vmul.f32 %v10659_v18, %v10659_v18  ;;  %v10831_v60 = vsel %vm4996_vm4, %v10722_v31, 0.0  ;;  %v10664_v18 = vsub.f32 %v17329_v43, %v17419_v51 }
 0xdcf   :  { %v10824_v62 = vadd.f32 %v10823_v56, %v10822_v34  ;;  %v10724_v56 = vmul.f32 %v10660_v29, %v10660_v29  ;;  %v10833_v41 = vsel %vm4996_vm4, %v10723_v42, 0.0  ;;  %v10665_v29 = vsub.f32 %v17340_v7, %v17419_v51 }
 0xdd1   :  { %v10826_v33 = vadd.f32 %v10825_v11, %v10824_v62  ;;  %v10725_v11 = vmul.f32 %v10661_v5, %v10661_v5  ;;  %v10835_v17 = vsel %vm4996_vm4, %v10724_v56, 0.0  ;;  %v10666_v5 = vsub.f32 %v17351_v0, %v17419_v51 }
 0xdd3   :  { %v10828_v47 = vadd.f32 %v10827_v27, %v10826_v33  ;;  %v10726_v27 = vmul.f32 %v10662_v38, %v10662_v38  ;;  %v10837_v31 = vsel %vm4996_vm4, %v10725_v11, 0.0  ;;  %v10667_v38 = vsub.f32 %v17362_v6, %v17419_v51 }
 0xdd5   :  { %v10830_v34 = vadd.f32 %v10829_v55, %v10828_v47  ;;  %v10727_v55 = vmul.f32 %v10663_v23, %v10663_v23  ;;  %v10839_v42 = vsel %vm4996_vm4, %v10726_v27, 0.0  ;;  %v10668_v23 = vsub.f32 %v17372_v58, %v17419_v51 }
 0xdd7   :  { %v10832_v62 = vadd.f32 %v10831_v60, %v10830_v34  ;;  %v10728_v60 = vmul.f32 %v10664_v18, %v10664_v18  ;;  %v10841_v56 = vsel %vm4996_vm4, %v10727_v55, 0.0  ;;  %v10669_v18 = vsub.f32 %v17380_v63, %v17419_v51 }
 0xdd9   :  { %v10834_v33 = vadd.f32 %v10833_v41, %v10832_v62  ;;  %v10729_v41 = vmul.f32 %v10665_v29, %v10665_v29  ;;  %v10843_v11 = vsel %vm4996_vm4, %v10728_v60, 0.0  ;;  %v10670_v29 = vsub.f32 %v17387_v40, %v17419_v51 }
 0xddb   :  { %v10836_v47 = vadd.f32 %v10835_v17, %v10834_v33  ;;  %v10730_v17 = vmul.f32 %v10666_v5, %v10666_v5  ;;  %v10845_v27 = vsel %vm4996_vm4, %v10729_v41, 0.0  ;;  %v10671_v5 = vsub.f32 %v17393_v12, %v17419_v51 }
 0xddd   :  { %v10838_v34 = vadd.f32 %v10837_v31, %v10836_v47  ;;  %v10731_v31 = vmul.f32 %v10667_v38, %v10667_v38  ;;  %v10847_v55 = vsel %vm4996_vm4, %v10730_v17, 0.0  ;;  %v10672_v38 = vsub.f32 %v17398_v25, %v17419_v51 }
 0xddf   :  { %v10840_v62 = vadd.f32 %v10839_v42, %v10838_v34  ;;  %v10732_v42 = vmul.f32 %v10668_v23, %v10668_v23  ;;  %v10849_v60 = vsel %vm4996_vm4, %v10731_v31, 0.0  ;;  %v10673_v23 = vsub.f32 %v17403_v49, %v17419_v51 }
 0xde1   :  { %v10842_v33 = vadd.f32 %v10841_v56, %v10840_v62  ;;  %v10733_v56 = vmul.f32 %v10669_v18, %v10669_v18  ;;  %v10851_v41 = vsel %vm4996_vm4, %v10732_v42, 0.0  ;;  %v10674_v18 = vsub.f32 %v17408_v50, %v17419_v51 }
 0xde3   :  { %v10844_v47 = vadd.f32 %v10843_v11, %v10842_v33  ;;  %v10734_v11 = vmul.f32 %v10670_v29, %v10670_v29  ;;  %v10853_v17 = vsel %vm4996_vm4, %v10733_v56, 0.0  ;;  %v10675_v29 = vsub.f32 %v17413_v9, %v17419_v51 }
 0xde5   :  { %v10846_v34 = vadd.f32 %v10845_v27, %v10844_v47  ;;  %v10735_v27 = vmul.f32 %v10671_v5, %v10671_v5  ;;  %v10855_v31 = vsel %vm4996_vm4, %v10734_v11, 0.0  ;;  %v10739_v56 = vmul.f32 %v10675_v29, %v10675_v29 }
 0xde7   :  { %v10848_v62 = vadd.f32 %v10847_v55, %v10846_v34  ;;  %v10736_v55 = vmul.f32 %v10672_v38, %v10672_v38  ;;  %v10857_v42 = vsel %vm4996_vm4, %v10735_v27, 0.0  ;;  %v10865_v11 = vsel %vm4996_vm4, %v10739_v56, 0.0  ;;  %v10887_v56 = vld [vmem:[%s18083_s8] sm:$0x1] }
 0xde9   :  { %v10850_v33 = vadd.f32 %v10849_v60, %v10848_v62  ;;  %v10737_v60 = vmul.f32 %v10673_v23, %v10673_v23  ;;  %v10859_v5 = vsel %vm4996_vm4, %v10736_v55, 0.0 }
 0xdeb   :  { %v10852_v47 = vadd.f32 %v10851_v41, %v10850_v33  ;;  %v10738_v41 = vmul.f32 %v10674_v18, %v10674_v18 }
 0xded   :  { %v10854_v34 = vadd.f32 %v10853_v17, %v10852_v47  ;;  %v10861_v47 = vsel %vm4996_vm4, %v10737_v60, 0.0  ;;  %v10863_v38 = vsel %vm4996_vm4, %v10738_v41, 0.0 }
 0xdef   :  { %v10856_v62 = vadd.f32 %v10855_v31, %v10854_v34 }
 0xdf1   :  { %v10858_v33 = vadd.f32 %v10857_v42, %v10856_v62 }
 0xdf3   :  { %v10860_v49 = vadd.f32 %v10859_v5, %v10858_v33 }
 0xdf5   :  { %v10862_v17 = vadd.f32 %v10861_v47, %v10860_v49 }
 0xdf7   :  { %v10864_v50 = vadd.f32 %v10863_v38, %v10862_v17 }
 0xdf9   :  { %v10866_v34 = vadd.f32 %v10865_v11, %v10864_v50  ;;  %v10874_v50 = vld [vmem:[%s18082_s7] sm:$0x1] }
 0xdfb   :  { %v10867_v31 = vrot.slane %v10866_v34, 4 }
 0xdfd   :  { %v10868_v25 = vadd.f32 %v10867_v31, %v10866_v34 }
 0xdff   :  { %v10869_v23 = vrot.slane %v10868_v25, 2 }
 0xe01   :  { %v10870_v12 = vadd.f32 %v10869_v23, %v10868_v25 }
 0xe03   :  { %v10871_v27 = vrot.slane %v10870_v12, 1 }
 0xe05   :  { %v10872_v62 = vadd.f32 %v10871_v27, %v10870_v12 }
 0xe07   :  { %v10873_v18 = vmul.f32 0.001953125, %v10872_v62 }
 0xe09   :  { %v10875_v42 = vadd.f32 1e-05, %v10873_v18 }
 0xe0b   :  { %12340 = vrsqrt.f32 %v10875_v42  ;;  %vm10882_vm11 = vweird.f32 %v10875_v42 }
 0xe11   :  { %v12341_v55 = vpop.eup %12340 }
 0xe12   :  { %v10877_v29 = vmul.f32 %v12341_v55, %v10875_v42  ;;  %vm10883_vm10 = vweird.f32 %v12341_v55 }
 0xe13   :  { %vm10884_vm12 = vmor %vm10882_vm11, %vm10883_vm10 }
 0xe14   :  { %v10878_v33 = vmul.f32 %v12341_v55, %v10877_v29 }
 0xe16   :  { %v10879_v60 = vmul.f32 0.5, %v10878_v33 }
 0xe18   :  { %v10880_v49 = vsub.f32 1.5, %v10879_v60 }
 0xe1a   :  { %v10881_v5 = vmul.f32 %v12341_v55, %v10880_v49 }
 0xe1c   :  { %v10885_v41 = vsel %vm10884_vm12, %v12341_v55, %v10881_v5 }
 0xe1d   :  { %v10886_v25 = vmul.f32 %v10885_v41, %v10874_v50 }
 0xe1f   :  { %v10888_v12 = vmul.f32 %v10886_v25, %v17419_v51  ;;  %v17620_v17 = vperm.slane %v10886_v25, 0 }
 0xe21   :  { %v10889_v47 = vsub.f32 %v10887_v56, %v10888_v12  ;;  %v10893_v11 = vmul.f32 %v17620_v17, %v16879_v44  ;;  %v10894_v34 = vmul.f32 %v17620_v17, %v16874_v61  ;;  %v10895_v31 = vmul.f32 %v17620_v17, %v16882_v37 }
 0xe22   :  { %v10896_v51 = vmul.f32 %v17620_v17, %v16889_v21  ;;  %v10897_v23 = vmul.f32 %v17620_v17, %v16898_v3  ;;  %v10898_v44 = vmul.f32 %v17620_v17, %v16908_v52  ;;  %v10956_v61 = vmul.f32 %v17620_v17, %v17413_v9 }
 0xe23   :  { %v17622_v38 = vperm.slane %v10889_v47, 0  ;;  %v10899_v21 = vmul.f32 %v17620_v17, %v18872_v13  ;;  %v10900_v3 = vmul.f32 %v17620_v17, %v18873_v4  ;;  %v10901_v55 = vmul.f32 %v17620_v17, %v18874_v14 }
 0xe24   :  { %v10902_v13 = vmul.f32 %v17620_v17, %v18875_v19  ;;  %v10903_v4 = vmul.f32 %v17620_v17, %v18876_v16  ;;  %v10904_v25 = vmul.f32 %v17620_v17, %v18877_v8  ;;  %v10905_v16 = vmul.f32 %v17620_v17, %v18878_v53 }
 0xe25   :  { %v10960_v27 = vadd.f32 %v17622_v38, %v10893_v11  ;;  %v10961_v62 = vadd.f32 %v17622_v38, %v10894_v34  ;;  %v10962_v18 = vadd.f32 %v17622_v38, %v10895_v31  ;;  %v10963_v37 = vadd.f32 %v17622_v38, %v10896_v51 }
 0xe26   :  { %v10964_v42 = vadd.f32 %v17622_v38, %v10897_v23  ;;  %v10965_v29 = vadd.f32 %v17622_v38, %v10898_v44  ;;  %v17651_v52 = vadd.f32 %v17622_v38, %v10956_v61  ;;  %v10966_v9 = vadd.f32 %v17622_v38, %v10899_v21 }
 0xe27   :  { %v11024_v33 = vmax.f32 %v10960_v27, 0.0  ;;  %v11025_v60 = vmax.f32 %v10961_v62, 0.0  ;;  %v11026_v49 = vmax.f32 %v10962_v18, 0.0  ;;  %v10967_v5 = vadd.f32 %v17622_v38, %v10900_v3 }
 0xe28   :  { %v11027_v50 = vmax.f32 %v10963_v37, 0.0  ;;  %v10968_v14 = vadd.f32 %v17622_v38, %v10901_v55  ;;  %v11028_v41 = vmax.f32 %v10964_v42, 0.0  ;;  %v10969_v12 = vadd.f32 %v17622_v38, %v10902_v13 }
 0xe29   :  { %11088 = vst.msk [vmem:[%s18084_s9] sm:$0xff] %vm4996_vm4, %v11024_v33  ;;  %v11029_v19 = vmax.f32 %v10965_v29, 0.0  ;;  %v10970_v56 = vadd.f32 %v17622_v38, %v10903_v4  ;;  %v11030_v47 = vmax.f32 %v10966_v9, 0.0  ;;  %v10906_v8 = vmul.f32 %v17620_v17, %v18879_v57 }
 0xe2a   :  { %11089 = vst.msk [vmem:[%s18084_s9 + $0x8] sm:$0xff] %vm4996_vm4, %v11025_v60  ;;  %v10971_v11 = vadd.f32 %v17622_v38, %v10904_v25  ;;  %v11031_v34 = vmax.f32 %v10967_v5, 0.0  ;;  %v10907_v53 = vmul.f32 %v17620_v17, %v18880_v24  ;;  %v10972_v31 = vadd.f32 %v17622_v38, %v10905_v16 }
 0xe2b   :  { %11090 = vst.msk [vmem:[%s18084_s9 + $0x10] sm:$0xff] %vm4996_vm4, %v11026_v49  ;;  %v11032_v51 = vmax.f32 %v10968_v14, 0.0  ;;  %v10908_v57 = vmul.f32 %v17620_v17, %v18881_v20  ;;  %v10973_v23 = vadd.f32 %v17622_v38, %v10906_v8  ;;  %v11033_v27 = vmax.f32 %v10969_v12, 0.0  ;;  %v18915_v8 = vld [vmem:[#allocation14_spill] sm:$0xff] }
 0xe2c   :  { %11091 = vst.msk [vmem:[%s18084_s9 + $0x18] sm:$0xff] %vm4996_vm4, %v11027_v50  ;;  %v10909_v24 = vmul.f32 %v17620_v17, %v18882_v28  ;;  %v10974_v62 = vadd.f32 %v17622_v38, %v10907_v53  ;;  %v11034_v18 = vmax.f32 %v10970_v56, 0.0  ;;  %v10910_v20 = vmul.f32 %v17620_v17, %v18883_v46 }
 0xe2d   :  { %11092 = vst.msk [vmem:[%s18084_s9 + $0x20] sm:$0xff] %vm4996_vm4, %v11028_v41  ;;  %v10975_v44 = vadd.f32 %v17622_v38, %v10908_v57  ;;  %v11035_v61 = vmax.f32 %v10971_v11, 0.0  ;;  %v10911_v28 = vmul.f32 %v17620_v17, %v18884_v2  ;;  %v11036_v21 = vmax.f32 %v10972_v31, 0.0  ;;  %v18916_v31 = vld [vmem:[#allocation5_spill] sm:$0xff] }
 0xe2e   :  { %11093 = vst.msk [vmem:[%s18084_s9 + $0x28] sm:$0xff] %vm4996_vm4, %v11029_v19  ;;  %v10976_v37 = vadd.f32 %v17622_v38, %v10909_v24  ;;  %v10912_v46 = vmul.f32 %v17620_v17, %v18885_v45  ;;  %v10977_v42 = vadd.f32 %v17622_v38, %v10910_v20  ;;  %v11037_v3 = vmax.f32 %v10973_v23, 0.0  ;;  %v18914_v19 = vld [vmem:[#allocation9_spill] sm:$0xff]  ;;  %v18918_v20 = vld [vmem:[#allocation6_spill] sm:$0xff] }
 0xe2f   :  { %11094 = vst.msk [vmem:[%s18084_s9 + $0x30] sm:$0xff] %vm4996_vm4, %v11030_v47  ;;  %v10913_v2 = vmul.f32 %v17620_v17, %v18886_v15  ;;  %v10978_v55 = vadd.f32 %v17622_v38, %v10911_v28  ;;  %v11038_v29 = vmax.f32 %v10974_v62, 0.0  ;;  %v10914_v45 = vmul.f32 %v17620_v17, %v18887_v1 }
 0xe30   :  { %11095 = vst.msk [vmem:[%s18084_s9 + $0x38] sm:$0xff] %vm4996_vm4, %v11031_v34  ;;  %v10979_v9 = vadd.f32 %v17622_v38, %v10912_v46  ;;  %v11039_v33 = vmax.f32 %v10975_v44, 0.0  ;;  %v10915_v15 = vmul.f32 %v17620_v17, %v18888_v22  ;;  %v11040_v49 = vmax.f32 %v10976_v37, 0.0  ;;  %v18912_v22 = vld [vmem:[#allocation77_spill] sm:$0xff]  ;;  %v18919_v37 = vld [vmem:[#allocation30_spill] sm:$0xff] }
 0xe31   :  { %11096 = vst.msk [vmem:[%s18084_s9 + $0x40] sm:$0xff] %vm4996_vm4, %v11032_v51  ;;  %v10980_v60 = vadd.f32 %v17622_v38, %v10913_v2  ;;  %v10916_v1 = vmul.f32 %v17620_v17, %v18889_v35  ;;  %v10981_v13 = vadd.f32 %v17622_v38, %v10914_v45  ;;  %v11041_v5 = vmax.f32 %v10977_v42, 0.0  ;;  %v18913_v35 = vld [vmem:[#allocation46_spill] sm:$0xff]  ;;  %v18921_v45 = vld [vmem:[#allocation7_spill] sm:$0xff] }
 0xe32   :  { %11097 = vst.msk [vmem:[%s18084_s9 + $0x48] sm:$0xff] %vm4996_vm4, %v11033_v27  ;;  %v10917_v50 = vmul.f32 %v17620_v17, %v18912_v22  ;;  %v10982_v4 = vadd.f32 %v17622_v38, %v10915_v15  ;;  %v11042_v14 = vmax.f32 %v10978_v55, 0.0  ;;  %v10918_v41 = vmul.f32 %v17620_v17, %v18913_v35  ;;  %v18917_v27 = vld [vmem:[#allocation55_spill] sm:$0xff] }
 0xe33   :  { %11098 = vst.msk [vmem:[%s18084_s9 + $0x50] sm:$0xff] %vm4996_vm4, %v11034_v18  ;;  %v10983_v25 = vadd.f32 %v17622_v38, %v10916_v1  ;;  %v11043_v12 = vmax.f32 %v10979_v9, 0.0  ;;  %v10919_v16 = vmul.f32 %v17620_v17, %v18914_v19  ;;  %v11044_v47 = vmax.f32 %v10980_v60, 0.0  ;;  %v18922_v60 = vld [vmem:[#allocation74_spill] sm:$0xff] }
 0xe34   :  { %11099 = vst.msk [vmem:[%s18084_s9 + $0x58] sm:$0xff] %vm4996_vm4, %v11035_v61  ;;  %v10984_v56 = vadd.f32 %v17622_v38, %v10917_v50  ;;  %v10920_v11 = vmul.f32 %v17620_v17, %v18915_v8  ;;  %v10985_v34 = vadd.f32 %v17622_v38, %v10918_v41  ;;  %v11045_v53 = vmax.f32 %v10981_v13, 0.0 }
 0xe35   :  { %11100 = vst.msk [vmem:[%s18084_s9 + $0x60] sm:$0xff] %vm4996_vm4, %v11036_v21  ;;  %v10921_v51 = vmul.f32 %v17620_v17, %v18916_v31  ;;  %v10986_v57 = vadd.f32 %v17622_v38, %v10919_v16  ;;  %v11046_v23 = vmax.f32 %v10982_v4, 0.0  ;;  %v10922_v24 = vmul.f32 %v17620_v17, %v18917_v27 }
 0xe36   :  { %11101 = vst.msk [vmem:[%s18084_s9 + $0x68] sm:$0xff] %vm4996_vm4, %v11037_v3  ;;  %v10987_v62 = vadd.f32 %v17622_v38, %v10920_v11  ;;  %v11047_v18 = vmax.f32 %v10983_v25, 0.0  ;;  %v10923_v44 = vmul.f32 %v17620_v17, %v18918_v20  ;;  %v11048_v28 = vmax.f32 %v10984_v56, 0.0  ;;  %v18920_v3 = vld [vmem:[#allocation23_spill] sm:$0xff] }
 0xe37   :  { %11102 = vst.msk [vmem:[%s18084_s9 + $0x70] sm:$0xff] %vm4996_vm4, %v11038_v29  ;;  %v10988_v61 = vadd.f32 %v17622_v38, %v10921_v51  ;;  %v10924_v21 = vmul.f32 %v17620_v17, %v18919_v37  ;;  %v10989_v46 = vadd.f32 %v17622_v38, %v10922_v24  ;;  %v11049_v42 = vmax.f32 %v10985_v34, 0.0 }
 0xe38   :  { %11103 = vst.msk [vmem:[%s18084_s9 + $0x78] sm:$0xff] %vm4996_vm4, %v11039_v33  ;;  %v10925_v2 = vmul.f32 %v17620_v17, %v18920_v3  ;;  %v10990_v55 = vadd.f32 %v17622_v38, %v10923_v44  ;;  %v11050_v29 = vmax.f32 %v10986_v57, 0.0  ;;  %v10926_v9 = vmul.f32 %v17620_v17, %v18921_v45 }
 0xe39   :  { %11104 = vst.msk [vmem:[%s18084_s9 + $0x80] sm:$0xff] %vm4996_vm4, %v11040_v49  ;;  %v10991_v33 = vadd.f32 %v17622_v38, %v10924_v21  ;;  %v11051_v15 = vmax.f32 %v10987_v62, 0.0  ;;  %v10927_v49 = vmul.f32 %v17620_v17, %v18922_v60  ;;  %v11052_v13 = vmax.f32 %v10988_v61, 0.0 }
 0xe3a   :  { %11105 = vst.msk [vmem:[%s18084_s9 + $0x88] sm:$0xff] %vm4996_vm4, %v11041_v5  ;;  %v10992_v1 = vadd.f32 %v17622_v38, %v10925_v2  ;;  %v18923_v5 = vld [vmem:[#allocation12_spill] sm:$0xff]  ;;  %v10993_v50 = vadd.f32 %v17622_v38, %v10926_v9  ;;  %v11053_v4 = vmax.f32 %v10989_v46, 0.0  ;;  %v11054_v25 = vmax.f32 %v10990_v55, 0.0  ;;  %v18930_v46 = vld [vmem:[#allocation39_spill] sm:$0xff] }
 0xe3b   :  { %11106 = vst.msk [vmem:[%s18084_s9 + $0x90] sm:$0xff] %vm4996_vm4, %v11042_v14  ;;  %v10928_v22 = vmul.f32 %v17620_v17, %v18923_v5  ;;  %v18924_v14 = vld [vmem:[#allocation43_spill] sm:$0xff]  ;;  %v10994_v41 = vadd.f32 %v17622_v38, %v10927_v49  ;;  %v11055_v56 = vmax.f32 %v10991_v33, 0.0  ;;  %v10938_v45 = vmul.f32 %v17620_v17, %v17251_v48 }
 0xe3c   :  { %11107 = vst.msk [vmem:[%s18084_s9 + $0x98] sm:$0xff] %vm4996_vm4, %v11043_v12  ;;  %v10929_v35 = vmul.f32 %v17620_v17, %v18924_v14  ;;  %v18925_v12 = vld [vmem:[#allocation21_spill] sm:$0xff]  ;;  %v11056_v34 = vmax.f32 %v10992_v1, 0.0  ;;  %v11057_v57 = vmax.f32 %v10993_v50, 0.0  ;;  %v10940_v48 = vmul.f32 %v17620_v17, %v17270_v32 }
 0xe3d   :  { %11108 = vst.msk [vmem:[%s18084_s9 + $0xa0] sm:$0xff] %vm4996_vm4, %v11044_v47  ;;  %v10930_v19 = vmul.f32 %v17620_v17, %v18925_v12  ;;  %v10995_v16 = vadd.f32 %v17622_v38, %v10928_v22  ;;  %v18926_v47 = vld [vmem:[#allocation31_spill] sm:$0xff]  ;;  %v11058_v62 = vmax.f32 %v10994_v41, 0.0  ;;  %v11005_v49 = vadd.f32 %v17622_v38, %v10938_v45 }
 0xe3e   :  { %11109 = vst.msk [vmem:[%s18084_s9 + $0xa8] sm:$0xff] %vm4996_vm4, %v11045_v53  ;;  %v10931_v8 = vmul.f32 %v17620_v17, %v18926_v47  ;;  %v10996_v11 = vadd.f32 %v17622_v38, %v10929_v35  ;;  %v18927_v53 = vld [vmem:[#allocation22_spill] sm:$0xff]  ;;  %v10942_v32 = vmul.f32 %v17620_v17, %v17295_v30  ;;  %v11007_v22 = vadd.f32 %v17622_v38, %v10940_v48 }
 0xe3f   :  { %11110 = vst.msk [vmem:[%s18084_s9 + $0xb0] sm:$0xff] %vm4996_vm4, %v11046_v23  ;;  %v10932_v31 = vmul.f32 %v17620_v17, %v18927_v53  ;;  %v10997_v51 = vadd.f32 %v17622_v38, %v10930_v19  ;;  %v18928_v23 = vld [vmem:[#allocation82_spill] sm:$0xff]  ;;  %v11059_v61 = vmax.f32 %v10995_v16, 0.0  ;;  %v10944_v30 = vmul.f32 %v17620_v17, %v17317_v54 }
 0xe40   :  { %11111 = vst.msk [vmem:[%s18084_s9 + $0xb8] sm:$0xff] %vm4996_vm4, %v11047_v18  ;;  %v10933_v27 = vmul.f32 %v17620_v17, %v18928_v23  ;;  %v10998_v24 = vadd.f32 %v17622_v38, %v10931_v8  ;;  %v18929_v18 = vld [vmem:[#allocation33_spill] sm:$0xff]  ;;  %v11060_v21 = vmax.f32 %v10996_v11, 0.0  ;;  %v11009_v35 = vadd.f32 %v17622_v38, %v10942_v32 }
 0xe41   :  { %11112 = vst.msk [vmem:[%s18084_s9 + $0xc0] sm:$0xff] %vm4996_vm4, %v11048_v28  ;;  %v10934_v20 = vmul.f32 %v17620_v17, %v18929_v18  ;;  %v10999_v44 = vadd.f32 %v17622_v38, %v10932_v31  ;;  %v10935_v28 = vmul.f32 %v17620_v17, %v18908_v10  ;;  %v11061_v2 = vmax.f32 %v10997_v51, 0.0 }
 0xe42   :  { %11113 = vst.msk [vmem:[%s18084_s9 + $0xc8] sm:$0xff] %vm4996_vm4, %v11049_v42  ;;  %v11000_v37 = vadd.f32 %v17622_v38, %v10933_v27  ;;  %v10936_v42 = vmul.f32 %v17620_v17, %v18930_v46  ;;  %v10937_v10 = vmul.f32 %v17620_v17, %v18910_v59  ;;  %v10939_v59 = vmul.f32 %v17620_v17, %v18911_v39  ;;  %v18934_v46 = vld [vmem:[#allocation90_spill] sm:$0xff] }
 0xe43   :  { %11114 = vst.msk [vmem:[%s18084_s9 + $0xd0] sm:$0xff] %vm4996_vm4, %v11050_v29  ;;  %v11001_v3 = vadd.f32 %v17622_v38, %v10934_v20  ;;  %v11002_v55 = vadd.f32 %v17622_v38, %v10935_v28  ;;  %v11062_v29 = vmax.f32 %v10998_v24, 0.0  ;;  %v11063_v33 = vmax.f32 %v10999_v44, 0.0 }
 0xe44   :  { %11115 = vst.msk [vmem:[%s18084_s9 + $0xd8] sm:$0xff] %vm4996_vm4, %v11051_v15  ;;  %v11003_v9 = vadd.f32 %v17622_v38, %v10936_v42  ;;  %v11004_v15 = vadd.f32 %v17622_v38, %v10937_v10  ;;  %v11064_v60 = vmax.f32 %v11000_v37, 0.0  ;;  %v10941_v39 = vmul.f32 %v17620_v17, %v17281_v36 }
 0xe45   :  { %11116 = vst.msk [vmem:[%s18084_s9 + $0xe0] sm:$0xff] %vm4996_vm4, %v11052_v13  ;;  %v11065_v1 = vmax.f32 %v11001_v3, 0.0  ;;  %v11006_v13 = vadd.f32 %v17622_v38, %v10939_v59  ;;  %v11066_v5 = vmax.f32 %v11002_v55, 0.0  ;;  %v10943_v36 = vmul.f32 %v17620_v17, %v17306_v26 }
 0xe46   :  { %11117 = vst.msk [vmem:[%s18084_s9 + $0xe8] sm:$0xff] %vm4996_vm4, %v11053_v4  ;;  %v11067_v50 = vmax.f32 %v11003_v9, 0.0  ;;  %v11008_v4 = vadd.f32 %v17622_v38, %v10941_v39  ;;  %v11068_v14 = vmax.f32 %v11004_v15, 0.0  ;;  %v11069_v41 = vmax.f32 %v11005_v49, 0.0 }
 0xe47   :  { %11118 = vst.msk [vmem:[%s18084_s9 + $0xf0] sm:$0xff] %vm4996_vm4, %v11054_v25  ;;  %v10945_v26 = vmul.f32 %v17620_v17, %v17329_v43  ;;  %v11010_v25 = vadd.f32 %v17622_v38, %v10943_v36  ;;  %v11070_v12 = vmax.f32 %v11006_v13, 0.0  ;;  %v10946_v54 = vmul.f32 %v17620_v17, %v17340_v7 }
 0xe48   :  { %11119 = vst.msk [vmem:[%s18084_s9 + $0xf8] sm:$0xff] %vm4996_vm4, %v11055_v56  ;;  %v11011_v19 = vadd.f32 %v17622_v38, %v10944_v30  ;;  %v11071_v16 = vmax.f32 %v11007_v22, 0.0  ;;  %v10947_v43 = vmul.f32 %v17620_v17, %v17351_v0  ;;  %v11072_v47 = vmax.f32 %v11008_v4, 0.0 }
 0xe49   :  { %11120 = vst.msk [vmem:[%s18084_s9 + $0x100] sm:$0xff] %vm4996_vm4, %v11056_v34  ;;  %v11012_v56 = vadd.f32 %v17622_v38, %v10945_v26  ;;  %v10948_v7 = vmul.f32 %v17620_v17, %v17362_v6  ;;  %v11013_v8 = vadd.f32 %v17622_v38, %v10946_v54  ;;  %v11073_v11 = vmax.f32 %v11009_v35, 0.0 }
 0xe4a   :  { %11121 = vst.msk [vmem:[%s18084_s9 + $0x108] sm:$0xff] %vm4996_vm4, %v11057_v57  ;;  %v10949_v0 = vmul.f32 %v17620_v17, %v17372_v58  ;;  %v11014_v34 = vadd.f32 %v17622_v38, %v10947_v43  ;;  %v11074_v53 = vmax.f32 %v11010_v25, 0.0  ;;  %v10950_v6 = vmul.f32 %v17620_v17, %v17380_v63  ;;  %v18931_v63 = vld [vmem:[#allocation85_spill] sm:$0xff] }
 0xe4b   :  { %11122 = vst.msk [vmem:[%s18084_s9 + $0x110] sm:$0xff] %vm4996_vm4, %v11058_v62  ;;  %v11015_v31 = vadd.f32 %v17622_v38, %v10948_v7  ;;  %v11075_v51 = vmax.f32 %v11011_v19, 0.0  ;;  %v10951_v58 = vmul.f32 %v17620_v17, %v17387_v40  ;;  %v11076_v23 = vmax.f32 %v11012_v56, 0.0  ;;  %v18932_v40 = vld [vmem:[#allocation27_spill] sm:$0xff] }
 0xe4c   :  { %11123 = vst.msk [vmem:[%s18084_s9 + $0x118] sm:$0xff] %vm4996_vm4, %v11059_v61  ;;  %v11016_v57 = vadd.f32 %v17622_v38, %v10949_v0  ;;  %v10952_v27 = vmul.f32 %v17620_v17, %v18931_v63  ;;  %v11017_v24 = vadd.f32 %v17622_v38, %v10950_v6  ;;  %v11077_v62 = vmax.f32 %v11013_v8, 0.0  ;;  %v18933_v61 = vld [vmem:[#allocation86_spill] sm:$0xff] }
 0xe4d   :  { %11124 = vst.msk [vmem:[%s18084_s9 + $0x120] sm:$0xff] %vm4996_vm4, %v11060_v21  ;;  %v10953_v18 = vmul.f32 %v17620_v17, %v18932_v40  ;;  %v11018_v20 = vadd.f32 %v17622_v38, %v10951_v58  ;;  %v11078_v44 = vmax.f32 %v11014_v34, 0.0  ;;  %v10954_v28 = vmul.f32 %v17620_v17, %v18933_v61 }
 0xe4e   :  { %11125 = vst.msk [vmem:[%s18084_s9 + $0x128] sm:$0xff] %vm4996_vm4, %v11061_v2  ;;  %v11019_v37 = vadd.f32 %v17622_v38, %v10952_v27  ;;  %v11079_v21 = vmax.f32 %v11015_v31, 0.0  ;;  %v10955_v42 = vmul.f32 %v17620_v17, %v18934_v46  ;;  %v11080_v2 = vmax.f32 %v11016_v57, 0.0 }
 0xe4f   :  { %11126 = vst.msk [vmem:[%s18084_s9 + $0x130] sm:$0xff] %vm4996_vm4, %v11062_v29  ;;  %v11020_v3 = vadd.f32 %v17622_v38, %v10953_v18  ;;  %v11021_v10 = vadd.f32 %v17622_v38, %v10954_v28  ;;  %v11081_v55 = vmax.f32 %v11017_v24, 0.0  ;;  %v11082_v45 = vmax.f32 %v11018_v20, 0.0 }
 0xe50   :  { %11127 = vst.msk [vmem:[%s18084_s9 + $0x138] sm:$0xff] %vm4996_vm4, %v11063_v33  ;;  %v11022_v29 = vadd.f32 %v17622_v38, %v10955_v42  ;;  %v11083_v17 = vmax.f32 %v11019_v37, 0.0  ;;  %v11087_v59 = vmax.f32 %v17651_v52, 0.0 }
 0xe51   :  { %11128 = vst.msk [vmem:[%s18084_s9 + $0x140] sm:$0xff] %vm4996_vm4, %v11064_v60  ;;  %v11084_v9 = vmax.f32 %v11020_v3, 0.0  ;;  %v11085_v33 = vmax.f32 %v11021_v10, 0.0 }
 0xe52   :  { %11129 = vst.msk [vmem:[%s18084_s9 + $0x148] sm:$0xff] %vm4996_vm4, %v11065_v1  ;;  %v11086_v38 = vmax.f32 %v11022_v29, 0.0 }
 0xe53   :  { %11130 = vst.msk [vmem:[%s18084_s9 + $0x150] sm:$0xff] %vm4996_vm4, %v11066_v5 }
 0xe54   :  { %11131 = vst.msk [vmem:[%s18084_s9 + $0x158] sm:$0xff] %vm4996_vm4, %v11067_v50 }
 0xe55   :  { %11132 = vst.msk [vmem:[%s18084_s9 + $0x160] sm:$0xff] %vm4996_vm4, %v11068_v14 }
 0xe56   :  { %11133 = vst.msk [vmem:[%s18084_s9 + $0x168] sm:$0xff] %vm4996_vm4, %v11069_v41 }
 0xe57   :  { %11134 = vst.msk [vmem:[%s18084_s9 + $0x170] sm:$0xff] %vm4996_vm4, %v11070_v12 }
 0xe58   :  { %11135 = vst.msk [vmem:[%s18084_s9 + $0x178] sm:$0xff] %vm4996_vm4, %v11071_v16 }
 0xe59   :  { %11136 = vst.msk [vmem:[%s18084_s9 + $0x180] sm:$0xff] %vm4996_vm4, %v11072_v47 }
 0xe5a   :  { %11137 = vst.msk [vmem:[%s18084_s9 + $0x188] sm:$0xff] %vm4996_vm4, %v11073_v11 }
 0xe5b   :  { %11138 = vst.msk [vmem:[%s18084_s9 + $0x190] sm:$0xff] %vm4996_vm4, %v11074_v53 }
 0xe5c   :  { %11139 = vst.msk [vmem:[%s18084_s9 + $0x198] sm:$0xff] %vm4996_vm4, %v11075_v51 }
 0xe5d   :  { %11140 = vst.msk [vmem:[%s18084_s9 + $0x1a0] sm:$0xff] %vm4996_vm4, %v11076_v23 }
 0xe5e   :  { %11141 = vst.msk [vmem:[%s18084_s9 + $0x1a8] sm:$0xff] %vm4996_vm4, %v11077_v62 }
 0xe5f   :  { %11142 = vst.msk [vmem:[%s18084_s9 + $0x1b0] sm:$0xff] %vm4996_vm4, %v11078_v44 }
 0xe60   :  { %11143 = vst.msk [vmem:[%s18084_s9 + $0x1b8] sm:$0xff] %vm4996_vm4, %v11079_v21 }
 0xe61   :  { %11144 = vst.msk [vmem:[%s18084_s9 + $0x1c0] sm:$0xff] %vm4996_vm4, %v11080_v2 }
 0xe62   :  { %11145 = vst.msk [vmem:[%s18084_s9 + $0x1c8] sm:$0xff] %vm4996_vm4, %v11081_v55 }
 0xe63   :  { %11146 = vst.msk [vmem:[%s18084_s9 + $0x1d0] sm:$0xff] %vm4996_vm4, %v11082_v45 }
 0xe64   :  { %11147 = vst.msk [vmem:[%s18084_s9 + $0x1d8] sm:$0xff] %vm4996_vm4, %v11083_v17 }
 0xe65   :  { %11148 = vst.msk [vmem:[%s18084_s9 + $0x1e0] sm:$0xff] %vm4996_vm4, %v11084_v9 }
 0xe66   :  { %11149 = vst.msk [vmem:[%s18084_s9 + $0x1e8] sm:$0xff] %vm4996_vm4, %v11085_v33 }
 0xe67   :  { %11150 = vst.msk [vmem:[%s18084_s9 + $0x1f0] sm:$0xff] %vm4996_vm4, %v11086_v38 }
 0xe68   :  { %11151 = vst.msk [vmem:[%s18084_s9 + $0x1f8] sm:$0xff] %vm4996_vm4, %v11087_v59 }

</bundles_post_ra>
